<compile_context>
chip_gen: v7x
topology: tpu7x:2x2x1
jax: 0.10.0
libtpu: 0.0.40
codegen_flags: <defaults>
</compile_context>

<pallas_src>
import math
from functools import partial

import numpy as np
import jax
import jax.numpy as jnp
from jax import lax
from jax.experimental import pallas as pl
from jax.experimental.pallas import tpu as pltpu

# ----------------------------- config (small, consistent with the module) ----
IMG_SIZE = 16
PATCH = 4
IN_CHANS = 3
EMBED_DIM = 32
DEPTH = 2
NUM_HEADS = 4
DEC_EMBED_DIM = 32
DEC_DEPTH = 2
DEC_NUM_HEADS = 4
MLP_RATIO = 4.0
LN_EPS = 1e-5                      # nn.LayerNorm default
GRID = IMG_SIZE // PATCH
NUM_PATCHES = GRID * GRID
PATCH_DIM = PATCH * PATCH * IN_CHANS

_PARALLEL = pltpu.CompilerParams(dimension_semantics=("parallel",))


# ----------------------------- in-kernel math helpers -------------------------
def _gelu_tanh(x):
    # TODO(synk): reference nn.GELU is exact (erf); erf lowering inside Mosaic is
    # not guaranteed, so the tanh approximation is used inside the fused kernel.
    c = math.sqrt(2.0 / math.pi)
    return 0.5 * x * (1.0 + jnp.tanh(c * (x + 0.044715 * x * x * x)))


def _ln(x, g, b, eps):
    mu = jnp.mean(x, axis=-1, keepdims=True)
    var = jnp.mean((x - mu) ** 2, axis=-1, keepdims=True)
    return (x - mu) * lax.rsqrt(var + eps) * g + b


def _run_blocks(x, *, depth, num_heads, eps,
                ln_ref, wqkv_ref, bqkv_ref, wo_ref, proj_b_ref,
                fc1_w_ref, fc1_b_ref, fc2_w_ref, fc2_b_ref):
    """Unrolled pre-norm transformer stack on a single (S, D) token slab.

    Weight stacks (leading depth axis, per-head q/k/v/proj slabs) are sliced with
    static ref indices so activations never need lane slicing.
    """
    S, D = x.shape
    dh = D // num_heads
    scale = dh ** -0.5
    for l in range(depth):
        # ---- attention branch ----
        h = _ln(x, ln_ref[l, 0], ln_ref[l, 1], eps)
        acc = None
        for hh in range(num_heads):
            q = jnp.dot(h, wqkv_ref[l, 0, hh],
                        preferred_element_type=jnp.float32) + bqkv_ref[l, 0, hh]
            k = jnp.dot(h, wqkv_ref[l, 1, hh],
                        preferred_element_type=jnp.float32) + bqkv_ref[l, 1, hh]
            v = jnp.dot(h, wqkv_ref[l, 2, hh],
                        preferred_element_type=jnp.float32) + bqkv_ref[l, 2, hh]
            s = lax.dot_general(q, k, (((1,), (1,)), ((), ())),
                                preferred_element_type=jnp.float32) * scale
            s = s - jnp.max(s, axis=-1, keepdims=True)
            p = jnp.exp(s)
            p = p / jnp.sum(p, axis=-1, keepdims=True)        # exact softmax
            o = jnp.dot(p, v, preferred_element_type=jnp.float32)          # (S, dh)
            c = jnp.dot(o, wo_ref[l, hh], preferred_element_type=jnp.float32)  # (S, D)
            acc = c if acc is None else acc + c
        x = x + acc + proj_b_ref[l]
        # ---- MLP branch ----
        h = _ln(x, ln_ref[l, 2], ln_ref[l, 3], eps)
        h = jnp.dot(h, fc1_w_ref[l], preferred_element_type=jnp.float32) + fc1_b_ref[l]
        h = _gelu_tanh(h)
        h = jnp.dot(h, fc2_w_ref[l], preferred_element_type=jnp.float32) + fc2_b_ref[l]
        x = x + h
    return x


# ----------------------------- fused encoder kernel ---------------------------
def _encoder_kernel(patches_ref, idk_ref, patch_w_ref, patch_b_ref, cls_ref, pos_ref,
                    ln_ref, wqkv_ref, bqkv_ref, wo_ref, proj_b_ref,
                    fc1_w_ref, fc1_b_ref, fc2_w_ref, fc2_b_ref,
                    norm_g_ref, norm_b_ref, dembed_w_ref, dembed_b_ref,
                    o_ref, *, depth, num_heads, eps):
    L = patches_ref.shape[1]
    # patch embed + patch pos-embed (rows 1.. of the cls-augmented pos table)
    xp = (jnp.dot(patches_ref[0], patch_w_ref[...], preferred_element_type=jnp.float32)
          + patch_b_ref[...] + pos_ref[1:, :])                                 # (L, D)

    # keep-token gather + cls prepend as one exact one-hot matmul
    # (row 0 of ids carries a -1 sentinel -> all-zero selector row -> cls token)
    ikp = idk_ref[0]                                                           # (S, 1) int32
    S = ikp.shape[0]
    sel = (ikp == lax.broadcasted_iota(jnp.int32, (S, L), 1)).astype(jnp.float32)
    cls_vec = cls_ref[...] + pos_ref[0:1, :]                                   # (1, D)
    x = (jnp.dot(sel, xp, preferred_element_type=jnp.float32)
         + (ikp == -1).astype(jnp.float32) * cls_vec)                          # (S, D)

    # encoder transformer stack (unrolled over depth, in VMEM)
    x = _run_blocks(x, depth=depth, num_heads=num_heads, eps=eps,
                    ln_ref=ln_ref, wqkv_ref=wqkv_ref, bqkv_ref=bqkv_ref, wo_ref=wo_ref,
                    proj_b_ref=proj_b_ref, fc1_w_ref=fc1_w_ref, fc1_b_ref=fc1_b_ref,
                    fc2_w_ref=fc2_w_ref, fc2_b_ref=fc2_b_ref)

    # final encoder LayerNorm fused with decoder_embed
    h = _ln(x, norm_g_ref[...], norm_b_ref[...], eps)
    o_ref[0] = (jnp.dot(h, dembed_w_ref[...], preferred_element_type=jnp.float32)
                + dembed_b_ref[...]).astype(o_ref.dtype)


# ----------------------------- fused decoder kernel ---------------------------
def _decoder_kernel(latent_ref, idr_ref, target_ref, mask_tok_ref, dpos_ref,
                    ln_ref, wqkv_ref, bqkv_ref, wo_ref, proj_b_ref,
                    fc1_w_ref, fc1_b_ref, fc2_w_ref, fc2_b_ref,
                    dnorm_g_ref, dnorm_b_ref, pred_w_ref, pred_b_ref,
                    pred_ref, loss_ref, *, depth, num_heads, eps):
    lat = latent_ref[0].astype(jnp.float32)                                    # (S, Dd)
    S = lat.shape[0]
    # ids_restore shifted by +1 with a 0 in the cls row: value i selects latent
    # row i when i < S (cls or kept token), otherwise the mask token.
    rp = idr_ref[0]                                                            # (L+1, 1) int32
    L1 = rp.shape[0]
    sel = (rp == lax.broadcasted_iota(jnp.int32, (L1, S), 1)).astype(jnp.float32)
    is_masked = (rp >= S).astype(jnp.float32)                                  # (L+1, 1)
    x = (jnp.dot(sel, lat, preferred_element_type=jnp.float32)
         + is_masked * mask_tok_ref[...] + dpos_ref[...])                      # (L+1, Dd)

    # decoder transformer stack
    x = _run_blocks(x, depth=depth, num_heads=num_heads, eps=eps,
                    ln_ref=ln_ref, wqkv_ref=wqkv_ref, bqkv_ref=bqkv_ref, wo_ref=wo_ref,
                    proj_b_ref=proj_b_ref, fc1_w_ref=fc1_w_ref, fc1_b_ref=fc1_b_ref,
                    fc2_w_ref=fc2_w_ref, fc2_b_ref=fc2_b_ref)

    # decoder norm + prediction head on the non-cls rows only
    xt = x[1:, :]                                                              # (L, Dd)
    h = _ln(xt, dnorm_g_ref[...], dnorm_b_ref[...], eps)
    pred = (jnp.dot(h, pred_w_ref[...], preferred_element_type=jnp.float32)
            + pred_b_ref[...])                                                 # (L, P)
    pred_ref[0] = pred.astype(pred_ref.dtype)

    # masked per-patch MSE terms (reduced + normalized by one fused XLA op outside)
    d = pred - target_ref[0]
    per_patch = jnp.mean(d * d, axis=-1, keepdims=True)                        # (L, 1)
    loss_ref[0] = (per_patch * is_masked[1:, :]).astype(loss_ref.dtype)


# ----------------------------- BlockSpec helpers ------------------------------
def _batch_spec(shape):
    """Block over the leading batch axis; trailing dims stay whole."""
    nd = len(shape)
    return pl.BlockSpec((1,) + tuple(shape[1:]),
                        lambda b, _n=nd: (b,) + (0,) * (_n - 1))


def _rep_spec(shape):
    """Full-array block, identical for every grid step (weights: one DMA total)."""
    nd = len(shape)
    return pl.BlockSpec(tuple(shape), lambda b, _n=nd: (0,) * _n)


# ----------------------------- pallas_call wrappers ---------------------------
def encode(params, patches, ids_keep_p):
    B, L, P = patches.shape
    S = ids_keep_p.shape[1]
    enc = params["enc"]
    hidden = int(EMBED_DIM * MLP_RATIO)
    args = (patches, ids_keep_p, params["patch_w"], params["patch_b"],
            params["cls_token"], params["pos_embed"],
            enc["ln"], enc["w_qkv"], enc["b_qkv"], enc["wo"], enc["proj_b"],
            enc["fc1_w"], enc["fc1_b"], enc["fc2_w"], enc["fc2_b"],
            params["norm_g"], params["norm_b"],
            params["dec_embed_w"], params["dec_embed_b"])
    in_specs = ([_batch_spec(patches.shape), _batch_spec(ids_keep_p.shape)]
                + [_rep_spec(a.shape) for a in args[2:]])
    flops = 2 * B * (L * P * EMBED_DIM + S * L * EMBED_DIM
                     + DEPTH * S * EMBED_DIM * (5 * EMBED_DIM + 2 * hidden)
                     + S * EMBED_DIM * DEC_EMBED_DIM)
    bytes_accessed = (sum(int(a.size) * a.dtype.itemsize for a in args)
                      + B * S * DEC_EMBED_DIM * 4)
    return pl.pallas_call(
        partial(_encoder_kernel, depth=DEPTH, num_heads=NUM_HEADS, eps=LN_EPS),
        grid=(B,),
        in_specs=in_specs,
        out_specs=_batch_spec((B, S, DEC_EMBED_DIM)),
        out_shape=jax.ShapeDtypeStruct((B, S, DEC_EMBED_DIM), jnp.float32),
        compiler_params=_PARALLEL,
        cost_estimate=pl.CostEstimate(
            flops=int(flops),
            transcendentals=int(B * DEPTH * (NUM_HEADS * S * S + S * hidden)),
            bytes_accessed=int(bytes_accessed)),
    )(*args)


def decode(params, latent, ids_restore_p, target):
    B, S, Dd = latent.shape
    _, L, P = target.shape
    dec = params["dec"]
    hidden = int(Dd * MLP_RATIO)
    args = (latent, ids_restore_p, target,
            params["mask_token"], params["dec_pos_embed"],
            dec["ln"], dec["w_qkv"], dec["b_qkv"], dec["wo"], dec["proj_b"],
            dec["fc1_w"], dec["fc1_b"], dec["fc2_w"], dec["fc2_b"],
            params["dec_norm_g"], params["dec_norm_b"],
            params["dec_pred_w"], params["dec_pred_b"])
    in_specs = ([_batch_spec(latent.shape), _batch_spec(ids_restore_p.shape),
                 _batch_spec(target.shape)]
                + [_rep_spec(a.shape) for a in args[3:]])
    flops = 2 * B * ((L + 1) * S * Dd
                     + DEC_DEPTH * (L + 1) * Dd * (5 * Dd + 2 * hidden)
                     + L * Dd * P)
    bytes_accessed = (sum(int(a.size) * a.dtype.itemsize for a in args)
                      + (B * L * P + B * L) * 4)
    pred, loss_terms = pl.pallas_call(
        partial(_decoder_kernel, depth=DEC_DEPTH, num_heads=DEC_NUM_HEADS, eps=LN_EPS),
        grid=(B,),
        in_specs=in_specs,
        out_specs=(_batch_spec((B, L, P)), _batch_spec((B, L, 1))),
        out_shape=(jax.ShapeDtypeStruct((B, L, P), jnp.float32),
                   jax.ShapeDtypeStruct((B, L, 1), jnp.float32)),
        compiler_params=_PARALLEL,
        cost_estimate=pl.CostEstimate(
            flops=int(flops),
            transcendentals=int(B * DEC_DEPTH * (DEC_NUM_HEADS * (L + 1) ** 2
                                                 + (L + 1) * hidden)),
            bytes_accessed=int(bytes_accessed)),
    )(*args)
    return pred, loss_terms


# ----------------------------- parameter init --------------------------------
def _get_1d_sincos(embed_dim, pos):
    omega = np.arange(embed_dim // 2, dtype=np.float64) / (embed_dim / 2.0)
    omega = 1.0 / 10000 ** omega
    out = np.einsum("m,d->md", pos.reshape(-1), omega)
    return np.concatenate([np.sin(out), np.cos(out)], axis=1)


def get_2d_sincos_pos_embed(embed_dim, grid_size, cls_token=False):
    gh, gw = grid_size
    grid_h = np.arange(gh, dtype=np.float64)
    grid_w = np.arange(gw, dtype=np.float64)
    grid = np.meshgrid(grid_w, grid_h)          # w goes first (MAE convention)
    grid = np.stack(grid, axis=0).reshape(2, 1, gh, gw)
    emb_h = _get_1d_sincos(embed_dim // 2, grid[0])
    emb_w = _get_1d_sincos(embed_dim // 2, grid[1])
    emb = np.concatenate([emb_h, emb_w], axis=1)
    if cls_token:
        emb = np.concatenate([np.zeros([1, embed_dim]), emb], axis=0)
    return emb.astype(np.float32)


def _xavier(key, fan_in, fan_out):
    a = math.sqrt(6.0 / (fan_in + fan_out))
    return jax.random.uniform(key, (fan_in, fan_out), jnp.float32, -a, a)


def init_block_params(key, dim, mlp_ratio):
    hidden = int(dim * mlp_ratio)
    k = jax.random.split(key, 4)
    return {
        "ln1_g": jnp.ones((1, dim), jnp.float32),
        "ln1_b": jnp.zeros((1, dim), jnp.float32),
        "qkv_w": _xavier(k[0], dim, 3 * dim),
        "qkv_b": jnp.zeros((1, 3 * dim), jnp.float32),
        "proj_w": _xavier(k[1], dim, dim),
        "proj_b": jnp.zeros((1, dim), jnp.float32),
        "ln2_g": jnp.ones((1, dim), jnp.float32),
        "ln2_b": jnp.zeros((1, dim), jnp.float32),
        "fc1_w": _xavier(k[2], dim, hidden),
        "fc1_b": jnp.zeros((1, hidden), jnp.float32),
        "fc2_w": _xavier(k[3], hidden, dim),
        "fc2_b": jnp.zeros((1, dim), jnp.float32),
    }


def _pack_blocks(blocks, dim, num_heads):
    """Stack per-layer weights along a leading depth axis, with per-head q/k/v/proj slabs."""
    depth = len(blocks)
    dh = dim // num_heads

    def st(name):
        return jnp.stack([blk[name] for blk in blocks])

    qkv_w = st("qkv_w")                                               # (depth, D, 3D)
    w_qkv = qkv_w.reshape(depth, dim, 3, num_heads, dh).transpose(0, 2, 3, 1, 4)
    b_qkv = st("qkv_b").reshape(depth, 3, num_heads, 1, dh)
    wo = st("proj_w").reshape(depth, num_heads, dh, dim)              # rows are head-major
    ln = jnp.stack([st("ln1_g"), st("ln1_b"), st("ln2_g"), st("ln2_b")], axis=1)
    return {
        "ln": ln,                                                     # (depth, 4, 1, D)
        "w_qkv": w_qkv,                                               # (depth, 3, H, D, dh)
        "b_qkv": b_qkv,                                               # (depth, 3, H, 1, dh)
        "wo": wo,                                                     # (depth, H, dh, D)
        "proj_b": st("proj_b"),                                       # (depth, 1, D)
        "fc1_w": st("fc1_w"), "fc1_b": st("fc1_b"),
        "fc2_w": st("fc2_w"), "fc2_b": st("fc2_b"),
    }


def init_params(key):
    ks = jax.random.split(key, 6 + DEPTH + DEC_DEPTH)
    it = iter(ks)

    # PatchEmbed conv weight, xavier_uniform on flattened view (embed_dim, C*ph*pw)
    patch_w = _xavier(next(it), PATCH_DIM, EMBED_DIM)
    bound = 1.0 / math.sqrt(PATCH_DIM)
    patch_b = jax.random.uniform(next(it), (1, EMBED_DIM), jnp.float32, -bound, bound)

    cls_token = 0.02 * jax.random.normal(next(it), (1, EMBED_DIM), jnp.float32)
    mask_token = 0.02 * jax.random.normal(next(it), (1, DEC_EMBED_DIM), jnp.float32)

    pos_embed = jnp.asarray(
        get_2d_sincos_pos_embed(EMBED_DIM, (GRID, GRID), cls_token=True))       # (L+1, D)
    dec_pos_embed = jnp.asarray(
        get_2d_sincos_pos_embed(DEC_EMBED_DIM, (GRID, GRID), cls_token=True))   # (L+1, Dd)

    enc_blocks = [init_block_params(next(it), EMBED_DIM, MLP_RATIO) for _ in range(DEPTH)]
    dec_blocks = [init_block_params(next(it), DEC_EMBED_DIM, MLP_RATIO)
                  for _ in range(DEC_DEPTH)]

    return {
        "patch_w": patch_w, "patch_b": patch_b,
        "cls_token": cls_token, "mask_token": mask_token,
        "pos_embed": pos_embed, "dec_pos_embed": dec_pos_embed,
        "enc": _pack_blocks(enc_blocks, EMBED_DIM, NUM_HEADS),
        "dec": _pack_blocks(dec_blocks, DEC_EMBED_DIM, DEC_NUM_HEADS),
        "norm_g": jnp.ones((1, EMBED_DIM), jnp.float32),
        "norm_b": jnp.zeros((1, EMBED_DIM), jnp.float32),
        "dec_embed_w": _xavier(next(it), EMBED_DIM, DEC_EMBED_DIM),
        "dec_embed_b": jnp.zeros((1, DEC_EMBED_DIM), jnp.float32),
        "dec_norm_g": jnp.ones((1, DEC_EMBED_DIM), jnp.float32),
        "dec_norm_b": jnp.zeros((1, DEC_EMBED_DIM), jnp.float32),
        "dec_pred_w": _xavier(next(it), DEC_EMBED_DIM, PATCH_DIM),
        "dec_pred_b": jnp.zeros((1, PATCH_DIM), jnp.float32),
    }


# ----------------------------- model glue (plain JAX) ------------------------
def patchify_conv_order(imgs):
    """(N, C, H, W) -> (N, L, C*ph*pw), flattened like Conv2d weight (c, p, q)."""
    N, C, H, W = imgs.shape
    h, w = H // PATCH, W // PATCH
    x = imgs.reshape(N, C, h, PATCH, w, PATCH)
    x = x.transpose(0, 2, 4, 1, 3, 5)                       # n h w c p q
    return x.reshape(N, h * w, C * PATCH * PATCH)


def patchify_target(imgs):
    """MAE patchify: 'nchpwq->nhwpqc' -> (N, L, ph*pw*C)."""
    N, C, H, W = imgs.shape
    h, w = H // PATCH, W // PATCH
    x = imgs.reshape(N, C, h, PATCH, w, PATCH)
    x = x.transpose(0, 2, 4, 3, 5, 1)                       # n h w p q c
    return x.reshape(N, h * w, PATCH * PATCH * C)


def mae_forward(params, imgs, mask_ratio=0.75, mask_key=None, norm_pix_loss=False):
    N = imgs.shape[0]
    L = NUM_PATCHES
    len_keep = int(L * (1 - mask_ratio))

    patches = patchify_conv_order(imgs)                     # conv-order for patch_embed
    target = patchify_target(imgs)                          # MAE order for the loss
    if norm_pix_loss:
        mean = target.mean(axis=-1, keepdims=True)
        var = target.var(axis=-1, keepdims=True)
        target = (target - mean) / (var + 1e-6) ** 0.5

    # TODO(synk): argsort-based random masking has no clean Pallas equivalent;
    # only the index bookkeeping stays in XLA (tiny int ops that fuse).
    noise = jax.random.uniform(mask_key, (N, L), jnp.float32)
    ids_shuffle = jnp.argsort(noise, axis=1).astype(jnp.int32)
    ids_restore = jnp.argsort(ids_shuffle, axis=1).astype(jnp.int32)
    ids_keep = ids_shuffle[:, :len_keep]
    mask = (ids_restore >= len_keep).astype(jnp.float32)    # == reference 0/1-template gather

    # index tensors consumed by the kernels' exact one-hot gathers
    ids_keep_p = jnp.concatenate(
        [jnp.full((N, 1), -1, jnp.int32), ids_keep], axis=1)[..., None]        # (N, K+1, 1)
    ids_restore_p = jnp.concatenate(
        [jnp.zeros((N, 1), jnp.int32), ids_restore + 1], axis=1)[..., None]    # (N, L+1, 1)

    latent_dec = encode(params, patches, ids_keep_p)        # (N, K+1, Dd), decoder-embedded
    pred, loss_terms = decode(params, latent_dec, ids_restore_p, target)
    loss = jnp.sum(loss_terms) / jnp.sum(mask)
    return loss, pred, mask


# ----------------------------- main -------------------------------------------
if __name__ == "__main__":
    root = jax.random.PRNGKey(0)
    k_params, k_imgs, k_mask = jax.random.split(root, 3)

    params = init_params(k_params)
    imgs = jax.random.normal(k_imgs, (2, IN_CHANS, IMG_SIZE, IMG_SIZE), jnp.float32)

    fwd = jax.jit(partial(mae_forward, mask_ratio=0.75))
    loss, pred, mask = fwd(params, imgs, mask_key=k_mask)
    jax.block_until_ready((loss, pred, mask))

    assert pred.shape == (2, NUM_PATCHES, PATCH_DIM)
    assert mask.shape == (2, NUM_PATCHES)
    assert bool(jnp.isfinite(loss))
    print("KERNEL_OK")
</pallas_src>

<mosaic_0001>
module attributes {stable_mosaic.version = 11 : i64} {
  func.func @_encoder_kernel(%arg0: i32, %arg1: memref<1x16x48xf32, #tpu.memory_space<vmem>>, %arg2: memref<1x5x1xi32, #tpu.memory_space<vmem>>, %arg3: memref<48x32xf32, #tpu.memory_space<vmem>>, %arg4: memref<1x32xf32, #tpu.memory_space<vmem>>, %arg5: memref<1x32xf32, #tpu.memory_space<vmem>>, %arg6: memref<17x32xf32, #tpu.memory_space<vmem>>, %arg7: memref<2x4x1x32xf32, #tpu.memory_space<vmem>>, %arg8: memref<2x3x4x32x8xf32, #tpu.memory_space<vmem>>, %arg9: memref<2x3x4x1x8xf32, #tpu.memory_space<vmem>>, %arg10: memref<2x4x8x32xf32, #tpu.memory_space<vmem>>, %arg11: memref<2x1x32xf32, #tpu.memory_space<vmem>>, %arg12: memref<2x32x128xf32, #tpu.memory_space<vmem>>, %arg13: memref<2x1x128xf32, #tpu.memory_space<vmem>>, %arg14: memref<2x128x32xf32, #tpu.memory_space<vmem>>, %arg15: memref<2x1x32xf32, #tpu.memory_space<vmem>>, %arg16: memref<1x32xf32, #tpu.memory_space<vmem>>, %arg17: memref<1x32xf32, #tpu.memory_space<vmem>>, %arg18: memref<32x32xf32, #tpu.memory_space<vmem>>, %arg19: memref<1x32xf32, #tpu.memory_space<vmem>>, %arg20: memref<1x5x32xf32, #tpu.memory_space<vmem>>) attributes {dimension_semantics = [#tpu.dimension_semantics<parallel>], iteration_bounds = array<i64: 2>, scalar_prefetch = 0 : i64, scratch_operands = 0 : i64, tpu.core_type = #tpu.core_type<tc>, window_params = [{transform_indices = @transform_0, window_bounds = array<i64: 1, 16, 48>}, {transform_indices = @transform_1, window_bounds = array<i64: 1, 5, 1>}, {pipeline_mode = #tpu.pipeline_mode<synchronous>, transform_indices = @transform_2, window_bounds = array<i64: 48, 32>}, {pipeline_mode = #tpu.pipeline_mode<synchronous>, transform_indices = @transform_3, window_bounds = array<i64: 1, 32>}, {pipeline_mode = #tpu.pipeline_mode<synchronous>, transform_indices = @transform_4, window_bounds = array<i64: 1, 32>}, {pipeline_mode = #tpu.pipeline_mode<synchronous>, transform_indices = @transform_5, window_bounds = array<i64: 17, 32>}, {pipeline_mode = #tpu.pipeline_mode<synchronous>, transform_indices = @transform_6, window_bounds = array<i64: 2, 4, 1, 32>}, {pipeline_mode = #tpu.pipeline_mode<synchronous>, transform_indices = @transform_7, window_bounds = array<i64: 2, 3, 4, 32, 8>}, {pipeline_mode = #tpu.pipeline_mode<synchronous>, transform_indices = @transform_8, window_bounds = array<i64: 2, 3, 4, 1, 8>}, {pipeline_mode = #tpu.pipeline_mode<synchronous>, transform_indices = @transform_9, window_bounds = array<i64: 2, 4, 8, 32>}, {pipeline_mode = #tpu.pipeline_mode<synchronous>, transform_indices = @transform_10, window_bounds = array<i64: 2, 1, 32>}, {pipeline_mode = #tpu.pipeline_mode<synchronous>, transform_indices = @transform_11, window_bounds = array<i64: 2, 32, 128>}, {pipeline_mode = #tpu.pipeline_mode<synchronous>, transform_indices = @transform_12, window_bounds = array<i64: 2, 1, 128>}, {pipeline_mode = #tpu.pipeline_mode<synchronous>, transform_indices = @transform_13, window_bounds = array<i64: 2, 128, 32>}, {pipeline_mode = #tpu.pipeline_mode<synchronous>, transform_indices = @transform_14, window_bounds = array<i64: 2, 1, 32>}, {pipeline_mode = #tpu.pipeline_mode<synchronous>, transform_indices = @transform_15, window_bounds = array<i64: 1, 32>}, {pipeline_mode = #tpu.pipeline_mode<synchronous>, transform_indices = @transform_16, window_bounds = array<i64: 1, 32>}, {pipeline_mode = #tpu.pipeline_mode<synchronous>, transform_indices = @transform_17, window_bounds = array<i64: 32, 32>}, {pipeline_mode = #tpu.pipeline_mode<synchronous>, transform_indices = @transform_18, window_bounds = array<i64: 1, 32>}, {transform_indices = @transform_19, window_bounds = array<i64: 1, 5, 32>}]} {
    %c0 = arith.constant 0 : index
    %c0_0 = arith.constant 0 : index
    %c0_1 = arith.constant 0 : index
    %0 = vector.load %arg1[%c0, %c0_0, %c0_1] : memref<1x16x48xf32, #tpu.memory_space<vmem>>, vector<1x16x48xf32>
    %1 = vector.shape_cast %0 : vector<1x16x48xf32> to vector<16x48xf32>
    %c0_2 = arith.constant 0 : index
    %c0_3 = arith.constant 0 : index
    %2 = vector.load %arg3[%c0_2, %c0_3] : memref<48x32xf32, #tpu.memory_space<vmem>>, vector<48x32xf32>
    %cst = arith.constant dense<0.000000e+00> : vector<16x32xf32>
    %3 = tpu.matmul %1, %2, %cst {dimension_numbers = #tpu.dot_dimension_numbers<[1], [0], [0], [1], [0, 0, 1, 1], [], []>} : vector<16x48xf32>, vector<48x32xf32>, vector<16x32xf32> -> vector<16x32xf32>
    %c0_4 = arith.constant 0 : index
    %c0_5 = arith.constant 0 : index
    %4 = vector.load %arg4[%c0_4, %c0_5] : memref<1x32xf32, #tpu.memory_space<vmem>>, vector<1x32xf32>
    %5 = vector.broadcast %4 : vector<1x32xf32> to vector<16x32xf32>
    %6 = arith.addf %3, %5 : vector<16x32xf32>
    %c1 = arith.constant 1 : index
    %c0_6 = arith.constant 0 : index
    %7 = vector.load %arg6[%c1, %c0_6] : memref<17x32xf32, #tpu.memory_space<vmem>>, vector<16x32xf32>
    %8 = arith.addf %6, %7 : vector<16x32xf32>
    %c0_7 = arith.constant 0 : index
    %c0_8 = arith.constant 0 : index
    %c0_9 = arith.constant 0 : index
    %9 = vector.load %arg2[%c0_7, %c0_8, %c0_9] : memref<1x5x1xi32, #tpu.memory_space<vmem>>, vector<1x5x1xi32>
    %10 = vector.shape_cast %9 : vector<1x5x1xi32> to vector<5x1xi32>
    %11 = tpu.iota {dimensions = array<i32: 1>} : vector<5x16xi32>
    %12 = vector.broadcast %10 : vector<5x1xi32> to vector<5x16xi32>
    %13 = arith.cmpi eq, %12, %11 : vector<5x16xi32>
    %14 = arith.extui %13 : vector<5x16xi1> to vector<5x16xi32>
    %15 = arith.sitofp %14 : vector<5x16xi32> to vector<5x16xf32>
    %c0_10 = arith.constant 0 : index
    %c0_11 = arith.constant 0 : index
    %16 = vector.load %arg5[%c0_10, %c0_11] : memref<1x32xf32, #tpu.memory_space<vmem>>, vector<1x32xf32>
    %c0_12 = arith.constant 0 : index
    %c0_13 = arith.constant 0 : index
    %17 = vector.load %arg6[%c0_12, %c0_13] : memref<17x32xf32, #tpu.memory_space<vmem>>, vector<1x32xf32>
    %18 = arith.addf %16, %17 : vector<1x32xf32>
    %cst_14 = arith.constant dense<0.000000e+00> : vector<5x32xf32>
    %19 = tpu.matmul %15, %8, %cst_14 {dimension_numbers = #tpu.dot_dimension_numbers<[1], [0], [0], [1], [0, 0, 1, 1], [], []>} : vector<5x16xf32>, vector<16x32xf32>, vector<5x32xf32> -> vector<5x32xf32>
    %c-1_i32 = arith.constant -1 : i32
    %20 = vector.broadcast %c-1_i32 : i32 to vector<5x1xi32>
    %21 = arith.cmpi eq, %10, %20 : vector<5x1xi32>
    %22 = arith.extui %21 : vector<5x1xi1> to vector<5x1xi32>
    %23 = arith.sitofp %22 : vector<5x1xi32> to vector<5x1xf32>
    %24 = vector.broadcast %23 : vector<5x1xf32> to vector<5x32xf32>
    %25 = vector.broadcast %18 : vector<1x32xf32> to vector<5x32xf32>
    %26 = arith.mulf %24, %25 : vector<5x32xf32>
    %27 = arith.addf %19, %26 : vector<5x32xf32>
    %c0_15 = arith.constant 0 : index
    %c0_16 = arith.constant 0 : index
    %c0_17 = arith.constant 0 : index
    %c0_18 = arith.constant 0 : index
    %28 = vector.load %arg7[%c0_15, %c0_16, %c0_17, %c0_18] : memref<2x4x1x32xf32, #tpu.memory_space<vmem>>, vector<1x1x1x32xf32>
    %29 = vector.shape_cast %28 : vector<1x1x1x32xf32> to vector<1x32xf32>
    %c0_19 = arith.constant 0 : index
    %c1_20 = arith.constant 1 : index
    %c0_21 = arith.constant 0 : index
    %c0_22 = arith.constant 0 : index
    %30 = vector.load %arg7[%c0_19, %c1_20, %c0_21, %c0_22] : memref<2x4x1x32xf32, #tpu.memory_space<vmem>>, vector<1x1x1x32xf32>
    %31 = vector.shape_cast %30 : vector<1x1x1x32xf32> to vector<1x32xf32>
    %cst_23 = arith.constant dense<0.000000e+00> : vector<5xf32>
    %32 = vector.multi_reduction <add>, %27, %cst_23 [1] : vector<5x32xf32> to vector<5xf32>
    %33 = vector.shape_cast %32 : vector<5xf32> to vector<5x1xf32>
    %cst_24 = arith.constant 3.200000e+01 : f32
    %34 = vector.broadcast %cst_24 : f32 to vector<5x1xf32>
    %35 = arith.divf %33, %34 : vector<5x1xf32>
    %36 = vector.broadcast %35 : vector<5x1xf32> to vector<5x32xf32>
    %37 = arith.subf %27, %36 : vector<5x32xf32>
    %38 = arith.mulf %37, %37 : vector<5x32xf32>
    %cst_25 = arith.constant dense<0.000000e+00> : vector<5xf32>
    %39 = vector.multi_reduction <add>, %38, %cst_25 [1] : vector<5x32xf32> to vector<5xf32>
    %40 = vector.shape_cast %39 : vector<5xf32> to vector<5x1xf32>
    %cst_26 = arith.constant 3.200000e+01 : f32
    %41 = vector.broadcast %cst_26 : f32 to vector<5x1xf32>
    %42 = arith.divf %40, %41 : vector<5x1xf32>
    %43 = vector.broadcast %35 : vector<5x1xf32> to vector<5x32xf32>
    %44 = arith.subf %27, %43 : vector<5x32xf32>
    %cst_27 = arith.constant 9.99999974E-6 : f32
    %45 = vector.broadcast %cst_27 : f32 to vector<5x1xf32>
    %46 = arith.addf %42, %45 : vector<5x1xf32>
    %47 = math.rsqrt %46 : vector<5x1xf32>
    %48 = vector.broadcast %47 : vector<5x1xf32> to vector<5x32xf32>
    %49 = arith.mulf %44, %48 : vector<5x32xf32>
    %50 = vector.broadcast %29 : vector<1x32xf32> to vector<5x32xf32>
    %51 = arith.mulf %49, %50 : vector<5x32xf32>
    %52 = vector.broadcast %31 : vector<1x32xf32> to vector<5x32xf32>
    %53 = arith.addf %51, %52 : vector<5x32xf32>
    %c0_28 = arith.constant 0 : index
    %c0_29 = arith.constant 0 : index
    %c0_30 = arith.constant 0 : index
    %c0_31 = arith.constant 0 : index
    %c0_32 = arith.constant 0 : index
    %54 = vector.load %arg8[%c0_28, %c0_29, %c0_30, %c0_31, %c0_32] : memref<2x3x4x32x8xf32, #tpu.memory_space<vmem>>, vector<1x1x1x32x8xf32>
    %55 = vector.shape_cast %54 : vector<1x1x1x32x8xf32> to vector<32x8xf32>
    %cst_33 = arith.constant dense<0.000000e+00> : vector<5x8xf32>
    %56 = tpu.matmul %53, %55, %cst_33 {dimension_numbers = #tpu.dot_dimension_numbers<[1], [0], [0], [1], [0, 0, 1, 1], [], []>} : vector<5x32xf32>, vector<32x8xf32>, vector<5x8xf32> -> vector<5x8xf32>
    %c0_34 = arith.constant 0 : index
    %c0_35 = arith.constant 0 : index
    %c0_36 = arith.constant 0 : index
    %c0_37 = arith.constant 0 : index
    %c0_38 = arith.constant 0 : index
    %57 = vector.load %arg9[%c0_34, %c0_35, %c0_36, %c0_37, %c0_38] : memref<2x3x4x1x8xf32, #tpu.memory_space<vmem>>, vector<1x1x1x1x8xf32>
    %58 = vector.shape_cast %57 : vector<1x1x1x1x8xf32> to vector<1x8xf32>
    %59 = vector.broadcast %58 : vector<1x8xf32> to vector<5x8xf32>
    %60 = arith.addf %56, %59 : vector<5x8xf32>
    %c0_39 = arith.constant 0 : index
    %c1_40 = arith.constant 1 : index
    %c0_41 = arith.constant 0 : index
    %c0_42 = arith.constant 0 : index
    %c0_43 = arith.constant 0 : index
    %61 = vector.load %arg8[%c0_39, %c1_40, %c0_41, %c0_42, %c0_43] : memref<2x3x4x32x8xf32, #tpu.memory_space<vmem>>, vector<1x1x1x32x8xf32>
    %62 = vector.shape_cast %61 : vector<1x1x1x32x8xf32> to vector<32x8xf32>
    %cst_44 = arith.constant dense<0.000000e+00> : vector<5x8xf32>
    %63 = tpu.matmul %53, %62, %cst_44 {dimension_numbers = #tpu.dot_dimension_numbers<[1], [0], [0], [1], [0, 0, 1, 1], [], []>} : vector<5x32xf32>, vector<32x8xf32>, vector<5x8xf32> -> vector<5x8xf32>
    %c0_45 = arith.constant 0 : index
    %c1_46 = arith.constant 1 : index
    %c0_47 = arith.constant 0 : index
    %c0_48 = arith.constant 0 : index
    %c0_49 = arith.constant 0 : index
    %64 = vector.load %arg9[%c0_45, %c1_46, %c0_47, %c0_48, %c0_49] : memref<2x3x4x1x8xf32, #tpu.memory_space<vmem>>, vector<1x1x1x1x8xf32>
    %65 = vector.shape_cast %64 : vector<1x1x1x1x8xf32> to vector<1x8xf32>
    %66 = vector.broadcast %65 : vector<1x8xf32> to vector<5x8xf32>
    %67 = arith.addf %63, %66 : vector<5x8xf32>
    %c0_50 = arith.constant 0 : index
    %c2 = arith.constant 2 : index
    %c0_51 = arith.constant 0 : index
    %c0_52 = arith.constant 0 : index
    %c0_53 = arith.constant 0 : index
    %68 = vector.load %arg8[%c0_50, %c2, %c0_51, %c0_52, %c0_53] : memref<2x3x4x32x8xf32, #tpu.memory_space<vmem>>, vector<1x1x1x32x8xf32>
    %69 = vector.shape_cast %68 : vector<1x1x1x32x8xf32> to vector<32x8xf32>
    %cst_54 = arith.constant dense<0.000000e+00> : vector<5x8xf32>
    %70 = tpu.matmul %53, %69, %cst_54 {dimension_numbers = #tpu.dot_dimension_numbers<[1], [0], [0], [1], [0, 0, 1, 1], [], []>} : vector<5x32xf32>, vector<32x8xf32>, vector<5x8xf32> -> vector<5x8xf32>
    %c0_55 = arith.constant 0 : index
    %c2_56 = arith.constant 2 : index
    %c0_57 = arith.constant 0 : index
    %c0_58 = arith.constant 0 : index
    %c0_59 = arith.constant 0 : index
    %71 = vector.load %arg9[%c0_55, %c2_56, %c0_57, %c0_58, %c0_59] : memref<2x3x4x1x8xf32, #tpu.memory_space<vmem>>, vector<1x1x1x1x8xf32>
    %72 = vector.shape_cast %71 : vector<1x1x1x1x8xf32> to vector<1x8xf32>
    %73 = vector.broadcast %72 : vector<1x8xf32> to vector<5x8xf32>
    %74 = arith.addf %70, %73 : vector<5x8xf32>
    %cst_60 = arith.constant dense<0.000000e+00> : vector<5x5xf32>
    %75 = tpu.matmul %60, %67, %cst_60 {dimension_numbers = #tpu.dot_dimension_numbers<[1], [1], [0], [0], [0, 0, 1, 0], [], []>} : vector<5x8xf32>, vector<5x8xf32>, vector<5x5xf32> -> vector<5x5xf32>
    %cst_61 = arith.constant 0.353553385 : f32
    %76 = vector.broadcast %cst_61 : f32 to vector<5x5xf32>
    %77 = arith.mulf %75, %76 : vector<5x5xf32>
    %cst_62 = arith.constant dense<0xFF800000> : vector<5xf32>
    %78 = vector.multi_reduction <maximumf>, %77, %cst_62 [1] : vector<5x5xf32> to vector<5xf32>
    %79 = vector.shape_cast %78 : vector<5xf32> to vector<5x1xf32>
    %80 = vector.broadcast %79 : vector<5x1xf32> to vector<5x5xf32>
    %81 = arith.subf %77, %80 : vector<5x5xf32>
    %82 = math.exp %81 : vector<5x5xf32>
    %cst_63 = arith.constant dense<0.000000e+00> : vector<5xf32>
    %83 = vector.multi_reduction <add>, %82, %cst_63 [1] : vector<5x5xf32> to vector<5xf32>
    %84 = vector.shape_cast %83 : vector<5xf32> to vector<5x1xf32>
    %85 = vector.broadcast %84 : vector<5x1xf32> to vector<5x5xf32>
    %86 = arith.divf %82, %85 : vector<5x5xf32>
    %cst_64 = arith.constant dense<0.000000e+00> : vector<5x8xf32>
    %87 = tpu.matmul %86, %74, %cst_64 {dimension_numbers = #tpu.dot_dimension_numbers<[1], [0], [0], [1], [0, 0, 1, 1], [], []>} : vector<5x5xf32>, vector<5x8xf32>, vector<5x8xf32> -> vector<5x8xf32>
    %c0_65 = arith.constant 0 : index
    %c0_66 = arith.constant 0 : index
    %c0_67 = arith.constant 0 : index
    %c0_68 = arith.constant 0 : index
    %88 = vector.load %arg10[%c0_65, %c0_66, %c0_67, %c0_68] : memref<2x4x8x32xf32, #tpu.memory_space<vmem>>, vector<1x1x8x32xf32>
    %89 = vector.shape_cast %88 : vector<1x1x8x32xf32> to vector<8x32xf32>
    %cst_69 = arith.constant dense<0.000000e+00> : vector<5x32xf32>
    %90 = tpu.matmul %87, %89, %cst_69 {dimension_numbers = #tpu.dot_dimension_numbers<[1], [0], [0], [1], [0, 0, 1, 1], [], []>} : vector<5x8xf32>, vector<8x32xf32>, vector<5x32xf32> -> vector<5x32xf32>
    %c0_70 = arith.constant 0 : index
    %c0_71 = arith.constant 0 : index
    %c1_72 = arith.constant 1 : index
    %c0_73 = arith.constant 0 : index
    %c0_74 = arith.constant 0 : index
    %91 = vector.load %arg8[%c0_70, %c0_71, %c1_72, %c0_73, %c0_74] : memref<2x3x4x32x8xf32, #tpu.memory_space<vmem>>, vector<1x1x1x32x8xf32>
    %92 = vector.shape_cast %91 : vector<1x1x1x32x8xf32> to vector<32x8xf32>
    %cst_75 = arith.constant dense<0.000000e+00> : vector<5x8xf32>
    %93 = tpu.matmul %53, %92, %cst_75 {dimension_numbers = #tpu.dot_dimension_numbers<[1], [0], [0], [1], [0, 0, 1, 1], [], []>} : vector<5x32xf32>, vector<32x8xf32>, vector<5x8xf32> -> vector<5x8xf32>
    %c0_76 = arith.constant 0 : index
    %c0_77 = arith.constant 0 : index
    %c1_78 = arith.constant 1 : index
    %c0_79 = arith.constant 0 : index
    %c0_80 = arith.constant 0 : index
    %94 = vector.load %arg9[%c0_76, %c0_77, %c1_78, %c0_79, %c0_80] : memref<2x3x4x1x8xf32, #tpu.memory_space<vmem>>, vector<1x1x1x1x8xf32>
    %95 = vector.shape_cast %94 : vector<1x1x1x1x8xf32> to vector<1x8xf32>
    %96 = vector.broadcast %95 : vector<1x8xf32> to vector<5x8xf32>
    %97 = arith.addf %93, %96 : vector<5x8xf32>
    %c0_81 = arith.constant 0 : index
    %c1_82 = arith.constant 1 : index
    %c1_83 = arith.constant 1 : index
    %c0_84 = arith.constant 0 : index
    %c0_85 = arith.constant 0 : index
    %98 = vector.load %arg8[%c0_81, %c1_82, %c1_83, %c0_84, %c0_85] : memref<2x3x4x32x8xf32, #tpu.memory_space<vmem>>, vector<1x1x1x32x8xf32>
    %99 = vector.shape_cast %98 : vector<1x1x1x32x8xf32> to vector<32x8xf32>
    %cst_86 = arith.constant dense<0.000000e+00> : vector<5x8xf32>
    %100 = tpu.matmul %53, %99, %cst_86 {dimension_numbers = #tpu.dot_dimension_numbers<[1], [0], [0], [1], [0, 0, 1, 1], [], []>} : vector<5x32xf32>, vector<32x8xf32>, vector<5x8xf32> -> vector<5x8xf32>
    %c0_87 = arith.constant 0 : index
    %c1_88 = arith.constant 1 : index
    %c1_89 = arith.constant 1 : index
    %c0_90 = arith.constant 0 : index
    %c0_91 = arith.constant 0 : index
    %101 = vector.load %arg9[%c0_87, %c1_88, %c1_89, %c0_90, %c0_91] : memref<2x3x4x1x8xf32, #tpu.memory_space<vmem>>, vector<1x1x1x1x8xf32>
    %102 = vector.shape_cast %101 : vector<1x1x1x1x8xf32> to vector<1x8xf32>
    %103 = vector.broadcast %102 : vector<1x8xf32> to vector<5x8xf32>
    %104 = arith.addf %100, %103 : vector<5x8xf32>
    %c0_92 = arith.constant 0 : index
    %c2_93 = arith.constant 2 : index
    %c1_94 = arith.constant 1 : index
    %c0_95 = arith.constant 0 : index
    %c0_96 = arith.constant 0 : index
    %105 = vector.load %arg8[%c0_92, %c2_93, %c1_94, %c0_95, %c0_96] : memref<2x3x4x32x8xf32, #tpu.memory_space<vmem>>, vector<1x1x1x32x8xf32>
    %106 = vector.shape_cast %105 : vector<1x1x1x32x8xf32> to vector<32x8xf32>
    %cst_97 = arith.constant dense<0.000000e+00> : vector<5x8xf32>
    %107 = tpu.matmul %53, %106, %cst_97 {dimension_numbers = #tpu.dot_dimension_numbers<[1], [0], [0], [1], [0, 0, 1, 1], [], []>} : vector<5x32xf32>, vector<32x8xf32>, vector<5x8xf32> -> vector<5x8xf32>
    %c0_98 = arith.constant 0 : index
    %c2_99 = arith.constant 2 : index
    %c1_100 = arith.constant 1 : index
    %c0_101 = arith.constant 0 : index
    %c0_102 = arith.constant 0 : index
    %108 = vector.load %arg9[%c0_98, %c2_99, %c1_100, %c0_101, %c0_102] : memref<2x3x4x1x8xf32, #tpu.memory_space<vmem>>, vector<1x1x1x1x8xf32>
    %109 = vector.shape_cast %108 : vector<1x1x1x1x8xf32> to vector<1x8xf32>
    %110 = vector.broadcast %109 : vector<1x8xf32> to vector<5x8xf32>
    %111 = arith.addf %107, %110 : vector<5x8xf32>
    %cst_103 = arith.constant dense<0.000000e+00> : vector<5x5xf32>
    %112 = tpu.matmul %97, %104, %cst_103 {dimension_numbers = #tpu.dot_dimension_numbers<[1], [1], [0], [0], [0, 0, 1, 0], [], []>} : vector<5x8xf32>, vector<5x8xf32>, vector<5x5xf32> -> vector<5x5xf32>
    %cst_104 = arith.constant 0.353553385 : f32
    %113 = vector.broadcast %cst_104 : f32 to vector<5x5xf32>
    %114 = arith.mulf %112, %113 : vector<5x5xf32>
    %cst_105 = arith.constant dense<0xFF800000> : vector<5xf32>
    %115 = vector.multi_reduction <maximumf>, %114, %cst_105 [1] : vector<5x5xf32> to vector<5xf32>
    %116 = vector.shape_cast %115 : vector<5xf32> to vector<5x1xf32>
    %117 = vector.broadcast %116 : vector<5x1xf32> to vector<5x5xf32>
    %118 = arith.subf %114, %117 : vector<5x5xf32>
    %119 = math.exp %118 : vector<5x5xf32>
    %cst_106 = arith.constant dense<0.000000e+00> : vector<5xf32>
    %120 = vector.multi_reduction <add>, %119, %cst_106 [1] : vector<5x5xf32> to vector<5xf32>
    %121 = vector.shape_cast %120 : vector<5xf32> to vector<5x1xf32>
    %122 = vector.broadcast %121 : vector<5x1xf32> to vector<5x5xf32>
    %123 = arith.divf %119, %122 : vector<5x5xf32>
    %cst_107 = arith.constant dense<0.000000e+00> : vector<5x8xf32>
    %124 = tpu.matmul %123, %111, %cst_107 {dimension_numbers = #tpu.dot_dimension_numbers<[1], [0], [0], [1], [0, 0, 1, 1], [], []>} : vector<5x5xf32>, vector<5x8xf32>, vector<5x8xf32> -> vector<5x8xf32>
    %c0_108 = arith.constant 0 : index
    %c1_109 = arith.constant 1 : index
    %c0_110 = arith.constant 0 : index
    %c0_111 = arith.constant 0 : index
    %125 = vector.load %arg10[%c0_108, %c1_109, %c0_110, %c0_111] : memref<2x4x8x32xf32, #tpu.memory_space<vmem>>, vector<1x1x8x32xf32>
    %126 = vector.shape_cast %125 : vector<1x1x8x32xf32> to vector<8x32xf32>
    %cst_112 = arith.constant dense<0.000000e+00> : vector<5x32xf32>
    %127 = tpu.matmul %124, %126, %cst_112 {dimension_numbers = #tpu.dot_dimension_numbers<[1], [0], [0], [1], [0, 0, 1, 1], [], []>} : vector<5x8xf32>, vector<8x32xf32>, vector<5x32xf32> -> vector<5x32xf32>
    %128 = arith.addf %90, %127 : vector<5x32xf32>
    %c0_113 = arith.constant 0 : index
    %c0_114 = arith.constant 0 : index
    %c2_115 = arith.constant 2 : index
    %c0_116 = arith.constant 0 : index
    %c0_117 = arith.constant 0 : index
    %129 = vector.load %arg8[%c0_113, %c0_114, %c2_115, %c0_116, %c0_117] : memref<2x3x4x32x8xf32, #tpu.memory_space<vmem>>, vector<1x1x1x32x8xf32>
    %130 = vector.shape_cast %129 : vector<1x1x1x32x8xf32> to vector<32x8xf32>
    %cst_118 = arith.constant dense<0.000000e+00> : vector<5x8xf32>
    %131 = tpu.matmul %53, %130, %cst_118 {dimension_numbers = #tpu.dot_dimension_numbers<[1], [0], [0], [1], [0, 0, 1, 1], [], []>} : vector<5x32xf32>, vector<32x8xf32>, vector<5x8xf32> -> vector<5x8xf32>
    %c0_119 = arith.constant 0 : index
    %c0_120 = arith.constant 0 : index
    %c2_121 = arith.constant 2 : index
    %c0_122 = arith.constant 0 : index
    %c0_123 = arith.constant 0 : index
    %132 = vector.load %arg9[%c0_119, %c0_120, %c2_121, %c0_122, %c0_123] : memref<2x3x4x1x8xf32, #tpu.memory_space<vmem>>, vector<1x1x1x1x8xf32>
    %133 = vector.shape_cast %132 : vector<1x1x1x1x8xf32> to vector<1x8xf32>
    %134 = vector.broadcast %133 : vector<1x8xf32> to vector<5x8xf32>
    %135 = arith.addf %131, %134 : vector<5x8xf32>
    %c0_124 = arith.constant 0 : index
    %c1_125 = arith.constant 1 : index
    %c2_126 = arith.constant 2 : index
    %c0_127 = arith.constant 0 : index
    %c0_128 = arith.constant 0 : index
    %136 = vector.load %arg8[%c0_124, %c1_125, %c2_126, %c0_127, %c0_128] : memref<2x3x4x32x8xf32, #tpu.memory_space<vmem>>, vector<1x1x1x32x8xf32>
    %137 = vector.shape_cast %136 : vector<1x1x1x32x8xf32> to vector<32x8xf32>
    %cst_129 = arith.constant dense<0.000000e+00> : vector<5x8xf32>
    %138 = tpu.matmul %53, %137, %cst_129 {dimension_numbers = #tpu.dot_dimension_numbers<[1], [0], [0], [1], [0, 0, 1, 1], [], []>} : vector<5x32xf32>, vector<32x8xf32>, vector<5x8xf32> -> vector<5x8xf32>
    %c0_130 = arith.constant 0 : index
    %c1_131 = arith.constant 1 : index
    %c2_132 = arith.constant 2 : index
    %c0_133 = arith.constant 0 : index
    %c0_134 = arith.constant 0 : index
    %139 = vector.load %arg9[%c0_130, %c1_131, %c2_132, %c0_133, %c0_134] : memref<2x3x4x1x8xf32, #tpu.memory_space<vmem>>, vector<1x1x1x1x8xf32>
    %140 = vector.shape_cast %139 : vector<1x1x1x1x8xf32> to vector<1x8xf32>
    %141 = vector.broadcast %140 : vector<1x8xf32> to vector<5x8xf32>
    %142 = arith.addf %138, %141 : vector<5x8xf32>
    %c0_135 = arith.constant 0 : index
    %c2_136 = arith.constant 2 : index
    %c2_137 = arith.constant 2 : index
    %c0_138 = arith.constant 0 : index
    %c0_139 = arith.constant 0 : index
    %143 = vector.load %arg8[%c0_135, %c2_136, %c2_137, %c0_138, %c0_139] : memref<2x3x4x32x8xf32, #tpu.memory_space<vmem>>, vector<1x1x1x32x8xf32>
    %144 = vector.shape_cast %143 : vector<1x1x1x32x8xf32> to vector<32x8xf32>
    %cst_140 = arith.constant dense<0.000000e+00> : vector<5x8xf32>
    %145 = tpu.matmul %53, %144, %cst_140 {dimension_numbers = #tpu.dot_dimension_numbers<[1], [0], [0], [1], [0, 0, 1, 1], [], []>} : vector<5x32xf32>, vector<32x8xf32>, vector<5x8xf32> -> vector<5x8xf32>
    %c0_141 = arith.constant 0 : index
    %c2_142 = arith.constant 2 : index
    %c2_143 = arith.constant 2 : index
    %c0_144 = arith.constant 0 : index
    %c0_145 = arith.constant 0 : index
    %146 = vector.load %arg9[%c0_141, %c2_142, %c2_143, %c0_144, %c0_145] : memref<2x3x4x1x8xf32, #tpu.memory_space<vmem>>, vector<1x1x1x1x8xf32>
    %147 = vector.shape_cast %146 : vector<1x1x1x1x8xf32> to vector<1x8xf32>
    %148 = vector.broadcast %147 : vector<1x8xf32> to vector<5x8xf32>
    %149 = arith.addf %145, %148 : vector<5x8xf32>
    %cst_146 = arith.constant dense<0.000000e+00> : vector<5x5xf32>
    %150 = tpu.matmul %135, %142, %cst_146 {dimension_numbers = #tpu.dot_dimension_numbers<[1], [1], [0], [0], [0, 0, 1, 0], [], []>} : vector<5x8xf32>, vector<5x8xf32>, vector<5x5xf32> -> vector<5x5xf32>
    %cst_147 = arith.constant 0.353553385 : f32
    %151 = vector.broadcast %cst_147 : f32 to vector<5x5xf32>
    %152 = arith.mulf %150, %151 : vector<5x5xf32>
    %cst_148 = arith.constant dense<0xFF800000> : vector<5xf32>
    %153 = vector.multi_reduction <maximumf>, %152, %cst_148 [1] : vector<5x5xf32> to vector<5xf32>
    %154 = vector.shape_cast %153 : vector<5xf32> to vector<5x1xf32>
    %155 = vector.broadcast %154 : vector<5x1xf32> to vector<5x5xf32>
    %156 = arith.subf %152, %155 : vector<5x5xf32>
    %157 = math.exp %156 : vector<5x5xf32>
    %cst_149 = arith.constant dense<0.000000e+00> : vector<5xf32>
    %158 = vector.multi_reduction <add>, %157, %cst_149 [1] : vector<5x5xf32> to vector<5xf32>
    %159 = vector.shape_cast %158 : vector<5xf32> to vector<5x1xf32>
    %160 = vector.broadcast %159 : vector<5x1xf32> to vector<5x5xf32>
    %161 = arith.divf %157, %160 : vector<5x5xf32>
    %cst_150 = arith.constant dense<0.000000e+00> : vector<5x8xf32>
    %162 = tpu.matmul %161, %149, %cst_150 {dimension_numbers = #tpu.dot_dimension_numbers<[1], [0], [0], [1], [0, 0, 1, 1], [], []>} : vector<5x5xf32>, vector<5x8xf32>, vector<5x8xf32> -> vector<5x8xf32>
    %c0_151 = arith.constant 0 : index
    %c2_152 = arith.constant 2 : index
    %c0_153 = arith.constant 0 : index
    %c0_154 = arith.constant 0 : index
    %163 = vector.load %arg10[%c0_151, %c2_152, %c0_153, %c0_154] : memref<2x4x8x32xf32, #tpu.memory_space<vmem>>, vector<1x1x8x32xf32>
    %164 = vector.shape_cast %163 : vector<1x1x8x32xf32> to vector<8x32xf32>
    %cst_155 = arith.constant dense<0.000000e+00> : vector<5x32xf32>
    %165 = tpu.matmul %162, %164, %cst_155 {dimension_numbers = #tpu.dot_dimension_numbers<[1], [0], [0], [1], [0, 0, 1, 1], [], []>} : vector<5x8xf32>, vector<8x32xf32>, vector<5x32xf32> -> vector<5x32xf32>
    %166 = arith.addf %128, %165 : vector<5x32xf32>
    %c0_156 = arith.constant 0 : index
    %c0_157 = arith.constant 0 : index
    %c3 = arith.constant 3 : index
    %c0_158 = arith.constant 0 : index
    %c0_159 = arith.constant 0 : index
    %167 = vector.load %arg8[%c0_156, %c0_157, %c3, %c0_158, %c0_159] : memref<2x3x4x32x8xf32, #tpu.memory_space<vmem>>, vector<1x1x1x32x8xf32>
    %168 = vector.shape_cast %167 : vector<1x1x1x32x8xf32> to vector<32x8xf32>
    %cst_160 = arith.constant dense<0.000000e+00> : vector<5x8xf32>
    %169 = tpu.matmul %53, %168, %cst_160 {dimension_numbers = #tpu.dot_dimension_numbers<[1], [0], [0], [1], [0, 0, 1, 1], [], []>} : vector<5x32xf32>, vector<32x8xf32>, vector<5x8xf32> -> vector<5x8xf32>
    %c0_161 = arith.constant 0 : index
    %c0_162 = arith.constant 0 : index
    %c3_163 = arith.constant 3 : index
    %c0_164 = arith.constant 0 : index
    %c0_165 = arith.constant 0 : index
    %170 = vector.load %arg9[%c0_161, %c0_162, %c3_163, %c0_164, %c0_165] : memref<2x3x4x1x8xf32, #tpu.memory_space<vmem>>, vector<1x1x1x1x8xf32>
    %171 = vector.shape_cast %170 : vector<1x1x1x1x8xf32> to vector<1x8xf32>
    %172 = vector.broadcast %171 : vector<1x8xf32> to vector<5x8xf32>
    %173 = arith.addf %169, %172 : vector<5x8xf32>
    %c0_166 = arith.constant 0 : index
    %c1_167 = arith.constant 1 : index
    %c3_168 = arith.constant 3 : index
    %c0_169 = arith.constant 0 : index
    %c0_170 = arith.constant 0 : index
    %174 = vector.load %arg8[%c0_166, %c1_167, %c3_168, %c0_169, %c0_170] : memref<2x3x4x32x8xf32, #tpu.memory_space<vmem>>, vector<1x1x1x32x8xf32>
    %175 = vector.shape_cast %174 : vector<1x1x1x32x8xf32> to vector<32x8xf32>
    %cst_171 = arith.constant dense<0.000000e+00> : vector<5x8xf32>
    %176 = tpu.matmul %53, %175, %cst_171 {dimension_numbers = #tpu.dot_dimension_numbers<[1], [0], [0], [1], [0, 0, 1, 1], [], []>} : vector<5x32xf32>, vector<32x8xf32>, vector<5x8xf32> -> vector<5x8xf32>
    %c0_172 = arith.constant 0 : index
    %c1_173 = arith.constant 1 : index
    %c3_174 = arith.constant 3 : index
    %c0_175 = arith.constant 0 : index
    %c0_176 = arith.constant 0 : index
    %177 = vector.load %arg9[%c0_172, %c1_173, %c3_174, %c0_175, %c0_176] : memref<2x3x4x1x8xf32, #tpu.memory_space<vmem>>, vector<1x1x1x1x8xf32>
    %178 = vector.shape_cast %177 : vector<1x1x1x1x8xf32> to vector<1x8xf32>
    %179 = vector.broadcast %178 : vector<1x8xf32> to vector<5x8xf32>
    %180 = arith.addf %176, %179 : vector<5x8xf32>
    %c0_177 = arith.constant 0 : index
    %c2_178 = arith.constant 2 : index
    %c3_179 = arith.constant 3 : index
    %c0_180 = arith.constant 0 : index
    %c0_181 = arith.constant 0 : index
    %181 = vector.load %arg8[%c0_177, %c2_178, %c3_179, %c0_180, %c0_181] : memref<2x3x4x32x8xf32, #tpu.memory_space<vmem>>, vector<1x1x1x32x8xf32>
    %182 = vector.shape_cast %181 : vector<1x1x1x32x8xf32> to vector<32x8xf32>
    %cst_182 = arith.constant dense<0.000000e+00> : vector<5x8xf32>
    %183 = tpu.matmul %53, %182, %cst_182 {dimension_numbers = #tpu.dot_dimension_numbers<[1], [0], [0], [1], [0, 0, 1, 1], [], []>} : vector<5x32xf32>, vector<32x8xf32>, vector<5x8xf32> -> vector<5x8xf32>
    %c0_183 = arith.constant 0 : index
    %c2_184 = arith.constant 2 : index
    %c3_185 = arith.constant 3 : index
    %c0_186 = arith.constant 0 : index
    %c0_187 = arith.constant 0 : index
    %184 = vector.load %arg9[%c0_183, %c2_184, %c3_185, %c0_186, %c0_187] : memref<2x3x4x1x8xf32, #tpu.memory_space<vmem>>, vector<1x1x1x1x8xf32>
    %185 = vector.shape_cast %184 : vector<1x1x1x1x8xf32> to vector<1x8xf32>
    %186 = vector.broadcast %185 : vector<1x8xf32> to vector<5x8xf32>
    %187 = arith.addf %183, %186 : vector<5x8xf32>
    %cst_188 = arith.constant dense<0.000000e+00> : vector<5x5xf32>
    %188 = tpu.matmul %173, %180, %cst_188 {dimension_numbers = #tpu.dot_dimension_numbers<[1], [1], [0], [0], [0, 0, 1, 0], [], []>} : vector<5x8xf32>, vector<5x8xf32>, vector<5x5xf32> -> vector<5x5xf32>
    %cst_189 = arith.constant 0.353553385 : f32
    %189 = vector.broadcast %cst_189 : f32 to vector<5x5xf32>
    %190 = arith.mulf %188, %189 : vector<5x5xf32>
    %cst_190 = arith.constant dense<0xFF800000> : vector<5xf32>
    %191 = vector.multi_reduction <maximumf>, %190, %cst_190 [1] : vector<5x5xf32> to vector<5xf32>
    %192 = vector.shape_cast %191 : vector<5xf32> to vector<5x1xf32>
    %193 = vector.broadcast %192 : vector<5x1xf32> to vector<5x5xf32>
    %194 = arith.subf %190, %193 : vector<5x5xf32>
    %195 = math.exp %194 : vector<5x5xf32>
    %cst_191 = arith.constant dense<0.000000e+00> : vector<5xf32>
    %196 = vector.multi_reduction <add>, %195, %cst_191 [1] : vector<5x5xf32> to vector<5xf32>
    %197 = vector.shape_cast %196 : vector<5xf32> to vector<5x1xf32>
    %198 = vector.broadcast %197 : vector<5x1xf32> to vector<5x5xf32>
    %199 = arith.divf %195, %198 : vector<5x5xf32>
    %cst_192 = arith.constant dense<0.000000e+00> : vector<5x8xf32>
    %200 = tpu.matmul %199, %187, %cst_192 {dimension_numbers = #tpu.dot_dimension_numbers<[1], [0], [0], [1], [0, 0, 1, 1], [], []>} : vector<5x5xf32>, vector<5x8xf32>, vector<5x8xf32> -> vector<5x8xf32>
    %c0_193 = arith.constant 0 : index
    %c3_194 = arith.constant 3 : index
    %c0_195 = arith.constant 0 : index
    %c0_196 = arith.constant 0 : index
    %201 = vector.load %arg10[%c0_193, %c3_194, %c0_195, %c0_196] : memref<2x4x8x32xf32, #tpu.memory_space<vmem>>, vector<1x1x8x32xf32>
    %202 = vector.shape_cast %201 : vector<1x1x8x32xf32> to vector<8x32xf32>
    %cst_197 = arith.constant dense<0.000000e+00> : vector<5x32xf32>
    %203 = tpu.matmul %200, %202, %cst_197 {dimension_numbers = #tpu.dot_dimension_numbers<[1], [0], [0], [1], [0, 0, 1, 1], [], []>} : vector<5x8xf32>, vector<8x32xf32>, vector<5x32xf32> -> vector<5x32xf32>
    %204 = arith.addf %166, %203 : vector<5x32xf32>
    %205 = arith.addf %27, %204 : vector<5x32xf32>
    %c0_198 = arith.constant 0 : index
    %c0_199 = arith.constant 0 : index
    %c0_200 = arith.constant 0 : index
    %206 = vector.load %arg11[%c0_198, %c0_199, %c0_200] : memref<2x1x32xf32, #tpu.memory_space<vmem>>, vector<1x1x32xf32>
    %207 = vector.shape_cast %206 : vector<1x1x32xf32> to vector<1x32xf32>
    %208 = vector.broadcast %207 : vector<1x32xf32> to vector<5x32xf32>
    %209 = arith.addf %205, %208 : vector<5x32xf32>
    %c0_201 = arith.constant 0 : index
    %c2_202 = arith.constant 2 : index
    %c0_203 = arith.constant 0 : index
    %c0_204 = arith.constant 0 : index
    %210 = vector.load %arg7[%c0_201, %c2_202, %c0_203, %c0_204] : memref<2x4x1x32xf32, #tpu.memory_space<vmem>>, vector<1x1x1x32xf32>
    %211 = vector.shape_cast %210 : vector<1x1x1x32xf32> to vector<1x32xf32>
    %c0_205 = arith.constant 0 : index
    %c3_206 = arith.constant 3 : index
    %c0_207 = arith.constant 0 : index
    %c0_208 = arith.constant 0 : index
    %212 = vector.load %arg7[%c0_205, %c3_206, %c0_207, %c0_208] : memref<2x4x1x32xf32, #tpu.memory_space<vmem>>, vector<1x1x1x32xf32>
    %213 = vector.shape_cast %212 : vector<1x1x1x32xf32> to vector<1x32xf32>
    %cst_209 = arith.constant dense<0.000000e+00> : vector<5xf32>
    %214 = vector.multi_reduction <add>, %209, %cst_209 [1] : vector<5x32xf32> to vector<5xf32>
    %215 = vector.shape_cast %214 : vector<5xf32> to vector<5x1xf32>
    %cst_210 = arith.constant 3.200000e+01 : f32
    %216 = vector.broadcast %cst_210 : f32 to vector<5x1xf32>
    %217 = arith.divf %215, %216 : vector<5x1xf32>
    %218 = vector.broadcast %217 : vector<5x1xf32> to vector<5x32xf32>
    %219 = arith.subf %209, %218 : vector<5x32xf32>
    %220 = arith.mulf %219, %219 : vector<5x32xf32>
    %cst_211 = arith.constant dense<0.000000e+00> : vector<5xf32>
    %221 = vector.multi_reduction <add>, %220, %cst_211 [1] : vector<5x32xf32> to vector<5xf32>
    %222 = vector.shape_cast %221 : vector<5xf32> to vector<5x1xf32>
    %cst_212 = arith.constant 3.200000e+01 : f32
    %223 = vector.broadcast %cst_212 : f32 to vector<5x1xf32>
    %224 = arith.divf %222, %223 : vector<5x1xf32>
    %225 = vector.broadcast %217 : vector<5x1xf32> to vector<5x32xf32>
    %226 = arith.subf %209, %225 : vector<5x32xf32>
    %cst_213 = arith.constant 9.99999974E-6 : f32
    %227 = vector.broadcast %cst_213 : f32 to vector<5x1xf32>
    %228 = arith.addf %224, %227 : vector<5x1xf32>
    %229 = math.rsqrt %228 : vector<5x1xf32>
    %230 = vector.broadcast %229 : vector<5x1xf32> to vector<5x32xf32>
    %231 = arith.mulf %226, %230 : vector<5x32xf32>
    %232 = vector.broadcast %211 : vector<1x32xf32> to vector<5x32xf32>
    %233 = arith.mulf %231, %232 : vector<5x32xf32>
    %234 = vector.broadcast %213 : vector<1x32xf32> to vector<5x32xf32>
    %235 = arith.addf %233, %234 : vector<5x32xf32>
    %c0_214 = arith.constant 0 : index
    %c0_215 = arith.constant 0 : index
    %c0_216 = arith.constant 0 : index
    %236 = vector.load %arg12[%c0_214, %c0_215, %c0_216] : memref<2x32x128xf32, #tpu.memory_space<vmem>>, vector<1x32x128xf32>
    %237 = vector.shape_cast %236 : vector<1x32x128xf32> to vector<32x128xf32>
    %cst_217 = arith.constant dense<0.000000e+00> : vector<5x128xf32>
    %238 = tpu.matmul %235, %237, %cst_217 {dimension_numbers = #tpu.dot_dimension_numbers<[1], [0], [0], [1], [0, 0, 1, 1], [], []>} : vector<5x32xf32>, vector<32x128xf32>, vector<5x128xf32> -> vector<5x128xf32>
    %c0_218 = arith.constant 0 : index
    %c0_219 = arith.constant 0 : index
    %c0_220 = arith.constant 0 : index
    %239 = vector.load %arg13[%c0_218, %c0_219, %c0_220] : memref<2x1x128xf32, #tpu.memory_space<vmem>>, vector<1x1x128xf32>
    %240 = vector.shape_cast %239 : vector<1x1x128xf32> to vector<1x128xf32>
    %241 = vector.broadcast %240 : vector<1x128xf32> to vector<5x128xf32>
    %242 = arith.addf %238, %241 : vector<5x128xf32>
    %cst_221 = arith.constant 5.000000e-01 : f32
    %243 = vector.broadcast %cst_221 : f32 to vector<5x128xf32>
    %244 = arith.mulf %243, %242 : vector<5x128xf32>
    %cst_222 = arith.constant 4.471500e-02 : f32
    %245 = vector.broadcast %cst_222 : f32 to vector<5x128xf32>
    %246 = arith.mulf %245, %242 : vector<5x128xf32>
    %247 = arith.mulf %246, %242 : vector<5x128xf32>
    %248 = arith.mulf %247, %242 : vector<5x128xf32>
    %249 = arith.addf %242, %248 : vector<5x128xf32>
    %cst_223 = arith.constant 0.797884583 : f32
    %250 = vector.broadcast %cst_223 : f32 to vector<5x128xf32>
    %251 = arith.mulf %250, %249 : vector<5x128xf32>
    %252 = math.tanh %251 : vector<5x128xf32>
    %cst_224 = arith.constant 1.000000e+00 : f32
    %253 = vector.broadcast %cst_224 : f32 to vector<5x128xf32>
    %254 = arith.addf %253, %252 : vector<5x128xf32>
    %255 = arith.mulf %244, %254 : vector<5x128xf32>
    %c0_225 = arith.constant 0 : index
    %c0_226 = arith.constant 0 : index
    %c0_227 = arith.constant 0 : index
    %256 = vector.load %arg14[%c0_225, %c0_226, %c0_227] : memref<2x128x32xf32, #tpu.memory_space<vmem>>, vector<1x128x32xf32>
    %257 = vector.shape_cast %256 : vector<1x128x32xf32> to vector<128x32xf32>
    %cst_228 = arith.constant dense<0.000000e+00> : vector<5x32xf32>
    %258 = tpu.matmul %255, %257, %cst_228 {dimension_numbers = #tpu.dot_dimension_numbers<[1], [0], [0], [1], [0, 0, 1, 1], [], []>} : vector<5x128xf32>, vector<128x32xf32>, vector<5x32xf32> -> vector<5x32xf32>
    %c0_229 = arith.constant 0 : index
    %c0_230 = arith.constant 0 : index
    %c0_231 = arith.constant 0 : index
    %259 = vector.load %arg15[%c0_229, %c0_230, %c0_231] : memref<2x1x32xf32, #tpu.memory_space<vmem>>, vector<1x1x32xf32>
    %260 = vector.shape_cast %259 : vector<1x1x32xf32> to vector<1x32xf32>
    %261 = vector.broadcast %260 : vector<1x32xf32> to vector<5x32xf32>
    %262 = arith.addf %258, %261 : vector<5x32xf32>
    %263 = arith.addf %209, %262 : vector<5x32xf32>
    %c1_232 = arith.constant 1 : index
    %c0_233 = arith.constant 0 : index
    %c0_234 = arith.constant 0 : index
    %c0_235 = arith.constant 0 : index
    %264 = vector.load %arg7[%c1_232, %c0_233, %c0_234, %c0_235] : memref<2x4x1x32xf32, #tpu.memory_space<vmem>>, vector<1x1x1x32xf32>
    %265 = vector.shape_cast %264 : vector<1x1x1x32xf32> to vector<1x32xf32>
    %c1_236 = arith.constant 1 : index
    %c1_237 = arith.constant 1 : index
    %c0_238 = arith.constant 0 : index
    %c0_239 = arith.constant 0 : index
    %266 = vector.load %arg7[%c1_236, %c1_237, %c0_238, %c0_239] : memref<2x4x1x32xf32, #tpu.memory_space<vmem>>, vector<1x1x1x32xf32>
    %267 = vector.shape_cast %266 : vector<1x1x1x32xf32> to vector<1x32xf32>
    %cst_240 = arith.constant dense<0.000000e+00> : vector<5xf32>
    %268 = vector.multi_reduction <add>, %263, %cst_240 [1] : vector<5x32xf32> to vector<5xf32>
    %269 = vector.shape_cast %268 : vector<5xf32> to vector<5x1xf32>
    %cst_241 = arith.constant 3.200000e+01 : f32
    %270 = vector.broadcast %cst_241 : f32 to vector<5x1xf32>
    %271 = arith.divf %269, %270 : vector<5x1xf32>
    %272 = vector.broadcast %271 : vector<5x1xf32> to vector<5x32xf32>
    %273 = arith.subf %263, %272 : vector<5x32xf32>
    %274 = arith.mulf %273, %273 : vector<5x32xf32>
    %cst_242 = arith.constant dense<0.000000e+00> : vector<5xf32>
    %275 = vector.multi_reduction <add>, %274, %cst_242 [1] : vector<5x32xf32> to vector<5xf32>
    %276 = vector.shape_cast %275 : vector<5xf32> to vector<5x1xf32>
    %cst_243 = arith.constant 3.200000e+01 : f32
    %277 = vector.broadcast %cst_243 : f32 to vector<5x1xf32>
    %278 = arith.divf %276, %277 : vector<5x1xf32>
    %279 = vector.broadcast %271 : vector<5x1xf32> to vector<5x32xf32>
    %280 = arith.subf %263, %279 : vector<5x32xf32>
    %cst_244 = arith.constant 9.99999974E-6 : f32
    %281 = vector.broadcast %cst_244 : f32 to vector<5x1xf32>
    %282 = arith.addf %278, %281 : vector<5x1xf32>
    %283 = math.rsqrt %282 : vector<5x1xf32>
    %284 = vector.broadcast %283 : vector<5x1xf32> to vector<5x32xf32>
    %285 = arith.mulf %280, %284 : vector<5x32xf32>
    %286 = vector.broadcast %265 : vector<1x32xf32> to vector<5x32xf32>
    %287 = arith.mulf %285, %286 : vector<5x32xf32>
    %288 = vector.broadcast %267 : vector<1x32xf32> to vector<5x32xf32>
    %289 = arith.addf %287, %288 : vector<5x32xf32>
    %c1_245 = arith.constant 1 : index
    %c0_246 = arith.constant 0 : index
    %c0_247 = arith.constant 0 : index
    %c0_248 = arith.constant 0 : index
    %c0_249 = arith.constant 0 : index
    %290 = vector.load %arg8[%c1_245, %c0_246, %c0_247, %c0_248, %c0_249] : memref<2x3x4x32x8xf32, #tpu.memory_space<vmem>>, vector<1x1x1x32x8xf32>
    %291 = vector.shape_cast %290 : vector<1x1x1x32x8xf32> to vector<32x8xf32>
    %cst_250 = arith.constant dense<0.000000e+00> : vector<5x8xf32>
    %292 = tpu.matmul %289, %291, %cst_250 {dimension_numbers = #tpu.dot_dimension_numbers<[1], [0], [0], [1], [0, 0, 1, 1], [], []>} : vector<5x32xf32>, vector<32x8xf32>, vector<5x8xf32> -> vector<5x8xf32>
    %c1_251 = arith.constant 1 : index
    %c0_252 = arith.constant 0 : index
    %c0_253 = arith.constant 0 : index
    %c0_254 = arith.constant 0 : index
    %c0_255 = arith.constant 0 : index
    %293 = vector.load %arg9[%c1_251, %c0_252, %c0_253, %c0_254, %c0_255] : memref<2x3x4x1x8xf32, #tpu.memory_space<vmem>>, vector<1x1x1x1x8xf32>
    %294 = vector.shape_cast %293 : vector<1x1x1x1x8xf32> to vector<1x8xf32>
    %295 = vector.broadcast %294 : vector<1x8xf32> to vector<5x8xf32>
    %296 = arith.addf %292, %295 : vector<5x8xf32>
    %c1_256 = arith.constant 1 : index
    %c1_257 = arith.constant 1 : index
    %c0_258 = arith.constant 0 : index
    %c0_259 = arith.constant 0 : index
    %c0_260 = arith.constant 0 : index
    %297 = vector.load %arg8[%c1_256, %c1_257, %c0_258, %c0_259, %c0_260] : memref<2x3x4x32x8xf32, #tpu.memory_space<vmem>>, vector<1x1x1x32x8xf32>
    %298 = vector.shape_cast %297 : vector<1x1x1x32x8xf32> to vector<32x8xf32>
    %cst_261 = arith.constant dense<0.000000e+00> : vector<5x8xf32>
    %299 = tpu.matmul %289, %298, %cst_261 {dimension_numbers = #tpu.dot_dimension_numbers<[1], [0], [0], [1], [0, 0, 1, 1], [], []>} : vector<5x32xf32>, vector<32x8xf32>, vector<5x8xf32> -> vector<5x8xf32>
    %c1_262 = arith.constant 1 : index
    %c1_263 = arith.constant 1 : index
    %c0_264 = arith.constant 0 : index
    %c0_265 = arith.constant 0 : index
    %c0_266 = arith.constant 0 : index
    %300 = vector.load %arg9[%c1_262, %c1_263, %c0_264, %c0_265, %c0_266] : memref<2x3x4x1x8xf32, #tpu.memory_space<vmem>>, vector<1x1x1x1x8xf32>
    %301 = vector.shape_cast %300 : vector<1x1x1x1x8xf32> to vector<1x8xf32>
    %302 = vector.broadcast %301 : vector<1x8xf32> to vector<5x8xf32>
    %303 = arith.addf %299, %302 : vector<5x8xf32>
    %c1_267 = arith.constant 1 : index
    %c2_268 = arith.constant 2 : index
    %c0_269 = arith.constant 0 : index
    %c0_270 = arith.constant 0 : index
    %c0_271 = arith.constant 0 : index
    %304 = vector.load %arg8[%c1_267, %c2_268, %c0_269, %c0_270, %c0_271] : memref<2x3x4x32x8xf32, #tpu.memory_space<vmem>>, vector<1x1x1x32x8xf32>
    %305 = vector.shape_cast %304 : vector<1x1x1x32x8xf32> to vector<32x8xf32>
    %cst_272 = arith.constant dense<0.000000e+00> : vector<5x8xf32>
    %306 = tpu.matmul %289, %305, %cst_272 {dimension_numbers = #tpu.dot_dimension_numbers<[1], [0], [0], [1], [0, 0, 1, 1], [], []>} : vector<5x32xf32>, vector<32x8xf32>, vector<5x8xf32> -> vector<5x8xf32>
    %c1_273 = arith.constant 1 : index
    %c2_274 = arith.constant 2 : index
    %c0_275 = arith.constant 0 : index
    %c0_276 = arith.constant 0 : index
    %c0_277 = arith.constant 0 : index
    %307 = vector.load %arg9[%c1_273, %c2_274, %c0_275, %c0_276, %c0_277] : memref<2x3x4x1x8xf32, #tpu.memory_space<vmem>>, vector<1x1x1x1x8xf32>
    %308 = vector.shape_cast %307 : vector<1x1x1x1x8xf32> to vector<1x8xf32>
    %309 = vector.broadcast %308 : vector<1x8xf32> to vector<5x8xf32>
    %310 = arith.addf %306, %309 : vector<5x8xf32>
    %cst_278 = arith.constant dense<0.000000e+00> : vector<5x5xf32>
    %311 = tpu.matmul %296, %303, %cst_278 {dimension_numbers = #tpu.dot_dimension_numbers<[1], [1], [0], [0], [0, 0, 1, 0], [], []>} : vector<5x8xf32>, vector<5x8xf32>, vector<5x5xf32> -> vector<5x5xf32>
    %cst_279 = arith.constant 0.353553385 : f32
    %312 = vector.broadcast %cst_279 : f32 to vector<5x5xf32>
    %313 = arith.mulf %311, %312 : vector<5x5xf32>
    %cst_280 = arith.constant dense<0xFF800000> : vector<5xf32>
    %314 = vector.multi_reduction <maximumf>, %313, %cst_280 [1] : vector<5x5xf32> to vector<5xf32>
    %315 = vector.shape_cast %314 : vector<5xf32> to vector<5x1xf32>
    %316 = vector.broadcast %315 : vector<5x1xf32> to vector<5x5xf32>
    %317 = arith.subf %313, %316 : vector<5x5xf32>
    %318 = math.exp %317 : vector<5x5xf32>
    %cst_281 = arith.constant dense<0.000000e+00> : vector<5xf32>
    %319 = vector.multi_reduction <add>, %318, %cst_281 [1] : vector<5x5xf32> to vector<5xf32>
    %320 = vector.shape_cast %319 : vector<5xf32> to vector<5x1xf32>
    %321 = vector.broadcast %320 : vector<5x1xf32> to vector<5x5xf32>
    %322 = arith.divf %318, %321 : vector<5x5xf32>
    %cst_282 = arith.constant dense<0.000000e+00> : vector<5x8xf32>
    %323 = tpu.matmul %322, %310, %cst_282 {dimension_numbers = #tpu.dot_dimension_numbers<[1], [0], [0], [1], [0, 0, 1, 1], [], []>} : vector<5x5xf32>, vector<5x8xf32>, vector<5x8xf32> -> vector<5x8xf32>
    %c1_283 = arith.constant 1 : index
    %c0_284 = arith.constant 0 : index
    %c0_285 = arith.constant 0 : index
    %c0_286 = arith.constant 0 : index
    %324 = vector.load %arg10[%c1_283, %c0_284, %c0_285, %c0_286] : memref<2x4x8x32xf32, #tpu.memory_space<vmem>>, vector<1x1x8x32xf32>
    %325 = vector.shape_cast %324 : vector<1x1x8x32xf32> to vector<8x32xf32>
    %cst_287 = arith.constant dense<0.000000e+00> : vector<5x32xf32>
    %326 = tpu.matmul %323, %325, %cst_287 {dimension_numbers = #tpu.dot_dimension_numbers<[1], [0], [0], [1], [0, 0, 1, 1], [], []>} : vector<5x8xf32>, vector<8x32xf32>, vector<5x32xf32> -> vector<5x32xf32>
    %c1_288 = arith.constant 1 : index
    %c0_289 = arith.constant 0 : index
    %c1_290 = arith.constant 1 : index
    %c0_291 = arith.constant 0 : index
    %c0_292 = arith.constant 0 : index
    %327 = vector.load %arg8[%c1_288, %c0_289, %c1_290, %c0_291, %c0_292] : memref<2x3x4x32x8xf32, #tpu.memory_space<vmem>>, vector<1x1x1x32x8xf32>
    %328 = vector.shape_cast %327 : vector<1x1x1x32x8xf32> to vector<32x8xf32>
    %cst_293 = arith.constant dense<0.000000e+00> : vector<5x8xf32>
    %329 = tpu.matmul %289, %328, %cst_293 {dimension_numbers = #tpu.dot_dimension_numbers<[1], [0], [0], [1], [0, 0, 1, 1], [], []>} : vector<5x32xf32>, vector<32x8xf32>, vector<5x8xf32> -> vector<5x8xf32>
    %c1_294 = arith.constant 1 : index
    %c0_295 = arith.constant 0 : index
    %c1_296 = arith.constant 1 : index
    %c0_297 = arith.constant 0 : index
    %c0_298 = arith.constant 0 : index
    %330 = vector.load %arg9[%c1_294, %c0_295, %c1_296, %c0_297, %c0_298] : memref<2x3x4x1x8xf32, #tpu.memory_space<vmem>>, vector<1x1x1x1x8xf32>
    %331 = vector.shape_cast %330 : vector<1x1x1x1x8xf32> to vector<1x8xf32>
    %332 = vector.broadcast %331 : vector<1x8xf32> to vector<5x8xf32>
    %333 = arith.addf %329, %332 : vector<5x8xf32>
    %c1_299 = arith.constant 1 : index
    %c1_300 = arith.constant 1 : index
    %c1_301 = arith.constant 1 : index
    %c0_302 = arith.constant 0 : index
    %c0_303 = arith.constant 0 : index
    %334 = vector.load %arg8[%c1_299, %c1_300, %c1_301, %c0_302, %c0_303] : memref<2x3x4x32x8xf32, #tpu.memory_space<vmem>>, vector<1x1x1x32x8xf32>
    %335 = vector.shape_cast %334 : vector<1x1x1x32x8xf32> to vector<32x8xf32>
    %cst_304 = arith.constant dense<0.000000e+00> : vector<5x8xf32>
    %336 = tpu.matmul %289, %335, %cst_304 {dimension_numbers = #tpu.dot_dimension_numbers<[1], [0], [0], [1], [0, 0, 1, 1], [], []>} : vector<5x32xf32>, vector<32x8xf32>, vector<5x8xf32> -> vector<5x8xf32>
    %c1_305 = arith.constant 1 : index
    %c1_306 = arith.constant 1 : index
    %c1_307 = arith.constant 1 : index
    %c0_308 = arith.constant 0 : index
    %c0_309 = arith.constant 0 : index
    %337 = vector.load %arg9[%c1_305, %c1_306, %c1_307, %c0_308, %c0_309] : memref<2x3x4x1x8xf32, #tpu.memory_space<vmem>>, vector<1x1x1x1x8xf32>
    %338 = vector.shape_cast %337 : vector<1x1x1x1x8xf32> to vector<1x8xf32>
    %339 = vector.broadcast %338 : vector<1x8xf32> to vector<5x8xf32>
    %340 = arith.addf %336, %339 : vector<5x8xf32>
    %c1_310 = arith.constant 1 : index
    %c2_311 = arith.constant 2 : index
    %c1_312 = arith.constant 1 : index
    %c0_313 = arith.constant 0 : index
    %c0_314 = arith.constant 0 : index
    %341 = vector.load %arg8[%c1_310, %c2_311, %c1_312, %c0_313, %c0_314] : memref<2x3x4x32x8xf32, #tpu.memory_space<vmem>>, vector<1x1x1x32x8xf32>
    %342 = vector.shape_cast %341 : vector<1x1x1x32x8xf32> to vector<32x8xf32>
    %cst_315 = arith.constant dense<0.000000e+00> : vector<5x8xf32>
    %343 = tpu.matmul %289, %342, %cst_315 {dimension_numbers = #tpu.dot_dimension_numbers<[1], [0], [0], [1], [0, 0, 1, 1], [], []>} : vector<5x32xf32>, vector<32x8xf32>, vector<5x8xf32> -> vector<5x8xf32>
    %c1_316 = arith.constant 1 : index
    %c2_317 = arith.constant 2 : index
    %c1_318 = arith.constant 1 : index
    %c0_319 = arith.constant 0 : index
    %c0_320 = arith.constant 0 : index
    %344 = vector.load %arg9[%c1_316, %c2_317, %c1_318, %c0_319, %c0_320] : memref<2x3x4x1x8xf32, #tpu.memory_space<vmem>>, vector<1x1x1x1x8xf32>
    %345 = vector.shape_cast %344 : vector<1x1x1x1x8xf32> to vector<1x8xf32>
    %346 = vector.broadcast %345 : vector<1x8xf32> to vector<5x8xf32>
    %347 = arith.addf %343, %346 : vector<5x8xf32>
    %cst_321 = arith.constant dense<0.000000e+00> : vector<5x5xf32>
    %348 = tpu.matmul %333, %340, %cst_321 {dimension_numbers = #tpu.dot_dimension_numbers<[1], [1], [0], [0], [0, 0, 1, 0], [], []>} : vector<5x8xf32>, vector<5x8xf32>, vector<5x5xf32> -> vector<5x5xf32>
    %cst_322 = arith.constant 0.353553385 : f32
    %349 = vector.broadcast %cst_322 : f32 to vector<5x5xf32>
    %350 = arith.mulf %348, %349 : vector<5x5xf32>
    %cst_323 = arith.constant dense<0xFF800000> : vector<5xf32>
    %351 = vector.multi_reduction <maximumf>, %350, %cst_323 [1] : vector<5x5xf32> to vector<5xf32>
    %352 = vector.shape_cast %351 : vector<5xf32> to vector<5x1xf32>
    %353 = vector.broadcast %352 : vector<5x1xf32> to vector<5x5xf32>
    %354 = arith.subf %350, %353 : vector<5x5xf32>
    %355 = math.exp %354 : vector<5x5xf32>
    %cst_324 = arith.constant dense<0.000000e+00> : vector<5xf32>
    %356 = vector.multi_reduction <add>, %355, %cst_324 [1] : vector<5x5xf32> to vector<5xf32>
    %357 = vector.shape_cast %356 : vector<5xf32> to vector<5x1xf32>
    %358 = vector.broadcast %357 : vector<5x1xf32> to vector<5x5xf32>
    %359 = arith.divf %355, %358 : vector<5x5xf32>
    %cst_325 = arith.constant dense<0.000000e+00> : vector<5x8xf32>
    %360 = tpu.matmul %359, %347, %cst_325 {dimension_numbers = #tpu.dot_dimension_numbers<[1], [0], [0], [1], [0, 0, 1, 1], [], []>} : vector<5x5xf32>, vector<5x8xf32>, vector<5x8xf32> -> vector<5x8xf32>
    %c1_326 = arith.constant 1 : index
    %c1_327 = arith.constant 1 : index
    %c0_328 = arith.constant 0 : index
    %c0_329 = arith.constant 0 : index
    %361 = vector.load %arg10[%c1_326, %c1_327, %c0_328, %c0_329] : memref<2x4x8x32xf32, #tpu.memory_space<vmem>>, vector<1x1x8x32xf32>
    %362 = vector.shape_cast %361 : vector<1x1x8x32xf32> to vector<8x32xf32>
    %cst_330 = arith.constant dense<0.000000e+00> : vector<5x32xf32>
    %363 = tpu.matmul %360, %362, %cst_330 {dimension_numbers = #tpu.dot_dimension_numbers<[1], [0], [0], [1], [0, 0, 1, 1], [], []>} : vector<5x8xf32>, vector<8x32xf32>, vector<5x32xf32> -> vector<5x32xf32>
    %364 = arith.addf %326, %363 : vector<5x32xf32>
    %c1_331 = arith.constant 1 : index
    %c0_332 = arith.constant 0 : index
    %c2_333 = arith.constant 2 : index
    %c0_334 = arith.constant 0 : index
    %c0_335 = arith.constant 0 : index
    %365 = vector.load %arg8[%c1_331, %c0_332, %c2_333, %c0_334, %c0_335] : memref<2x3x4x32x8xf32, #tpu.memory_space<vmem>>, vector<1x1x1x32x8xf32>
    %366 = vector.shape_cast %365 : vector<1x1x1x32x8xf32> to vector<32x8xf32>
    %cst_336 = arith.constant dense<0.000000e+00> : vector<5x8xf32>
    %367 = tpu.matmul %289, %366, %cst_336 {dimension_numbers = #tpu.dot_dimension_numbers<[1], [0], [0], [1], [0, 0, 1, 1], [], []>} : vector<5x32xf32>, vector<32x8xf32>, vector<5x8xf32> -> vector<5x8xf32>
    %c1_337 = arith.constant 1 : index
    %c0_338 = arith.constant 0 : index
    %c2_339 = arith.constant 2 : index
    %c0_340 = arith.constant 0 : index
    %c0_341 = arith.constant 0 : index
    %368 = vector.load %arg9[%c1_337, %c0_338, %c2_339, %c0_340, %c0_341] : memref<2x3x4x1x8xf32, #tpu.memory_space<vmem>>, vector<1x1x1x1x8xf32>
    %369 = vector.shape_cast %368 : vector<1x1x1x1x8xf32> to vector<1x8xf32>
    %370 = vector.broadcast %369 : vector<1x8xf32> to vector<5x8xf32>
    %371 = arith.addf %367, %370 : vector<5x8xf32>
    %c1_342 = arith.constant 1 : index
    %c1_343 = arith.constant 1 : index
    %c2_344 = arith.constant 2 : index
    %c0_345 = arith.constant 0 : index
    %c0_346 = arith.constant 0 : index
    %372 = vector.load %arg8[%c1_342, %c1_343, %c2_344, %c0_345, %c0_346] : memref<2x3x4x32x8xf32, #tpu.memory_space<vmem>>, vector<1x1x1x32x8xf32>
    %373 = vector.shape_cast %372 : vector<1x1x1x32x8xf32> to vector<32x8xf32>
    %cst_347 = arith.constant dense<0.000000e+00> : vector<5x8xf32>
    %374 = tpu.matmul %289, %373, %cst_347 {dimension_numbers = #tpu.dot_dimension_numbers<[1], [0], [0], [1], [0, 0, 1, 1], [], []>} : vector<5x32xf32>, vector<32x8xf32>, vector<5x8xf32> -> vector<5x8xf32>
    %c1_348 = arith.constant 1 : index
    %c1_349 = arith.constant 1 : index
    %c2_350 = arith.constant 2 : index
    %c0_351 = arith.constant 0 : index
    %c0_352 = arith.constant 0 : index
    %375 = vector.load %arg9[%c1_348, %c1_349, %c2_350, %c0_351, %c0_352] : memref<2x3x4x1x8xf32, #tpu.memory_space<vmem>>, vector<1x1x1x1x8xf32>
    %376 = vector.shape_cast %375 : vector<1x1x1x1x8xf32> to vector<1x8xf32>
    %377 = vector.broadcast %376 : vector<1x8xf32> to vector<5x8xf32>
    %378 = arith.addf %374, %377 : vector<5x8xf32>
    %c1_353 = arith.constant 1 : index
    %c2_354 = arith.constant 2 : index
    %c2_355 = arith.constant 2 : index
    %c0_356 = arith.constant 0 : index
    %c0_357 = arith.constant 0 : index
    %379 = vector.load %arg8[%c1_353, %c2_354, %c2_355, %c0_356, %c0_357] : memref<2x3x4x32x8xf32, #tpu.memory_space<vmem>>, vector<1x1x1x32x8xf32>
    %380 = vector.shape_cast %379 : vector<1x1x1x32x8xf32> to vector<32x8xf32>
    %cst_358 = arith.constant dense<0.000000e+00> : vector<5x8xf32>
    %381 = tpu.matmul %289, %380, %cst_358 {dimension_numbers = #tpu.dot_dimension_numbers<[1], [0], [0], [1], [0, 0, 1, 1], [], []>} : vector<5x32xf32>, vector<32x8xf32>, vector<5x8xf32> -> vector<5x8xf32>
    %c1_359 = arith.constant 1 : index
    %c2_360 = arith.constant 2 : index
    %c2_361 = arith.constant 2 : index
    %c0_362 = arith.constant 0 : index
    %c0_363 = arith.constant 0 : index
    %382 = vector.load %arg9[%c1_359, %c2_360, %c2_361, %c0_362, %c0_363] : memref<2x3x4x1x8xf32, #tpu.memory_space<vmem>>, vector<1x1x1x1x8xf32>
    %383 = vector.shape_cast %382 : vector<1x1x1x1x8xf32> to vector<1x8xf32>
    %384 = vector.broadcast %383 : vector<1x8xf32> to vector<5x8xf32>
    %385 = arith.addf %381, %384 : vector<5x8xf32>
    %cst_364 = arith.constant dense<0.000000e+00> : vector<5x5xf32>
    %386 = tpu.matmul %371, %378, %cst_364 {dimension_numbers = #tpu.dot_dimension_numbers<[1], [1], [0], [0], [0, 0, 1, 0], [], []>} : vector<5x8xf32>, vector<5x8xf32>, vector<5x5xf32> -> vector<5x5xf32>
    %cst_365 = arith.constant 0.353553385 : f32
    %387 = vector.broadcast %cst_365 : f32 to vector<5x5xf32>
    %388 = arith.mulf %386, %387 : vector<5x5xf32>
    %cst_366 = arith.constant dense<0xFF800000> : vector<5xf32>
    %389 = vector.multi_reduction <maximumf>, %388, %cst_366 [1] : vector<5x5xf32> to vector<5xf32>
    %390 = vector.shape_cast %389 : vector<5xf32> to vector<5x1xf32>
    %391 = vector.broadcast %390 : vector<5x1xf32> to vector<5x5xf32>
    %392 = arith.subf %388, %391 : vector<5x5xf32>
    %393 = math.exp %392 : vector<5x5xf32>
    %cst_367 = arith.constant dense<0.000000e+00> : vector<5xf32>
    %394 = vector.multi_reduction <add>, %393, %cst_367 [1] : vector<5x5xf32> to vector<5xf32>
    %395 = vector.shape_cast %394 : vector<5xf32> to vector<5x1xf32>
    %396 = vector.broadcast %395 : vector<5x1xf32> to vector<5x5xf32>
    %397 = arith.divf %393, %396 : vector<5x5xf32>
    %cst_368 = arith.constant dense<0.000000e+00> : vector<5x8xf32>
    %398 = tpu.matmul %397, %385, %cst_368 {dimension_numbers = #tpu.dot_dimension_numbers<[1], [0], [0], [1], [0, 0, 1, 1], [], []>} : vector<5x5xf32>, vector<5x8xf32>, vector<5x8xf32> -> vector<5x8xf32>
    %c1_369 = arith.constant 1 : index
    %c2_370 = arith.constant 2 : index
    %c0_371 = arith.constant 0 : index
    %c0_372 = arith.constant 0 : index
    %399 = vector.load %arg10[%c1_369, %c2_370, %c0_371, %c0_372] : memref<2x4x8x32xf32, #tpu.memory_space<vmem>>, vector<1x1x8x32xf32>
    %400 = vector.shape_cast %399 : vector<1x1x8x32xf32> to vector<8x32xf32>
    %cst_373 = arith.constant dense<0.000000e+00> : vector<5x32xf32>
    %401 = tpu.matmul %398, %400, %cst_373 {dimension_numbers = #tpu.dot_dimension_numbers<[1], [0], [0], [1], [0, 0, 1, 1], [], []>} : vector<5x8xf32>, vector<8x32xf32>, vector<5x32xf32> -> vector<5x32xf32>
    %402 = arith.addf %364, %401 : vector<5x32xf32>
    %c1_374 = arith.constant 1 : index
    %c0_375 = arith.constant 0 : index
    %c3_376 = arith.constant 3 : index
    %c0_377 = arith.constant 0 : index
    %c0_378 = arith.constant 0 : index
    %403 = vector.load %arg8[%c1_374, %c0_375, %c3_376, %c0_377, %c0_378] : memref<2x3x4x32x8xf32, #tpu.memory_space<vmem>>, vector<1x1x1x32x8xf32>
    %404 = vector.shape_cast %403 : vector<1x1x1x32x8xf32> to vector<32x8xf32>
    %cst_379 = arith.constant dense<0.000000e+00> : vector<5x8xf32>
    %405 = tpu.matmul %289, %404, %cst_379 {dimension_numbers = #tpu.dot_dimension_numbers<[1], [0], [0], [1], [0, 0, 1, 1], [], []>} : vector<5x32xf32>, vector<32x8xf32>, vector<5x8xf32> -> vector<5x8xf32>
    %c1_380 = arith.constant 1 : index
    %c0_381 = arith.constant 0 : index
    %c3_382 = arith.constant 3 : index
    %c0_383 = arith.constant 0 : index
    %c0_384 = arith.constant 0 : index
    %406 = vector.load %arg9[%c1_380, %c0_381, %c3_382, %c0_383, %c0_384] : memref<2x3x4x1x8xf32, #tpu.memory_space<vmem>>, vector<1x1x1x1x8xf32>
    %407 = vector.shape_cast %406 : vector<1x1x1x1x8xf32> to vector<1x8xf32>
    %408 = vector.broadcast %407 : vector<1x8xf32> to vector<5x8xf32>
    %409 = arith.addf %405, %408 : vector<5x8xf32>
    %c1_385 = arith.constant 1 : index
    %c1_386 = arith.constant 1 : index
    %c3_387 = arith.constant 3 : index
    %c0_388 = arith.constant 0 : index
    %c0_389 = arith.constant 0 : index
    %410 = vector.load %arg8[%c1_385, %c1_386, %c3_387, %c0_388, %c0_389] : memref<2x3x4x32x8xf32, #tpu.memory_space<vmem>>, vector<1x1x1x32x8xf32>
    %411 = vector.shape_cast %410 : vector<1x1x1x32x8xf32> to vector<32x8xf32>
    %cst_390 = arith.constant dense<0.000000e+00> : vector<5x8xf32>
    %412 = tpu.matmul %289, %411, %cst_390 {dimension_numbers = #tpu.dot_dimension_numbers<[1], [0], [0], [1], [0, 0, 1, 1], [], []>} : vector<5x32xf32>, vector<32x8xf32>, vector<5x8xf32> -> vector<5x8xf32>
    %c1_391 = arith.constant 1 : index
    %c1_392 = arith.constant 1 : index
    %c3_393 = arith.constant 3 : index
    %c0_394 = arith.constant 0 : index
    %c0_395 = arith.constant 0 : index
    %413 = vector.load %arg9[%c1_391, %c1_392, %c3_393, %c0_394, %c0_395] : memref<2x3x4x1x8xf32, #tpu.memory_space<vmem>>, vector<1x1x1x1x8xf32>
    %414 = vector.shape_cast %413 : vector<1x1x1x1x8xf32> to vector<1x8xf32>
    %415 = vector.broadcast %414 : vector<1x8xf32> to vector<5x8xf32>
    %416 = arith.addf %412, %415 : vector<5x8xf32>
    %c1_396 = arith.constant 1 : index
    %c2_397 = arith.constant 2 : index
    %c3_398 = arith.constant 3 : index
    %c0_399 = arith.constant 0 : index
    %c0_400 = arith.constant 0 : index
    %417 = vector.load %arg8[%c1_396, %c2_397, %c3_398, %c0_399, %c0_400] : memref<2x3x4x32x8xf32, #tpu.memory_space<vmem>>, vector<1x1x1x32x8xf32>
    %418 = vector.shape_cast %417 : vector<1x1x1x32x8xf32> to vector<32x8xf32>
    %cst_401 = arith.constant dense<0.000000e+00> : vector<5x8xf32>
    %419 = tpu.matmul %289, %418, %cst_401 {dimension_numbers = #tpu.dot_dimension_numbers<[1], [0], [0], [1], [0, 0, 1, 1], [], []>} : vector<5x32xf32>, vector<32x8xf32>, vector<5x8xf32> -> vector<5x8xf32>
    %c1_402 = arith.constant 1 : index
    %c2_403 = arith.constant 2 : index
    %c3_404 = arith.constant 3 : index
    %c0_405 = arith.constant 0 : index
    %c0_406 = arith.constant 0 : index
    %420 = vector.load %arg9[%c1_402, %c2_403, %c3_404, %c0_405, %c0_406] : memref<2x3x4x1x8xf32, #tpu.memory_space<vmem>>, vector<1x1x1x1x8xf32>
    %421 = vector.shape_cast %420 : vector<1x1x1x1x8xf32> to vector<1x8xf32>
    %422 = vector.broadcast %421 : vector<1x8xf32> to vector<5x8xf32>
    %423 = arith.addf %419, %422 : vector<5x8xf32>
    %cst_407 = arith.constant dense<0.000000e+00> : vector<5x5xf32>
    %424 = tpu.matmul %409, %416, %cst_407 {dimension_numbers = #tpu.dot_dimension_numbers<[1], [1], [0], [0], [0, 0, 1, 0], [], []>} : vector<5x8xf32>, vector<5x8xf32>, vector<5x5xf32> -> vector<5x5xf32>
    %cst_408 = arith.constant 0.353553385 : f32
    %425 = vector.broadcast %cst_408 : f32 to vector<5x5xf32>
    %426 = arith.mulf %424, %425 : vector<5x5xf32>
    %cst_409 = arith.constant dense<0xFF800000> : vector<5xf32>
    %427 = vector.multi_reduction <maximumf>, %426, %cst_409 [1] : vector<5x5xf32> to vector<5xf32>
    %428 = vector.shape_cast %427 : vector<5xf32> to vector<5x1xf32>
    %429 = vector.broadcast %428 : vector<5x1xf32> to vector<5x5xf32>
    %430 = arith.subf %426, %429 : vector<5x5xf32>
    %431 = math.exp %430 : vector<5x5xf32>
    %cst_410 = arith.constant dense<0.000000e+00> : vector<5xf32>
    %432 = vector.multi_reduction <add>, %431, %cst_410 [1] : vector<5x5xf32> to vector<5xf32>
    %433 = vector.shape_cast %432 : vector<5xf32> to vector<5x1xf32>
    %434 = vector.broadcast %433 : vector<5x1xf32> to vector<5x5xf32>
    %435 = arith.divf %431, %434 : vector<5x5xf32>
    %cst_411 = arith.constant dense<0.000000e+00> : vector<5x8xf32>
    %436 = tpu.matmul %435, %423, %cst_411 {dimension_numbers = #tpu.dot_dimension_numbers<[1], [0], [0], [1], [0, 0, 1, 1], [], []>} : vector<5x5xf32>, vector<5x8xf32>, vector<5x8xf32> -> vector<5x8xf32>
    %c1_412 = arith.constant 1 : index
    %c3_413 = arith.constant 3 : index
    %c0_414 = arith.constant 0 : index
    %c0_415 = arith.constant 0 : index
    %437 = vector.load %arg10[%c1_412, %c3_413, %c0_414, %c0_415] : memref<2x4x8x32xf32, #tpu.memory_space<vmem>>, vector<1x1x8x32xf32>
    %438 = vector.shape_cast %437 : vector<1x1x8x32xf32> to vector<8x32xf32>
    %cst_416 = arith.constant dense<0.000000e+00> : vector<5x32xf32>
    %439 = tpu.matmul %436, %438, %cst_416 {dimension_numbers = #tpu.dot_dimension_numbers<[1], [0], [0], [1], [0, 0, 1, 1], [], []>} : vector<5x8xf32>, vector<8x32xf32>, vector<5x32xf32> -> vector<5x32xf32>
    %440 = arith.addf %402, %439 : vector<5x32xf32>
    %441 = arith.addf %263, %440 : vector<5x32xf32>
    %c1_417 = arith.constant 1 : index
    %c0_418 = arith.constant 0 : index
    %c0_419 = arith.constant 0 : index
    %442 = vector.load %arg11[%c1_417, %c0_418, %c0_419] : memref<2x1x32xf32, #tpu.memory_space<vmem>>, vector<1x1x32xf32>
    %443 = vector.shape_cast %442 : vector<1x1x32xf32> to vector<1x32xf32>
    %444 = vector.broadcast %443 : vector<1x32xf32> to vector<5x32xf32>
    %445 = arith.addf %441, %444 : vector<5x32xf32>
    %c1_420 = arith.constant 1 : index
    %c2_421 = arith.constant 2 : index
    %c0_422 = arith.constant 0 : index
    %c0_423 = arith.constant 0 : index
    %446 = vector.load %arg7[%c1_420, %c2_421, %c0_422, %c0_423] : memref<2x4x1x32xf32, #tpu.memory_space<vmem>>, vector<1x1x1x32xf32>
    %447 = vector.shape_cast %446 : vector<1x1x1x32xf32> to vector<1x32xf32>
    %c1_424 = arith.constant 1 : index
    %c3_425 = arith.constant 3 : index
    %c0_426 = arith.constant 0 : index
    %c0_427 = arith.constant 0 : index
    %448 = vector.load %arg7[%c1_424, %c3_425, %c0_426, %c0_427] : memref<2x4x1x32xf32, #tpu.memory_space<vmem>>, vector<1x1x1x32xf32>
    %449 = vector.shape_cast %448 : vector<1x1x1x32xf32> to vector<1x32xf32>
    %cst_428 = arith.constant dense<0.000000e+00> : vector<5xf32>
    %450 = vector.multi_reduction <add>, %445, %cst_428 [1] : vector<5x32xf32> to vector<5xf32>
    %451 = vector.shape_cast %450 : vector<5xf32> to vector<5x1xf32>
    %cst_429 = arith.constant 3.200000e+01 : f32
    %452 = vector.broadcast %cst_429 : f32 to vector<5x1xf32>
    %453 = arith.divf %451, %452 : vector<5x1xf32>
    %454 = vector.broadcast %453 : vector<5x1xf32> to vector<5x32xf32>
    %455 = arith.subf %445, %454 : vector<5x32xf32>
    %456 = arith.mulf %455, %455 : vector<5x32xf32>
    %cst_430 = arith.constant dense<0.000000e+00> : vector<5xf32>
    %457 = vector.multi_reduction <add>, %456, %cst_430 [1] : vector<5x32xf32> to vector<5xf32>
    %458 = vector.shape_cast %457 : vector<5xf32> to vector<5x1xf32>
    %cst_431 = arith.constant 3.200000e+01 : f32
    %459 = vector.broadcast %cst_431 : f32 to vector<5x1xf32>
    %460 = arith.divf %458, %459 : vector<5x1xf32>
    %461 = vector.broadcast %453 : vector<5x1xf32> to vector<5x32xf32>
    %462 = arith.subf %445, %461 : vector<5x32xf32>
    %cst_432 = arith.constant 9.99999974E-6 : f32
    %463 = vector.broadcast %cst_432 : f32 to vector<5x1xf32>
    %464 = arith.addf %460, %463 : vector<5x1xf32>
    %465 = math.rsqrt %464 : vector<5x1xf32>
    %466 = vector.broadcast %465 : vector<5x1xf32> to vector<5x32xf32>
    %467 = arith.mulf %462, %466 : vector<5x32xf32>
    %468 = vector.broadcast %447 : vector<1x32xf32> to vector<5x32xf32>
    %469 = arith.mulf %467, %468 : vector<5x32xf32>
    %470 = vector.broadcast %449 : vector<1x32xf32> to vector<5x32xf32>
    %471 = arith.addf %469, %470 : vector<5x32xf32>
    %c1_433 = arith.constant 1 : index
    %c0_434 = arith.constant 0 : index
    %c0_435 = arith.constant 0 : index
    %472 = vector.load %arg12[%c1_433, %c0_434, %c0_435] : memref<2x32x128xf32, #tpu.memory_space<vmem>>, vector<1x32x128xf32>
    %473 = vector.shape_cast %472 : vector<1x32x128xf32> to vector<32x128xf32>
    %cst_436 = arith.constant dense<0.000000e+00> : vector<5x128xf32>
    %474 = tpu.matmul %471, %473, %cst_436 {dimension_numbers = #tpu.dot_dimension_numbers<[1], [0], [0], [1], [0, 0, 1, 1], [], []>} : vector<5x32xf32>, vector<32x128xf32>, vector<5x128xf32> -> vector<5x128xf32>
    %c1_437 = arith.constant 1 : index
    %c0_438 = arith.constant 0 : index
    %c0_439 = arith.constant 0 : index
    %475 = vector.load %arg13[%c1_437, %c0_438, %c0_439] : memref<2x1x128xf32, #tpu.memory_space<vmem>>, vector<1x1x128xf32>
    %476 = vector.shape_cast %475 : vector<1x1x128xf32> to vector<1x128xf32>
    %477 = vector.broadcast %476 : vector<1x128xf32> to vector<5x128xf32>
    %478 = arith.addf %474, %477 : vector<5x128xf32>
    %cst_440 = arith.constant 5.000000e-01 : f32
    %479 = vector.broadcast %cst_440 : f32 to vector<5x128xf32>
    %480 = arith.mulf %479, %478 : vector<5x128xf32>
    %cst_441 = arith.constant 4.471500e-02 : f32
    %481 = vector.broadcast %cst_441 : f32 to vector<5x128xf32>
    %482 = arith.mulf %481, %478 : vector<5x128xf32>
    %483 = arith.mulf %482, %478 : vector<5x128xf32>
    %484 = arith.mulf %483, %478 : vector<5x128xf32>
    %485 = arith.addf %478, %484 : vector<5x128xf32>
    %cst_442 = arith.constant 0.797884583 : f32
    %486 = vector.broadcast %cst_442 : f32 to vector<5x128xf32>
    %487 = arith.mulf %486, %485 : vector<5x128xf32>
    %488 = math.tanh %487 : vector<5x128xf32>
    %cst_443 = arith.constant 1.000000e+00 : f32
    %489 = vector.broadcast %cst_443 : f32 to vector<5x128xf32>
    %490 = arith.addf %489, %488 : vector<5x128xf32>
    %491 = arith.mulf %480, %490 : vector<5x128xf32>
    %c1_444 = arith.constant 1 : index
    %c0_445 = arith.constant 0 : index
    %c0_446 = arith.constant 0 : index
    %492 = vector.load %arg14[%c1_444, %c0_445, %c0_446] : memref<2x128x32xf32, #tpu.memory_space<vmem>>, vector<1x128x32xf32>
    %493 = vector.shape_cast %492 : vector<1x128x32xf32> to vector<128x32xf32>
    %cst_447 = arith.constant dense<0.000000e+00> : vector<5x32xf32>
    %494 = tpu.matmul %491, %493, %cst_447 {dimension_numbers = #tpu.dot_dimension_numbers<[1], [0], [0], [1], [0, 0, 1, 1], [], []>} : vector<5x128xf32>, vector<128x32xf32>, vector<5x32xf32> -> vector<5x32xf32>
    %c1_448 = arith.constant 1 : index
    %c0_449 = arith.constant 0 : index
    %c0_450 = arith.constant 0 : index
    %495 = vector.load %arg15[%c1_448, %c0_449, %c0_450] : memref<2x1x32xf32, #tpu.memory_space<vmem>>, vector<1x1x32xf32>
    %496 = vector.shape_cast %495 : vector<1x1x32xf32> to vector<1x32xf32>
    %497 = vector.broadcast %496 : vector<1x32xf32> to vector<5x32xf32>
    %498 = arith.addf %494, %497 : vector<5x32xf32>
    %499 = arith.addf %445, %498 : vector<5x32xf32>
    %c0_451 = arith.constant 0 : index
    %c0_452 = arith.constant 0 : index
    %500 = vector.load %arg16[%c0_451, %c0_452] : memref<1x32xf32, #tpu.memory_space<vmem>>, vector<1x32xf32>
    %c0_453 = arith.constant 0 : index
    %c0_454 = arith.constant 0 : index
    %501 = vector.load %arg17[%c0_453, %c0_454] : memref<1x32xf32, #tpu.memory_space<vmem>>, vector<1x32xf32>
    %cst_455 = arith.constant dense<0.000000e+00> : vector<5xf32>
    %502 = vector.multi_reduction <add>, %499, %cst_455 [1] : vector<5x32xf32> to vector<5xf32>
    %503 = vector.shape_cast %502 : vector<5xf32> to vector<5x1xf32>
    %cst_456 = arith.constant 3.200000e+01 : f32
    %504 = vector.broadcast %cst_456 : f32 to vector<5x1xf32>
    %505 = arith.divf %503, %504 : vector<5x1xf32>
    %506 = vector.broadcast %505 : vector<5x1xf32> to vector<5x32xf32>
    %507 = arith.subf %499, %506 : vector<5x32xf32>
    %508 = arith.mulf %507, %507 : vector<5x32xf32>
    %cst_457 = arith.constant dense<0.000000e+00> : vector<5xf32>
    %509 = vector.multi_reduction <add>, %508, %cst_457 [1] : vector<5x32xf32> to vector<5xf32>
    %510 = vector.shape_cast %509 : vector<5xf32> to vector<5x1xf32>
    %cst_458 = arith.constant 3.200000e+01 : f32
    %511 = vector.broadcast %cst_458 : f32 to vector<5x1xf32>
    %512 = arith.divf %510, %511 : vector<5x1xf32>
    %513 = vector.broadcast %505 : vector<5x1xf32> to vector<5x32xf32>
    %514 = arith.subf %499, %513 : vector<5x32xf32>
    %cst_459 = arith.constant 9.99999974E-6 : f32
    %515 = vector.broadcast %cst_459 : f32 to vector<5x1xf32>
    %516 = arith.addf %512, %515 : vector<5x1xf32>
    %517 = math.rsqrt %516 : vector<5x1xf32>
    %518 = vector.broadcast %517 : vector<5x1xf32> to vector<5x32xf32>
    %519 = arith.mulf %514, %518 : vector<5x32xf32>
    %520 = vector.broadcast %500 : vector<1x32xf32> to vector<5x32xf32>
    %521 = arith.mulf %519, %520 : vector<5x32xf32>
    %522 = vector.broadcast %501 : vector<1x32xf32> to vector<5x32xf32>
    %523 = arith.addf %521, %522 : vector<5x32xf32>
    %c0_460 = arith.constant 0 : index
    %c0_461 = arith.constant 0 : index
    %524 = vector.load %arg18[%c0_460, %c0_461] : memref<32x32xf32, #tpu.memory_space<vmem>>, vector<32x32xf32>
    %cst_462 = arith.constant dense<0.000000e+00> : vector<5x32xf32>
    %525 = tpu.matmul %523, %524, %cst_462 {dimension_numbers = #tpu.dot_dimension_numbers<[1], [0], [0], [1], [0, 0, 1, 1], [], []>} : vector<5x32xf32>, vector<32x32xf32>, vector<5x32xf32> -> vector<5x32xf32>
    %c0_463 = arith.constant 0 : index
    %c0_464 = arith.constant 0 : index
    %526 = vector.load %arg19[%c0_463, %c0_464] : memref<1x32xf32, #tpu.memory_space<vmem>>, vector<1x32xf32>
    %527 = vector.broadcast %526 : vector<1x32xf32> to vector<5x32xf32>
    %528 = arith.addf %525, %527 : vector<5x32xf32>
    %c0_465 = arith.constant 0 : index
    %c0_466 = arith.constant 0 : index
    %c0_467 = arith.constant 0 : index
    %529 = vector.load %arg20[%c0_465, %c0_466, %c0_467] : memref<1x5x32xf32, #tpu.memory_space<vmem>>, vector<1x5x32xf32>
    %530 = vector.shape_cast %529 : vector<1x5x32xf32> to vector<5x32xf32>
    %531 = vector.shape_cast %528 : vector<5x32xf32> to vector<1x5x32xf32>
    tpu.vector_store %arg20[%c0_465, %c0_466, %c0_467], %531 {strides = array<i32>} : memref<1x5x32xf32, #tpu.memory_space<vmem>>, vector<1x5x32xf32>,
    return
  }
  func.func @transform_0(%arg0: i32) -> (i32, i32, i32) {
    %c0_i32 = arith.constant 0 : i32
    %c0_i32_0 = arith.constant 0 : i32
    %c0_i32_1 = arith.constant 0 : i32
    return %arg0, %c0_i32, %c0_i32_0 : i32, i32, i32
  }
  func.func @transform_1(%arg0: i32) -> (i32, i32, i32) {
    %c0_i32 = arith.constant 0 : i32
    %c0_i32_0 = arith.constant 0 : i32
    %c0_i32_1 = arith.constant 0 : i32
    return %arg0, %c0_i32, %c0_i32_0 : i32, i32, i32
  }
  func.func @transform_2(%arg0: i32) -> (i32, i32) {
    %c0_i32 = arith.constant 0 : i32
    %c0_i32_0 = arith.constant 0 : i32
    %c0_i32_1 = arith.constant 0 : i32
    return %c0_i32, %c0_i32_0 : i32, i32
  }
  func.func @transform_3(%arg0: i32) -> (i32, i32) {
    %c0_i32 = arith.constant 0 : i32
    %c0_i32_0 = arith.constant 0 : i32
    %c0_i32_1 = arith.constant 0 : i32
    return %c0_i32, %c0_i32_0 : i32, i32
  }
  func.func @transform_4(%arg0: i32) -> (i32, i32) {
    %c0_i32 = arith.constant 0 : i32
    %c0_i32_0 = arith.constant 0 : i32
    %c0_i32_1 = arith.constant 0 : i32
    return %c0_i32, %c0_i32_0 : i32, i32
  }
  func.func @transform_5(%arg0: i32) -> (i32, i32) {
    %c0_i32 = arith.constant 0 : i32
    %c0_i32_0 = arith.constant 0 : i32
    %c0_i32_1 = arith.constant 0 : i32
    return %c0_i32, %c0_i32_0 : i32, i32
  }
  func.func @transform_6(%arg0: i32) -> (i32, i32, i32, i32) {
    %c0_i32 = arith.constant 0 : i32
    %c0_i32_0 = arith.constant 0 : i32
    %c0_i32_1 = arith.constant 0 : i32
    %c0_i32_2 = arith.constant 0 : i32
    %c0_i32_3 = arith.constant 0 : i32
    return %c0_i32, %c0_i32_0, %c0_i32_1, %c0_i32_2 : i32, i32, i32, i32
  }
  func.func @transform_7(%arg0: i32) -> (i32, i32, i32, i32, i32) {
    %c0_i32 = arith.constant 0 : i32
    %c0_i32_0 = arith.constant 0 : i32
    %c0_i32_1 = arith.constant 0 : i32
    %c0_i32_2 = arith.constant 0 : i32
    %c0_i32_3 = arith.constant 0 : i32
    %c0_i32_4 = arith.constant 0 : i32
    return %c0_i32, %c0_i32_0, %c0_i32_1, %c0_i32_2, %c0_i32_3 : i32, i32, i32, i32, i32
  }
  func.func @transform_8(%arg0: i32) -> (i32, i32, i32, i32, i32) {
    %c0_i32 = arith.constant 0 : i32
    %c0_i32_0 = arith.constant 0 : i32
    %c0_i32_1 = arith.constant 0 : i32
    %c0_i32_2 = arith.constant 0 : i32
    %c0_i32_3 = arith.constant 0 : i32
    %c0_i32_4 = arith.constant 0 : i32
    return %c0_i32, %c0_i32_0, %c0_i32_1, %c0_i32_2, %c0_i32_3 : i32, i32, i32, i32, i32
  }
  func.func @transform_9(%arg0: i32) -> (i32, i32, i32, i32) {
    %c0_i32 = arith.constant 0 : i32
    %c0_i32_0 = arith.constant 0 : i32
    %c0_i32_1 = arith.constant 0 : i32
    %c0_i32_2 = arith.constant 0 : i32
    %c0_i32_3 = arith.constant 0 : i32
    return %c0_i32, %c0_i32_0, %c0_i32_1, %c0_i32_2 : i32, i32, i32, i32
  }
  func.func @transform_10(%arg0: i32) -> (i32, i32, i32) {
    %c0_i32 = arith.constant 0 : i32
    %c0_i32_0 = arith.constant 0 : i32
    %c0_i32_1 = arith.constant 0 : i32
    %c0_i32_2 = arith.constant 0 : i32
    return %c0_i32, %c0_i32_0, %c0_i32_1 : i32, i32, i32
  }
  func.func @transform_11(%arg0: i32) -> (i32, i32, i32) {
    %c0_i32 = arith.constant 0 : i32
    %c0_i32_0 = arith.constant 0 : i32
    %c0_i32_1 = arith.constant 0 : i32
    %c0_i32_2 = arith.constant 0 : i32
    return %c0_i32, %c0_i32_0, %c0_i32_1 : i32, i32, i32
  }
  func.func @transform_12(%arg0: i32) -> (i32, i32, i32) {
    %c0_i32 = arith.constant 0 : i32
    %c0_i32_0 = arith.constant 0 : i32
    %c0_i32_1 = arith.constant 0 : i32
    %c0_i32_2 = arith.constant 0 : i32
    return %c0_i32, %c0_i32_0, %c0_i32_1 : i32, i32, i32
  }
  func.func @transform_13(%arg0: i32) -> (i32, i32, i32) {
    %c0_i32 = arith.constant 0 : i32
    %c0_i32_0 = arith.constant 0 : i32
    %c0_i32_1 = arith.constant 0 : i32
    %c0_i32_2 = arith.constant 0 : i32
    return %c0_i32, %c0_i32_0, %c0_i32_1 : i32, i32, i32
  }
  func.func @transform_14(%arg0: i32) -> (i32, i32, i32) {
    %c0_i32 = arith.constant 0 : i32
    %c0_i32_0 = arith.constant 0 : i32
    %c0_i32_1 = arith.constant 0 : i32
    %c0_i32_2 = arith.constant 0 : i32
    return %c0_i32, %c0_i32_0, %c0_i32_1 : i32, i32, i32
  }
  func.func @transform_15(%arg0: i32) -> (i32, i32) {
    %c0_i32 = arith.constant 0 : i32
    %c0_i32_0 = arith.constant 0 : i32
    %c0_i32_1 = arith.constant 0 : i32
    return %c0_i32, %c0_i32_0 : i32, i32
  }
  func.func @transform_16(%arg0: i32) -> (i32, i32) {
    %c0_i32 = arith.constant 0 : i32
    %c0_i32_0 = arith.constant 0 : i32
    %c0_i32_1 = arith.constant 0 : i32
    return %c0_i32, %c0_i32_0 : i32, i32
  }
  func.func @transform_17(%arg0: i32) -> (i32, i32) {
    %c0_i32 = arith.constant 0 : i32
    %c0_i32_0 = arith.constant 0 : i32
    %c0_i32_1 = arith.constant 0 : i32
    return %c0_i32, %c0_i32_0 : i32, i32
  }
  func.func @transform_18(%arg0: i32) -> (i32, i32) {
    %c0_i32 = arith.constant 0 : i32
    %c0_i32_0 = arith.constant 0 : i32
    %c0_i32_1 = arith.constant 0 : i32
    return %c0_i32, %c0_i32_0 : i32, i32
  }
  func.func @transform_19(%arg0: i32) -> (i32, i32, i32) {
    %c0_i32 = arith.constant 0 : i32
    %c0_i32_0 = arith.constant 0 : i32
    %c0_i32_1 = arith.constant 0 : i32
    return %arg0, %c0_i32, %c0_i32_0 : i32, i32, i32
  }
}

module attributes {stable_mosaic.version = 11 : i64} {
  func.func @_decoder_kernel(%arg0: i32, %arg1: memref<1x5x32xf32, #tpu.memory_space<vmem>>, %arg2: memref<1x17x1xi32, #tpu.memory_space<vmem>>, %arg3: memref<1x16x48xf32, #tpu.memory_space<vmem>>, %arg4: memref<1x32xf32, #tpu.memory_space<vmem>>, %arg5: memref<17x32xf32, #tpu.memory_space<vmem>>, %arg6: memref<2x4x1x32xf32, #tpu.memory_space<vmem>>, %arg7: memref<2x3x4x32x8xf32, #tpu.memory_space<vmem>>, %arg8: memref<2x3x4x1x8xf32, #tpu.memory_space<vmem>>, %arg9: memref<2x4x8x32xf32, #tpu.memory_space<vmem>>, %arg10: memref<2x1x32xf32, #tpu.memory_space<vmem>>, %arg11: memref<2x32x128xf32, #tpu.memory_space<vmem>>, %arg12: memref<2x1x128xf32, #tpu.memory_space<vmem>>, %arg13: memref<2x128x32xf32, #tpu.memory_space<vmem>>, %arg14: memref<2x1x32xf32, #tpu.memory_space<vmem>>, %arg15: memref<1x32xf32, #tpu.memory_space<vmem>>, %arg16: memref<1x32xf32, #tpu.memory_space<vmem>>, %arg17: memref<32x48xf32, #tpu.memory_space<vmem>>, %arg18: memref<1x48xf32, #tpu.memory_space<vmem>>, %arg19: memref<1x16x48xf32, #tpu.memory_space<vmem>>, %arg20: memref<1x16x1xf32, #tpu.memory_space<vmem>>) attributes {dimension_semantics = [#tpu.dimension_semantics<parallel>], iteration_bounds = array<i64: 2>, scalar_prefetch = 0 : i64, scratch_operands = 0 : i64, tpu.core_type = #tpu.core_type<tc>, window_params = [{transform_indices = @transform_0, window_bounds = array<i64: 1, 5, 32>}, {transform_indices = @transform_1, window_bounds = array<i64: 1, 17, 1>}, {transform_indices = @transform_2, window_bounds = array<i64: 1, 16, 48>}, {pipeline_mode = #tpu.pipeline_mode<synchronous>, transform_indices = @transform_3, window_bounds = array<i64: 1, 32>}, {pipeline_mode = #tpu.pipeline_mode<synchronous>, transform_indices = @transform_4, window_bounds = array<i64: 17, 32>}, {pipeline_mode = #tpu.pipeline_mode<synchronous>, transform_indices = @transform_5, window_bounds = array<i64: 2, 4, 1, 32>}, {pipeline_mode = #tpu.pipeline_mode<synchronous>, transform_indices = @transform_6, window_bounds = array<i64: 2, 3, 4, 32, 8>}, {pipeline_mode = #tpu.pipeline_mode<synchronous>, transform_indices = @transform_7, window_bounds = array<i64: 2, 3, 4, 1, 8>}, {pipeline_mode = #tpu.pipeline_mode<synchronous>, transform_indices = @transform_8, window_bounds = array<i64: 2, 4, 8, 32>}, {pipeline_mode = #tpu.pipeline_mode<synchronous>, transform_indices = @transform_9, window_bounds = array<i64: 2, 1, 32>}, {pipeline_mode = #tpu.pipeline_mode<synchronous>, transform_indices = @transform_10, window_bounds = array<i64: 2, 32, 128>}, {pipeline_mode = #tpu.pipeline_mode<synchronous>, transform_indices = @transform_11, window_bounds = array<i64: 2, 1, 128>}, {pipeline_mode = #tpu.pipeline_mode<synchronous>, transform_indices = @transform_12, window_bounds = array<i64: 2, 128, 32>}, {pipeline_mode = #tpu.pipeline_mode<synchronous>, transform_indices = @transform_13, window_bounds = array<i64: 2, 1, 32>}, {pipeline_mode = #tpu.pipeline_mode<synchronous>, transform_indices = @transform_14, window_bounds = array<i64: 1, 32>}, {pipeline_mode = #tpu.pipeline_mode<synchronous>, transform_indices = @transform_15, window_bounds = array<i64: 1, 32>}, {pipeline_mode = #tpu.pipeline_mode<synchronous>, transform_indices = @transform_16, window_bounds = array<i64: 32, 48>}, {pipeline_mode = #tpu.pipeline_mode<synchronous>, transform_indices = @transform_17, window_bounds = array<i64: 1, 48>}, {transform_indices = @transform_18, window_bounds = array<i64: 1, 16, 48>}, {transform_indices = @transform_19, window_bounds = array<i64: 1, 16, 1>}]} {
    %c0 = arith.constant 0 : index
    %c0_0 = arith.constant 0 : index
    %c0_1 = arith.constant 0 : index
    %0 = vector.load %arg1[%c0, %c0_0, %c0_1] : memref<1x5x32xf32, #tpu.memory_space<vmem>>, vector<1x5x32xf32>
    %1 = vector.shape_cast %0 : vector<1x5x32xf32> to vector<5x32xf32>
    %c0_2 = arith.constant 0 : index
    %c0_3 = arith.constant 0 : index
    %c0_4 = arith.constant 0 : index
    %2 = vector.load %arg2[%c0_2, %c0_3, %c0_4] : memref<1x17x1xi32, #tpu.memory_space<vmem>>, vector<1x17x1xi32>
    %3 = vector.shape_cast %2 : vector<1x17x1xi32> to vector<17x1xi32>
    %4 = tpu.iota {dimensions = array<i32: 1>} : vector<17x5xi32>
    %5 = vector.broadcast %3 : vector<17x1xi32> to vector<17x5xi32>
    %6 = arith.cmpi eq, %5, %4 : vector<17x5xi32>
    %7 = arith.extui %6 : vector<17x5xi1> to vector<17x5xi32>
    %8 = arith.sitofp %7 : vector<17x5xi32> to vector<17x5xf32>
    %c5_i32 = arith.constant 5 : i32
    %9 = vector.broadcast %c5_i32 : i32 to vector<17x1xi32>
    %10 = arith.cmpi sge, %3, %9 : vector<17x1xi32>
    %11 = arith.extui %10 : vector<17x1xi1> to vector<17x1xi32>
    %12 = arith.sitofp %11 : vector<17x1xi32> to vector<17x1xf32>
    %cst = arith.constant dense<0.000000e+00> : vector<17x32xf32>
    %13 = tpu.matmul %8, %1, %cst {dimension_numbers = #tpu.dot_dimension_numbers<[1], [0], [0], [1], [0, 0, 1, 1], [], []>} : vector<17x5xf32>, vector<5x32xf32>, vector<17x32xf32> -> vector<17x32xf32>
    %c0_5 = arith.constant 0 : index
    %c0_6 = arith.constant 0 : index
    %14 = vector.load %arg4[%c0_5, %c0_6] : memref<1x32xf32, #tpu.memory_space<vmem>>, vector<1x32xf32>
    %15 = vector.broadcast %12 : vector<17x1xf32> to vector<17x32xf32>
    %16 = vector.broadcast %14 : vector<1x32xf32> to vector<17x32xf32>
    %17 = arith.mulf %15, %16 : vector<17x32xf32>
    %18 = arith.addf %13, %17 : vector<17x32xf32>
    %c0_7 = arith.constant 0 : index
    %c0_8 = arith.constant 0 : index
    %19 = vector.load %arg5[%c0_7, %c0_8] : memref<17x32xf32, #tpu.memory_space<vmem>>, vector<17x32xf32>
    %20 = arith.addf %18, %19 : vector<17x32xf32>
    %c0_9 = arith.constant 0 : index
    %c0_10 = arith.constant 0 : index
    %c0_11 = arith.constant 0 : index
    %c0_12 = arith.constant 0 : index
    %21 = vector.load %arg6[%c0_9, %c0_10, %c0_11, %c0_12] : memref<2x4x1x32xf32, #tpu.memory_space<vmem>>, vector<1x1x1x32xf32>
    %22 = vector.shape_cast %21 : vector<1x1x1x32xf32> to vector<1x32xf32>
    %c0_13 = arith.constant 0 : index
    %c1 = arith.constant 1 : index
    %c0_14 = arith.constant 0 : index
    %c0_15 = arith.constant 0 : index
    %23 = vector.load %arg6[%c0_13, %c1, %c0_14, %c0_15] : memref<2x4x1x32xf32, #tpu.memory_space<vmem>>, vector<1x1x1x32xf32>
    %24 = vector.shape_cast %23 : vector<1x1x1x32xf32> to vector<1x32xf32>
    %cst_16 = arith.constant dense<0.000000e+00> : vector<17xf32>
    %25 = vector.multi_reduction <add>, %20, %cst_16 [1] : vector<17x32xf32> to vector<17xf32>
    %26 = vector.shape_cast %25 : vector<17xf32> to vector<17x1xf32>
    %cst_17 = arith.constant 3.200000e+01 : f32
    %27 = vector.broadcast %cst_17 : f32 to vector<17x1xf32>
    %28 = arith.divf %26, %27 : vector<17x1xf32>
    %29 = vector.broadcast %28 : vector<17x1xf32> to vector<17x32xf32>
    %30 = arith.subf %20, %29 : vector<17x32xf32>
    %31 = arith.mulf %30, %30 : vector<17x32xf32>
    %cst_18 = arith.constant dense<0.000000e+00> : vector<17xf32>
    %32 = vector.multi_reduction <add>, %31, %cst_18 [1] : vector<17x32xf32> to vector<17xf32>
    %33 = vector.shape_cast %32 : vector<17xf32> to vector<17x1xf32>
    %cst_19 = arith.constant 3.200000e+01 : f32
    %34 = vector.broadcast %cst_19 : f32 to vector<17x1xf32>
    %35 = arith.divf %33, %34 : vector<17x1xf32>
    %36 = vector.broadcast %28 : vector<17x1xf32> to vector<17x32xf32>
    %37 = arith.subf %20, %36 : vector<17x32xf32>
    %cst_20 = arith.constant 9.99999974E-6 : f32
    %38 = vector.broadcast %cst_20 : f32 to vector<17x1xf32>
    %39 = arith.addf %35, %38 : vector<17x1xf32>
    %40 = math.rsqrt %39 : vector<17x1xf32>
    %41 = vector.broadcast %40 : vector<17x1xf32> to vector<17x32xf32>
    %42 = arith.mulf %37, %41 : vector<17x32xf32>
    %43 = vector.broadcast %22 : vector<1x32xf32> to vector<17x32xf32>
    %44 = arith.mulf %42, %43 : vector<17x32xf32>
    %45 = vector.broadcast %24 : vector<1x32xf32> to vector<17x32xf32>
    %46 = arith.addf %44, %45 : vector<17x32xf32>
    %c0_21 = arith.constant 0 : index
    %c0_22 = arith.constant 0 : index
    %c0_23 = arith.constant 0 : index
    %c0_24 = arith.constant 0 : index
    %c0_25 = arith.constant 0 : index
    %47 = vector.load %arg7[%c0_21, %c0_22, %c0_23, %c0_24, %c0_25] : memref<2x3x4x32x8xf32, #tpu.memory_space<vmem>>, vector<1x1x1x32x8xf32>
    %48 = vector.shape_cast %47 : vector<1x1x1x32x8xf32> to vector<32x8xf32>
    %cst_26 = arith.constant dense<0.000000e+00> : vector<17x8xf32>
    %49 = tpu.matmul %46, %48, %cst_26 {dimension_numbers = #tpu.dot_dimension_numbers<[1], [0], [0], [1], [0, 0, 1, 1], [], []>} : vector<17x32xf32>, vector<32x8xf32>, vector<17x8xf32> -> vector<17x8xf32>
    %c0_27 = arith.constant 0 : index
    %c0_28 = arith.constant 0 : index
    %c0_29 = arith.constant 0 : index
    %c0_30 = arith.constant 0 : index
    %c0_31 = arith.constant 0 : index
    %50 = vector.load %arg8[%c0_27, %c0_28, %c0_29, %c0_30, %c0_31] : memref<2x3x4x1x8xf32, #tpu.memory_space<vmem>>, vector<1x1x1x1x8xf32>
    %51 = vector.shape_cast %50 : vector<1x1x1x1x8xf32> to vector<1x8xf32>
    %52 = vector.broadcast %51 : vector<1x8xf32> to vector<17x8xf32>
    %53 = arith.addf %49, %52 : vector<17x8xf32>
    %c0_32 = arith.constant 0 : index
    %c1_33 = arith.constant 1 : index
    %c0_34 = arith.constant 0 : index
    %c0_35 = arith.constant 0 : index
    %c0_36 = arith.constant 0 : index
    %54 = vector.load %arg7[%c0_32, %c1_33, %c0_34, %c0_35, %c0_36] : memref<2x3x4x32x8xf32, #tpu.memory_space<vmem>>, vector<1x1x1x32x8xf32>
    %55 = vector.shape_cast %54 : vector<1x1x1x32x8xf32> to vector<32x8xf32>
    %cst_37 = arith.constant dense<0.000000e+00> : vector<17x8xf32>
    %56 = tpu.matmul %46, %55, %cst_37 {dimension_numbers = #tpu.dot_dimension_numbers<[1], [0], [0], [1], [0, 0, 1, 1], [], []>} : vector<17x32xf32>, vector<32x8xf32>, vector<17x8xf32> -> vector<17x8xf32>
    %c0_38 = arith.constant 0 : index
    %c1_39 = arith.constant 1 : index
    %c0_40 = arith.constant 0 : index
    %c0_41 = arith.constant 0 : index
    %c0_42 = arith.constant 0 : index
    %57 = vector.load %arg8[%c0_38, %c1_39, %c0_40, %c0_41, %c0_42] : memref<2x3x4x1x8xf32, #tpu.memory_space<vmem>>, vector<1x1x1x1x8xf32>
    %58 = vector.shape_cast %57 : vector<1x1x1x1x8xf32> to vector<1x8xf32>
    %59 = vector.broadcast %58 : vector<1x8xf32> to vector<17x8xf32>
    %60 = arith.addf %56, %59 : vector<17x8xf32>
    %c0_43 = arith.constant 0 : index
    %c2 = arith.constant 2 : index
    %c0_44 = arith.constant 0 : index
    %c0_45 = arith.constant 0 : index
    %c0_46 = arith.constant 0 : index
    %61 = vector.load %arg7[%c0_43, %c2, %c0_44, %c0_45, %c0_46] : memref<2x3x4x32x8xf32, #tpu.memory_space<vmem>>, vector<1x1x1x32x8xf32>
    %62 = vector.shape_cast %61 : vector<1x1x1x32x8xf32> to vector<32x8xf32>
    %cst_47 = arith.constant dense<0.000000e+00> : vector<17x8xf32>
    %63 = tpu.matmul %46, %62, %cst_47 {dimension_numbers = #tpu.dot_dimension_numbers<[1], [0], [0], [1], [0, 0, 1, 1], [], []>} : vector<17x32xf32>, vector<32x8xf32>, vector<17x8xf32> -> vector<17x8xf32>
    %c0_48 = arith.constant 0 : index
    %c2_49 = arith.constant 2 : index
    %c0_50 = arith.constant 0 : index
    %c0_51 = arith.constant 0 : index
    %c0_52 = arith.constant 0 : index
    %64 = vector.load %arg8[%c0_48, %c2_49, %c0_50, %c0_51, %c0_52] : memref<2x3x4x1x8xf32, #tpu.memory_space<vmem>>, vector<1x1x1x1x8xf32>
    %65 = vector.shape_cast %64 : vector<1x1x1x1x8xf32> to vector<1x8xf32>
    %66 = vector.broadcast %65 : vector<1x8xf32> to vector<17x8xf32>
    %67 = arith.addf %63, %66 : vector<17x8xf32>
    %cst_53 = arith.constant dense<0.000000e+00> : vector<17x17xf32>
    %68 = tpu.matmul %53, %60, %cst_53 {dimension_numbers = #tpu.dot_dimension_numbers<[1], [1], [0], [0], [0, 0, 1, 0], [], []>} : vector<17x8xf32>, vector<17x8xf32>, vector<17x17xf32> -> vector<17x17xf32>
    %cst_54 = arith.constant 0.353553385 : f32
    %69 = vector.broadcast %cst_54 : f32 to vector<17x17xf32>
    %70 = arith.mulf %68, %69 : vector<17x17xf32>
    %cst_55 = arith.constant dense<0xFF800000> : vector<17xf32>
    %71 = vector.multi_reduction <maximumf>, %70, %cst_55 [1] : vector<17x17xf32> to vector<17xf32>
    %72 = vector.shape_cast %71 : vector<17xf32> to vector<17x1xf32>
    %73 = vector.broadcast %72 : vector<17x1xf32> to vector<17x17xf32>
    %74 = arith.subf %70, %73 : vector<17x17xf32>
    %75 = math.exp %74 : vector<17x17xf32>
    %cst_56 = arith.constant dense<0.000000e+00> : vector<17xf32>
    %76 = vector.multi_reduction <add>, %75, %cst_56 [1] : vector<17x17xf32> to vector<17xf32>
    %77 = vector.shape_cast %76 : vector<17xf32> to vector<17x1xf32>
    %78 = vector.broadcast %77 : vector<17x1xf32> to vector<17x17xf32>
    %79 = arith.divf %75, %78 : vector<17x17xf32>
    %cst_57 = arith.constant dense<0.000000e+00> : vector<17x8xf32>
    %80 = tpu.matmul %79, %67, %cst_57 {dimension_numbers = #tpu.dot_dimension_numbers<[1], [0], [0], [1], [0, 0, 1, 1], [], []>} : vector<17x17xf32>, vector<17x8xf32>, vector<17x8xf32> -> vector<17x8xf32>
    %c0_58 = arith.constant 0 : index
    %c0_59 = arith.constant 0 : index
    %c0_60 = arith.constant 0 : index
    %c0_61 = arith.constant 0 : index
    %81 = vector.load %arg9[%c0_58, %c0_59, %c0_60, %c0_61] : memref<2x4x8x32xf32, #tpu.memory_space<vmem>>, vector<1x1x8x32xf32>
    %82 = vector.shape_cast %81 : vector<1x1x8x32xf32> to vector<8x32xf32>
    %cst_62 = arith.constant dense<0.000000e+00> : vector<17x32xf32>
    %83 = tpu.matmul %80, %82, %cst_62 {dimension_numbers = #tpu.dot_dimension_numbers<[1], [0], [0], [1], [0, 0, 1, 1], [], []>} : vector<17x8xf32>, vector<8x32xf32>, vector<17x32xf32> -> vector<17x32xf32>
    %c0_63 = arith.constant 0 : index
    %c0_64 = arith.constant 0 : index
    %c1_65 = arith.constant 1 : index
    %c0_66 = arith.constant 0 : index
    %c0_67 = arith.constant 0 : index
    %84 = vector.load %arg7[%c0_63, %c0_64, %c1_65, %c0_66, %c0_67] : memref<2x3x4x32x8xf32, #tpu.memory_space<vmem>>, vector<1x1x1x32x8xf32>
    %85 = vector.shape_cast %84 : vector<1x1x1x32x8xf32> to vector<32x8xf32>
    %cst_68 = arith.constant dense<0.000000e+00> : vector<17x8xf32>
    %86 = tpu.matmul %46, %85, %cst_68 {dimension_numbers = #tpu.dot_dimension_numbers<[1], [0], [0], [1], [0, 0, 1, 1], [], []>} : vector<17x32xf32>, vector<32x8xf32>, vector<17x8xf32> -> vector<17x8xf32>
    %c0_69 = arith.constant 0 : index
    %c0_70 = arith.constant 0 : index
    %c1_71 = arith.constant 1 : index
    %c0_72 = arith.constant 0 : index
    %c0_73 = arith.constant 0 : index
    %87 = vector.load %arg8[%c0_69, %c0_70, %c1_71, %c0_72, %c0_73] : memref<2x3x4x1x8xf32, #tpu.memory_space<vmem>>, vector<1x1x1x1x8xf32>
    %88 = vector.shape_cast %87 : vector<1x1x1x1x8xf32> to vector<1x8xf32>
    %89 = vector.broadcast %88 : vector<1x8xf32> to vector<17x8xf32>
    %90 = arith.addf %86, %89 : vector<17x8xf32>
    %c0_74 = arith.constant 0 : index
    %c1_75 = arith.constant 1 : index
    %c1_76 = arith.constant 1 : index
    %c0_77 = arith.constant 0 : index
    %c0_78 = arith.constant 0 : index
    %91 = vector.load %arg7[%c0_74, %c1_75, %c1_76, %c0_77, %c0_78] : memref<2x3x4x32x8xf32, #tpu.memory_space<vmem>>, vector<1x1x1x32x8xf32>
    %92 = vector.shape_cast %91 : vector<1x1x1x32x8xf32> to vector<32x8xf32>
    %cst_79 = arith.constant dense<0.000000e+00> : vector<17x8xf32>
    %93 = tpu.matmul %46, %92, %cst_79 {dimension_numbers = #tpu.dot_dimension_numbers<[1], [0], [0], [1], [0, 0, 1, 1], [], []>} : vector<17x32xf32>, vector<32x8xf32>, vector<17x8xf32> -> vector<17x8xf32>
    %c0_80 = arith.constant 0 : index
    %c1_81 = arith.constant 1 : index
    %c1_82 = arith.constant 1 : index
    %c0_83 = arith.constant 0 : index
    %c0_84 = arith.constant 0 : index
    %94 = vector.load %arg8[%c0_80, %c1_81, %c1_82, %c0_83, %c0_84] : memref<2x3x4x1x8xf32, #tpu.memory_space<vmem>>, vector<1x1x1x1x8xf32>
    %95 = vector.shape_cast %94 : vector<1x1x1x1x8xf32> to vector<1x8xf32>
    %96 = vector.broadcast %95 : vector<1x8xf32> to vector<17x8xf32>
    %97 = arith.addf %93, %96 : vector<17x8xf32>
    %c0_85 = arith.constant 0 : index
    %c2_86 = arith.constant 2 : index
    %c1_87 = arith.constant 1 : index
    %c0_88 = arith.constant 0 : index
    %c0_89 = arith.constant 0 : index
    %98 = vector.load %arg7[%c0_85, %c2_86, %c1_87, %c0_88, %c0_89] : memref<2x3x4x32x8xf32, #tpu.memory_space<vmem>>, vector<1x1x1x32x8xf32>
    %99 = vector.shape_cast %98 : vector<1x1x1x32x8xf32> to vector<32x8xf32>
    %cst_90 = arith.constant dense<0.000000e+00> : vector<17x8xf32>
    %100 = tpu.matmul %46, %99, %cst_90 {dimension_numbers = #tpu.dot_dimension_numbers<[1], [0], [0], [1], [0, 0, 1, 1], [], []>} : vector<17x32xf32>, vector<32x8xf32>, vector<17x8xf32> -> vector<17x8xf32>
    %c0_91 = arith.constant 0 : index
    %c2_92 = arith.constant 2 : index
    %c1_93 = arith.constant 1 : index
    %c0_94 = arith.constant 0 : index
    %c0_95 = arith.constant 0 : index
    %101 = vector.load %arg8[%c0_91, %c2_92, %c1_93, %c0_94, %c0_95] : memref<2x3x4x1x8xf32, #tpu.memory_space<vmem>>, vector<1x1x1x1x8xf32>
    %102 = vector.shape_cast %101 : vector<1x1x1x1x8xf32> to vector<1x8xf32>
    %103 = vector.broadcast %102 : vector<1x8xf32> to vector<17x8xf32>
    %104 = arith.addf %100, %103 : vector<17x8xf32>
    %cst_96 = arith.constant dense<0.000000e+00> : vector<17x17xf32>
    %105 = tpu.matmul %90, %97, %cst_96 {dimension_numbers = #tpu.dot_dimension_numbers<[1], [1], [0], [0], [0, 0, 1, 0], [], []>} : vector<17x8xf32>, vector<17x8xf32>, vector<17x17xf32> -> vector<17x17xf32>
    %cst_97 = arith.constant 0.353553385 : f32
    %106 = vector.broadcast %cst_97 : f32 to vector<17x17xf32>
    %107 = arith.mulf %105, %106 : vector<17x17xf32>
    %cst_98 = arith.constant dense<0xFF800000> : vector<17xf32>
    %108 = vector.multi_reduction <maximumf>, %107, %cst_98 [1] : vector<17x17xf32> to vector<17xf32>
    %109 = vector.shape_cast %108 : vector<17xf32> to vector<17x1xf32>
    %110 = vector.broadcast %109 : vector<17x1xf32> to vector<17x17xf32>
    %111 = arith.subf %107, %110 : vector<17x17xf32>
    %112 = math.exp %111 : vector<17x17xf32>
    %cst_99 = arith.constant dense<0.000000e+00> : vector<17xf32>
    %113 = vector.multi_reduction <add>, %112, %cst_99 [1] : vector<17x17xf32> to vector<17xf32>
    %114 = vector.shape_cast %113 : vector<17xf32> to vector<17x1xf32>
    %115 = vector.broadcast %114 : vector<17x1xf32> to vector<17x17xf32>
    %116 = arith.divf %112, %115 : vector<17x17xf32>
    %cst_100 = arith.constant dense<0.000000e+00> : vector<17x8xf32>
    %117 = tpu.matmul %116, %104, %cst_100 {dimension_numbers = #tpu.dot_dimension_numbers<[1], [0], [0], [1], [0, 0, 1, 1], [], []>} : vector<17x17xf32>, vector<17x8xf32>, vector<17x8xf32> -> vector<17x8xf32>
    %c0_101 = arith.constant 0 : index
    %c1_102 = arith.constant 1 : index
    %c0_103 = arith.constant 0 : index
    %c0_104 = arith.constant 0 : index
    %118 = vector.load %arg9[%c0_101, %c1_102, %c0_103, %c0_104] : memref<2x4x8x32xf32, #tpu.memory_space<vmem>>, vector<1x1x8x32xf32>
    %119 = vector.shape_cast %118 : vector<1x1x8x32xf32> to vector<8x32xf32>
    %cst_105 = arith.constant dense<0.000000e+00> : vector<17x32xf32>
    %120 = tpu.matmul %117, %119, %cst_105 {dimension_numbers = #tpu.dot_dimension_numbers<[1], [0], [0], [1], [0, 0, 1, 1], [], []>} : vector<17x8xf32>, vector<8x32xf32>, vector<17x32xf32> -> vector<17x32xf32>
    %121 = arith.addf %83, %120 : vector<17x32xf32>
    %c0_106 = arith.constant 0 : index
    %c0_107 = arith.constant 0 : index
    %c2_108 = arith.constant 2 : index
    %c0_109 = arith.constant 0 : index
    %c0_110 = arith.constant 0 : index
    %122 = vector.load %arg7[%c0_106, %c0_107, %c2_108, %c0_109, %c0_110] : memref<2x3x4x32x8xf32, #tpu.memory_space<vmem>>, vector<1x1x1x32x8xf32>
    %123 = vector.shape_cast %122 : vector<1x1x1x32x8xf32> to vector<32x8xf32>
    %cst_111 = arith.constant dense<0.000000e+00> : vector<17x8xf32>
    %124 = tpu.matmul %46, %123, %cst_111 {dimension_numbers = #tpu.dot_dimension_numbers<[1], [0], [0], [1], [0, 0, 1, 1], [], []>} : vector<17x32xf32>, vector<32x8xf32>, vector<17x8xf32> -> vector<17x8xf32>
    %c0_112 = arith.constant 0 : index
    %c0_113 = arith.constant 0 : index
    %c2_114 = arith.constant 2 : index
    %c0_115 = arith.constant 0 : index
    %c0_116 = arith.constant 0 : index
    %125 = vector.load %arg8[%c0_112, %c0_113, %c2_114, %c0_115, %c0_116] : memref<2x3x4x1x8xf32, #tpu.memory_space<vmem>>, vector<1x1x1x1x8xf32>
    %126 = vector.shape_cast %125 : vector<1x1x1x1x8xf32> to vector<1x8xf32>
    %127 = vector.broadcast %126 : vector<1x8xf32> to vector<17x8xf32>
    %128 = arith.addf %124, %127 : vector<17x8xf32>
    %c0_117 = arith.constant 0 : index
    %c1_118 = arith.constant 1 : index
    %c2_119 = arith.constant 2 : index
    %c0_120 = arith.constant 0 : index
    %c0_121 = arith.constant 0 : index
    %129 = vector.load %arg7[%c0_117, %c1_118, %c2_119, %c0_120, %c0_121] : memref<2x3x4x32x8xf32, #tpu.memory_space<vmem>>, vector<1x1x1x32x8xf32>
    %130 = vector.shape_cast %129 : vector<1x1x1x32x8xf32> to vector<32x8xf32>
    %cst_122 = arith.constant dense<0.000000e+00> : vector<17x8xf32>
    %131 = tpu.matmul %46, %130, %cst_122 {dimension_numbers = #tpu.dot_dimension_numbers<[1], [0], [0], [1], [0, 0, 1, 1], [], []>} : vector<17x32xf32>, vector<32x8xf32>, vector<17x8xf32> -> vector<17x8xf32>
    %c0_123 = arith.constant 0 : index
    %c1_124 = arith.constant 1 : index
    %c2_125 = arith.constant 2 : index
    %c0_126 = arith.constant 0 : index
    %c0_127 = arith.constant 0 : index
    %132 = vector.load %arg8[%c0_123, %c1_124, %c2_125, %c0_126, %c0_127] : memref<2x3x4x1x8xf32, #tpu.memory_space<vmem>>, vector<1x1x1x1x8xf32>
    %133 = vector.shape_cast %132 : vector<1x1x1x1x8xf32> to vector<1x8xf32>
    %134 = vector.broadcast %133 : vector<1x8xf32> to vector<17x8xf32>
    %135 = arith.addf %131, %134 : vector<17x8xf32>
    %c0_128 = arith.constant 0 : index
    %c2_129 = arith.constant 2 : index
    %c2_130 = arith.constant 2 : index
    %c0_131 = arith.constant 0 : index
    %c0_132 = arith.constant 0 : index
    %136 = vector.load %arg7[%c0_128, %c2_129, %c2_130, %c0_131, %c0_132] : memref<2x3x4x32x8xf32, #tpu.memory_space<vmem>>, vector<1x1x1x32x8xf32>
    %137 = vector.shape_cast %136 : vector<1x1x1x32x8xf32> to vector<32x8xf32>
    %cst_133 = arith.constant dense<0.000000e+00> : vector<17x8xf32>
    %138 = tpu.matmul %46, %137, %cst_133 {dimension_numbers = #tpu.dot_dimension_numbers<[1], [0], [0], [1], [0, 0, 1, 1], [], []>} : vector<17x32xf32>, vector<32x8xf32>, vector<17x8xf32> -> vector<17x8xf32>
    %c0_134 = arith.constant 0 : index
    %c2_135 = arith.constant 2 : index
    %c2_136 = arith.constant 2 : index
    %c0_137 = arith.constant 0 : index
    %c0_138 = arith.constant 0 : index
    %139 = vector.load %arg8[%c0_134, %c2_135, %c2_136, %c0_137, %c0_138] : memref<2x3x4x1x8xf32, #tpu.memory_space<vmem>>, vector<1x1x1x1x8xf32>
    %140 = vector.shape_cast %139 : vector<1x1x1x1x8xf32> to vector<1x8xf32>
    %141 = vector.broadcast %140 : vector<1x8xf32> to vector<17x8xf32>
    %142 = arith.addf %138, %141 : vector<17x8xf32>
    %cst_139 = arith.constant dense<0.000000e+00> : vector<17x17xf32>
    %143 = tpu.matmul %128, %135, %cst_139 {dimension_numbers = #tpu.dot_dimension_numbers<[1], [1], [0], [0], [0, 0, 1, 0], [], []>} : vector<17x8xf32>, vector<17x8xf32>, vector<17x17xf32> -> vector<17x17xf32>
    %cst_140 = arith.constant 0.353553385 : f32
    %144 = vector.broadcast %cst_140 : f32 to vector<17x17xf32>
    %145 = arith.mulf %143, %144 : vector<17x17xf32>
    %cst_141 = arith.constant dense<0xFF800000> : vector<17xf32>
    %146 = vector.multi_reduction <maximumf>, %145, %cst_141 [1] : vector<17x17xf32> to vector<17xf32>
    %147 = vector.shape_cast %146 : vector<17xf32> to vector<17x1xf32>
    %148 = vector.broadcast %147 : vector<17x1xf32> to vector<17x17xf32>
    %149 = arith.subf %145, %148 : vector<17x17xf32>
    %150 = math.exp %149 : vector<17x17xf32>
    %cst_142 = arith.constant dense<0.000000e+00> : vector<17xf32>
    %151 = vector.multi_reduction <add>, %150, %cst_142 [1] : vector<17x17xf32> to vector<17xf32>
    %152 = vector.shape_cast %151 : vector<17xf32> to vector<17x1xf32>
    %153 = vector.broadcast %152 : vector<17x1xf32> to vector<17x17xf32>
    %154 = arith.divf %150, %153 : vector<17x17xf32>
    %cst_143 = arith.constant dense<0.000000e+00> : vector<17x8xf32>
    %155 = tpu.matmul %154, %142, %cst_143 {dimension_numbers = #tpu.dot_dimension_numbers<[1], [0], [0], [1], [0, 0, 1, 1], [], []>} : vector<17x17xf32>, vector<17x8xf32>, vector<17x8xf32> -> vector<17x8xf32>
    %c0_144 = arith.constant 0 : index
    %c2_145 = arith.constant 2 : index
    %c0_146 = arith.constant 0 : index
    %c0_147 = arith.constant 0 : index
    %156 = vector.load %arg9[%c0_144, %c2_145, %c0_146, %c0_147] : memref<2x4x8x32xf32, #tpu.memory_space<vmem>>, vector<1x1x8x32xf32>
    %157 = vector.shape_cast %156 : vector<1x1x8x32xf32> to vector<8x32xf32>
    %cst_148 = arith.constant dense<0.000000e+00> : vector<17x32xf32>
    %158 = tpu.matmul %155, %157, %cst_148 {dimension_numbers = #tpu.dot_dimension_numbers<[1], [0], [0], [1], [0, 0, 1, 1], [], []>} : vector<17x8xf32>, vector<8x32xf32>, vector<17x32xf32> -> vector<17x32xf32>
    %159 = arith.addf %121, %158 : vector<17x32xf32>
    %c0_149 = arith.constant 0 : index
    %c0_150 = arith.constant 0 : index
    %c3 = arith.constant 3 : index
    %c0_151 = arith.constant 0 : index
    %c0_152 = arith.constant 0 : index
    %160 = vector.load %arg7[%c0_149, %c0_150, %c3, %c0_151, %c0_152] : memref<2x3x4x32x8xf32, #tpu.memory_space<vmem>>, vector<1x1x1x32x8xf32>
    %161 = vector.shape_cast %160 : vector<1x1x1x32x8xf32> to vector<32x8xf32>
    %cst_153 = arith.constant dense<0.000000e+00> : vector<17x8xf32>
    %162 = tpu.matmul %46, %161, %cst_153 {dimension_numbers = #tpu.dot_dimension_numbers<[1], [0], [0], [1], [0, 0, 1, 1], [], []>} : vector<17x32xf32>, vector<32x8xf32>, vector<17x8xf32> -> vector<17x8xf32>
    %c0_154 = arith.constant 0 : index
    %c0_155 = arith.constant 0 : index
    %c3_156 = arith.constant 3 : index
    %c0_157 = arith.constant 0 : index
    %c0_158 = arith.constant 0 : index
    %163 = vector.load %arg8[%c0_154, %c0_155, %c3_156, %c0_157, %c0_158] : memref<2x3x4x1x8xf32, #tpu.memory_space<vmem>>, vector<1x1x1x1x8xf32>
    %164 = vector.shape_cast %163 : vector<1x1x1x1x8xf32> to vector<1x8xf32>
    %165 = vector.broadcast %164 : vector<1x8xf32> to vector<17x8xf32>
    %166 = arith.addf %162, %165 : vector<17x8xf32>
    %c0_159 = arith.constant 0 : index
    %c1_160 = arith.constant 1 : index
    %c3_161 = arith.constant 3 : index
    %c0_162 = arith.constant 0 : index
    %c0_163 = arith.constant 0 : index
    %167 = vector.load %arg7[%c0_159, %c1_160, %c3_161, %c0_162, %c0_163] : memref<2x3x4x32x8xf32, #tpu.memory_space<vmem>>, vector<1x1x1x32x8xf32>
    %168 = vector.shape_cast %167 : vector<1x1x1x32x8xf32> to vector<32x8xf32>
    %cst_164 = arith.constant dense<0.000000e+00> : vector<17x8xf32>
    %169 = tpu.matmul %46, %168, %cst_164 {dimension_numbers = #tpu.dot_dimension_numbers<[1], [0], [0], [1], [0, 0, 1, 1], [], []>} : vector<17x32xf32>, vector<32x8xf32>, vector<17x8xf32> -> vector<17x8xf32>
    %c0_165 = arith.constant 0 : index
    %c1_166 = arith.constant 1 : index
    %c3_167 = arith.constant 3 : index
    %c0_168 = arith.constant 0 : index
    %c0_169 = arith.constant 0 : index
    %170 = vector.load %arg8[%c0_165, %c1_166, %c3_167, %c0_168, %c0_169] : memref<2x3x4x1x8xf32, #tpu.memory_space<vmem>>, vector<1x1x1x1x8xf32>
    %171 = vector.shape_cast %170 : vector<1x1x1x1x8xf32> to vector<1x8xf32>
    %172 = vector.broadcast %171 : vector<1x8xf32> to vector<17x8xf32>
    %173 = arith.addf %169, %172 : vector<17x8xf32>
    %c0_170 = arith.constant 0 : index
    %c2_171 = arith.constant 2 : index
    %c3_172 = arith.constant 3 : index
    %c0_173 = arith.constant 0 : index
    %c0_174 = arith.constant 0 : index
    %174 = vector.load %arg7[%c0_170, %c2_171, %c3_172, %c0_173, %c0_174] : memref<2x3x4x32x8xf32, #tpu.memory_space<vmem>>, vector<1x1x1x32x8xf32>
    %175 = vector.shape_cast %174 : vector<1x1x1x32x8xf32> to vector<32x8xf32>
    %cst_175 = arith.constant dense<0.000000e+00> : vector<17x8xf32>
    %176 = tpu.matmul %46, %175, %cst_175 {dimension_numbers = #tpu.dot_dimension_numbers<[1], [0], [0], [1], [0, 0, 1, 1], [], []>} : vector<17x32xf32>, vector<32x8xf32>, vector<17x8xf32> -> vector<17x8xf32>
    %c0_176 = arith.constant 0 : index
    %c2_177 = arith.constant 2 : index
    %c3_178 = arith.constant 3 : index
    %c0_179 = arith.constant 0 : index
    %c0_180 = arith.constant 0 : index
    %177 = vector.load %arg8[%c0_176, %c2_177, %c3_178, %c0_179, %c0_180] : memref<2x3x4x1x8xf32, #tpu.memory_space<vmem>>, vector<1x1x1x1x8xf32>
    %178 = vector.shape_cast %177 : vector<1x1x1x1x8xf32> to vector<1x8xf32>
    %179 = vector.broadcast %178 : vector<1x8xf32> to vector<17x8xf32>
    %180 = arith.addf %176, %179 : vector<17x8xf32>
    %cst_181 = arith.constant dense<0.000000e+00> : vector<17x17xf32>
    %181 = tpu.matmul %166, %173, %cst_181 {dimension_numbers = #tpu.dot_dimension_numbers<[1], [1], [0], [0], [0, 0, 1, 0], [], []>} : vector<17x8xf32>, vector<17x8xf32>, vector<17x17xf32> -> vector<17x17xf32>
    %cst_182 = arith.constant 0.353553385 : f32
    %182 = vector.broadcast %cst_182 : f32 to vector<17x17xf32>
    %183 = arith.mulf %181, %182 : vector<17x17xf32>
    %cst_183 = arith.constant dense<0xFF800000> : vector<17xf32>
    %184 = vector.multi_reduction <maximumf>, %183, %cst_183 [1] : vector<17x17xf32> to vector<17xf32>
    %185 = vector.shape_cast %184 : vector<17xf32> to vector<17x1xf32>
    %186 = vector.broadcast %185 : vector<17x1xf32> to vector<17x17xf32>
    %187 = arith.subf %183, %186 : vector<17x17xf32>
    %188 = math.exp %187 : vector<17x17xf32>
    %cst_184 = arith.constant dense<0.000000e+00> : vector<17xf32>
    %189 = vector.multi_reduction <add>, %188, %cst_184 [1] : vector<17x17xf32> to vector<17xf32>
    %190 = vector.shape_cast %189 : vector<17xf32> to vector<17x1xf32>
    %191 = vector.broadcast %190 : vector<17x1xf32> to vector<17x17xf32>
    %192 = arith.divf %188, %191 : vector<17x17xf32>
    %cst_185 = arith.constant dense<0.000000e+00> : vector<17x8xf32>
    %193 = tpu.matmul %192, %180, %cst_185 {dimension_numbers = #tpu.dot_dimension_numbers<[1], [0], [0], [1], [0, 0, 1, 1], [], []>} : vector<17x17xf32>, vector<17x8xf32>, vector<17x8xf32> -> vector<17x8xf32>
    %c0_186 = arith.constant 0 : index
    %c3_187 = arith.constant 3 : index
    %c0_188 = arith.constant 0 : index
    %c0_189 = arith.constant 0 : index
    %194 = vector.load %arg9[%c0_186, %c3_187, %c0_188, %c0_189] : memref<2x4x8x32xf32, #tpu.memory_space<vmem>>, vector<1x1x8x32xf32>
    %195 = vector.shape_cast %194 : vector<1x1x8x32xf32> to vector<8x32xf32>
    %cst_190 = arith.constant dense<0.000000e+00> : vector<17x32xf32>
    %196 = tpu.matmul %193, %195, %cst_190 {dimension_numbers = #tpu.dot_dimension_numbers<[1], [0], [0], [1], [0, 0, 1, 1], [], []>} : vector<17x8xf32>, vector<8x32xf32>, vector<17x32xf32> -> vector<17x32xf32>
    %197 = arith.addf %159, %196 : vector<17x32xf32>
    %198 = arith.addf %20, %197 : vector<17x32xf32>
    %c0_191 = arith.constant 0 : index
    %c0_192 = arith.constant 0 : index
    %c0_193 = arith.constant 0 : index
    %199 = vector.load %arg10[%c0_191, %c0_192, %c0_193] : memref<2x1x32xf32, #tpu.memory_space<vmem>>, vector<1x1x32xf32>
    %200 = vector.shape_cast %199 : vector<1x1x32xf32> to vector<1x32xf32>
    %201 = vector.broadcast %200 : vector<1x32xf32> to vector<17x32xf32>
    %202 = arith.addf %198, %201 : vector<17x32xf32>
    %c0_194 = arith.constant 0 : index
    %c2_195 = arith.constant 2 : index
    %c0_196 = arith.constant 0 : index
    %c0_197 = arith.constant 0 : index
    %203 = vector.load %arg6[%c0_194, %c2_195, %c0_196, %c0_197] : memref<2x4x1x32xf32, #tpu.memory_space<vmem>>, vector<1x1x1x32xf32>
    %204 = vector.shape_cast %203 : vector<1x1x1x32xf32> to vector<1x32xf32>
    %c0_198 = arith.constant 0 : index
    %c3_199 = arith.constant 3 : index
    %c0_200 = arith.constant 0 : index
    %c0_201 = arith.constant 0 : index
    %205 = vector.load %arg6[%c0_198, %c3_199, %c0_200, %c0_201] : memref<2x4x1x32xf32, #tpu.memory_space<vmem>>, vector<1x1x1x32xf32>
    %206 = vector.shape_cast %205 : vector<1x1x1x32xf32> to vector<1x32xf32>
    %cst_202 = arith.constant dense<0.000000e+00> : vector<17xf32>
    %207 = vector.multi_reduction <add>, %202, %cst_202 [1] : vector<17x32xf32> to vector<17xf32>
    %208 = vector.shape_cast %207 : vector<17xf32> to vector<17x1xf32>
    %cst_203 = arith.constant 3.200000e+01 : f32
    %209 = vector.broadcast %cst_203 : f32 to vector<17x1xf32>
    %210 = arith.divf %208, %209 : vector<17x1xf32>
    %211 = vector.broadcast %210 : vector<17x1xf32> to vector<17x32xf32>
    %212 = arith.subf %202, %211 : vector<17x32xf32>
    %213 = arith.mulf %212, %212 : vector<17x32xf32>
    %cst_204 = arith.constant dense<0.000000e+00> : vector<17xf32>
    %214 = vector.multi_reduction <add>, %213, %cst_204 [1] : vector<17x32xf32> to vector<17xf32>
    %215 = vector.shape_cast %214 : vector<17xf32> to vector<17x1xf32>
    %cst_205 = arith.constant 3.200000e+01 : f32
    %216 = vector.broadcast %cst_205 : f32 to vector<17x1xf32>
    %217 = arith.divf %215, %216 : vector<17x1xf32>
    %218 = vector.broadcast %210 : vector<17x1xf32> to vector<17x32xf32>
    %219 = arith.subf %202, %218 : vector<17x32xf32>
    %cst_206 = arith.constant 9.99999974E-6 : f32
    %220 = vector.broadcast %cst_206 : f32 to vector<17x1xf32>
    %221 = arith.addf %217, %220 : vector<17x1xf32>
    %222 = math.rsqrt %221 : vector<17x1xf32>
    %223 = vector.broadcast %222 : vector<17x1xf32> to vector<17x32xf32>
    %224 = arith.mulf %219, %223 : vector<17x32xf32>
    %225 = vector.broadcast %204 : vector<1x32xf32> to vector<17x32xf32>
    %226 = arith.mulf %224, %225 : vector<17x32xf32>
    %227 = vector.broadcast %206 : vector<1x32xf32> to vector<17x32xf32>
    %228 = arith.addf %226, %227 : vector<17x32xf32>
    %c0_207 = arith.constant 0 : index
    %c0_208 = arith.constant 0 : index
    %c0_209 = arith.constant 0 : index
    %229 = vector.load %arg11[%c0_207, %c0_208, %c0_209] : memref<2x32x128xf32, #tpu.memory_space<vmem>>, vector<1x32x128xf32>
    %230 = vector.shape_cast %229 : vector<1x32x128xf32> to vector<32x128xf32>
    %cst_210 = arith.constant dense<0.000000e+00> : vector<17x128xf32>
    %231 = tpu.matmul %228, %230, %cst_210 {dimension_numbers = #tpu.dot_dimension_numbers<[1], [0], [0], [1], [0, 0, 1, 1], [], []>} : vector<17x32xf32>, vector<32x128xf32>, vector<17x128xf32> -> vector<17x128xf32>
    %c0_211 = arith.constant 0 : index
    %c0_212 = arith.constant 0 : index
    %c0_213 = arith.constant 0 : index
    %232 = vector.load %arg12[%c0_211, %c0_212, %c0_213] : memref<2x1x128xf32, #tpu.memory_space<vmem>>, vector<1x1x128xf32>
    %233 = vector.shape_cast %232 : vector<1x1x128xf32> to vector<1x128xf32>
    %234 = vector.broadcast %233 : vector<1x128xf32> to vector<17x128xf32>
    %235 = arith.addf %231, %234 : vector<17x128xf32>
    %cst_214 = arith.constant 5.000000e-01 : f32
    %236 = vector.broadcast %cst_214 : f32 to vector<17x128xf32>
    %237 = arith.mulf %236, %235 : vector<17x128xf32>
    %cst_215 = arith.constant 4.471500e-02 : f32
    %238 = vector.broadcast %cst_215 : f32 to vector<17x128xf32>
    %239 = arith.mulf %238, %235 : vector<17x128xf32>
    %240 = arith.mulf %239, %235 : vector<17x128xf32>
    %241 = arith.mulf %240, %235 : vector<17x128xf32>
    %242 = arith.addf %235, %241 : vector<17x128xf32>
    %cst_216 = arith.constant 0.797884583 : f32
    %243 = vector.broadcast %cst_216 : f32 to vector<17x128xf32>
    %244 = arith.mulf %243, %242 : vector<17x128xf32>
    %245 = math.tanh %244 : vector<17x128xf32>
    %cst_217 = arith.constant 1.000000e+00 : f32
    %246 = vector.broadcast %cst_217 : f32 to vector<17x128xf32>
    %247 = arith.addf %246, %245 : vector<17x128xf32>
    %248 = arith.mulf %237, %247 : vector<17x128xf32>
    %c0_218 = arith.constant 0 : index
    %c0_219 = arith.constant 0 : index
    %c0_220 = arith.constant 0 : index
    %249 = vector.load %arg13[%c0_218, %c0_219, %c0_220] : memref<2x128x32xf32, #tpu.memory_space<vmem>>, vector<1x128x32xf32>
    %250 = vector.shape_cast %249 : vector<1x128x32xf32> to vector<128x32xf32>
    %cst_221 = arith.constant dense<0.000000e+00> : vector<17x32xf32>
    %251 = tpu.matmul %248, %250, %cst_221 {dimension_numbers = #tpu.dot_dimension_numbers<[1], [0], [0], [1], [0, 0, 1, 1], [], []>} : vector<17x128xf32>, vector<128x32xf32>, vector<17x32xf32> -> vector<17x32xf32>
    %c0_222 = arith.constant 0 : index
    %c0_223 = arith.constant 0 : index
    %c0_224 = arith.constant 0 : index
    %252 = vector.load %arg14[%c0_222, %c0_223, %c0_224] : memref<2x1x32xf32, #tpu.memory_space<vmem>>, vector<1x1x32xf32>
    %253 = vector.shape_cast %252 : vector<1x1x32xf32> to vector<1x32xf32>
    %254 = vector.broadcast %253 : vector<1x32xf32> to vector<17x32xf32>
    %255 = arith.addf %251, %254 : vector<17x32xf32>
    %256 = arith.addf %202, %255 : vector<17x32xf32>
    %c1_225 = arith.constant 1 : index
    %c0_226 = arith.constant 0 : index
    %c0_227 = arith.constant 0 : index
    %c0_228 = arith.constant 0 : index
    %257 = vector.load %arg6[%c1_225, %c0_226, %c0_227, %c0_228] : memref<2x4x1x32xf32, #tpu.memory_space<vmem>>, vector<1x1x1x32xf32>
    %258 = vector.shape_cast %257 : vector<1x1x1x32xf32> to vector<1x32xf32>
    %c1_229 = arith.constant 1 : index
    %c1_230 = arith.constant 1 : index
    %c0_231 = arith.constant 0 : index
    %c0_232 = arith.constant 0 : index
    %259 = vector.load %arg6[%c1_229, %c1_230, %c0_231, %c0_232] : memref<2x4x1x32xf32, #tpu.memory_space<vmem>>, vector<1x1x1x32xf32>
    %260 = vector.shape_cast %259 : vector<1x1x1x32xf32> to vector<1x32xf32>
    %cst_233 = arith.constant dense<0.000000e+00> : vector<17xf32>
    %261 = vector.multi_reduction <add>, %256, %cst_233 [1] : vector<17x32xf32> to vector<17xf32>
    %262 = vector.shape_cast %261 : vector<17xf32> to vector<17x1xf32>
    %cst_234 = arith.constant 3.200000e+01 : f32
    %263 = vector.broadcast %cst_234 : f32 to vector<17x1xf32>
    %264 = arith.divf %262, %263 : vector<17x1xf32>
    %265 = vector.broadcast %264 : vector<17x1xf32> to vector<17x32xf32>
    %266 = arith.subf %256, %265 : vector<17x32xf32>
    %267 = arith.mulf %266, %266 : vector<17x32xf32>
    %cst_235 = arith.constant dense<0.000000e+00> : vector<17xf32>
    %268 = vector.multi_reduction <add>, %267, %cst_235 [1] : vector<17x32xf32> to vector<17xf32>
    %269 = vector.shape_cast %268 : vector<17xf32> to vector<17x1xf32>
    %cst_236 = arith.constant 3.200000e+01 : f32
    %270 = vector.broadcast %cst_236 : f32 to vector<17x1xf32>
    %271 = arith.divf %269, %270 : vector<17x1xf32>
    %272 = vector.broadcast %264 : vector<17x1xf32> to vector<17x32xf32>
    %273 = arith.subf %256, %272 : vector<17x32xf32>
    %cst_237 = arith.constant 9.99999974E-6 : f32
    %274 = vector.broadcast %cst_237 : f32 to vector<17x1xf32>
    %275 = arith.addf %271, %274 : vector<17x1xf32>
    %276 = math.rsqrt %275 : vector<17x1xf32>
    %277 = vector.broadcast %276 : vector<17x1xf32> to vector<17x32xf32>
    %278 = arith.mulf %273, %277 : vector<17x32xf32>
    %279 = vector.broadcast %258 : vector<1x32xf32> to vector<17x32xf32>
    %280 = arith.mulf %278, %279 : vector<17x32xf32>
    %281 = vector.broadcast %260 : vector<1x32xf32> to vector<17x32xf32>
    %282 = arith.addf %280, %281 : vector<17x32xf32>
    %c1_238 = arith.constant 1 : index
    %c0_239 = arith.constant 0 : index
    %c0_240 = arith.constant 0 : index
    %c0_241 = arith.constant 0 : index
    %c0_242 = arith.constant 0 : index
    %283 = vector.load %arg7[%c1_238, %c0_239, %c0_240, %c0_241, %c0_242] : memref<2x3x4x32x8xf32, #tpu.memory_space<vmem>>, vector<1x1x1x32x8xf32>
    %284 = vector.shape_cast %283 : vector<1x1x1x32x8xf32> to vector<32x8xf32>
    %cst_243 = arith.constant dense<0.000000e+00> : vector<17x8xf32>
    %285 = tpu.matmul %282, %284, %cst_243 {dimension_numbers = #tpu.dot_dimension_numbers<[1], [0], [0], [1], [0, 0, 1, 1], [], []>} : vector<17x32xf32>, vector<32x8xf32>, vector<17x8xf32> -> vector<17x8xf32>
    %c1_244 = arith.constant 1 : index
    %c0_245 = arith.constant 0 : index
    %c0_246 = arith.constant 0 : index
    %c0_247 = arith.constant 0 : index
    %c0_248 = arith.constant 0 : index
    %286 = vector.load %arg8[%c1_244, %c0_245, %c0_246, %c0_247, %c0_248] : memref<2x3x4x1x8xf32, #tpu.memory_space<vmem>>, vector<1x1x1x1x8xf32>
    %287 = vector.shape_cast %286 : vector<1x1x1x1x8xf32> to vector<1x8xf32>
    %288 = vector.broadcast %287 : vector<1x8xf32> to vector<17x8xf32>
    %289 = arith.addf %285, %288 : vector<17x8xf32>
    %c1_249 = arith.constant 1 : index
    %c1_250 = arith.constant 1 : index
    %c0_251 = arith.constant 0 : index
    %c0_252 = arith.constant 0 : index
    %c0_253 = arith.constant 0 : index
    %290 = vector.load %arg7[%c1_249, %c1_250, %c0_251, %c0_252, %c0_253] : memref<2x3x4x32x8xf32, #tpu.memory_space<vmem>>, vector<1x1x1x32x8xf32>
    %291 = vector.shape_cast %290 : vector<1x1x1x32x8xf32> to vector<32x8xf32>
    %cst_254 = arith.constant dense<0.000000e+00> : vector<17x8xf32>
    %292 = tpu.matmul %282, %291, %cst_254 {dimension_numbers = #tpu.dot_dimension_numbers<[1], [0], [0], [1], [0, 0, 1, 1], [], []>} : vector<17x32xf32>, vector<32x8xf32>, vector<17x8xf32> -> vector<17x8xf32>
    %c1_255 = arith.constant 1 : index
    %c1_256 = arith.constant 1 : index
    %c0_257 = arith.constant 0 : index
    %c0_258 = arith.constant 0 : index
    %c0_259 = arith.constant 0 : index
    %293 = vector.load %arg8[%c1_255, %c1_256, %c0_257, %c0_258, %c0_259] : memref<2x3x4x1x8xf32, #tpu.memory_space<vmem>>, vector<1x1x1x1x8xf32>
    %294 = vector.shape_cast %293 : vector<1x1x1x1x8xf32> to vector<1x8xf32>
    %295 = vector.broadcast %294 : vector<1x8xf32> to vector<17x8xf32>
    %296 = arith.addf %292, %295 : vector<17x8xf32>
    %c1_260 = arith.constant 1 : index
    %c2_261 = arith.constant 2 : index
    %c0_262 = arith.constant 0 : index
    %c0_263 = arith.constant 0 : index
    %c0_264 = arith.constant 0 : index
    %297 = vector.load %arg7[%c1_260, %c2_261, %c0_262, %c0_263, %c0_264] : memref<2x3x4x32x8xf32, #tpu.memory_space<vmem>>, vector<1x1x1x32x8xf32>
    %298 = vector.shape_cast %297 : vector<1x1x1x32x8xf32> to vector<32x8xf32>
    %cst_265 = arith.constant dense<0.000000e+00> : vector<17x8xf32>
    %299 = tpu.matmul %282, %298, %cst_265 {dimension_numbers = #tpu.dot_dimension_numbers<[1], [0], [0], [1], [0, 0, 1, 1], [], []>} : vector<17x32xf32>, vector<32x8xf32>, vector<17x8xf32> -> vector<17x8xf32>
    %c1_266 = arith.constant 1 : index
    %c2_267 = arith.constant 2 : index
    %c0_268 = arith.constant 0 : index
    %c0_269 = arith.constant 0 : index
    %c0_270 = arith.constant 0 : index
    %300 = vector.load %arg8[%c1_266, %c2_267, %c0_268, %c0_269, %c0_270] : memref<2x3x4x1x8xf32, #tpu.memory_space<vmem>>, vector<1x1x1x1x8xf32>
    %301 = vector.shape_cast %300 : vector<1x1x1x1x8xf32> to vector<1x8xf32>
    %302 = vector.broadcast %301 : vector<1x8xf32> to vector<17x8xf32>
    %303 = arith.addf %299, %302 : vector<17x8xf32>
    %cst_271 = arith.constant dense<0.000000e+00> : vector<17x17xf32>
    %304 = tpu.matmul %289, %296, %cst_271 {dimension_numbers = #tpu.dot_dimension_numbers<[1], [1], [0], [0], [0, 0, 1, 0], [], []>} : vector<17x8xf32>, vector<17x8xf32>, vector<17x17xf32> -> vector<17x17xf32>
    %cst_272 = arith.constant 0.353553385 : f32
    %305 = vector.broadcast %cst_272 : f32 to vector<17x17xf32>
    %306 = arith.mulf %304, %305 : vector<17x17xf32>
    %cst_273 = arith.constant dense<0xFF800000> : vector<17xf32>
    %307 = vector.multi_reduction <maximumf>, %306, %cst_273 [1] : vector<17x17xf32> to vector<17xf32>
    %308 = vector.shape_cast %307 : vector<17xf32> to vector<17x1xf32>
    %309 = vector.broadcast %308 : vector<17x1xf32> to vector<17x17xf32>
    %310 = arith.subf %306, %309 : vector<17x17xf32>
    %311 = math.exp %310 : vector<17x17xf32>
    %cst_274 = arith.constant dense<0.000000e+00> : vector<17xf32>
    %312 = vector.multi_reduction <add>, %311, %cst_274 [1] : vector<17x17xf32> to vector<17xf32>
    %313 = vector.shape_cast %312 : vector<17xf32> to vector<17x1xf32>
    %314 = vector.broadcast %313 : vector<17x1xf32> to vector<17x17xf32>
    %315 = arith.divf %311, %314 : vector<17x17xf32>
    %cst_275 = arith.constant dense<0.000000e+00> : vector<17x8xf32>
    %316 = tpu.matmul %315, %303, %cst_275 {dimension_numbers = #tpu.dot_dimension_numbers<[1], [0], [0], [1], [0, 0, 1, 1], [], []>} : vector<17x17xf32>, vector<17x8xf32>, vector<17x8xf32> -> vector<17x8xf32>
    %c1_276 = arith.constant 1 : index
    %c0_277 = arith.constant 0 : index
    %c0_278 = arith.constant 0 : index
    %c0_279 = arith.constant 0 : index
    %317 = vector.load %arg9[%c1_276, %c0_277, %c0_278, %c0_279] : memref<2x4x8x32xf32, #tpu.memory_space<vmem>>, vector<1x1x8x32xf32>
    %318 = vector.shape_cast %317 : vector<1x1x8x32xf32> to vector<8x32xf32>
    %cst_280 = arith.constant dense<0.000000e+00> : vector<17x32xf32>
    %319 = tpu.matmul %316, %318, %cst_280 {dimension_numbers = #tpu.dot_dimension_numbers<[1], [0], [0], [1], [0, 0, 1, 1], [], []>} : vector<17x8xf32>, vector<8x32xf32>, vector<17x32xf32> -> vector<17x32xf32>
    %c1_281 = arith.constant 1 : index
    %c0_282 = arith.constant 0 : index
    %c1_283 = arith.constant 1 : index
    %c0_284 = arith.constant 0 : index
    %c0_285 = arith.constant 0 : index
    %320 = vector.load %arg7[%c1_281, %c0_282, %c1_283, %c0_284, %c0_285] : memref<2x3x4x32x8xf32, #tpu.memory_space<vmem>>, vector<1x1x1x32x8xf32>
    %321 = vector.shape_cast %320 : vector<1x1x1x32x8xf32> to vector<32x8xf32>
    %cst_286 = arith.constant dense<0.000000e+00> : vector<17x8xf32>
    %322 = tpu.matmul %282, %321, %cst_286 {dimension_numbers = #tpu.dot_dimension_numbers<[1], [0], [0], [1], [0, 0, 1, 1], [], []>} : vector<17x32xf32>, vector<32x8xf32>, vector<17x8xf32> -> vector<17x8xf32>
    %c1_287 = arith.constant 1 : index
    %c0_288 = arith.constant 0 : index
    %c1_289 = arith.constant 1 : index
    %c0_290 = arith.constant 0 : index
    %c0_291 = arith.constant 0 : index
    %323 = vector.load %arg8[%c1_287, %c0_288, %c1_289, %c0_290, %c0_291] : memref<2x3x4x1x8xf32, #tpu.memory_space<vmem>>, vector<1x1x1x1x8xf32>
    %324 = vector.shape_cast %323 : vector<1x1x1x1x8xf32> to vector<1x8xf32>
    %325 = vector.broadcast %324 : vector<1x8xf32> to vector<17x8xf32>
    %326 = arith.addf %322, %325 : vector<17x8xf32>
    %c1_292 = arith.constant 1 : index
    %c1_293 = arith.constant 1 : index
    %c1_294 = arith.constant 1 : index
    %c0_295 = arith.constant 0 : index
    %c0_296 = arith.constant 0 : index
    %327 = vector.load %arg7[%c1_292, %c1_293, %c1_294, %c0_295, %c0_296] : memref<2x3x4x32x8xf32, #tpu.memory_space<vmem>>, vector<1x1x1x32x8xf32>
    %328 = vector.shape_cast %327 : vector<1x1x1x32x8xf32> to vector<32x8xf32>
    %cst_297 = arith.constant dense<0.000000e+00> : vector<17x8xf32>
    %329 = tpu.matmul %282, %328, %cst_297 {dimension_numbers = #tpu.dot_dimension_numbers<[1], [0], [0], [1], [0, 0, 1, 1], [], []>} : vector<17x32xf32>, vector<32x8xf32>, vector<17x8xf32> -> vector<17x8xf32>
    %c1_298 = arith.constant 1 : index
    %c1_299 = arith.constant 1 : index
    %c1_300 = arith.constant 1 : index
    %c0_301 = arith.constant 0 : index
    %c0_302 = arith.constant 0 : index
    %330 = vector.load %arg8[%c1_298, %c1_299, %c1_300, %c0_301, %c0_302] : memref<2x3x4x1x8xf32, #tpu.memory_space<vmem>>, vector<1x1x1x1x8xf32>
    %331 = vector.shape_cast %330 : vector<1x1x1x1x8xf32> to vector<1x8xf32>
    %332 = vector.broadcast %331 : vector<1x8xf32> to vector<17x8xf32>
    %333 = arith.addf %329, %332 : vector<17x8xf32>
    %c1_303 = arith.constant 1 : index
    %c2_304 = arith.constant 2 : index
    %c1_305 = arith.constant 1 : index
    %c0_306 = arith.constant 0 : index
    %c0_307 = arith.constant 0 : index
    %334 = vector.load %arg7[%c1_303, %c2_304, %c1_305, %c0_306, %c0_307] : memref<2x3x4x32x8xf32, #tpu.memory_space<vmem>>, vector<1x1x1x32x8xf32>
    %335 = vector.shape_cast %334 : vector<1x1x1x32x8xf32> to vector<32x8xf32>
    %cst_308 = arith.constant dense<0.000000e+00> : vector<17x8xf32>
    %336 = tpu.matmul %282, %335, %cst_308 {dimension_numbers = #tpu.dot_dimension_numbers<[1], [0], [0], [1], [0, 0, 1, 1], [], []>} : vector<17x32xf32>, vector<32x8xf32>, vector<17x8xf32> -> vector<17x8xf32>
    %c1_309 = arith.constant 1 : index
    %c2_310 = arith.constant 2 : index
    %c1_311 = arith.constant 1 : index
    %c0_312 = arith.constant 0 : index
    %c0_313 = arith.constant 0 : index
    %337 = vector.load %arg8[%c1_309, %c2_310, %c1_311, %c0_312, %c0_313] : memref<2x3x4x1x8xf32, #tpu.memory_space<vmem>>, vector<1x1x1x1x8xf32>
    %338 = vector.shape_cast %337 : vector<1x1x1x1x8xf32> to vector<1x8xf32>
    %339 = vector.broadcast %338 : vector<1x8xf32> to vector<17x8xf32>
    %340 = arith.addf %336, %339 : vector<17x8xf32>
    %cst_314 = arith.constant dense<0.000000e+00> : vector<17x17xf32>
    %341 = tpu.matmul %326, %333, %cst_314 {dimension_numbers = #tpu.dot_dimension_numbers<[1], [1], [0], [0], [0, 0, 1, 0], [], []>} : vector<17x8xf32>, vector<17x8xf32>, vector<17x17xf32> -> vector<17x17xf32>
    %cst_315 = arith.constant 0.353553385 : f32
    %342 = vector.broadcast %cst_315 : f32 to vector<17x17xf32>
    %343 = arith.mulf %341, %342 : vector<17x17xf32>
    %cst_316 = arith.constant dense<0xFF800000> : vector<17xf32>
    %344 = vector.multi_reduction <maximumf>, %343, %cst_316 [1] : vector<17x17xf32> to vector<17xf32>
    %345 = vector.shape_cast %344 : vector<17xf32> to vector<17x1xf32>
    %346 = vector.broadcast %345 : vector<17x1xf32> to vector<17x17xf32>
    %347 = arith.subf %343, %346 : vector<17x17xf32>
    %348 = math.exp %347 : vector<17x17xf32>
    %cst_317 = arith.constant dense<0.000000e+00> : vector<17xf32>
    %349 = vector.multi_reduction <add>, %348, %cst_317 [1] : vector<17x17xf32> to vector<17xf32>
    %350 = vector.shape_cast %349 : vector<17xf32> to vector<17x1xf32>
    %351 = vector.broadcast %350 : vector<17x1xf32> to vector<17x17xf32>
    %352 = arith.divf %348, %351 : vector<17x17xf32>
    %cst_318 = arith.constant dense<0.000000e+00> : vector<17x8xf32>
    %353 = tpu.matmul %352, %340, %cst_318 {dimension_numbers = #tpu.dot_dimension_numbers<[1], [0], [0], [1], [0, 0, 1, 1], [], []>} : vector<17x17xf32>, vector<17x8xf32>, vector<17x8xf32> -> vector<17x8xf32>
    %c1_319 = arith.constant 1 : index
    %c1_320 = arith.constant 1 : index
    %c0_321 = arith.constant 0 : index
    %c0_322 = arith.constant 0 : index
    %354 = vector.load %arg9[%c1_319, %c1_320, %c0_321, %c0_322] : memref<2x4x8x32xf32, #tpu.memory_space<vmem>>, vector<1x1x8x32xf32>
    %355 = vector.shape_cast %354 : vector<1x1x8x32xf32> to vector<8x32xf32>
    %cst_323 = arith.constant dense<0.000000e+00> : vector<17x32xf32>
    %356 = tpu.matmul %353, %355, %cst_323 {dimension_numbers = #tpu.dot_dimension_numbers<[1], [0], [0], [1], [0, 0, 1, 1], [], []>} : vector<17x8xf32>, vector<8x32xf32>, vector<17x32xf32> -> vector<17x32xf32>
    %357 = arith.addf %319, %356 : vector<17x32xf32>
    %c1_324 = arith.constant 1 : index
    %c0_325 = arith.constant 0 : index
    %c2_326 = arith.constant 2 : index
    %c0_327 = arith.constant 0 : index
    %c0_328 = arith.constant 0 : index
    %358 = vector.load %arg7[%c1_324, %c0_325, %c2_326, %c0_327, %c0_328] : memref<2x3x4x32x8xf32, #tpu.memory_space<vmem>>, vector<1x1x1x32x8xf32>
    %359 = vector.shape_cast %358 : vector<1x1x1x32x8xf32> to vector<32x8xf32>
    %cst_329 = arith.constant dense<0.000000e+00> : vector<17x8xf32>
    %360 = tpu.matmul %282, %359, %cst_329 {dimension_numbers = #tpu.dot_dimension_numbers<[1], [0], [0], [1], [0, 0, 1, 1], [], []>} : vector<17x32xf32>, vector<32x8xf32>, vector<17x8xf32> -> vector<17x8xf32>
    %c1_330 = arith.constant 1 : index
    %c0_331 = arith.constant 0 : index
    %c2_332 = arith.constant 2 : index
    %c0_333 = arith.constant 0 : index
    %c0_334 = arith.constant 0 : index
    %361 = vector.load %arg8[%c1_330, %c0_331, %c2_332, %c0_333, %c0_334] : memref<2x3x4x1x8xf32, #tpu.memory_space<vmem>>, vector<1x1x1x1x8xf32>
    %362 = vector.shape_cast %361 : vector<1x1x1x1x8xf32> to vector<1x8xf32>
    %363 = vector.broadcast %362 : vector<1x8xf32> to vector<17x8xf32>
    %364 = arith.addf %360, %363 : vector<17x8xf32>
    %c1_335 = arith.constant 1 : index
    %c1_336 = arith.constant 1 : index
    %c2_337 = arith.constant 2 : index
    %c0_338 = arith.constant 0 : index
    %c0_339 = arith.constant 0 : index
    %365 = vector.load %arg7[%c1_335, %c1_336, %c2_337, %c0_338, %c0_339] : memref<2x3x4x32x8xf32, #tpu.memory_space<vmem>>, vector<1x1x1x32x8xf32>
    %366 = vector.shape_cast %365 : vector<1x1x1x32x8xf32> to vector<32x8xf32>
    %cst_340 = arith.constant dense<0.000000e+00> : vector<17x8xf32>
    %367 = tpu.matmul %282, %366, %cst_340 {dimension_numbers = #tpu.dot_dimension_numbers<[1], [0], [0], [1], [0, 0, 1, 1], [], []>} : vector<17x32xf32>, vector<32x8xf32>, vector<17x8xf32> -> vector<17x8xf32>
    %c1_341 = arith.constant 1 : index
    %c1_342 = arith.constant 1 : index
    %c2_343 = arith.constant 2 : index
    %c0_344 = arith.constant 0 : index
    %c0_345 = arith.constant 0 : index
    %368 = vector.load %arg8[%c1_341, %c1_342, %c2_343, %c0_344, %c0_345] : memref<2x3x4x1x8xf32, #tpu.memory_space<vmem>>, vector<1x1x1x1x8xf32>
    %369 = vector.shape_cast %368 : vector<1x1x1x1x8xf32> to vector<1x8xf32>
    %370 = vector.broadcast %369 : vector<1x8xf32> to vector<17x8xf32>
    %371 = arith.addf %367, %370 : vector<17x8xf32>
    %c1_346 = arith.constant 1 : index
    %c2_347 = arith.constant 2 : index
    %c2_348 = arith.constant 2 : index
    %c0_349 = arith.constant 0 : index
    %c0_350 = arith.constant 0 : index
    %372 = vector.load %arg7[%c1_346, %c2_347, %c2_348, %c0_349, %c0_350] : memref<2x3x4x32x8xf32, #tpu.memory_space<vmem>>, vector<1x1x1x32x8xf32>
    %373 = vector.shape_cast %372 : vector<1x1x1x32x8xf32> to vector<32x8xf32>
    %cst_351 = arith.constant dense<0.000000e+00> : vector<17x8xf32>
    %374 = tpu.matmul %282, %373, %cst_351 {dimension_numbers = #tpu.dot_dimension_numbers<[1], [0], [0], [1], [0, 0, 1, 1], [], []>} : vector<17x32xf32>, vector<32x8xf32>, vector<17x8xf32> -> vector<17x8xf32>
    %c1_352 = arith.constant 1 : index
    %c2_353 = arith.constant 2 : index
    %c2_354 = arith.constant 2 : index
    %c0_355 = arith.constant 0 : index
    %c0_356 = arith.constant 0 : index
    %375 = vector.load %arg8[%c1_352, %c2_353, %c2_354, %c0_355, %c0_356] : memref<2x3x4x1x8xf32, #tpu.memory_space<vmem>>, vector<1x1x1x1x8xf32>
    %376 = vector.shape_cast %375 : vector<1x1x1x1x8xf32> to vector<1x8xf32>
    %377 = vector.broadcast %376 : vector<1x8xf32> to vector<17x8xf32>
    %378 = arith.addf %374, %377 : vector<17x8xf32>
    %cst_357 = arith.constant dense<0.000000e+00> : vector<17x17xf32>
    %379 = tpu.matmul %364, %371, %cst_357 {dimension_numbers = #tpu.dot_dimension_numbers<[1], [1], [0], [0], [0, 0, 1, 0], [], []>} : vector<17x8xf32>, vector<17x8xf32>, vector<17x17xf32> -> vector<17x17xf32>
    %cst_358 = arith.constant 0.353553385 : f32
    %380 = vector.broadcast %cst_358 : f32 to vector<17x17xf32>
    %381 = arith.mulf %379, %380 : vector<17x17xf32>
    %cst_359 = arith.constant dense<0xFF800000> : vector<17xf32>
    %382 = vector.multi_reduction <maximumf>, %381, %cst_359 [1] : vector<17x17xf32> to vector<17xf32>
    %383 = vector.shape_cast %382 : vector<17xf32> to vector<17x1xf32>
    %384 = vector.broadcast %383 : vector<17x1xf32> to vector<17x17xf32>
    %385 = arith.subf %381, %384 : vector<17x17xf32>
    %386 = math.exp %385 : vector<17x17xf32>
    %cst_360 = arith.constant dense<0.000000e+00> : vector<17xf32>
    %387 = vector.multi_reduction <add>, %386, %cst_360 [1] : vector<17x17xf32> to vector<17xf32>
    %388 = vector.shape_cast %387 : vector<17xf32> to vector<17x1xf32>
    %389 = vector.broadcast %388 : vector<17x1xf32> to vector<17x17xf32>
    %390 = arith.divf %386, %389 : vector<17x17xf32>
    %cst_361 = arith.constant dense<0.000000e+00> : vector<17x8xf32>
    %391 = tpu.matmul %390, %378, %cst_361 {dimension_numbers = #tpu.dot_dimension_numbers<[1], [0], [0], [1], [0, 0, 1, 1], [], []>} : vector<17x17xf32>, vector<17x8xf32>, vector<17x8xf32> -> vector<17x8xf32>
    %c1_362 = arith.constant 1 : index
    %c2_363 = arith.constant 2 : index
    %c0_364 = arith.constant 0 : index
    %c0_365 = arith.constant 0 : index
    %392 = vector.load %arg9[%c1_362, %c2_363, %c0_364, %c0_365] : memref<2x4x8x32xf32, #tpu.memory_space<vmem>>, vector<1x1x8x32xf32>
    %393 = vector.shape_cast %392 : vector<1x1x8x32xf32> to vector<8x32xf32>
    %cst_366 = arith.constant dense<0.000000e+00> : vector<17x32xf32>
    %394 = tpu.matmul %391, %393, %cst_366 {dimension_numbers = #tpu.dot_dimension_numbers<[1], [0], [0], [1], [0, 0, 1, 1], [], []>} : vector<17x8xf32>, vector<8x32xf32>, vector<17x32xf32> -> vector<17x32xf32>
    %395 = arith.addf %357, %394 : vector<17x32xf32>
    %c1_367 = arith.constant 1 : index
    %c0_368 = arith.constant 0 : index
    %c3_369 = arith.constant 3 : index
    %c0_370 = arith.constant 0 : index
    %c0_371 = arith.constant 0 : index
    %396 = vector.load %arg7[%c1_367, %c0_368, %c3_369, %c0_370, %c0_371] : memref<2x3x4x32x8xf32, #tpu.memory_space<vmem>>, vector<1x1x1x32x8xf32>
    %397 = vector.shape_cast %396 : vector<1x1x1x32x8xf32> to vector<32x8xf32>
    %cst_372 = arith.constant dense<0.000000e+00> : vector<17x8xf32>
    %398 = tpu.matmul %282, %397, %cst_372 {dimension_numbers = #tpu.dot_dimension_numbers<[1], [0], [0], [1], [0, 0, 1, 1], [], []>} : vector<17x32xf32>, vector<32x8xf32>, vector<17x8xf32> -> vector<17x8xf32>
    %c1_373 = arith.constant 1 : index
    %c0_374 = arith.constant 0 : index
    %c3_375 = arith.constant 3 : index
    %c0_376 = arith.constant 0 : index
    %c0_377 = arith.constant 0 : index
    %399 = vector.load %arg8[%c1_373, %c0_374, %c3_375, %c0_376, %c0_377] : memref<2x3x4x1x8xf32, #tpu.memory_space<vmem>>, vector<1x1x1x1x8xf32>
    %400 = vector.shape_cast %399 : vector<1x1x1x1x8xf32> to vector<1x8xf32>
    %401 = vector.broadcast %400 : vector<1x8xf32> to vector<17x8xf32>
    %402 = arith.addf %398, %401 : vector<17x8xf32>
    %c1_378 = arith.constant 1 : index
    %c1_379 = arith.constant 1 : index
    %c3_380 = arith.constant 3 : index
    %c0_381 = arith.constant 0 : index
    %c0_382 = arith.constant 0 : index
    %403 = vector.load %arg7[%c1_378, %c1_379, %c3_380, %c0_381, %c0_382] : memref<2x3x4x32x8xf32, #tpu.memory_space<vmem>>, vector<1x1x1x32x8xf32>
    %404 = vector.shape_cast %403 : vector<1x1x1x32x8xf32> to vector<32x8xf32>
    %cst_383 = arith.constant dense<0.000000e+00> : vector<17x8xf32>
    %405 = tpu.matmul %282, %404, %cst_383 {dimension_numbers = #tpu.dot_dimension_numbers<[1], [0], [0], [1], [0, 0, 1, 1], [], []>} : vector<17x32xf32>, vector<32x8xf32>, vector<17x8xf32> -> vector<17x8xf32>
    %c1_384 = arith.constant 1 : index
    %c1_385 = arith.constant 1 : index
    %c3_386 = arith.constant 3 : index
    %c0_387 = arith.constant 0 : index
    %c0_388 = arith.constant 0 : index
    %406 = vector.load %arg8[%c1_384, %c1_385, %c3_386, %c0_387, %c0_388] : memref<2x3x4x1x8xf32, #tpu.memory_space<vmem>>, vector<1x1x1x1x8xf32>
    %407 = vector.shape_cast %406 : vector<1x1x1x1x8xf32> to vector<1x8xf32>
    %408 = vector.broadcast %407 : vector<1x8xf32> to vector<17x8xf32>
    %409 = arith.addf %405, %408 : vector<17x8xf32>
    %c1_389 = arith.constant 1 : index
    %c2_390 = arith.constant 2 : index
    %c3_391 = arith.constant 3 : index
    %c0_392 = arith.constant 0 : index
    %c0_393 = arith.constant 0 : index
    %410 = vector.load %arg7[%c1_389, %c2_390, %c3_391, %c0_392, %c0_393] : memref<2x3x4x32x8xf32, #tpu.memory_space<vmem>>, vector<1x1x1x32x8xf32>
    %411 = vector.shape_cast %410 : vector<1x1x1x32x8xf32> to vector<32x8xf32>
    %cst_394 = arith.constant dense<0.000000e+00> : vector<17x8xf32>
    %412 = tpu.matmul %282, %411, %cst_394 {dimension_numbers = #tpu.dot_dimension_numbers<[1], [0], [0], [1], [0, 0, 1, 1], [], []>} : vector<17x32xf32>, vector<32x8xf32>, vector<17x8xf32> -> vector<17x8xf32>
    %c1_395 = arith.constant 1 : index
    %c2_396 = arith.constant 2 : index
    %c3_397 = arith.constant 3 : index
    %c0_398 = arith.constant 0 : index
    %c0_399 = arith.constant 0 : index
    %413 = vector.load %arg8[%c1_395, %c2_396, %c3_397, %c0_398, %c0_399] : memref<2x3x4x1x8xf32, #tpu.memory_space<vmem>>, vector<1x1x1x1x8xf32>
    %414 = vector.shape_cast %413 : vector<1x1x1x1x8xf32> to vector<1x8xf32>
    %415 = vector.broadcast %414 : vector<1x8xf32> to vector<17x8xf32>
    %416 = arith.addf %412, %415 : vector<17x8xf32>
    %cst_400 = arith.constant dense<0.000000e+00> : vector<17x17xf32>
    %417 = tpu.matmul %402, %409, %cst_400 {dimension_numbers = #tpu.dot_dimension_numbers<[1], [1], [0], [0], [0, 0, 1, 0], [], []>} : vector<17x8xf32>, vector<17x8xf32>, vector<17x17xf32> -> vector<17x17xf32>
    %cst_401 = arith.constant 0.353553385 : f32
    %418 = vector.broadcast %cst_401 : f32 to vector<17x17xf32>
    %419 = arith.mulf %417, %418 : vector<17x17xf32>
    %cst_402 = arith.constant dense<0xFF800000> : vector<17xf32>
    %420 = vector.multi_reduction <maximumf>, %419, %cst_402 [1] : vector<17x17xf32> to vector<17xf32>
    %421 = vector.shape_cast %420 : vector<17xf32> to vector<17x1xf32>
    %422 = vector.broadcast %421 : vector<17x1xf32> to vector<17x17xf32>
    %423 = arith.subf %419, %422 : vector<17x17xf32>
    %424 = math.exp %423 : vector<17x17xf32>
    %cst_403 = arith.constant dense<0.000000e+00> : vector<17xf32>
    %425 = vector.multi_reduction <add>, %424, %cst_403 [1] : vector<17x17xf32> to vector<17xf32>
    %426 = vector.shape_cast %425 : vector<17xf32> to vector<17x1xf32>
    %427 = vector.broadcast %426 : vector<17x1xf32> to vector<17x17xf32>
    %428 = arith.divf %424, %427 : vector<17x17xf32>
    %cst_404 = arith.constant dense<0.000000e+00> : vector<17x8xf32>
    %429 = tpu.matmul %428, %416, %cst_404 {dimension_numbers = #tpu.dot_dimension_numbers<[1], [0], [0], [1], [0, 0, 1, 1], [], []>} : vector<17x17xf32>, vector<17x8xf32>, vector<17x8xf32> -> vector<17x8xf32>
    %c1_405 = arith.constant 1 : index
    %c3_406 = arith.constant 3 : index
    %c0_407 = arith.constant 0 : index
    %c0_408 = arith.constant 0 : index
    %430 = vector.load %arg9[%c1_405, %c3_406, %c0_407, %c0_408] : memref<2x4x8x32xf32, #tpu.memory_space<vmem>>, vector<1x1x8x32xf32>
    %431 = vector.shape_cast %430 : vector<1x1x8x32xf32> to vector<8x32xf32>
    %cst_409 = arith.constant dense<0.000000e+00> : vector<17x32xf32>
    %432 = tpu.matmul %429, %431, %cst_409 {dimension_numbers = #tpu.dot_dimension_numbers<[1], [0], [0], [1], [0, 0, 1, 1], [], []>} : vector<17x8xf32>, vector<8x32xf32>, vector<17x32xf32> -> vector<17x32xf32>
    %433 = arith.addf %395, %432 : vector<17x32xf32>
    %434 = arith.addf %256, %433 : vector<17x32xf32>
    %c1_410 = arith.constant 1 : index
    %c0_411 = arith.constant 0 : index
    %c0_412 = arith.constant 0 : index
    %435 = vector.load %arg10[%c1_410, %c0_411, %c0_412] : memref<2x1x32xf32, #tpu.memory_space<vmem>>, vector<1x1x32xf32>
    %436 = vector.shape_cast %435 : vector<1x1x32xf32> to vector<1x32xf32>
    %437 = vector.broadcast %436 : vector<1x32xf32> to vector<17x32xf32>
    %438 = arith.addf %434, %437 : vector<17x32xf32>
    %c1_413 = arith.constant 1 : index
    %c2_414 = arith.constant 2 : index
    %c0_415 = arith.constant 0 : index
    %c0_416 = arith.constant 0 : index
    %439 = vector.load %arg6[%c1_413, %c2_414, %c0_415, %c0_416] : memref<2x4x1x32xf32, #tpu.memory_space<vmem>>, vector<1x1x1x32xf32>
    %440 = vector.shape_cast %439 : vector<1x1x1x32xf32> to vector<1x32xf32>
    %c1_417 = arith.constant 1 : index
    %c3_418 = arith.constant 3 : index
    %c0_419 = arith.constant 0 : index
    %c0_420 = arith.constant 0 : index
    %441 = vector.load %arg6[%c1_417, %c3_418, %c0_419, %c0_420] : memref<2x4x1x32xf32, #tpu.memory_space<vmem>>, vector<1x1x1x32xf32>
    %442 = vector.shape_cast %441 : vector<1x1x1x32xf32> to vector<1x32xf32>
    %cst_421 = arith.constant dense<0.000000e+00> : vector<17xf32>
    %443 = vector.multi_reduction <add>, %438, %cst_421 [1] : vector<17x32xf32> to vector<17xf32>
    %444 = vector.shape_cast %443 : vector<17xf32> to vector<17x1xf32>
    %cst_422 = arith.constant 3.200000e+01 : f32
    %445 = vector.broadcast %cst_422 : f32 to vector<17x1xf32>
    %446 = arith.divf %444, %445 : vector<17x1xf32>
    %447 = vector.broadcast %446 : vector<17x1xf32> to vector<17x32xf32>
    %448 = arith.subf %438, %447 : vector<17x32xf32>
    %449 = arith.mulf %448, %448 : vector<17x32xf32>
    %cst_423 = arith.constant dense<0.000000e+00> : vector<17xf32>
    %450 = vector.multi_reduction <add>, %449, %cst_423 [1] : vector<17x32xf32> to vector<17xf32>
    %451 = vector.shape_cast %450 : vector<17xf32> to vector<17x1xf32>
    %cst_424 = arith.constant 3.200000e+01 : f32
    %452 = vector.broadcast %cst_424 : f32 to vector<17x1xf32>
    %453 = arith.divf %451, %452 : vector<17x1xf32>
    %454 = vector.broadcast %446 : vector<17x1xf32> to vector<17x32xf32>
    %455 = arith.subf %438, %454 : vector<17x32xf32>
    %cst_425 = arith.constant 9.99999974E-6 : f32
    %456 = vector.broadcast %cst_425 : f32 to vector<17x1xf32>
    %457 = arith.addf %453, %456 : vector<17x1xf32>
    %458 = math.rsqrt %457 : vector<17x1xf32>
    %459 = vector.broadcast %458 : vector<17x1xf32> to vector<17x32xf32>
    %460 = arith.mulf %455, %459 : vector<17x32xf32>
    %461 = vector.broadcast %440 : vector<1x32xf32> to vector<17x32xf32>
    %462 = arith.mulf %460, %461 : vector<17x32xf32>
    %463 = vector.broadcast %442 : vector<1x32xf32> to vector<17x32xf32>
    %464 = arith.addf %462, %463 : vector<17x32xf32>
    %c1_426 = arith.constant 1 : index
    %c0_427 = arith.constant 0 : index
    %c0_428 = arith.constant 0 : index
    %465 = vector.load %arg11[%c1_426, %c0_427, %c0_428] : memref<2x32x128xf32, #tpu.memory_space<vmem>>, vector<1x32x128xf32>
    %466 = vector.shape_cast %465 : vector<1x32x128xf32> to vector<32x128xf32>
    %cst_429 = arith.constant dense<0.000000e+00> : vector<17x128xf32>
    %467 = tpu.matmul %464, %466, %cst_429 {dimension_numbers = #tpu.dot_dimension_numbers<[1], [0], [0], [1], [0, 0, 1, 1], [], []>} : vector<17x32xf32>, vector<32x128xf32>, vector<17x128xf32> -> vector<17x128xf32>
    %c1_430 = arith.constant 1 : index
    %c0_431 = arith.constant 0 : index
    %c0_432 = arith.constant 0 : index
    %468 = vector.load %arg12[%c1_430, %c0_431, %c0_432] : memref<2x1x128xf32, #tpu.memory_space<vmem>>, vector<1x1x128xf32>
    %469 = vector.shape_cast %468 : vector<1x1x128xf32> to vector<1x128xf32>
    %470 = vector.broadcast %469 : vector<1x128xf32> to vector<17x128xf32>
    %471 = arith.addf %467, %470 : vector<17x128xf32>
    %cst_433 = arith.constant 5.000000e-01 : f32
    %472 = vector.broadcast %cst_433 : f32 to vector<17x128xf32>
    %473 = arith.mulf %472, %471 : vector<17x128xf32>
    %cst_434 = arith.constant 4.471500e-02 : f32
    %474 = vector.broadcast %cst_434 : f32 to vector<17x128xf32>
    %475 = arith.mulf %474, %471 : vector<17x128xf32>
    %476 = arith.mulf %475, %471 : vector<17x128xf32>
    %477 = arith.mulf %476, %471 : vector<17x128xf32>
    %478 = arith.addf %471, %477 : vector<17x128xf32>
    %cst_435 = arith.constant 0.797884583 : f32
    %479 = vector.broadcast %cst_435 : f32 to vector<17x128xf32>
    %480 = arith.mulf %479, %478 : vector<17x128xf32>
    %481 = math.tanh %480 : vector<17x128xf32>
    %cst_436 = arith.constant 1.000000e+00 : f32
    %482 = vector.broadcast %cst_436 : f32 to vector<17x128xf32>
    %483 = arith.addf %482, %481 : vector<17x128xf32>
    %484 = arith.mulf %473, %483 : vector<17x128xf32>
    %c1_437 = arith.constant 1 : index
    %c0_438 = arith.constant 0 : index
    %c0_439 = arith.constant 0 : index
    %485 = vector.load %arg13[%c1_437, %c0_438, %c0_439] : memref<2x128x32xf32, #tpu.memory_space<vmem>>, vector<1x128x32xf32>
    %486 = vector.shape_cast %485 : vector<1x128x32xf32> to vector<128x32xf32>
    %cst_440 = arith.constant dense<0.000000e+00> : vector<17x32xf32>
    %487 = tpu.matmul %484, %486, %cst_440 {dimension_numbers = #tpu.dot_dimension_numbers<[1], [0], [0], [1], [0, 0, 1, 1], [], []>} : vector<17x128xf32>, vector<128x32xf32>, vector<17x32xf32> -> vector<17x32xf32>
    %c1_441 = arith.constant 1 : index
    %c0_442 = arith.constant 0 : index
    %c0_443 = arith.constant 0 : index
    %488 = vector.load %arg14[%c1_441, %c0_442, %c0_443] : memref<2x1x32xf32, #tpu.memory_space<vmem>>, vector<1x1x32xf32>
    %489 = vector.shape_cast %488 : vector<1x1x32xf32> to vector<1x32xf32>
    %490 = vector.broadcast %489 : vector<1x32xf32> to vector<17x32xf32>
    %491 = arith.addf %487, %490 : vector<17x32xf32>
    %492 = arith.addf %438, %491 : vector<17x32xf32>
    %493 = vector.extract_strided_slice %492 {offsets = [1, 0], sizes = [16, 32], strides = [1, 1]} : vector<17x32xf32> to vector<16x32xf32>
    %c0_444 = arith.constant 0 : index
    %c0_445 = arith.constant 0 : index
    %494 = vector.load %arg15[%c0_444, %c0_445] : memref<1x32xf32, #tpu.memory_space<vmem>>, vector<1x32xf32>
    %c0_446 = arith.constant 0 : index
    %c0_447 = arith.constant 0 : index
    %495 = vector.load %arg16[%c0_446, %c0_447] : memref<1x32xf32, #tpu.memory_space<vmem>>, vector<1x32xf32>
    %cst_448 = arith.constant dense<0.000000e+00> : vector<16xf32>
    %496 = vector.multi_reduction <add>, %493, %cst_448 [1] : vector<16x32xf32> to vector<16xf32>
    %497 = vector.shape_cast %496 : vector<16xf32> to vector<16x1xf32>
    %cst_449 = arith.constant 3.200000e+01 : f32
    %498 = vector.broadcast %cst_449 : f32 to vector<16x1xf32>
    %499 = arith.divf %497, %498 : vector<16x1xf32>
    %500 = vector.broadcast %499 : vector<16x1xf32> to vector<16x32xf32>
    %501 = arith.subf %493, %500 : vector<16x32xf32>
    %502 = arith.mulf %501, %501 : vector<16x32xf32>
    %cst_450 = arith.constant dense<0.000000e+00> : vector<16xf32>
    %503 = vector.multi_reduction <add>, %502, %cst_450 [1] : vector<16x32xf32> to vector<16xf32>
    %504 = vector.shape_cast %503 : vector<16xf32> to vector<16x1xf32>
    %cst_451 = arith.constant 3.200000e+01 : f32
    %505 = vector.broadcast %cst_451 : f32 to vector<16x1xf32>
    %506 = arith.divf %504, %505 : vector<16x1xf32>
    %507 = vector.broadcast %499 : vector<16x1xf32> to vector<16x32xf32>
    %508 = arith.subf %493, %507 : vector<16x32xf32>
    %cst_452 = arith.constant 9.99999974E-6 : f32
    %509 = vector.broadcast %cst_452 : f32 to vector<16x1xf32>
    %510 = arith.addf %506, %509 : vector<16x1xf32>
    %511 = math.rsqrt %510 : vector<16x1xf32>
    %512 = vector.broadcast %511 : vector<16x1xf32> to vector<16x32xf32>
    %513 = arith.mulf %508, %512 : vector<16x32xf32>
    %514 = vector.broadcast %494 : vector<1x32xf32> to vector<16x32xf32>
    %515 = arith.mulf %513, %514 : vector<16x32xf32>
    %516 = vector.broadcast %495 : vector<1x32xf32> to vector<16x32xf32>
    %517 = arith.addf %515, %516 : vector<16x32xf32>
    %c0_453 = arith.constant 0 : index
    %c0_454 = arith.constant 0 : index
    %518 = vector.load %arg17[%c0_453, %c0_454] : memref<32x48xf32, #tpu.memory_space<vmem>>, vector<32x48xf32>
    %cst_455 = arith.constant dense<0.000000e+00> : vector<16x48xf32>
    %519 = tpu.matmul %517, %518, %cst_455 {dimension_numbers = #tpu.dot_dimension_numbers<[1], [0], [0], [1], [0, 0, 1, 1], [], []>} : vector<16x32xf32>, vector<32x48xf32>, vector<16x48xf32> -> vector<16x48xf32>
    %c0_456 = arith.constant 0 : index
    %c0_457 = arith.constant 0 : index
    %520 = vector.load %arg18[%c0_456, %c0_457] : memref<1x48xf32, #tpu.memory_space<vmem>>, vector<1x48xf32>
    %521 = vector.broadcast %520 : vector<1x48xf32> to vector<16x48xf32>
    %522 = arith.addf %519, %521 : vector<16x48xf32>
    %c0_458 = arith.constant 0 : index
    %c0_459 = arith.constant 0 : index
    %c0_460 = arith.constant 0 : index
    %523 = vector.load %arg19[%c0_458, %c0_459, %c0_460] : memref<1x16x48xf32, #tpu.memory_space<vmem>>, vector<1x16x48xf32>
    %524 = vector.shape_cast %523 : vector<1x16x48xf32> to vector<16x48xf32>
    %525 = vector.shape_cast %522 : vector<16x48xf32> to vector<1x16x48xf32>
    tpu.vector_store %arg19[%c0_458, %c0_459, %c0_460], %525 {strides = array<i32>} : memref<1x16x48xf32, #tpu.memory_space<vmem>>, vector<1x16x48xf32>,
    %c0_461 = arith.constant 0 : index
    %c0_462 = arith.constant 0 : index
    %c0_463 = arith.constant 0 : index
    %526 = vector.load %arg3[%c0_461, %c0_462, %c0_463] : memref<1x16x48xf32, #tpu.memory_space<vmem>>, vector<1x16x48xf32>
    %527 = vector.shape_cast %526 : vector<1x16x48xf32> to vector<16x48xf32>
    %528 = arith.subf %522, %527 : vector<16x48xf32>
    %529 = arith.mulf %528, %528 : vector<16x48xf32>
    %cst_464 = arith.constant dense<0.000000e+00> : vector<16xf32>
    %530 = vector.multi_reduction <add>, %529, %cst_464 [1] : vector<16x48xf32> to vector<16xf32>
    %531 = vector.shape_cast %530 : vector<16xf32> to vector<16x1xf32>
    %cst_465 = arith.constant 4.800000e+01 : f32
    %532 = vector.broadcast %cst_465 : f32 to vector<16x1xf32>
    %533 = arith.divf %531, %532 : vector<16x1xf32>
    %534 = vector.extract_strided_slice %12 {offsets = [1, 0], sizes = [16, 1], strides = [1, 1]} : vector<17x1xf32> to vector<16x1xf32>
    %535 = arith.mulf %533, %534 : vector<16x1xf32>
    %c0_466 = arith.constant 0 : index
    %c0_467 = arith.constant 0 : index
    %c0_468 = arith.constant 0 : index
    %536 = vector.load %arg20[%c0_466, %c0_467, %c0_468] : memref<1x16x1xf32, #tpu.memory_space<vmem>>, vector<1x16x1xf32>
    %537 = vector.shape_cast %536 : vector<1x16x1xf32> to vector<16x1xf32>
    %538 = vector.shape_cast %535 : vector<16x1xf32> to vector<1x16x1xf32>
    tpu.vector_store %arg20[%c0_466, %c0_467, %c0_468], %538 {strides = array<i32>} : memref<1x16x1xf32, #tpu.memory_space<vmem>>, vector<1x16x1xf32>,
    return
  }
  func.func @transform_0(%arg0: i32) -> (i32, i32, i32) {
    %c0_i32 = arith.constant 0 : i32
    %c0_i32_0 = arith.constant 0 : i32
    %c0_i32_1 = arith.constant 0 : i32
    return %arg0, %c0_i32, %c0_i32_0 : i32, i32, i32
  }
  func.func @transform_1(%arg0: i32) -> (i32, i32, i32) {
    %c0_i32 = arith.constant 0 : i32
    %c0_i32_0 = arith.constant 0 : i32
    %c0_i32_1 = arith.constant 0 : i32
    return %arg0, %c0_i32, %c0_i32_0 : i32, i32, i32
  }
  func.func @transform_2(%arg0: i32) -> (i32, i32, i32) {
    %c0_i32 = arith.constant 0 : i32
    %c0_i32_0 = arith.constant 0 : i32
    %c0_i32_1 = arith.constant 0 : i32
    return %arg0, %c0_i32, %c0_i32_0 : i32, i32, i32
  }
  func.func @transform_3(%arg0: i32) -> (i32, i32) {
    %c0_i32 = arith.constant 0 : i32
    %c0_i32_0 = arith.constant 0 : i32
    %c0_i32_1 = arith.constant 0 : i32
    return %c0_i32, %c0_i32_0 : i32, i32
  }
  func.func @transform_4(%arg0: i32) -> (i32, i32) {
    %c0_i32 = arith.constant 0 : i32
    %c0_i32_0 = arith.constant 0 : i32
    %c0_i32_1 = arith.constant 0 : i32
    return %c0_i32, %c0_i32_0 : i32, i32
  }
  func.func @transform_5(%arg0: i32) -> (i32, i32, i32, i32) {
    %c0_i32 = arith.constant 0 : i32
    %c0_i32_0 = arith.constant 0 : i32
    %c0_i32_1 = arith.constant 0 : i32
    %c0_i32_2 = arith.constant 0 : i32
    %c0_i32_3 = arith.constant 0 : i32
    return %c0_i32, %c0_i32_0, %c0_i32_1, %c0_i32_2 : i32, i32, i32, i32
  }
  func.func @transform_6(%arg0: i32) -> (i32, i32, i32, i32, i32) {
    %c0_i32 = arith.constant 0 : i32
    %c0_i32_0 = arith.constant 0 : i32
    %c0_i32_1 = arith.constant 0 : i32
    %c0_i32_2 = arith.constant 0 : i32
    %c0_i32_3 = arith.constant 0 : i32
    %c0_i32_4 = arith.constant 0 : i32
    return %c0_i32, %c0_i32_0, %c0_i32_1, %c0_i32_2, %c0_i32_3 : i32, i32, i32, i32, i32
  }
  func.func @transform_7(%arg0: i32) -> (i32, i32, i32, i32, i32) {
    %c0_i32 = arith.constant 0 : i32
    %c0_i32_0 = arith.constant 0 : i32
    %c0_i32_1 = arith.constant 0 : i32
    %c0_i32_2 = arith.constant 0 : i32
    %c0_i32_3 = arith.constant 0 : i32
    %c0_i32_4 = arith.constant 0 : i32
    return %c0_i32, %c0_i32_0, %c0_i32_1, %c0_i32_2, %c0_i32_3 : i32, i32, i32, i32, i32
  }
  func.func @transform_8(%arg0: i32) -> (i32, i32, i32, i32) {
    %c0_i32 = arith.constant 0 : i32
    %c0_i32_0 = arith.constant 0 : i32
    %c0_i32_1 = arith.constant 0 : i32
    %c0_i32_2 = arith.constant 0 : i32
    %c0_i32_3 = arith.constant 0 : i32
    return %c0_i32, %c0_i32_0, %c0_i32_1, %c0_i32_2 : i32, i32, i32, i32
  }
  func.func @transform_9(%arg0: i32) -> (i32, i32, i32) {
    %c0_i32 = arith.constant 0 : i32
    %c0_i32_0 = arith.constant 0 : i32
    %c0_i32_1 = arith.constant 0 : i32
    %c0_i32_2 = arith.constant 0 : i32
    return %c0_i32, %c0_i32_0, %c0_i32_1 : i32, i32, i32
  }
  func.func @transform_10(%arg0: i32) -> (i32, i32, i32) {
    %c0_i32 = arith.constant 0 : i32
    %c0_i32_0 = arith.constant 0 : i32
    %c0_i32_1 = arith.constant 0 : i32
    %c0_i32_2 = arith.constant 0 : i32
    return %c0_i32, %c0_i32_0, %c0_i32_1 : i32, i32, i32
  }
  func.func @transform_11(%arg0: i32) -> (i32, i32, i32) {
    %c0_i32 = arith.constant 0 : i32
    %c0_i32_0 = arith.constant 0 : i32
    %c0_i32_1 = arith.constant 0 : i32
    %c0_i32_2 = arith.constant 0 : i32
    return %c0_i32, %c0_i32_0, %c0_i32_1 : i32, i32, i32
  }
  func.func @transform_12(%arg0: i32) -> (i32, i32, i32) {
    %c0_i32 = arith.constant 0 : i32
    %c0_i32_0 = arith.constant 0 : i32
    %c0_i32_1 = arith.constant 0 : i32
    %c0_i32_2 = arith.constant 0 : i32
    return %c0_i32, %c0_i32_0, %c0_i32_1 : i32, i32, i32
  }
  func.func @transform_13(%arg0: i32) -> (i32, i32, i32) {
    %c0_i32 = arith.constant 0 : i32
    %c0_i32_0 = arith.constant 0 : i32
    %c0_i32_1 = arith.constant 0 : i32
    %c0_i32_2 = arith.constant 0 : i32
    return %c0_i32, %c0_i32_0, %c0_i32_1 : i32, i32, i32
  }
  func.func @transform_14(%arg0: i32) -> (i32, i32) {
    %c0_i32 = arith.constant 0 : i32
    %c0_i32_0 = arith.constant 0 : i32
    %c0_i32_1 = arith.constant 0 : i32
    return %c0_i32, %c0_i32_0 : i32, i32
  }
  func.func @transform_15(%arg0: i32) -> (i32, i32) {
    %c0_i32 = arith.constant 0 : i32
    %c0_i32_0 = arith.constant 0 : i32
    %c0_i32_1 = arith.constant 0 : i32
    return %c0_i32, %c0_i32_0 : i32, i32
  }
  func.func @transform_16(%arg0: i32) -> (i32, i32) {
    %c0_i32 = arith.constant 0 : i32
    %c0_i32_0 = arith.constant 0 : i32
    %c0_i32_1 = arith.constant 0 : i32
    return %c0_i32, %c0_i32_0 : i32, i32
  }
  func.func @transform_17(%arg0: i32) -> (i32, i32) {
    %c0_i32 = arith.constant 0 : i32
    %c0_i32_0 = arith.constant 0 : i32
    %c0_i32_1 = arith.constant 0 : i32
    return %c0_i32, %c0_i32_0 : i32, i32
  }
  func.func @transform_18(%arg0: i32) -> (i32, i32, i32) {
    %c0_i32 = arith.constant 0 : i32
    %c0_i32_0 = arith.constant 0 : i32
    %c0_i32_1 = arith.constant 0 : i32
    return %arg0, %c0_i32, %c0_i32_0 : i32, i32, i32
  }
  func.func @transform_19(%arg0: i32) -> (i32, i32, i32) {
    %c0_i32 = arith.constant 0 : i32
    %c0_i32_0 = arith.constant 0 : i32
    %c0_i32_1 = arith.constant 0 : i32
    return %arg0, %c0_i32, %c0_i32_0 : i32, i32, i32
  }
}

</mosaic_0001>

<bundles_post_ra>
// kernel: mae_forward.2
= control target key start
LH: loop header
LB: loop body
LE: loop exit
PB: predicated region body
PF: predicated region fallthrough
CT: control target
= control target key end

     0   :  { %s7831_s0 = inlined_call_operand.vmem [shape: f32[2,16,48], index: 0, kind: input, shape index: {}]   ;;  %s7832_s1 = inlined_call_operand.vmem [shape: s32[2,5,1], index: 1, kind: input, shape index: {}]   ;;  %s7833_s2 = inlined_call_operand.vmem [shape: f32[48,32], index: 2, kind: input, shape index: {}]   ;;  %s7834_s3 = inlined_call_operand.vmem [shape: f32[1,32], index: 3, kind: input, shape index: {}]   ;;  %s7835_s4 = inlined_call_operand.vmem [shape: f32[1,32], index: 4, kind: input, shape index: {}]   ;;  %s7836_s5 = inlined_call_operand.vmem [shape: f32[17,32], index: 5, kind: input, shape index: {}]   ;;  %s7837_s6 = inlined_call_operand.vmem [shape: f32[2,4,1,32], index: 6, kind: input, shape index: {}]   ;;  %s7838_s7 = inlined_call_operand.vmem [shape: f32[2,3,4,32,8], index: 7, kind: input, shape index: {}]   ;;  %s7839_s8 = inlined_call_operand.vmem [shape: f32[2,3,4,1,8], index: 8, kind: input, shape index: {}]   ;;  %s7840_s9 = inlined_call_operand.vmem [shape: f32[2,4,8,32], index: 9, kind: input, shape index: {}]   ;;  %s7841_s10 = inlined_call_operand.vmem [shape: f32[2,1,32], index: 10, kind: input, shape index: {}]   ;;  %s7842_s11 = inlined_call_operand.vmem [shape: f32[2,32,128], index: 11, kind: input, shape index: {}]   ;;  %s7843_s12 = inlined_call_operand.vmem [shape: f32[2,1,128], index: 12, kind: input, shape index: {}]   ;;  %s7844_s13 = inlined_call_operand.vmem [shape: f32[2,128,32], index: 13, kind: input, shape index: {}]   ;;  %s7845_s14 = inlined_call_operand.vmem [shape: f32[2,1,32], index: 14, kind: input, shape index: {}]   ;;  %s7846_s15 = inlined_call_operand.vmem [shape: f32[1,32], index: 15, kind: input, shape index: {}]   ;;  %s7847_s16 = inlined_call_operand.vmem [shape: f32[1,32], index: 16, kind: input, shape index: {}]   ;;  %s7848_s17 = inlined_call_operand.vmem [shape: f32[32,32], index: 17, kind: input, shape index: {}]   ;;  %s7849_s18 = inlined_call_operand.vmem [shape: f32[1,32], index: 18, kind: input, shape index: {}]   ;;  %s7850_s19 = inlined_call_operand.vmem [shape: f32[2,5,32], index: 19, kind: output, shape index: {}]  }
   0x1   :  { %7852 = sst [smem:[#allocation2_spill]] %s7831_s0  ;;  %s6848_s0 = smov 0  }
   0x2   :  { %7853 = sst [smem:[#allocation3_spill]] %s7832_s1 }
   0x3   :  { %7854 = sst [smem:[#allocation4_spill]] %s7833_s2 }
   0x4   :  { %7855 = sst [smem:[#allocation5_spill]] %s7834_s3 }
   0x5 LB: > { %s5437_s30 = sadd.s32 4294967295, %s6742_s0   ;;  %p5441_p0 = scmp.ge.s32.totalorder %s6742_s0, 1  ;;  %s6742_s0 = sphi %s6848_s0, %s29_s0  }
   0x6   : > { %p546_p1 = scmp.lt.s32.totalorder %s6742_s0, 3 }
   0x8   : > { %p547_p2 = pnand %p5441_p0, %p546_p1 }
   0x9   : > { %s7856_s1 = sld [smem:[#allocation4_spill]] (!%p547_p2)  ;;  %p605_p3 = scmp.lt.s32.totalorder (!%p547_p2), %s5437_s30, 1  ;;  %v6744_v5 = vmov (!%p547_p2), 0   ;;  %vm633_vm0 = vcmask (!%p547_p2), 392192   ;;  %v6745_v12 = vmov (!%p547_p2), 0.0   ;;  %v6746_v15 = vmov (!%p547_p2), 0.0|0.0  }
   0xa   : > { %550 = sbr.rel (%p547_p2) target bundleno = 10882 (0x2a82), region = 96  ;;  %6689 = vset.pattern.permute.xlu0 (!%p547_p2), %v6744_v5  ;;  %s7857_s23 = sld [smem:[#allocation2_spill]] (!%p547_p2)  ;;  %6464 = vmatprep.subr.bf16.mxu1 (!%p547_p2), %v6746_v15  ;;  %vm6747_vm2 = vmmov (!%p547_p2), 0   ;;  %v720_v17 = vlaneseq (!%p547_p2)  ;;  %v716_v19 = vld [vmem:[%s7836_s5 + $0x9] sm:$0xff] (!%p547_p2)  ;;  %v715_v22 = vld [vmem:[%s7836_s5 + $0x1] sm:$0xff] (!%p547_p2)  ;;  %vm746_vm4 = vcmask (!%p547_p2), 130048  }
   0xb   : > { %s7858_s26 = sld [smem:[#allocation3_spill]] (!%p547_p2)  ;;  %5962 = vmatprep.mubr.msk.f32.mxu1 (!%p547_p2), %vm6747_vm2, %v6745_v12  ;;  %v728_v31 = vld [vmem:[%s7835_s4] sm:$0x1] (!%p547_p2)  ;;  %vm823_vm5 = vcmask (!%p547_p2), 258048   ;;  %v853_v48 = vld [vmem:[%s7838_s7 + $0x8] sm:$0xff] (!%p547_p2)  ;;  %v854_v53 = vld [vmem:[%s7838_s7 + $0x10] sm:$0xff] (!%p547_p2) }
   0xc   : > { %v721_v23 = vand.u32 (!%p547_p2), 127, %v720_v17  ;;  %v741_v30 = vshrl.u32 (!%p547_p2), %v720_v17, 7  ;;  %v729_v32 = vld [vmem:[%s7836_s5] sm:$0x1] (!%p547_p2)  ;;  %v5465_v51 = vld [vmem:[%s7838_s7 + $0x108] sm:$0xff] (!%p547_p2)  ;;  %v855_v54 = vld [vmem:[%s7838_s7 + $0x18] sm:$0xff] (!%p547_p2) }
   0xd   : > { %v730_v33 = vadd.f32 (!%p547_p2), %v729_v32, %v728_v31  ;;  %v852_v47 = vld [vmem:[%s7838_s7] sm:$0xff] (!%p547_p2)  ;;  %v6471_v55 = vpack.c.bf16 (!%p547_p2), %v855_v54, %v854_v53  ;;  %v5466_v56 = vld [vmem:[%s7838_s7 + $0x110] sm:$0xff] (!%p547_p2)  ;;  %v5467_v57 = vld [vmem:[%s7838_s7 + $0x118] sm:$0xff] (!%p547_p2)  ;;  %vm863_vm6 = vcmask (!%p547_p2), 261120   ;;  %vm1197_vm7 = vcmask (!%p547_p2), 1044480  }
   0xe   : > { %v742_v34 = vsub.s32 (!%p547_p2), 0, %v741_v30  ;;  %v6468_v49 = vpack.c.bf16 (!%p547_p2), %v853_v48, %v852_v47  ;;  %v5464_v50 = vld [vmem:[%s7838_s7 + $0x100] sm:$0xff] (!%p547_p2)  ;;  %v6483_v58 = vpack.c.bf16 (!%p547_p2), %v5467_v57, %v5466_v56  ;;  %vm1103_vm8 = vcmask (!%p547_p2), 64512   ;;  %v5490_v31 = vld [vmem:[%s7838_s7 + $0x128] sm:$0xff] (!%p547_p2)  ;;  %v5484_v56 = vld [vmem:[%s7838_s7 + $0xb0] sm:$0xff] (!%p547_p2) }
   0xf   : > { %v620_v0 = vld [vmem:[%s7856_s1] sm:$0xff] (!%p547_p2)  ;;  %v621_v1 = vld [vmem:[%s7856_s1 + $0x8] sm:$0xff] (!%p547_p2)  ;;  %v622_v2 = vld [vmem:[%s7856_s1 + $0x10] sm:$0xff] (!%p547_p2)  ;;  %v6480_v52 = vpack.c.bf16 (!%p547_p2), %v5465_v51, %v5464_v50  ;;  %vm1181_vm9 = vcmask (!%p547_p2), 36864   ;;  %vm1193_vm10 = vcmask (!%p547_p2), 39936  }
  0x10   : > { %v6452_v3 = vpack.c.bf16 (!%p547_p2), %v621_v1, %v620_v0  ;;  %v623_v4 = vld [vmem:[%s7856_s1 + $0x18] sm:$0xff] (!%p547_p2)  ;;  %v624_v7 = vld [vmem:[%s7856_s1 + $0x20] sm:$0xff] (!%p547_p2)  ;;  %v625_v8 = vld [vmem:[%s7856_s1 + $0x28] sm:$0xff] (!%p547_p2)  ;;  %v743_v35 = vrot.slane (!%p547_p2), %v730_v33, %v742_v34 }
  0x11   : > { %v6456_v6 = vpack.c.bf16 %v623_v4, %v622_v2  ;;  %s7861_s30 = smov (!%p605_p3, %s5437_s30), 1  ;;  %v6460_v9 = vpack.c.bf16 %v625_v8, %v624_v7  ;;  %v5453_v63 = vld [vmem:[%s7837_s6] ss:$0 sm:$0xff]  ;;  %v5458_v2 = vld [vmem:[%s7838_s7 + $0x88] sm:$0xff]  ;;  %v5459_v7 = vld [vmem:[%s7838_s7 + $0x90] sm:$0xff] }
  0x12   : > { %6453 = vmatprep.subr.bf16.mxu0 %v6452_v3  ;;  %s5714_s20 = sshll.u32 %s7861_s30, 4  ;;  %s5444_s21 = sshll.u32 %s7861_s30, 3  ;;  %v5457_v1 = vld [vmem:[%s7838_s7 + $0x80] sm:$0xff]  ;;  %v5460_v8 = vld [vmem:[%s7838_s7 + $0x98] sm:$0xff]  ;;  %v5491_v33 = vld [vmem:[%s7838_s7 + $0x130] sm:$0xff] }
  0x13   : > { %6455 = vmatpush3.bf16.msra.mxu0 %v6452_v3  ;;  %s609_s24 = scalar_lea.vmem %s7857_s23, %s5714_s20  ;;  %s613_s27 = scalar_lea.vmem %s7858_s26, %s5444_s21  ;;  %v5454_v3 = vld [vmem:[%s7837_s6 + $0x1] ss:$0 sm:$0xff]  ;;  %v6474_v5 = vpack.c.bf16 %v5458_v2, %v5457_v1  ;;  %v5492_v34 = vld [vmem:[%s7838_s7 + $0x138] sm:$0xff]  ;;  %v5494_v2 = vld [vmem:[%s7839_s8 + $0x9] ss:$0 sm:$0xff] }
  0x14   : > { %6457 = vmatprep.subr.bf16.mxu0 %v6456_v6  ;;  %v618_v10 = vld [vmem:[%s609_s24] sm:$0xff]  ;;  %v619_v14 = vld [vmem:[%s609_s24 + $0x8] sm:$0xff]  ;;  %s7859_s20 = sld [smem:[#allocation5_spill]]  ;;  %v5485_v57 = vld [vmem:[%s7838_s7 + $0xb8] sm:$0xff]  ;;  %s617_s24 = scalar_lea.vmem %s7850_s19, %s5444_s21 }
  0x15   : > { %v719_v11 = vld [vmem:[%s613_s27] sm:$0x1f]  ;;  %5955 = vmatprep.mubr.msk.f32.mxu0 %vm633_vm0, %v618_v10  ;;  %v5469_v10 = vld [vmem:[%s7839_s8 + $0x8] ss:$0 sm:$0xff] }
  0x16   : > { %723 = vperm.xlu0 %6689, %v719_v11   ;;  %vm731_vm1 = vcmp.eq.s32.totalorder %v719_v11, 4294967295  ;;  %v5489_v30 = vld [vmem:[%s7838_s7 + $0x120] sm:$0xff] }
  0x17   : > { %6459 = vmatpush3.bf16.msra.mxu0 %v6456_v6  ;;  %v5450_v13 = vsel %vm731_vm1, 1.0, %v6745_v12  ;;  %v6498_v32 = vpack.c.bf16 %v5490_v31, %v5489_v30  ;;  %v5482_v51 = vld [vmem:[%s7838_s7 + $0xa0] sm:$0xff]  ;;  %v5505_v31 = vld [vmem:[%s7838_s7 + $0x50] sm:$0xff] }
  0x18   : > { %6461 = vmatprep.subr.bf16.mxu0 %v6460_v9 }
  0x1a   : > { %736 = vperm.xlu0 %6689, %v5450_v13   ;;  %v5446_v16 = vld [vmem:[%s7859_s20] ss:$0 sm:$0xff] }
  0x1b   : > { %6463 = vmatpush3.bf16.msra.mxu0 %v6460_v9  ;;  %v6477_v9 = vpack.c.bf16 %v5460_v8, %v5459_v7 }
  0x1c   : > { %6467 = vmatprep.subr.bf16.mxu0 %v6746_v15 }
  0x1e   : > { %5956 = vmatmul.mubr.msk.f32.vlgmr.msra.gmra.mrb[0].mxu0 %vm633_vm0, %v619_v14 }
  0x1f   : > { %5973 = vmatprep.mubr.msk.f32.mxu0 %vm6747_vm2, %v6745_v12  ;;  %6469 = vmatpush3.bf16.msra.mxu0 %v6468_v49 }
  0x20   : > { %6470 = vmatprep.subr.bf16.mxu0 %v6746_v15 }
  0x23   : > { %6472 = vmatpush3.bf16.msra.mxu0 %v6471_v55 }
  0x24   : > { %6473 = vmatprep.subr.bf16.mxu0 %v6746_v15 }
  0x95   : > { %v724_v27 = vpop.permute.xlu0 %723 }
  0x96   : > { %vm725_vm3 = vcmp.eq.s32.totalorder %v724_v27, %v721_v23  ;;  %v5477_v27 = vld [vmem:[%s7838_s7 + $0x30] sm:$0xff] }
  0x97   : > { %v5449_v29 = vsel %vm725_vm3, 1.0, %v6745_v12 }
  0x99   : > { %v737_v36 = vpop.permute.xlu0 %736 }
  0x9a   : > { %v745_v37 = vmul.f32 %v743_v35, %v737_v36  ;;  %v6501_v35 = vpack.c.bf16 %v5492_v34, %v5491_v33 }
  0xf1   : > { %v5957_v18 = vpop.f32.mrb[0].mxu0 }
  0xf2   : > { %v712_v20 = vadd.f32 %v5957_v18, %v5446_v16  ;;  %v706_v21 = vpop.f32.mrb[1].mxu0  ;;  %v5462_v18 = vld [vmem:[%s7839_s8 + $0x4] ss:$0 sm:$0xff] }
  0xf3   : > { %v707_v24 = vadd.f32 %v5446_v16, %v706_v21  ;;  %v5476_v21 = vld [vmem:[%s7838_s7 + $0x28] sm:$0xff] }
  0xf4   : > { %v718_v25 = vadd.f32 %v716_v19, %v712_v20  ;;  %v5475_v20 = vld [vmem:[%s7838_s7 + $0x20] sm:$0xff] }
  0xf5   : > { %v717_v26 = vadd.f32 %v715_v22, %v707_v24  ;;  %v5455_v22 = vld [vmem:[%s7839_s8] ss:$0 sm:$0xff] }
  0xf7   : > { %v6465_v28 = vpack.c.bf16 %v718_v25, %v717_v26  ;;  %v6486_v25 = vpack.c.bf16 %v5476_v21, %v5475_v20  ;;  %v1271_v21 = vld [vmem:[%s7840_s9] sm:$0xff] }
  0xf9   : > { %6466 = vmatpush3.bf16.msra.mxu1 %v6465_v28  ;;  %v5478_v28 = vld [vmem:[%s7838_s7 + $0x38] sm:$0xff] }
  0xfa   : > { %6479 = vmatprep.subr.bf16.mxu1 %v6746_v15 }
  0xfc   : > { %5963 = vmatmul.mubr.msk.f32.vlgmr.msra.gmra.mrb[0].mxu1 %vm746_vm4, %v5449_v29  ;;  %v6489_v29 = vpack.c.bf16 %v5478_v28, %v5477_v27  ;;  %v5503_v28 = vld [vmem:[%s7838_s7 + $0x40] sm:$0xff] }
  0xfd   : > { %5995 = vmatprep.mubr.msk.f32.mxu1 %vm6747_vm2, %v6745_v12  ;;  %6481 = vmatpush3.bf16.msra.mxu1 %v6480_v52  ;;  %v5483_v52 = vld [vmem:[%s7838_s7 + $0xa8] sm:$0xff] }
  0xfe   : > { %6482 = vmatprep.subr.bf16.mxu1 %v6746_v15  ;;  %v6492_v54 = vpack.c.bf16 %v5483_v52, %v5482_v51  ;;  %v5508_v52 = vld [vmem:[%s7839_s8 + $0x2] ss:$0 sm:$0xff] }
 0x101   : > { %6484 = vmatpush3.bf16.msra.mxu1 %v6483_v58  ;;  %v6495_v58 = vpack.c.bf16 %v5485_v57, %v5484_v56  ;;  %v5522_v56 = vld [vmem:[%s7839_s8 + $0xa] ss:$0 sm:$0xff] }
 0x102   : > { %6003 = vmatprep.subr.mxu1 %v6745_v12 }
 0x1cf   : > { %v816_v38 = vpop.f32.mrb[0].mxu1 }
 0x1d0   : > { %v6914_v39 = vadd.f32 %v816_v38, %v745_v37  ;;  %v5964_v40 = vpop.f32.mrb[1].mxu1 }
 0x1d2   : > { %v824_v41 = vsel %vm823_vm5, %v6914_v39, 0.0 }
 0x1d3   : > { %825 = vadd.xlane.f32.xlu1 %v824_v41 }
 0x260   : > { %v826_v42 = vpop.xlane.xlu1 %825 }
 0x261   : > { %v828_v43 = vmul.f32 0.03125, %v826_v42 }
 0x263   : > { %v829_v44 = vsub.f32 %v6914_v39, %v828_v43 }
 0x265   : > { %v830_v45 = vmul.f32 %v829_v44, %v829_v44 }
 0x267   : > { %v831_v46 = vsel %vm823_vm5, %v830_v45, 0.0 }
 0x268   : > { %832 = vadd.xlane.f32.xlu1 %v831_v46 }
 0x2f5   : > { %v833_v59 = vpop.xlane.xlu1 %832 }
 0x2f6   : > { %v834_v60 = vmul.f32 0.03125, %v833_v59 }
 0x2f8   : > { %v835_v61 = vadd.f32 1e-05, %v834_v60 }
 0x2fa   : > { %6690 = vrsqrt.f32 %v835_v61  ;;  %v5487_v61 = vld [vmem:[%s7839_s8 + $0x5] ss:$0 sm:$0xff] }
 0x304   : > { %v6691_v62 = vpop.eup %6690 }
 0x305   : > { %v837_v0 = vmul.f32 %v6691_v62, %v829_v44 }
 0x307   : > { %v844_v4 = vmul.f32 %v5453_v63, %v837_v0  ;;  %v5480_v63 = vld [vmem:[%s7839_s8 + $0x1] ss:$0 sm:$0xff] }
 0x309   : > { %v6960_v6 = vadd.f32 %v5454_v3, %v844_v4 }
 0x30b   : > { %5974 = vmatmul.mubr.msk.f32.vlgmr.msra.gmra.mrb[2].mxu0 %vm863_vm6, %v6960_v6  ;;  %5996 = vmatmul.mubr.msk.f32.vlgmr.msra.gmra.mrb[2].mxu1 %vm863_vm6, %v6960_v6 }
 0x30c   : > { %6475 = vmatpush3.bf16.msra.mxu0 %v6474_v5  ;;  %5984 = vmatprep.mubr.msk.f32.mxu0 %vm6747_vm2, %v6745_v12 }
 0x30d   : > { %6476 = vmatprep.subr.bf16.mxu0 %v6746_v15  ;;  %6005 = vmatprep.mubr.msk.f32.mxu1 %vm6747_vm2, %v6745_v12 }
 0x310   : > { %6478 = vmatpush3.bf16.msra.mxu0 %v6477_v9 }
 0x311   : > { %5998 = vmatprep.subr.mxu0 %v6745_v12 }
 0x313   : > { %5985 = vmatmul.mubr.msk.f32.vlgmr.msra.gmra.mrb[4].mxu0 %vm863_vm6, %v6960_v6 }
 0x314   : > { %6000 = vmatprep.mubr.msk.f32.mxu0 %vm6747_vm2, %v6745_v12 }
 0x3de   : > { %v933_v11 = vpop.f32.mrb[2].mxu0  ;;  %v1099_v13 = vpop.f32.mrb[2].mxu1 }
 0x3df   : > { %v1100_v14 = vadd.f32 %v5469_v10, %v1099_v13  ;;  %v5975_v16 = vpop.f32.mrb[3].mxu0  ;;  %v5997_v17 = vpop.f32.mrb[3].mxu1  ;;  %v934_v26 = vadd.f32 %v5455_v22, %v933_v11  ;;  %v5510_v22 = vld [vmem:[%s7838_s7 + $0xc0] sm:$0xff] }
 0x3e0   : > { %v5500_v17 = vld [vmem:[%s7840_s9 + $0x8] sm:$0xff] }
 0x3e1   : > { %6004 = vmatpush3.msk.msra.mxu1 %vm1197_vm7, %v1100_v14 }
 0x3e2   : > { %6491 = vmatprep.subr.bf16.mxu1 %v6746_v15 }
 0x3e6   : > { %v1016_v19 = vpop.f32.mrb[4].mxu0 }
 0x3e7   : > { %v1017_v23 = vadd.f32 %v5462_v18, %v1016_v19  ;;  %v5986_v24 = vpop.f32.mrb[5].mxu0 }
 0x3e9   : > { %5999 = vmatpush3.xpose.msk.msra.mxu0 %vm1103_vm8, %v1017_v23  ;;  %v5511_v23 = vld [vmem:[%s7838_s7 + $0xc8] sm:$0xff] }
 0x3ea   : > { %6485 = vmatprep.subr.bf16.mxu0 %v6746_v15  ;;  %v6510_v24 = vpack.c.bf16 %v5511_v23, %v5510_v22  ;;  %v5547_v22 = vld [vmem:[%s7838_s7 + $0x178] sm:$0xff] }
 0x3ec   : > { %6001 = vmatmul.mubr.msk.f32.vlgmr.msra.gmra.mrb[6].mxu0 %vm1103_vm8, %v934_v26  ;;  %v5513_v26 = vld [vmem:[%s7838_s7 + $0xd8] sm:$0xff] }
 0x3ed   : > { %6487 = vmatpush3.bf16.msra.mxu0 %v6486_v25  ;;  %6016 = vmatprep.mubr.msk.f32.mxu0 %vm6747_vm2, %v6745_v12  ;;  %v5512_v25 = vld [vmem:[%s7838_s7 + $0xd0] sm:$0xff] }
 0x3ee   : > { %6488 = vmatprep.subr.bf16.mxu0 %v6746_v15  ;;  %v6513_v27 = vpack.c.bf16 %v5513_v26, %v5512_v25  ;;  %v5538_v25 = vld [vmem:[%s7838_s7 + $0xe8] sm:$0xff] }
 0x3f1   : > { %6490 = vmatpush3.bf16.msra.mxu0 %v6489_v29  ;;  %v5504_v29 = vld [vmem:[%s7838_s7 + $0x48] sm:$0xff] }
 0x3f2   : > { %6497 = vmatprep.subr.bf16.mxu0 %v6746_v15  ;;  %v6504_v30 = vpack.c.bf16 %v5504_v29, %v5503_v28  ;;  %v5540_v28 = vld [vmem:[%s7838_s7 + $0xf8] sm:$0xff] }
 0x3f4   : > { %6017 = vmatmul.mubr.msk.f32.vlgmr.msra.gmra.mrb[8].mxu0 %vm863_vm6, %v6960_v6 }
 0x3f5   : > { %6499 = vmatpush3.bf16.msra.mxu0 %v6498_v32  ;;  %6038 = vmatprep.mubr.msk.f32.mxu0 %vm6747_vm2, %v6745_v12  ;;  %v5506_v32 = vld [vmem:[%s7838_s7 + $0x58] sm:$0xff] }
 0x3f6   : > { %6500 = vmatprep.subr.bf16.mxu0 %v6746_v15 }
 0x3f9   : > { %6502 = vmatpush3.bf16.msra.mxu0 %v6501_v35  ;;  %v6507_v35 = vpack.c.bf16 %v5506_v32, %v5505_v31 }
 0x3fa   : > { %6051 = vmatprep.subr.mxu0 %v6745_v12 }
 0x3fc   : > { %6039 = vmatmul.mubr.msk.f32.vlgmr.msra.gmra.mrb[10].mxu0 %vm863_vm6, %v6960_v6 }
 0x3fd   : > { %6053 = vmatprep.mubr.msk.f32.mxu0 %vm6747_vm2, %v6745_v12  ;;  %6052 = vmatpush3.msra.mxu0 %v5500_v17 }
 0x3fe   : > { %6503 = vmatprep.subr.bf16.mxu0 %v6746_v15 }
 0x4bf   : > { %v1176_v36 = vpop.f32.mrb[6].mxu0 }
 0x4c0   : > { %v1180_v37 = vmul.f32 0.35355338, %v1176_v36  ;;  %v6002_v38 = vpop.f32.mrb[7].mxu0  ;;  %v5517_v36 = vld [vmem:[%s7838_s7 + $0x140] sm:$0xff] }
 0x4c2   : > { %v1182_v40 = vsel %vm1181_vm9, %v1180_v37, -inf }
 0x4c3   : > { %1183 = vmax.xlane.f32.xlu0 %v1182_v40 }
 0x4c7   : > { %v1351_v41 = vpop.f32.mrb[8].mxu0 }
 0x4c8   : > { %v6018_v42 = vpop.f32.mrb[9].mxu0  ;;  %v1352_v3 = vadd.f32 %v5480_v63, %v1351_v41 }
 0x4c9   : > { %v5519_v42 = vld [vmem:[%s7838_s7 + $0x150] sm:$0xff] }
 0x4cf   : > { %v1517_v43 = vpop.f32.mrb[10].mxu0 }
 0x4d0   : > { %v6040_v44 = vpop.f32.mrb[11].mxu0  ;;  %v1518_v4 = vadd.f32 %v5494_v2, %v1517_v43  ;;  %v5520_v43 = vld [vmem:[%s7838_s7 + $0x158] sm:$0xff] }
 0x4d1   : > { %v5515_v44 = vld [vmem:[%s7839_s8 + $0x6] ss:$0 sm:$0xff] }
 0x550   : > { %v1184_v45 = vpop.xlane.xlu0 %1183 }
 0x551   : > { %v1185_v46 = vsub.f32 %v1180_v37, %v1184_v45  ;;  %v5518_v37 = vld [vmem:[%s7838_s7 + $0x148] sm:$0xff]  ;;  %v6519_v45 = vpack.c.bf16 %v5520_v43, %v5519_v42  ;;  %v5535_v42 = vld [vmem:[%s7839_s8 + $0x3] ss:$0 sm:$0xff] }
 0x552   : > { %v6516_v41 = vpack.c.bf16 %v5518_v37, %v5517_v36 }
 0x553   : > { %v1186_v47 = vmul.f32 1.442695, %v1185_v46 }
 0x555   : > { %6692 = vpow2.f32 %v1186_v47 }
 0x55f   : > { %v6693_v48 = vpop.eup %6692 }
 0x560   : > { %v1188_v49 = vsel %vm1181_vm9, %v6693_v48, 0.0 }
 0x561   : > { %1189 = vadd.xlane.f32.xlu1 %v1188_v49 }
 0x5ee   : > { %v1190_v50 = vpop.xlane.xlu1 %1189 }
 0x5ef   : > { %6694 = vrcp.f32 %v1190_v50 }
 0x5f9   : > { %v6695_v53 = vpop.eup %6694 }
 0x5fa   : > { %v1192_v55 = vmul.f32 %v6695_v53, %v6693_v48 }
 0x5fc   : > { %6006 = vmatmul.mubr.msk.f32.vlgmr.msra.gmra.mrb[4].mxu1 %vm1193_vm10, %v1192_v55 }
 0x5fd   : > { %6493 = vmatpush3.bf16.msra.mxu1 %v6492_v54  ;;  %6027 = vmatprep.mubr.msk.f32.mxu1 %vm6747_vm2, %v6745_v12 }
 0x5fe   : > { %6494 = vmatprep.subr.bf16.mxu1 %v6746_v15 }
 0x601   : > { %6496 = vmatpush3.bf16.msra.mxu1 %v6495_v58 }
 0x602   : > { %6041 = vmatprep.subr.mxu1 %v6745_v12 }
 0x604   : > { %6028 = vmatmul.mubr.msk.f32.vlgmr.msra.gmra.mrb[6].mxu1 %vm863_vm6, %v6960_v6 }
 0x605   : > { %6043 = vmatprep.mubr.msk.f32.mxu1 %vm6747_vm2, %v6745_v12 }
 0x6cf   : > { %v1267_v59 = vpop.f32.mrb[4].mxu1 }
 0x6d0   : > { %v6007_v60 = vpop.f32.mrb[5].mxu1 }
 0x6d7   : > { %v1434_v62 = vpop.f32.mrb[6].mxu1 }
 0x6d8   : > { %v1435_v0 = vadd.f32 %v5487_v61, %v1434_v62  ;;  %v6029_v1 = vpop.f32.mrb[7].mxu1 }
 0x6da   : > { %6042 = vmatpush3.xpose.msk.msra.mxu1 %vm1103_vm8, %v1435_v0 }
 0x6db   : > { %6046 = vmatprep.subr.mxu1 %v6745_v12 }
 0x6dd   : > { %6044 = vmatmul.mubr.msk.f32.vlgmr.msra.gmra.mrb[8].mxu1 %vm1103_vm8, %v1352_v3 }
 0x6de   : > { %6047 = vmatpush3.msk.msra.mxu1 %vm1197_vm7, %v1518_v4  ;;  %6048 = vmatprep.mubr.msk.f32.mxu1 %vm6747_vm2, %v6745_v12 }
 0x6df   : > { %6056 = vmatprep.subr.mxu1 %v6745_v12 }
 0x7b0   : > { %v1593_v5 = vpop.f32.mrb[8].mxu1 }
 0x7b1   : > { %v1597_v7 = vmul.f32 0.35355338, %v1593_v5  ;;  %v6045_v8 = vpop.f32.mrb[9].mxu1  ;;  %v5528_v5 = vld [vmem:[%s7840_s9 + $0x10] sm:$0xff] }
 0x7b2   : > { %v5530_v8 = vld [vmem:[%s7838_s7 + $0x60] sm:$0xff] }
 0x7b3   : > { %v1598_v9 = vsel %vm1181_vm9, %v1597_v7, -inf }
 0x7b4   : > { %1599 = vmax.xlane.f32.xlu1 %v1598_v9  ;;  %v5531_v9 = vld [vmem:[%s7838_s7 + $0x68] sm:$0xff] }
 0x841   : > { %v1600_v10 = vpop.xlane.xlu1 %1599 }
 0x842   : > { %v1601_v11 = vsub.f32 %v1597_v7, %v1600_v10 }
 0x844   : > { %v1602_v13 = vmul.f32 1.442695, %v1601_v11  ;;  %v6522_v11 = vpack.c.bf16 %v5531_v9, %v5530_v8 }
 0x846   : > { %6696 = vpow2.f32 %v1602_v13 }
 0x850   : > { %v6697_v14 = vpop.eup %6696 }
 0x851   : > { %v1604_v16 = vsel %vm1181_vm9, %v6697_v14, 0.0 }
 0x852   : > { %1605 = vadd.xlane.f32.xlu1 %v1604_v16  ;;  %v5533_v16 = vld [vmem:[%s7838_s7 + $0x78] sm:$0xff] }
 0x8df   : > { %v1606_v18 = vpop.xlane.xlu1 %1605 }
 0x8e0   : > { %6698 = vrcp.f32 %v1606_v18  ;;  %v5544_v18 = vld [vmem:[%s7838_s7 + $0x160] sm:$0xff] }
 0x8ea   : > { %v6699_v19 = vpop.eup %6698 }
 0x8eb   : > { %v1608_v20 = vmul.f32 %v6699_v19, %v6697_v14  ;;  %v5532_v14 = vld [vmem:[%s7838_s7 + $0x70] sm:$0xff]  ;;  %v5545_v19 = vld [vmem:[%s7838_s7 + $0x168] sm:$0xff] }
 0x8ec   : > { %v6525_v17 = vpack.c.bf16 %v5533_v16, %v5532_v14  ;;  %v2853_v14 = vld [vmem:[%s7842_s11 + $0x10] sm:$0xff]  ;;  %v2854_v16 = vld [vmem:[%s7842_s11 + $0x18] sm:$0xff] }
 0x8ed   : > { %6049 = vmatmul.mubr.msk.f32.vlgmr.msra.gmra.mrb[10].mxu1 %vm1193_vm10, %v1608_v20  ;;  %v6534_v20 = vpack.c.bf16 %v5545_v19, %v5544_v18  ;;  %v2944_v18 = vld [vmem:[%s7844_s13] sm:$0xff]  ;;  %v2945_v19 = vld [vmem:[%s7844_s13 + $0x8] sm:$0xff] }
 0x8ee   : > { %6057 = vmatpush3.msra.mxu1 %v1271_v21  ;;  %6058 = vmatprep.mubr.msk.f32.mxu1 %vm6747_vm2, %v6745_v12  ;;  %v5546_v21 = vld [vmem:[%s7838_s7 + $0x170] sm:$0xff] }
 0x8ef   : > { %6509 = vmatprep.subr.bf16.mxu1 %v6746_v15  ;;  %v6537_v23 = vpack.c.bf16 %v5547_v22, %v5546_v21 }
 0x8f1   : > { %6059 = vmatmul.mubr.msk.f32.vlgmr.msra.gmra.mrb[12].mxu1 %vm1103_vm8, %v1267_v59 }
 0x8f2   : > { %6511 = vmatpush3.bf16.msra.mxu1 %v6510_v24  ;;  %6080 = vmatprep.mubr.msk.f32.mxu1 %vm6747_vm2, %v6745_v12  ;;  %v5537_v24 = vld [vmem:[%s7838_s7 + $0xe0] sm:$0xff] }
 0x8f3   : > { %6512 = vmatprep.subr.bf16.mxu1 %v6746_v15  ;;  %v6528_v26 = vpack.c.bf16 %v5538_v25, %v5537_v24  ;;  %v5560_v25 = vld [vmem:[%s7837_s6 + $0x2] ss:$0 sm:$0xff] }
 0x8f6   : > { %6514 = vmatpush3.bf16.msra.mxu1 %v6513_v27  ;;  %v5539_v27 = vld [vmem:[%s7838_s7 + $0xf0] sm:$0xff] }
 0x8f7   : > { %6094 = vmatprep.subr.mxu1 %v6745_v12  ;;  %v6531_v31 = vpack.c.bf16 %v5540_v28, %v5539_v27  ;;  %v5561_v27 = vld [vmem:[%s7837_s6 + $0x3] ss:$0 sm:$0xff] }
 0x8f9   : > { %6081 = vmatmul.mubr.msk.f32.vlgmr.msra.gmra.mrb[14].mxu1 %vm863_vm6, %v6960_v6 }
 0x8fa   : > { %6096 = vmatprep.mubr.msk.f32.mxu1 %vm6747_vm2, %v6745_v12 }
 0x9c0   : > { %v1681_v33 = vpop.f32.mrb[10].mxu1 }
 0x9c1   : > { %v6050_v34 = vpop.f32.mrb[11].mxu1  ;;  %6054 = vmatmul.mubr.msk.f32.vlgmr.msra.gmra.mrb[12].mxu0 %vm1103_vm8, %v1681_v33 }
 0x9c2   : > { %6505 = vmatpush3.bf16.msra.mxu0 %v6504_v30  ;;  %6069 = vmatprep.mubr.msk.f32.mxu0 %vm6747_vm2, %v6745_v12 }
 0x9c3   : > { %6506 = vmatprep.subr.bf16.mxu0 %v6746_v15 }
 0x9c4   : > { %v1829_v38 = vpop.f32.mrb[12].mxu1 }
 0x9c5   : > { %v6060_v40 = vpop.f32.mrb[13].mxu1 }
 0x9c6   : > { %6508 = vmatpush3.bf16.msra.mxu0 %v6507_v35  ;;  %v5542_v40 = vld [vmem:[%s7839_s8 + $0x7] ss:$0 sm:$0xff] }
 0x9c7   : > { %6515 = vmatprep.subr.bf16.mxu0 %v6746_v15 }
 0x9c9   : > { %6070 = vmatmul.mubr.msk.f32.vlgmr.msra.gmra.mrb[14].mxu0 %vm863_vm6, %v6960_v6 }
 0x9ca   : > { %6517 = vmatpush3.bf16.msra.mxu0 %v6516_v41  ;;  %6091 = vmatprep.mubr.msk.f32.mxu0 %vm6747_vm2, %v6745_v12 }
 0x9cb   : > { %6518 = vmatprep.subr.bf16.mxu0 %v6746_v15 }
 0x9cc   : > { %v1995_v46 = vpop.f32.mrb[14].mxu1 }
 0x9cd   : > { %v1996_v47 = vadd.f32 %v5515_v44, %v1995_v46  ;;  %v6082_v48 = vpop.f32.mrb[15].mxu1  ;;  %v5549_v44 = vld [vmem:[%s7839_s8 + $0xb] ss:$0 sm:$0xff] }
 0x9ce   : > { %6520 = vmatpush3.bf16.msra.mxu0 %v6519_v45 }
 0x9cf   : > { %6095 = vmatpush3.xpose.msk.msra.mxu1 %vm1103_vm8, %v1996_v47  ;;  %6104 = vmatprep.subr.mxu0 %v6745_v12 }
 0x9d0   : > { %6099 = vmatprep.subr.mxu1 %v6745_v12 }
 0x9d1   : > { %6092 = vmatmul.mubr.msk.f32.vlgmr.msra.gmra.mrb[16].mxu0 %vm863_vm6, %v6960_v6 }
 0x9d2   : > { %6106 = vmatprep.mubr.msk.f32.mxu0 %vm6747_vm2, %v6745_v12  ;;  %6105 = vmatpush3.msra.mxu0 %v5528_v5 }
 0x9d3   : > { %6527 = vmatprep.subr.bf16.mxu0 %v6746_v15 }
 0xa94   : > { %v1756_v49 = vpop.f32.mrb[12].mxu0 }
 0xa95   : > { %v7151_v50 = vadd.f32 %v1829_v38, %v1756_v49  ;;  %v6055_v51 = vpop.f32.mrb[13].mxu0 }
 0xa9c   : > { %v1912_v53 = vpop.f32.mrb[14].mxu0 }
 0xa9d   : > { %v1913_v54 = vadd.f32 %v5508_v52, %v1912_v53  ;;  %v6071_v55 = vpop.f32.mrb[15].mxu0 }
 0xa9f   : > { %6097 = vmatmul.mubr.msk.f32.vlgmr.msra.gmra.mrb[16].mxu1 %vm1103_vm8, %v1913_v54 }
 0xaa0   : > { %6101 = vmatprep.mubr.msk.f32.mxu1 %vm6747_vm2, %v6745_v12 }
 0xaa4   : > { %v2078_v57 = vpop.f32.mrb[16].mxu0 }
 0xaa5   : > { %v2079_v58 = vadd.f32 %v5522_v56, %v2078_v57  ;;  %v6093_v59 = vpop.f32.mrb[17].mxu0  ;;  %v5555_v56 = vld [vmem:[%s7840_s9 + $0x18] sm:$0xff] }
 0xaa7   : > { %6100 = vmatpush3.msk.msra.mxu1 %vm1197_vm7, %v2079_v58 }
 0xaa8   : > { %6521 = vmatprep.subr.bf16.mxu1 %v6746_v15 }
 0xb72   : > { %v2154_v60 = vpop.f32.mrb[16].mxu1 }
 0xb73   : > { %v2158_v61 = vmul.f32 0.35355338, %v2154_v60  ;;  %v6098_v62 = vpop.f32.mrb[17].mxu1 }
 0xb75   : > { %v2159_v63 = vsel %vm1181_vm9, %v2158_v61, -inf }
 0xb76   : > { %2160 = vmax.xlane.f32.xlu1 %v2159_v63 }
 0xc03   : > { %v2161_v0 = vpop.xlane.xlu1 %2160 }
 0xc04   : > { %v2162_v1 = vsub.f32 %v2158_v61, %v2161_v0 }
 0xc06   : > { %v2163_v2 = vmul.f32 1.442695, %v2162_v1  ;;  %v5557_v1 = vld [vmem:[%s7841_s10] ss:$0 sm:$0xff] }
 0xc08   : > { %6700 = vpow2.f32 %v2163_v2 }
 0xc12   : > { %v6701_v3 = vpop.eup %6700 }
 0xc13   : > { %v2165_v4 = vsel %vm1181_vm9, %v6701_v3, 0.0 }
 0xc14   : > { %2166 = vadd.xlane.f32.xlu1 %v2165_v4 }
 0xca1   : > { %v2167_v7 = vpop.xlane.xlu1 %2166 }
 0xca2   : > { %6702 = vrcp.f32 %v2167_v7 }
 0xcac   : > { %v6703_v10 = vpop.eup %6702 }
 0xcad   : > { %v2169_v13 = vmul.f32 %v6703_v10, %v6701_v3 }
 0xcaf   : > { %6102 = vmatmul.mubr.msk.f32.vlgmr.msra.gmra.mrb[18].mxu1 %vm1193_vm10, %v2169_v13 }
 0xcb0   : > { %6523 = vmatpush3.bf16.msra.mxu1 %v6522_v11  ;;  %6117 = vmatprep.mubr.msk.f32.mxu1 %vm6747_vm2, %v6745_v12  ;;  %v2851_v11 = vld [vmem:[%s7842_s11] sm:$0xff] }
 0xcb1   : > { %6524 = vmatprep.subr.bf16.mxu1 %v6746_v15 }
 0xcb4   : > { %6526 = vmatpush3.bf16.msra.mxu1 %v6525_v17  ;;  %v6543_v17 = vpack.c.bf16 %v2854_v16, %v2853_v14  ;;  %v5571_v16 = vld [vmem:[%s7838_s7 + $0x190] sm:$0xff] }
 0xcb5   : > { %6533 = vmatprep.subr.bf16.mxu1 %v6746_v15 }
 0xcb7   : > { %6118 = vmatmul.mubr.msk.f32.vlgmr.msra.gmra.mrb[20].mxu1 %vm863_vm6, %v6960_v6 }
 0xcb8   : > { %6535 = vmatpush3.bf16.msra.mxu1 %v6534_v20  ;;  %6139 = vmatprep.mubr.msk.f32.mxu1 %vm6747_vm2, %v6745_v12  ;;  %v6546_v20 = vpack.c.bf16 %v2945_v19, %v2944_v18 }
 0xcb9   : > { %6536 = vmatprep.subr.bf16.mxu1 %v6746_v15 }
 0xcbc   : > { %6538 = vmatpush3.bf16.msra.mxu1 %v6537_v23 }
 0xcbd   : > { %6152 = vmatprep.subr.mxu1 %v6745_v12 }
 0xcbf   : > { %6140 = vmatmul.mubr.msk.f32.vlgmr.msra.gmra.mrb[22].mxu1 %vm863_vm6, %v6960_v6 }
 0xcc0   : > { %6154 = vmatprep.mubr.msk.f32.mxu1 %vm6747_vm2, %v6745_v12  ;;  %6153 = vmatpush3.msra.mxu1 %v5555_v56 }
 0xcc1   : > { %6545 = vmatprep.subr.bf16.mxu1 %v6746_v15 }
 0xd82   : > { %v2242_v29 = vpop.f32.mrb[18].mxu1 }
 0xd83   : > { %v6103_v30 = vpop.f32.mrb[19].mxu1  ;;  %6107 = vmatmul.mubr.msk.f32.vlgmr.msra.gmra.mrb[18].mxu0 %vm1103_vm8, %v2242_v29 }
 0xd84   : > { %6529 = vmatpush3.bf16.msra.mxu0 %v6528_v26  ;;  %6128 = vmatprep.mubr.msk.f32.mxu0 %vm6747_vm2, %v6745_v12  ;;  %v2946_v30 = vld [vmem:[%s7844_s13 + $0x10] sm:$0xff] }
 0xd85   : > { %6530 = vmatprep.subr.bf16.mxu0 %v6746_v15 }
 0xd88   : > { %6532 = vmatpush3.bf16.msra.mxu0 %v6531_v31  ;;  %v2947_v31 = vld [vmem:[%s7844_s13 + $0x18] sm:$0xff] }
 0xd89   : > { %6142 = vmatprep.subr.mxu0 %v6745_v12 }
 0xd8a   : > { %v2401_v32 = vpop.f32.mrb[20].mxu1 }
 0xd8b   : > { %v6119_v33 = vpop.f32.mrb[21].mxu1  ;;  %6129 = vmatmul.mubr.msk.f32.vlgmr.msra.gmra.mrb[20].mxu0 %vm863_vm6, %v6960_v6  ;;  %v2402_v45 = vadd.f32 %v5535_v42, %v2401_v32  ;;  %v6549_v32 = vpack.c.bf16 %v2947_v31, %v2946_v30  ;;  %v5578_v31 = vld [vmem:[%s7838_s7 + $0x210] sm:$0xff] }
 0xd8c   : > { %6144 = vmatprep.mubr.msk.f32.mxu0 %vm6747_vm2, %v6745_v12  ;;  %v2948_v33 = vld [vmem:[%s7844_s13 + $0x20] sm:$0xff] }
 0xd92   : > { %v2567_v34 = vpop.f32.mrb[22].mxu1 }
 0xd93   : > { %v6141_v35 = vpop.f32.mrb[23].mxu1  ;;  %v2568_v46 = vadd.f32 %v5549_v44, %v2567_v34  ;;  %v2949_v34 = vld [vmem:[%s7844_s13 + $0x28] sm:$0xff] }
 0xd94   : > { %v6552_v35 = vpack.c.bf16 %v2949_v34, %v2948_v33  ;;  %v5583_v34 = vld [vmem:[%s7838_s7 + $0x280] sm:$0xff] }
 0xe56   : > { %v2317_v36 = vpop.f32.mrb[18].mxu0 }
 0xe57   : > { %v2321_v37 = vadd.f32 %v2317_v36, %v7151_v50  ;;  %v6108_v38 = vpop.f32.mrb[19].mxu0  ;;  %v2950_v36 = vld [vmem:[%s7844_s13 + $0x30] sm:$0xff] }
 0xe5e   : > { %v2484_v41 = vpop.f32.mrb[20].mxu0 }
 0xe5f   : > { %v2485_v43 = vadd.f32 %v5542_v40, %v2484_v41  ;;  %v6130_v6 = vpop.f32.mrb[21].mxu0  ;;  %v2952_v40 = vld [vmem:[%s7844_s13 + $0x40] sm:$0xff]  ;;  %v2953_v41 = vld [vmem:[%s7844_s13 + $0x48] sm:$0xff] }
 0xe60   : > { %v6558_v42 = vpack.c.bf16 %v2953_v41, %v2952_v40  ;;  %v2955_v6 = vld [vmem:[%s7844_s13 + $0x58] sm:$0xff] }
 0xe61   : > { %6143 = vmatpush3.xpose.msk.msra.mxu0 %vm1103_vm8, %v2485_v43  ;;  %v2954_v43 = vld [vmem:[%s7844_s13 + $0x50] sm:$0xff] }
 0xe62   : > { %6147 = vmatprep.subr.mxu0 %v6745_v12  ;;  %v6561_v44 = vpack.c.bf16 %v2955_v6, %v2954_v43  ;;  %v5581_v43 = vld [vmem:[%s7839_s8 + $0x10] ss:$0 sm:$0xff] }
 0xe64   : > { %6145 = vmatmul.mubr.msk.f32.vlgmr.msra.gmra.mrb[22].mxu0 %vm1103_vm8, %v2402_v45  ;;  %v2956_v45 = vld [vmem:[%s7844_s13 + $0x60] sm:$0xff] }
 0xe65   : > { %6148 = vmatpush3.msk.msra.mxu0 %vm1197_vm7, %v2568_v46  ;;  %6149 = vmatprep.mubr.msk.f32.mxu0 %vm6747_vm2, %v6745_v12  ;;  %v2957_v46 = vld [vmem:[%s7844_s13 + $0x68] sm:$0xff] }
 0xe66   : > { %6539 = vmatprep.subr.bf16.mxu0 %v6746_v15 }
 0xf37   : > { %v2643_v47 = vpop.f32.mrb[22].mxu0 }
 0xf38   : > { %v2647_v48 = vmul.f32 0.35355338, %v2643_v47  ;;  %v6146_v49 = vpop.f32.mrb[23].mxu0  ;;  %v6564_v47 = vpack.c.bf16 %v2957_v46, %v2956_v45  ;;  %v5596_v45 = vld [vmem:[%s7838_s7 + $0x1a8] sm:$0xff] }
 0xf39   : > { %v2959_v49 = vld [vmem:[%s7844_s13 + $0x78] sm:$0xff]  ;;  %v5574_v46 = vld [vmem:[%s7839_s8 + $0xc] ss:$0 sm:$0xff] }
 0xf3a   : > { %v2648_v50 = vsel %vm1181_vm9, %v2647_v48, -inf }
 0xf3b   : > { %2649 = vmax.xlane.f32.xlu1 %v2648_v50 }
 0xfc8   : > { %v2650_v51 = vpop.xlane.xlu1 %2649 }
 0xfc9   : > { %v2651_v52 = vsub.f32 %v2647_v48, %v2650_v51  ;;  %v2958_v48 = vld [vmem:[%s7844_s13 + $0x70] sm:$0xff]  ;;  %v5562_v51 = vld [vmem:[%s7843_s12] ss:$0 sm:$0xff] }
 0xfca   : > { %v6567_v50 = vpack.c.bf16 %v2959_v49, %v2958_v48 }
 0xfcb   : > { %v2652_v53 = vmul.f32 1.442695, %v2651_v52 }
 0xfcd   : > { %6704 = vpow2.f32 %v2652_v53 }
 0xfd7   : > { %v6705_v54 = vpop.eup %6704 }
 0xfd8   : > { %v2654_v55 = vsel %vm1181_vm9, %v6705_v54, 0.0 }
 0xfd9   : > { %2655 = vadd.xlane.f32.xlu1 %v2654_v55 }
0x1066   : > { %v2656_v57 = vpop.xlane.xlu1 %2655 }
0x1067   : > { %6706 = vrcp.f32 %v2656_v57 }
0x1071   : > { %v6707_v58 = vpop.eup %6706 }
0x1072   : > { %v2658_v59 = vmul.f32 %v6707_v58, %v6705_v54 }
0x1074   : > { %6150 = vmatmul.mubr.msk.f32.vlgmr.msra.gmra.mrb[24].mxu0 %vm1193_vm10, %v2658_v59 }
0x1075   : > { %6165 = vmatprep.mubr.msk.f32.mxu0 %vm6747_vm2, %v6745_v12 }
0x1147   : > { %v2731_v60 = vpop.f32.mrb[24].mxu0 }
0x1148   : > { %v6151_v61 = vpop.f32.mrb[25].mxu0  ;;  %6155 = vmatmul.mubr.msk.f32.vlgmr.msra.gmra.mrb[24].mxu1 %vm1103_vm8, %v2731_v60 }
0x1149   : > { %6200 = vmatprep.mubr.msk.f32.mxu1 %vm6747_vm2, %v6745_v12  ;;  %6547 = vmatpush3.bf16.msra.mxu1 %v6546_v20 }
0x114a   : > { %6548 = vmatprep.subr.bf16.mxu1 %v6746_v15 }
0x114d   : > { %6550 = vmatpush3.bf16.msra.mxu1 %v6549_v32  ;;  %v5579_v32 = vld [vmem:[%s7838_s7 + $0x218] sm:$0xff] }
0x114e   : > { %6551 = vmatprep.subr.bf16.mxu1 %v6746_v15  ;;  %v6579_v33 = vpack.c.bf16 %v5579_v32, %v5578_v31 }
0x1151   : > { %6553 = vmatpush3.bf16.msra.mxu1 %v6552_v35  ;;  %v5584_v35 = vld [vmem:[%s7838_s7 + $0x288] sm:$0xff] }
0x1152   : > { %6554 = vmatprep.subr.bf16.mxu1 %v6746_v15 }
0x121b   : > { %v2806_v62 = vpop.f32.mrb[24].mxu1 }
0x121c   : > { %v2810_v63 = vadd.f32 %v2806_v62, %v2321_v37  ;;  %v6156_v0 = vpop.f32.mrb[25].mxu1  ;;  %v2951_v37 = vld [vmem:[%s7844_s13 + $0x38] sm:$0xff] }
0x121d   : > { %v6555_v38 = vpack.c.bf16 %v2951_v37, %v2950_v36  ;;  %v5564_v0 = vld [vmem:[%s7845_s14] ss:$0 sm:$0xff]  ;;  %v6582_v36 = vpack.c.bf16 %v5584_v35, %v5583_v34  ;;  %v5585_v37 = vld [vmem:[%s7838_s7 + $0x290] sm:$0xff] }
0x121e   : > { %v2811_v2 = vadd.f32 %v2810_v63, %v6914_v39  ;;  %v2852_v39 = vld [vmem:[%s7842_s11 + $0x8] sm:$0xff] }
0x121f   : > { %v6540_v13 = vpack.c.bf16 %v2852_v39, %v2851_v11  ;;  %6556 = vmatpush3.bf16.msra.mxu1 %v6555_v38  ;;  %v5586_v38 = vld [vmem:[%s7838_s7 + $0x298] sm:$0xff] }
0x1220   : > { %v7263_v3 = vadd.f32 %v5557_v1, %v2811_v2  ;;  %6557 = vmatprep.subr.bf16.mxu1 %v6746_v15  ;;  %v6585_v40 = vpack.c.bf16 %v5586_v38, %v5585_v37 }
0x1221   : > { %6541 = vmatpush3.bf16.msra.mxu0 %v6540_v13  ;;  %v5569_v13 = vld [vmem:[%s7838_s7 + $0x180] sm:$0xff] }
0x1222   : > { %v2824_v4 = vsel %vm823_vm5, %v7263_v3, 0.0  ;;  %6542 = vmatprep.subr.bf16.mxu0 %v6746_v15 }
0x1223   : > { %2825 = vadd.xlane.f32.xlu1 %v2824_v4  ;;  %6559 = vmatpush3.bf16.msra.mxu1 %v6558_v42 }
0x1224   : > { %6560 = vmatprep.subr.bf16.mxu1 %v6746_v15 }
0x1225   : > { %6544 = vmatpush3.bf16.msra.mxu0 %v6543_v17  ;;  %v5572_v17 = vld [vmem:[%s7838_s7 + $0x198] sm:$0xff] }
0x1226   : > { %6569 = vmatprep.subr.bf16.mxu0 %v6746_v15  ;;  %v6573_v18 = vpack.c.bf16 %v5572_v17, %v5571_v16  ;;  %v5602_v17 = vld [vmem:[%s7838_s7 + $0x220] sm:$0xff] }
0x1227   : > { %6562 = vmatpush3.bf16.msra.mxu1 %v6561_v44  ;;  %v5595_v44 = vld [vmem:[%s7838_s7 + $0x1a0] sm:$0xff] }
0x1228   : > { %6563 = vmatprep.subr.bf16.mxu1 %v6746_v15  ;;  %v6588_v49 = vpack.c.bf16 %v5596_v45, %v5595_v44  ;;  %v5620_v45 = vld [vmem:[%s7840_s9 + $0x28] sm:$0xff] }
0x122b   : > { %6565 = vmatpush3.bf16.msra.mxu1 %v6564_v47 }
0x122c   : > { %6566 = vmatprep.subr.bf16.mxu1 %v6746_v15 }
0x122f   : > { %6568 = vmatpush3.bf16.msra.mxu1 %v6567_v50 }
0x1230   : > { %6241 = vmatprep.subr.mxu1 %v6745_v12 }
0x12b0   : > { %v2826_v5 = vpop.xlane.xlu1 %2825 }
0x12b1   : > { %v2827_v7 = vmul.f32 0.03125, %v2826_v5 }
0x12b3   : > { %v2828_v8 = vsub.f32 %v7263_v3, %v2827_v7 }
0x12b5   : > { %v2829_v9 = vmul.f32 %v2828_v8, %v2828_v8 }
0x12b7   : > { %v2830_v10 = vsel %vm823_vm5, %v2829_v9, 0.0 }
0x12b8   : > { %2831 = vadd.xlane.f32.xlu0 %v2830_v10 }
0x1345   : > { %v2832_v21 = vpop.xlane.xlu0 %2831 }
0x1346   : > { %v2833_v22 = vmul.f32 0.03125, %v2832_v21 }
0x1348   : > { %v2834_v23 = vadd.f32 1e-05, %v2833_v22 }
0x134a   : > { %6708 = vrsqrt.f32 %v2834_v23  ;;  %v5567_v23 = vld [vmem:[%s7837_s6 + $0x4] ss:$0 sm:$0xff] }
0x1354   : > { %v6709_v24 = vpop.eup %6708 }
0x1355   : > { %v2836_v26 = vmul.f32 %v6709_v24, %v2828_v8 }
0x1357   : > { %v2843_v28 = vmul.f32 %v5560_v25, %v2836_v26  ;;  %v5576_v25 = vld [vmem:[%s7838_s7 + $0x200] sm:$0xff]  ;;  %v5577_v26 = vld [vmem:[%s7838_s7 + $0x208] sm:$0xff] }
0x1359   : > { %v2850_v29 = vadd.f32 %v5561_v27, %v2843_v28  ;;  %v5568_v27 = vld [vmem:[%s7837_s6 + $0x5] ss:$0 sm:$0xff] }
0x135b   : > { %6166 = vmatmul.mubr.msk.f32.vlgmr.msra.gmra.mrb[26].mxu0 %vm863_vm6, %v2850_v29  ;;  %v6576_v29 = vpack.c.bf16 %v5577_v26, %v5576_v25 }
0x135c   : > { %6211 = vmatprep.mubr.msk.f32.mxu0 %vm6747_vm2, %v6745_v12 }
0x142e   : > { %v2931_v52 = vpop.f32.mrb[26].mxu0 }
0x142f   : > { %v2932_v53 = vadd.f32 %v5562_v51, %v2931_v52  ;;  %v6167_v54 = vpop.f32.mrb[27].mxu0  ;;  %v5597_v51 = vld [vmem:[%s7838_s7 + $0x1b0] sm:$0xff]  ;;  %v5598_v52 = vld [vmem:[%s7838_s7 + $0x1b8] sm:$0xff] }
0x1430   : > { %v6591_v54 = vpack.c.bf16 %v5598_v52, %v5597_v51  ;;  %v5631_v51 = vld [vmem:[%s7838_s7 + $0x248] sm:$0xff] }
0x1431   : > { %v2936_v55 = vmul.f32 0.044715, %v2932_v53  ;;  %v2935_v61 = vmul.f32 0.5, %v2932_v53 }
0x1433   : > { %v2937_v56 = vmul.f32 %v2936_v55, %v2932_v53 }
0x1435   : > { %v2938_v57 = vmul.f32 %v2937_v56, %v2932_v53  ;;  %v5609_v56 = vld [vmem:[%s7838_s7 + $0x2a0] sm:$0xff] }
0x1437   : > { %v2939_v58 = vadd.f32 %v2938_v57, %v2932_v53  ;;  %v5588_v53 = vld [vmem:[%s7839_s8 + $0x14] ss:$0 sm:$0xff]  ;;  %v5610_v57 = vld [vmem:[%s7838_s7 + $0x2a8] sm:$0xff] }
0x1439   : > { %v2940_v59 = vmul.f32 0.7978846, %v2939_v58 }
0x143b   : > { %6710 = vtanh.f32 %v2940_v59 }
0x1445   : > { %v6711_v60 = vpop.eup %6710 }
0x1446   : > { %v2942_v62 = vadd.f32 1.0, %v6711_v60  ;;  %v6600_v60 = vpack.c.bf16 %v5610_v57, %v5609_v56  ;;  %v5623_v56 = vld [vmem:[%s7838_s7 + $0x1c0] sm:$0xff]  ;;  %v5624_v57 = vld [vmem:[%s7838_s7 + $0x1c8] sm:$0xff] }
0x1448   : > { %v2943_v63 = vmul.f32 %v2942_v62, %v2935_v61  ;;  %v5611_v61 = vld [vmem:[%s7838_s7 + $0x2b0] sm:$0xff]  ;;  %v5612_v62 = vld [vmem:[%s7838_s7 + $0x2b8] sm:$0xff] }
0x144a   : > { %6201 = vmatmul.mubr.f32.vlgmr.msra.gmra.mrb[26].mxu1 %v2943_v63  ;;  %v6603_v63 = vpack.c.bf16 %v5612_v62, %v5611_v61 }
0x144b   : > { %6243 = vmatprep.mubr.msk.f32.mxu1 %vm6747_vm2, %v6745_v12 }
0x151d   : > { %v3033_v1 = vpop.f32.mrb[26].mxu1 }
0x151e   : > { %v3034_v2 = vadd.f32 %v5564_v0, %v3033_v1  ;;  %v6202_v4 = vpop.f32.mrb[27].mxu1 }
0x1520   : > { %v7357_v5 = vadd.f32 %v3034_v2, %v7263_v3  ;;  %v5570_v3 = vld [vmem:[%s7838_s7 + $0x188] sm:$0xff] }
0x1521   : > { %v6570_v14 = vpack.c.bf16 %v5570_v3, %v5569_v13 }
0x1522   : > { %v3042_v7 = vsel %vm823_vm5, %v7357_v5, 0.0 }
0x1523   : > { %3043 = vadd.xlane.f32.xlu1 %v3042_v7  ;;  %6571 = vmatpush3.bf16.msra.mxu0 %v6570_v14 }
0x1524   : > { %6572 = vmatprep.subr.bf16.mxu0 %v6746_v15 }
0x1527   : > { %6574 = vmatpush3.bf16.msra.mxu0 %v6573_v18  ;;  %v5603_v18 = vld [vmem:[%s7838_s7 + $0x228] sm:$0xff] }
0x1528   : > { %6575 = vmatprep.subr.bf16.mxu0 %v6746_v15 }
0x15b0   : > { %v3044_v8 = vpop.xlane.xlu1 %3043 }
0x15b1   : > { %v3045_v9 = vmul.f32 0.03125, %v3044_v8 }
0x15b3   : > { %v3046_v10 = vsub.f32 %v7357_v5, %v3045_v9 }
0x15b5   : > { %v3047_v11 = vmul.f32 %v3046_v10, %v3046_v10 }
0x15b7   : > { %v3048_v39 = vsel %vm823_vm5, %v3047_v11, 0.0 }
0x15b8   : > { %3049 = vadd.xlane.f32.xlu0 %v3048_v39 }
0x1645   : > { %v3050_v19 = vpop.xlane.xlu0 %3049 }
0x1646   : > { %v3051_v20 = vmul.f32 0.03125, %v3050_v19 }
0x1648   : > { %v3052_v21 = vadd.f32 1e-05, %v3051_v20  ;;  %v6594_v20 = vpack.c.bf16 %v5603_v18, %v5602_v17  ;;  %v5628_v18 = vld [vmem:[%s7839_s8 + $0xe] ss:$0 sm:$0xff] }
0x164a   : > { %6712 = vrsqrt.f32 %v3052_v21 }
0x1654   : > { %v6713_v22 = vpop.eup %6712 }
0x1655   : > { %v3054_v24 = vmul.f32 %v6713_v22, %v3046_v10  ;;  %v5604_v22 = vld [vmem:[%s7838_s7 + $0x230] sm:$0xff] }
0x1657   : > { %v3061_v28 = vmul.f32 %v5567_v23, %v3054_v24  ;;  %v5605_v23 = vld [vmem:[%s7838_s7 + $0x238] sm:$0xff] }
0x1658   : > { %v6597_v24 = vpack.c.bf16 %v5605_v23, %v5604_v22  ;;  %v5642_v22 = vld [vmem:[%s7839_s8 + $0x16] ss:$0 sm:$0xff] }
0x1659   : > { %v7389_v30 = vadd.f32 %v5568_v27, %v3061_v28  ;;  %v5607_v27 = vld [vmem:[%s7839_s8 + $0x11] ss:$0 sm:$0xff] }
0x165b   : > { %6212 = vmatmul.mubr.msk.f32.vlgmr.msra.gmra.mrb[28].mxu0 %vm863_vm6, %v7389_v30 }
0x165c   : > { %6577 = vmatpush3.bf16.msra.mxu0 %v6576_v29  ;;  %6222 = vmatprep.mubr.msk.f32.mxu0 %vm6747_vm2, %v6745_v12  ;;  %v5600_v29 = vld [vmem:[%s7839_s8 + $0xd] ss:$0 sm:$0xff] }
0x165d   : > { %6578 = vmatprep.subr.bf16.mxu0 %v6746_v15 }
0x1660   : > { %6580 = vmatpush3.bf16.msra.mxu0 %v6579_v33  ;;  %v5614_v33 = vld [vmem:[%s7839_s8 + $0x15] ss:$0 sm:$0xff] }
0x1661   : > { %6581 = vmatprep.subr.bf16.mxu0 %v6746_v15 }
0x1663   : > { %6223 = vmatmul.mubr.msk.f32.vlgmr.msra.gmra.mrb[30].mxu0 %vm863_vm6, %v7389_v30 }
0x1664   : > { %6583 = vmatpush3.bf16.msra.mxu0 %v6582_v36  ;;  %6233 = vmatprep.mubr.msk.f32.mxu0 %vm6747_vm2, %v6745_v12 }
0x1665   : > { %6584 = vmatprep.subr.bf16.mxu0 %v6746_v15 }
0x1668   : > { %6586 = vmatpush3.bf16.msra.mxu0 %v6585_v40 }
0x1669   : > { %6236 = vmatprep.subr.mxu0 %v6745_v12 }
0x166b   : > { %6234 = vmatmul.mubr.msk.f32.vlgmr.msra.gmra.mrb[32].mxu0 %vm863_vm6, %v7389_v30 }
0x166c   : > { %6238 = vmatprep.mubr.msk.f32.mxu0 %vm6747_vm2, %v6745_v12 }
0x172e   : > { %v3151_v41 = vpop.f32.mrb[28].mxu0 }
0x172f   : > { %v6213_v42 = vpop.f32.mrb[29].mxu0  ;;  %v3152_v50 = vadd.f32 %v5574_v46, %v3151_v41 }
0x1736   : > { %v3234_v6 = vpop.f32.mrb[30].mxu0 }
0x1737   : > { %v3235_v47 = vadd.f32 %v5581_v43, %v3234_v6  ;;  %v6224_v48 = vpop.f32.mrb[31].mxu0 }
0x1739   : > { %6237 = vmatpush3.xpose.msk.msra.mxu0 %vm1103_vm8, %v3235_v47 }
0x173a   : > { %6587 = vmatprep.subr.bf16.mxu0 %v6746_v15 }
0x173c   : > { %6239 = vmatmul.mubr.msk.f32.vlgmr.msra.gmra.mrb[34].mxu0 %vm1103_vm8, %v3152_v50  ;;  %v5630_v50 = vld [vmem:[%s7838_s7 + $0x240] sm:$0xff] }
0x173d   : > { %6589 = vmatpush3.bf16.msra.mxu0 %v6588_v49  ;;  %6254 = vmatprep.mubr.msk.f32.mxu0 %vm6747_vm2, %v6745_v12  ;;  %v5594_v49 = vld [vmem:[%s7840_s9 + $0x20] sm:$0xff]  ;;  %v6612_v52 = vpack.c.bf16 %v5631_v51, %v5630_v50  ;;  %v5667_v50 = vld [vmem:[%s7838_s7 + $0x2f8] sm:$0xff] }
0x173e   : > { %v3317_v55 = vpop.f32.mrb[32].mxu0  ;;  %6590 = vmatprep.subr.bf16.mxu0 %v6746_v15 }
0x173f   : > { %v3318_v58 = vadd.f32 %v5588_v53, %v3317_v55  ;;  %v6235_v59 = vpop.f32.mrb[33].mxu0  ;;  %v5632_v53 = vld [vmem:[%s7838_s7 + $0x250] sm:$0xff] }
0x1740   : > { %v5625_v59 = vld [vmem:[%s7838_s7 + $0x1d0] sm:$0xff] }
0x1741   : > { %6242 = vmatpush3.msk.msra.mxu1 %vm1197_vm7, %v3318_v58  ;;  %6592 = vmatpush3.bf16.msra.mxu0 %v6591_v54  ;;  %v5633_v54 = vld [vmem:[%s7838_s7 + $0x258] sm:$0xff]  ;;  %v6606_v58 = vpack.c.bf16 %v5624_v57, %v5623_v56 }
0x1742   : > { %6599 = vmatprep.subr.bf16.mxu0 %v6746_v15  ;;  %6593 = vmatprep.subr.bf16.mxu1 %v6746_v15  ;;  %v6615_v55 = vpack.c.bf16 %v5633_v54, %v5632_v53  ;;  %v5658_v53 = vld [vmem:[%s7838_s7 + $0x268] sm:$0xff]  ;;  %v5660_v56 = vld [vmem:[%s7838_s7 + $0x278] sm:$0xff] }
0x1744   : > { %6255 = vmatmul.mubr.msk.f32.vlgmr.msra.gmra.mrb[36].mxu0 %vm863_vm6, %v7389_v30 }
0x1745   : > { %6601 = vmatpush3.bf16.msra.mxu0 %v6600_v60  ;;  %6276 = vmatprep.mubr.msk.f32.mxu0 %vm6747_vm2, %v6745_v12  ;;  %v5626_v60 = vld [vmem:[%s7838_s7 + $0x1d8] sm:$0xff] }
0x1746   : > { %6602 = vmatprep.subr.bf16.mxu0 %v6746_v15 }
0x1749   : > { %6604 = vmatpush3.bf16.msra.mxu0 %v6603_v63  ;;  %v6609_v63 = vpack.c.bf16 %v5626_v60, %v5625_v59 }
0x174a   : > { %6289 = vmatprep.subr.mxu0 %v6745_v12 }
0x174c   : > { %6277 = vmatmul.mubr.msk.f32.vlgmr.msra.gmra.mrb[38].mxu0 %vm863_vm6, %v7389_v30 }
0x174d   : > { %6291 = vmatprep.mubr.msk.f32.mxu0 %vm6747_vm2, %v6745_v12  ;;  %6290 = vmatpush3.msra.mxu0 %v5620_v45 }
0x174e   : > { %6605 = vmatprep.subr.bf16.mxu0 %v6746_v15 }
0x180f   : > { %v3393_v0 = vpop.f32.mrb[34].mxu0 }
0x1810   : > { %v3397_v1 = vmul.f32 0.35355338, %v3393_v0  ;;  %v6240_v2 = vpop.f32.mrb[35].mxu0  ;;  %v5637_v0 = vld [vmem:[%s7838_s7 + $0x2c0] sm:$0xff] }
0x1812   : > { %v3398_v4 = vsel %vm1181_vm9, %v3397_v1, -inf }
0x1813   : > { %3399 = vmax.xlane.f32.xlu1 %v3398_v4 }
0x1817   : > { %v3566_v7 = vpop.f32.mrb[36].mxu0 }
0x1818   : > { %v6256_v8 = vpop.f32.mrb[37].mxu0  ;;  %v3567_v34 = vadd.f32 %v5600_v29, %v3566_v7 }
0x1819   : > { %v5639_v8 = vld [vmem:[%s7838_s7 + $0x2d0] sm:$0xff] }
0x181f   : > { %v3732_v9 = vpop.f32.mrb[38].mxu0 }
0x1820   : > { %v6278_v10 = vpop.f32.mrb[39].mxu0  ;;  %v3733_v35 = vadd.f32 %v5614_v33, %v3732_v9  ;;  %v5640_v9 = vld [vmem:[%s7838_s7 + $0x2d8] sm:$0xff] }
0x1821   : > { %v5635_v10 = vld [vmem:[%s7839_s8 + $0x12] ss:$0 sm:$0xff] }
0x18a0   : > { %v3400_v11 = vpop.xlane.xlu1 %3399 }
0x18a1   : > { %v3401_v39 = vsub.f32 %v3397_v1, %v3400_v11  ;;  %v5638_v1 = vld [vmem:[%s7838_s7 + $0x2c8] sm:$0xff]  ;;  %v6621_v11 = vpack.c.bf16 %v5640_v9, %v5639_v8 }
0x18a2   : > { %v6618_v7 = vpack.c.bf16 %v5638_v1, %v5637_v0  ;;  %v5655_v8 = vld [vmem:[%s7839_s8 + $0xf] ss:$0 sm:$0xff] }
0x18a3   : > { %v3402_v13 = vmul.f32 1.442695, %v3401_v39 }
0x18a5   : > { %6714 = vpow2.f32 %v3402_v13 }
0x18af   : > { %v6715_v3 = vpop.eup %6714 }
0x18b0   : > { %v3404_v14 = vsel %vm1181_vm9, %v6715_v3, 0.0 }
0x18b1   : > { %3405 = vadd.xlane.f32.xlu0 %v3404_v14 }
0x193e   : > { %v3406_v16 = vpop.xlane.xlu0 %3405 }
0x193f   : > { %6716 = vrcp.f32 %v3406_v16 }
0x1949   : > { %v6717_v19 = vpop.eup %6716 }
0x194a   : > { %v3408_v21 = vmul.f32 %v6717_v19, %v6715_v3 }
0x194c   : > { %6244 = vmatmul.mubr.msk.f32.vlgmr.msra.gmra.mrb[28].mxu1 %vm1193_vm10, %v3408_v21 }
0x194d   : > { %6595 = vmatpush3.bf16.msra.mxu1 %v6594_v20  ;;  %6265 = vmatprep.mubr.msk.f32.mxu1 %vm6747_vm2, %v6745_v12 }
0x194e   : > { %6596 = vmatprep.subr.bf16.mxu1 %v6746_v15 }
0x1951   : > { %6598 = vmatpush3.bf16.msra.mxu1 %v6597_v24 }
0x1952   : > { %6279 = vmatprep.subr.mxu1 %v6745_v12 }
0x1954   : > { %6266 = vmatmul.mubr.msk.f32.vlgmr.msra.gmra.mrb[30].mxu1 %vm863_vm6, %v7389_v30 }
0x1955   : > { %6281 = vmatprep.mubr.msk.f32.mxu1 %vm6747_vm2, %v6745_v12 }
0x1a1f   : > { %v3481_v25 = vpop.f32.mrb[28].mxu1 }
0x1a20   : > { %v6245_v26 = vpop.f32.mrb[29].mxu1 }
0x1a27   : > { %v3649_v28 = vpop.f32.mrb[30].mxu1 }
0x1a28   : > { %v3650_v31 = vadd.f32 %v5607_v27, %v3649_v28  ;;  %v6267_v32 = vpop.f32.mrb[31].mxu1 }
0x1a2a   : > { %6280 = vmatpush3.xpose.msk.msra.mxu1 %vm1103_vm8, %v3650_v31 }
0x1a2b   : > { %6284 = vmatprep.subr.mxu1 %v6745_v12 }
0x1a2d   : > { %6282 = vmatmul.mubr.msk.f32.vlgmr.msra.gmra.mrb[32].mxu1 %vm1103_vm8, %v3567_v34 }
0x1a2e   : > { %6285 = vmatpush3.msk.msra.mxu1 %vm1197_vm7, %v3733_v35  ;;  %6286 = vmatprep.mubr.msk.f32.mxu1 %vm6747_vm2, %v6745_v12 }
0x1a2f   : > { %6294 = vmatprep.subr.mxu1 %v6745_v12 }
0x1b00   : > { %v3808_v36 = vpop.f32.mrb[32].mxu1 }
0x1b01   : > { %v3812_v37 = vmul.f32 0.35355338, %v3808_v36  ;;  %v6283_v38 = vpop.f32.mrb[33].mxu1  ;;  %v5648_v36 = vld [vmem:[%s7840_s9 + $0x30] sm:$0xff] }
0x1b02   : > { %v5650_v38 = vld [vmem:[%s7838_s7 + $0x1e0] sm:$0xff] }
0x1b03   : > { %v3813_v40 = vsel %vm1181_vm9, %v3812_v37, -inf }
0x1b04   : > { %3814 = vmax.xlane.f32.xlu1 %v3813_v40  ;;  %v5651_v40 = vld [vmem:[%s7838_s7 + $0x1e8] sm:$0xff] }
0x1b91   : > { %v3815_v41 = vpop.xlane.xlu1 %3814 }
0x1b92   : > { %v3816_v42 = vsub.f32 %v3812_v37, %v3815_v41 }
0x1b94   : > { %v3817_v43 = vmul.f32 1.442695, %v3816_v42  ;;  %v6624_v42 = vpack.c.bf16 %v5651_v40, %v5650_v38 }
0x1b96   : > { %6718 = vpow2.f32 %v3817_v43 }
0x1ba0   : > { %v6719_v6 = vpop.eup %6718 }
0x1ba1   : > { %v3819_v44 = vsel %vm1181_vm9, %v6719_v6, 0.0 }
0x1ba2   : > { %3820 = vadd.xlane.f32.xlu0 %v3819_v44  ;;  %v5653_v44 = vld [vmem:[%s7838_s7 + $0x1f8] sm:$0xff] }
0x1c2f   : > { %v3821_v46 = vpop.xlane.xlu0 %3820 }
0x1c30   : > { %6720 = vrcp.f32 %v3821_v46  ;;  %v5664_v46 = vld [vmem:[%s7838_s7 + $0x2e0] sm:$0xff] }
0x1c3a   : > { %v6721_v47 = vpop.eup %6720 }
0x1c3b   : > { %v3823_v48 = vmul.f32 %v6721_v47, %v6719_v6  ;;  %v5652_v6 = vld [vmem:[%s7838_s7 + $0x1f0] sm:$0xff]  ;;  %v5665_v47 = vld [vmem:[%s7838_s7 + $0x2e8] sm:$0xff] }
0x1c3c   : > { %v6627_v45 = vpack.c.bf16 %v5653_v44, %v5652_v6  ;;  %v5685_v6 = vld [vmem:[%s7842_s11 + $0x30] sm:$0xff]  ;;  %v5686_v44 = vld [vmem:[%s7842_s11 + $0x38] sm:$0xff] }
0x1c3d   : > { %6287 = vmatmul.mubr.msk.f32.vlgmr.msra.gmra.mrb[34].mxu1 %vm1193_vm10, %v3823_v48  ;;  %v6636_v48 = vpack.c.bf16 %v5665_v47, %v5664_v46  ;;  %v5690_v46 = vld [vmem:[%s7844_s13 + $0x80] sm:$0xff]  ;;  %v5691_v47 = vld [vmem:[%s7844_s13 + $0x88] sm:$0xff] }
0x1c3e   : > { %6295 = vmatpush3.msra.mxu1 %v5594_v49  ;;  %6296 = vmatprep.mubr.msk.f32.mxu1 %vm6747_vm2, %v6745_v12  ;;  %v5666_v49 = vld [vmem:[%s7838_s7 + $0x2f0] sm:$0xff] }
0x1c3f   : > { %6611 = vmatprep.subr.bf16.mxu1 %v6746_v15  ;;  %v6639_v51 = vpack.c.bf16 %v5667_v50, %v5666_v49 }
0x1c41   : > { %6297 = vmatmul.mubr.msk.f32.vlgmr.msra.gmra.mrb[36].mxu1 %vm1103_vm8, %v3481_v25 }
0x1c42   : > { %6613 = vmatpush3.bf16.msra.mxu1 %v6612_v52  ;;  %6318 = vmatprep.mubr.msk.f32.mxu1 %vm6747_vm2, %v6745_v12  ;;  %v5657_v52 = vld [vmem:[%s7838_s7 + $0x260] sm:$0xff] }
0x1c43   : > { %6614 = vmatprep.subr.bf16.mxu1 %v6746_v15  ;;  %v6630_v54 = vpack.c.bf16 %v5658_v53, %v5657_v52  ;;  %v5681_v53 = vld [vmem:[%s7837_s6 + $0x6] ss:$0 sm:$0xff] }
0x1c46   : > { %6616 = vmatpush3.bf16.msra.mxu1 %v6615_v55  ;;  %v5659_v55 = vld [vmem:[%s7838_s7 + $0x270] sm:$0xff] }
0x1c47   : > { %6332 = vmatprep.subr.mxu1 %v6745_v12  ;;  %v6633_v59 = vpack.c.bf16 %v5660_v56, %v5659_v55  ;;  %v5682_v55 = vld [vmem:[%s7837_s6 + $0x7] ss:$0 sm:$0xff] }
0x1c49   : > { %6319 = vmatmul.mubr.msk.f32.vlgmr.msra.gmra.mrb[38].mxu1 %vm863_vm6, %v7389_v30 }
0x1c4a   : > { %6334 = vmatprep.mubr.msk.f32.mxu1 %vm6747_vm2, %v6745_v12 }
0x1d10   : > { %v3896_v61 = vpop.f32.mrb[34].mxu1 }
0x1d11   : > { %v6288_v62 = vpop.f32.mrb[35].mxu1  ;;  %6292 = vmatmul.mubr.msk.f32.vlgmr.msra.gmra.mrb[40].mxu0 %vm1103_vm8, %v3896_v61 }
0x1d12   : > { %6607 = vmatpush3.bf16.msra.mxu0 %v6606_v58  ;;  %6307 = vmatprep.mubr.msk.f32.mxu0 %vm6747_vm2, %v6745_v12 }
0x1d13   : > { %6608 = vmatprep.subr.bf16.mxu0 %v6746_v15 }
0x1d14   : > { %v4044_v2 = vpop.f32.mrb[36].mxu1 }
0x1d15   : > { %v6298_v4 = vpop.f32.mrb[37].mxu1 }
0x1d16   : > { %6610 = vmatpush3.bf16.msra.mxu0 %v6609_v63  ;;  %v5662_v4 = vld [vmem:[%s7839_s8 + $0x13] ss:$0 sm:$0xff] }
0x1d17   : > { %6617 = vmatprep.subr.bf16.mxu0 %v6746_v15 }
0x1d19   : > { %6308 = vmatmul.mubr.msk.f32.vlgmr.msra.gmra.mrb[42].mxu0 %vm863_vm6, %v7389_v30 }
0x1d1a   : > { %6619 = vmatpush3.bf16.msra.mxu0 %v6618_v7  ;;  %6329 = vmatprep.mubr.msk.f32.mxu0 %vm6747_vm2, %v6745_v12 }
0x1d1b   : > { %6620 = vmatprep.subr.bf16.mxu0 %v6746_v15 }
0x1d1c   : > { %v4210_v39 = vpop.f32.mrb[38].mxu1 }
0x1d1d   : > { %v4211_v13 = vadd.f32 %v5635_v10, %v4210_v39  ;;  %v6320_v3 = vpop.f32.mrb[39].mxu1  ;;  %v5669_v10 = vld [vmem:[%s7839_s8 + $0x17] ss:$0 sm:$0xff] }
0x1d1e   : > { %6622 = vmatpush3.bf16.msra.mxu0 %v6621_v11 }
0x1d1f   : > { %6333 = vmatpush3.xpose.msk.msra.mxu1 %vm1103_vm8, %v4211_v13  ;;  %6342 = vmatprep.subr.mxu0 %v6745_v12 }
0x1d20   : > { %6337 = vmatprep.subr.mxu1 %v6745_v12 }
0x1d21   : > { %6330 = vmatmul.mubr.msk.f32.vlgmr.msra.gmra.mrb[44].mxu0 %vm863_vm6, %v7389_v30 }
0x1d22   : > { %6344 = vmatprep.mubr.msk.f32.mxu0 %vm6747_vm2, %v6745_v12  ;;  %6343 = vmatpush3.msra.mxu0 %v5648_v36 }
0x1d23   : > { %6629 = vmatprep.subr.bf16.mxu0 %v6746_v15 }
0x1de4   : > { %v3971_v14 = vpop.f32.mrb[40].mxu0 }
0x1de5   : > { %v7594_v16 = vadd.f32 %v4044_v2, %v3971_v14  ;;  %v6293_v17 = vpop.f32.mrb[41].mxu0 }
0x1dec   : > { %v4127_v19 = vpop.f32.mrb[42].mxu0 }
0x1ded   : > { %v4128_v20 = vadd.f32 %v5628_v18, %v4127_v19  ;;  %v6309_v21 = vpop.f32.mrb[43].mxu0 }
0x1def   : > { %6335 = vmatmul.mubr.msk.f32.vlgmr.msra.gmra.mrb[40].mxu1 %vm1103_vm8, %v4128_v20 }
0x1df0   : > { %6339 = vmatprep.mubr.msk.f32.mxu1 %vm6747_vm2, %v6745_v12 }
0x1df4   : > { %v4293_v23 = vpop.f32.mrb[44].mxu0 }
0x1df5   : > { %v4294_v24 = vadd.f32 %v5642_v22, %v4293_v23  ;;  %v6331_v25 = vpop.f32.mrb[45].mxu0  ;;  %v5675_v22 = vld [vmem:[%s7840_s9 + $0x38] sm:$0xff] }
0x1df7   : > { %6338 = vmatpush3.msk.msra.mxu1 %vm1197_vm7, %v4294_v24 }
0x1df8   : > { %6623 = vmatprep.subr.bf16.mxu1 %v6746_v15 }
0x1ec2   : > { %v4369_v26 = vpop.f32.mrb[40].mxu1 }
0x1ec3   : > { %v4373_v27 = vmul.f32 0.35355338, %v4369_v26  ;;  %v6336_v28 = vpop.f32.mrb[41].mxu1 }
0x1ec5   : > { %v4374_v29 = vsel %vm1181_vm9, %v4373_v27, -inf }
0x1ec6   : > { %4375 = vmax.xlane.f32.xlu1 %v4374_v29 }
0x1f53   : > { %v4376_v31 = vpop.xlane.xlu1 %4375 }
0x1f54   : > { %v4377_v32 = vsub.f32 %v4373_v27, %v4376_v31 }
0x1f56   : > { %v4378_v33 = vmul.f32 1.442695, %v4377_v32  ;;  %v5678_v32 = vld [vmem:[%s7841_s10 + $0x1] ss:$0 sm:$0xff] }
0x1f58   : > { %6722 = vpow2.f32 %v4378_v33 }
0x1f62   : > { %v6723_v34 = vpop.eup %6722 }
0x1f63   : > { %v4380_v35 = vsel %vm1181_vm9, %v6723_v34, 0.0 }
0x1f64   : > { %4381 = vadd.xlane.f32.xlu0 %v4380_v35 }
0x1ff1   : > { %v4382_v37 = vpop.xlane.xlu0 %4381 }
0x1ff2   : > { %6724 = vrcp.f32 %v4382_v37 }
0x1ffc   : > { %v6725_v41 = vpop.eup %6724 }
0x1ffd   : > { %v4384_v43 = vmul.f32 %v6725_v41, %v6723_v34 }
0x1fff   : > { %6340 = vmatmul.mubr.msk.f32.vlgmr.msra.gmra.mrb[42].mxu1 %vm1193_vm10, %v4384_v43 }
0x2000   : > { %6625 = vmatpush3.bf16.msra.mxu1 %v6624_v42  ;;  %6355 = vmatprep.mubr.msk.f32.mxu1 %vm6747_vm2, %v6745_v12  ;;  %v5683_v42 = vld [vmem:[%s7842_s11 + $0x20] sm:$0xff] }
0x2001   : > { %6626 = vmatprep.subr.bf16.mxu1 %v6746_v15 }
0x2004   : > { %6628 = vmatpush3.bf16.msra.mxu1 %v6627_v45  ;;  %v6645_v45 = vpack.c.bf16 %v5686_v44, %v5685_v6  ;;  %v5290_v44 = vld [vmem:[%s7848_s17 + $0x18] sm:$0xff] }
0x2005   : > { %6635 = vmatprep.subr.bf16.mxu1 %v6746_v15 }
0x2007   : > { %6356 = vmatmul.mubr.msk.f32.vlgmr.msra.gmra.mrb[44].mxu1 %vm863_vm6, %v7389_v30 }
0x2008   : > { %6637 = vmatpush3.bf16.msra.mxu1 %v6636_v48  ;;  %6377 = vmatprep.mubr.msk.f32.mxu1 %vm6747_vm2, %v6745_v12  ;;  %v6648_v48 = vpack.c.bf16 %v5691_v47, %v5690_v46 }
0x2009   : > { %6638 = vmatprep.subr.bf16.mxu1 %v6746_v15 }
0x200c   : > { %6640 = vmatpush3.bf16.msra.mxu1 %v6639_v51 }
0x200d   : > { %6390 = vmatprep.subr.mxu1 %v6745_v12 }
0x200f   : > { %6378 = vmatmul.mubr.msk.f32.vlgmr.msra.gmra.mrb[46].mxu1 %vm863_vm6, %v7389_v30 }
0x2010   : > { %6392 = vmatprep.mubr.msk.f32.mxu1 %vm6747_vm2, %v6745_v12  ;;  %6391 = vmatpush3.msra.mxu1 %v5675_v22 }
0x2011   : > { %6647 = vmatprep.subr.bf16.mxu1 %v6746_v15 }
0x20d2   : > { %v4457_v57 = vpop.f32.mrb[42].mxu1 }
0x20d3   : > { %v6341_v58 = vpop.f32.mrb[43].mxu1  ;;  %6345 = vmatmul.mubr.msk.f32.vlgmr.msra.gmra.mrb[46].mxu0 %vm1103_vm8, %v4457_v57 }
0x20d4   : > { %6631 = vmatpush3.bf16.msra.mxu0 %v6630_v54  ;;  %6366 = vmatprep.mubr.msk.f32.mxu0 %vm6747_vm2, %v6745_v12  ;;  %v5692_v58 = vld [vmem:[%s7844_s13 + $0x90] sm:$0xff] }
0x20d5   : > { %6632 = vmatprep.subr.bf16.mxu0 %v6746_v15 }
0x20d8   : > { %6634 = vmatpush3.bf16.msra.mxu0 %v6633_v59  ;;  %v5693_v59 = vld [vmem:[%s7844_s13 + $0x98] sm:$0xff] }
0x20d9   : > { %6380 = vmatprep.subr.mxu0 %v6745_v12 }
0x20da   : > { %v4616_v60 = vpop.f32.mrb[44].mxu1 }
0x20db   : > { %v6357_v61 = vpop.f32.mrb[45].mxu1  ;;  %6367 = vmatmul.mubr.msk.f32.vlgmr.msra.gmra.mrb[48].mxu0 %vm863_vm6, %v7389_v30  ;;  %v4617_v11 = vadd.f32 %v5655_v8, %v4616_v60  ;;  %v6651_v60 = vpack.c.bf16 %v5693_v59, %v5692_v58  ;;  %v5700_v8 = vld [vmem:[%s7844_s13 + $0xd0] sm:$0xff] }
0x20dc   : > { %6382 = vmatprep.mubr.msk.f32.mxu0 %vm6747_vm2, %v6745_v12  ;;  %v5694_v61 = vld [vmem:[%s7844_s13 + $0xa0] sm:$0xff] }
0x20e2   : > { %v4782_v62 = vpop.f32.mrb[46].mxu1 }
0x20e3   : > { %v6379_v63 = vpop.f32.mrb[47].mxu1  ;;  %v4783_v39 = vadd.f32 %v5669_v10, %v4782_v62  ;;  %v5702_v10 = vld [vmem:[%s7844_s13 + $0xe0] sm:$0xff] }
0x20e4   : > { %v5696_v63 = vld [vmem:[%s7844_s13 + $0xb0] sm:$0xff] }
0x21a6   : > { %v4532_v0 = vpop.f32.mrb[46].mxu0 }
0x21a7   : > { %v4536_v1 = vadd.f32 %v4532_v0, %v7594_v16  ;;  %v6346_v2 = vpop.f32.mrb[47].mxu0  ;;  %v5697_v0 = vld [vmem:[%s7844_s13 + $0xb8] sm:$0xff] }
0x21a8   : > { %v5698_v2 = vld [vmem:[%s7844_s13 + $0xc0] sm:$0xff] }
0x21ae   : > { %v4699_v7 = vpop.f32.mrb[48].mxu0 }
0x21af   : > { %v4700_v9 = vadd.f32 %v5662_v4, %v4699_v7  ;;  %v6368_v30 = vpop.f32.mrb[49].mxu0  ;;  %v5699_v4 = vld [vmem:[%s7844_s13 + $0xc8] sm:$0xff] }
0x21b0   : > { %v6660_v7 = vpack.c.bf16 %v5699_v4, %v5698_v2 }
0x21b1   : > { %6381 = vmatpush3.xpose.msk.msra.mxu0 %vm1103_vm8, %v4700_v9  ;;  %v5701_v9 = vld [vmem:[%s7844_s13 + $0xd8] sm:$0xff] }
0x21b2   : > { %6385 = vmatprep.subr.mxu0 %v6745_v12  ;;  %v6663_v30 = vpack.c.bf16 %v5701_v9, %v5700_v8 }
0x21b4   : > { %6383 = vmatmul.mubr.msk.f32.vlgmr.msra.gmra.mrb[50].mxu0 %vm1103_vm8, %v4617_v11  ;;  %v5703_v11 = vld [vmem:[%s7844_s13 + $0xe8] sm:$0xff] }
0x21b5   : > { %6386 = vmatpush3.msk.msra.mxu0 %vm1197_vm7, %v4783_v39  ;;  %6387 = vmatprep.mubr.msk.f32.mxu0 %vm6747_vm2, %v6745_v12  ;;  %v6666_v39 = vpack.c.bf16 %v5703_v11, %v5702_v10 }
0x21b6   : > { %6641 = vmatprep.subr.bf16.mxu0 %v6746_v15 }
0x2287   : > { %v4858_v13 = vpop.f32.mrb[50].mxu0 }
0x2288   : > { %v4862_v3 = vmul.f32 0.35355338, %v4858_v13  ;;  %v6384_v14 = vpop.f32.mrb[51].mxu0  ;;  %v5704_v13 = vld [vmem:[%s7844_s13 + $0xf0] sm:$0xff] }
0x228a   : > { %v4863_v16 = vsel %vm1181_vm9, %v4862_v3, -inf }
0x228b   : > { %4864 = vmax.xlane.f32.xlu1 %v4863_v16  ;;  %v5688_v16 = vld [vmem:[%s7843_s12 + $0x1] ss:$0 sm:$0xff] }
0x2318   : > { %v4865_v17 = vpop.xlane.xlu1 %4864 }
0x2319   : > { %v4866_v18 = vsub.f32 %v4862_v3, %v4865_v17  ;;  %v5705_v3 = vld [vmem:[%s7844_s13 + $0xf8] sm:$0xff] }
0x231a   : > { %v6669_v14 = vpack.c.bf16 %v5705_v3, %v5704_v13 }
0x231b   : > { %v4867_v19 = vmul.f32 1.442695, %v4866_v18 }
0x231d   : > { %6726 = vpow2.f32 %v4867_v19 }
0x2327   : > { %v6727_v20 = vpop.eup %6726 }
0x2328   : > { %v4869_v21 = vsel %vm1181_vm9, %v6727_v20, 0.0 }
0x2329   : > { %4870 = vadd.xlane.f32.xlu0 %v4869_v21 }
0x23b6   : > { %v4871_v23 = vpop.xlane.xlu0 %4870 }
0x23b7   : > { %6728 = vrcp.f32 %v4871_v23 }
0x23c1   : > { %v6729_v24 = vpop.eup %6728 }
0x23c2   : > { %v4873_v25 = vmul.f32 %v6729_v24, %v6727_v20 }
0x23c4   : > { %6388 = vmatmul.mubr.msk.f32.vlgmr.msra.gmra.mrb[52].mxu0 %vm1193_vm10, %v4873_v25 }
0x23c5   : > { %6403 = vmatprep.mubr.msk.f32.mxu0 %vm6747_vm2, %v6745_v12 }
0x2497   : > { %v4946_v26 = vpop.f32.mrb[52].mxu0 }
0x2498   : > { %v6389_v27 = vpop.f32.mrb[53].mxu0  ;;  %6393 = vmatmul.mubr.msk.f32.vlgmr.msra.gmra.mrb[48].mxu1 %vm1103_vm8, %v4946_v26 }
0x2499   : > { %6438 = vmatprep.mubr.msk.f32.mxu1 %vm6747_vm2, %v6745_v12  ;;  %6649 = vmatpush3.bf16.msra.mxu1 %v6648_v48 }
0x249a   : > { %6650 = vmatprep.subr.bf16.mxu1 %v6746_v15 }
0x249d   : > { %6652 = vmatpush3.bf16.msra.mxu1 %v6651_v60 }
0x249e   : > { %6653 = vmatprep.subr.bf16.mxu1 %v6746_v15 }
0x256b   : > { %v5021_v28 = vpop.f32.mrb[48].mxu1 }
0x256c   : > { %v5025_v29 = vadd.f32 %v5021_v28, %v4536_v1  ;;  %v6394_v31 = vpop.f32.mrb[49].mxu1  ;;  %v6657_v1 = vpack.c.bf16 %v5697_v0, %v5696_v63 }
0x256e   : > { %v5026_v33 = vadd.f32 %v5025_v29, %v7357_v5  ;;  %v5684_v5 = vld [vmem:[%s7842_s11 + $0x28] sm:$0xff]  ;;  %v5707_v29 = vld [vmem:[%s7845_s14 + $0x1] ss:$0 sm:$0xff] }
0x256f   : > { %v6642_v43 = vpack.c.bf16 %v5684_v5, %v5683_v42  ;;  %v5287_v5 = vld [vmem:[%s7848_s17] sm:$0xff] }
0x2570   : > { %v7706_v34 = vadd.f32 %v5678_v32, %v5026_v33 }
0x2571   : > { %6643 = vmatpush3.bf16.msra.mxu0 %v6642_v43  ;;  %v5288_v43 = vld [vmem:[%s7848_s17 + $0x8] sm:$0xff] }
0x2572   : > { %v5040_v35 = vsel %vm823_vm5, %v7706_v34, 0.0  ;;  %6644 = vmatprep.subr.bf16.mxu0 %v6746_v15  ;;  %v6672_v6 = vpack.c.bf16 %v5288_v43, %v5287_v5 }
0x2573   : > { %5041 = vadd.xlane.f32.xlu1 %v5040_v35 }
0x2575   : > { %6646 = vmatpush3.bf16.msra.mxu0 %v6645_v45 }
0x2576   : > { %6671 = vmatprep.subr.bf16.mxu0 %v6746_v15 }
0x2600   : > { %v5042_v36 = vpop.xlane.xlu1 %5041 }
0x2601   : > { %v5043_v37 = vmul.f32 0.03125, %v5042_v36 }
0x2603   : > { %v5044_v38 = vsub.f32 %v7706_v34, %v5043_v37 }
0x2605   : > { %v5045_v40 = vmul.f32 %v5044_v38, %v5044_v38 }
0x2607   : > { %v5046_v41 = vsel %vm823_vm5, %v5045_v40, 0.0 }
0x2608   : > { %5047 = vadd.xlane.f32.xlu0 %v5046_v41 }
0x2695   : > { %v5048_v49 = vpop.xlane.xlu0 %5047 }
0x2696   : > { %v5049_v50 = vmul.f32 0.03125, %v5048_v49 }
0x2698   : > { %v5050_v51 = vadd.f32 1e-05, %v5049_v50 }
0x269a   : > { %6730 = vrsqrt.f32 %v5050_v51  ;;  %v5709_v51 = vld [vmem:[%s7847_s16] ss:$0 sm:$0xff] }
0x26a4   : > { %v6731_v52 = vpop.eup %6730 }
0x26a5   : > { %v5052_v54 = vmul.f32 %v6731_v52, %v5044_v38 }
0x26a7   : > { %v5059_v56 = vmul.f32 %v5681_v53, %v5052_v54  ;;  %v5710_v54 = vld [vmem:[%s7849_s18] ss:$0 sm:$0xff] }
0x26a9   : > { %v5066_v57 = vadd.f32 %v5682_v55, %v5059_v56 }
0x26ab   : > { %6404 = vmatmul.mubr.msk.f32.vlgmr.msra.gmra.mrb[54].mxu0 %vm863_vm6, %v5066_v57 }
0x26ac   : > { %6449 = vmatprep.mubr.msk.f32.mxu0 %vm6747_vm2, %v6745_v12  ;;  %v5695_v12 = vld [vmem:[%s7844_s13 + $0xa8] sm:$0xff]  ;;  %6673 = vmatpush3.bf16.msra.mxu0 %v6672_v6 }
0x26ad   : > { %v6654_v62 = vpack.c.bf16 %v5695_v12, %v5694_v61  ;;  %6674 = vmatprep.subr.bf16.mxu0 %v6746_v15 }
0x26af   : > { %6655 = vmatpush3.bf16.msra.mxu1 %v6654_v62 }
0x26b0   : > { %6656 = vmatprep.subr.bf16.mxu1 %v6746_v15 }
0x26b3   : > { %6658 = vmatpush3.bf16.msra.mxu1 %v6657_v1 }
0x26b4   : > { %6659 = vmatprep.subr.bf16.mxu1 %v6746_v15 }
0x26b7   : > { %6661 = vmatpush3.bf16.msra.mxu1 %v6660_v7 }
0x26b8   : > { %6662 = vmatprep.subr.bf16.mxu1 %v6746_v15 }
0x26bb   : > { %6664 = vmatpush3.bf16.msra.mxu1 %v6663_v30 }
0x26bc   : > { %6665 = vmatprep.subr.bf16.mxu1 %v6746_v15 }
0x26bf   : > { %6667 = vmatpush3.bf16.msra.mxu1 %v6666_v39 }
0x26c0   : > { %6668 = vmatprep.subr.bf16.mxu1 %v6746_v15  ;;  %v5708_v15 = vld [vmem:[%s7846_s15] ss:$0 sm:$0xff] }
0x26c3   : > { %6670 = vmatpush3.bf16.msra.mxu1 %v6669_v14 }
0x277e   : > { %v5149_v17 = vpop.f32.mrb[54].mxu0 }
0x277f   : > { %v5150_v18 = vadd.f32 %v5688_v16, %v5149_v17  ;;  %v6405_v19 = vpop.f32.mrb[55].mxu0 }
0x2781   : > { %v5154_v20 = vmul.f32 0.044715, %v5150_v18  ;;  %v5153_v26 = vmul.f32 0.5, %v5150_v18 }
0x2783   : > { %v5155_v21 = vmul.f32 %v5154_v20, %v5150_v18 }
0x2785   : > { %v5156_v22 = vmul.f32 %v5155_v21, %v5150_v18 }
0x2787   : > { %v5157_v23 = vadd.f32 %v5156_v22, %v5150_v18 }
0x2789   : > { %v5158_v24 = vmul.f32 0.7978846, %v5157_v23 }
0x278b   : > { %6732 = vtanh.f32 %v5158_v24 }
0x2795   : > { %v6733_v25 = vpop.eup %6732 }
0x2796   : > { %v5160_v27 = vadd.f32 1.0, %v6733_v25 }
0x2798   : > { %v5161_v28 = vmul.f32 %v5160_v27, %v5153_v26 }
0x279a   : > { %6439 = vmatmul.mubr.f32.vlgmr.msra.gmra.mrb[50].mxu1 %v5161_v28 }
0x286d   : > { %v5253_v31 = vpop.f32.mrb[50].mxu1 }
0x286e   : > { %v5254_v32 = vadd.f32 %v5707_v29, %v5253_v31  ;;  %v6440_v33 = vpop.f32.mrb[51].mxu1 }
0x2870   : > { %v5257_v35 = vadd.f32 %v5254_v32, %v7706_v34  ;;  %v5289_v34 = vld [vmem:[%s7848_s17 + $0x10] sm:$0xff] }
0x2871   : > { %v6675_v45 = vpack.c.bf16 %v5290_v44, %v5289_v34 }
0x2872   : > { %v5260_v36 = vsel %vm823_vm5, %v5257_v35, 0.0 }
0x2873   : > { %5261 = vadd.xlane.f32.xlu1 %v5260_v36  ;;  %6676 = vmatpush3.bf16.msra.mxu0 %v6675_v45 }
0x2900   : > { %v5262_v37 = vpop.xlane.xlu1 %5261 }
0x2901   : > { %v5263_v38 = vmul.f32 0.03125, %v5262_v37 }
0x2903   : > { %v5264_v40 = vsub.f32 %v5257_v35, %v5263_v38 }
0x2905   : > { %v5265_v41 = vmul.f32 %v5264_v40, %v5264_v40 }
0x2907   : > { %v5266_v42 = vsel %vm823_vm5, %v5265_v41, 0.0 }
0x2908   : > { %5267 = vadd.xlane.f32.xlu0 %v5266_v42 }
0x2995   : > { %v5268_v46 = vpop.xlane.xlu0 %5267 }
0x2996   : > { %v5269_v47 = vmul.f32 0.03125, %v5268_v46 }
0x2998   : > { %v5270_v48 = vadd.f32 1e-05, %v5269_v47 }
0x299a   : > { %6734 = vrsqrt.f32 %v5270_v48 }
0x29a4   : > { %v6735_v49 = vpop.eup %6734 }
0x29a5   : > { %v5272_v50 = vmul.f32 %v6735_v49, %v5264_v40 }
0x29a7   : > { %v5279_v52 = vmul.f32 %v5708_v15, %v5272_v50 }
0x29a9   : > { %v5286_v53 = vadd.f32 %v5709_v51, %v5279_v52 }
0x29ab   : > { %6450 = vmatmul.mubr.msk.f32.vlgmr.msra.gmra.mrb[56].mxu0 %vm863_vm6, %v5286_v53 }
0x2a7e   : > { %v5367_v55 = vpop.f32.mrb[56].mxu0 }
0x2a7f   : > { %v5368_v56 = vadd.f32 %v5710_v54, %v5367_v55  ;;  %v6451_v57 = vpop.f32.mrb[57].mxu0 }
0x2a81   : > { %5371 = vst.msk [vmem:[%s617_s24] sm:$0x1f] %vm823_vm5, %v5368_v56 }
0x2a82 PF: > { %s29_s0 = sadd.s32 1, %s6742_s0  }
0x2a83   : > { %p26_p4 = scmp.ge.s32.totalorder %s29_s0, 4  }
0x2a85   :  { %28 = sbr.rel (!%p26_p4) target bundleno = 5 (0x5), region = 194 }

// kernel: mae_forward.3
= control target key start
LH: loop header
LB: loop body
LE: loop exit
PB: predicated region body
PF: predicated region fallthrough
CT: control target
= control target key end

     0   :  { %s10588_s0 = inlined_call_operand.vmem [shape: f32[2,5,32], index: 0, kind: input, shape index: {}]   ;;  %s10589_s1 = inlined_call_operand.vmem [shape: s32[2,17,1], index: 1, kind: input, shape index: {}]   ;;  %s10590_s2 = inlined_call_operand.vmem [shape: f32[2,16,48], index: 2, kind: input, shape index: {}]   ;;  %s10591_s3 = inlined_call_operand.vmem [shape: f32[1,32], index: 3, kind: input, shape index: {}]   ;;  %s10592_s4 = inlined_call_operand.vmem [shape: f32[17,32], index: 4, kind: input, shape index: {}]   ;;  %s10593_s5 = inlined_call_operand.vmem [shape: f32[2,4,1,32], index: 5, kind: input, shape index: {}]   ;;  %s10594_s6 = inlined_call_operand.vmem [shape: f32[2,3,4,32,8], index: 6, kind: input, shape index: {}]   ;;  %s10595_s7 = inlined_call_operand.vmem [shape: f32[2,3,4,1,8], index: 7, kind: input, shape index: {}]   ;;  %s10596_s8 = inlined_call_operand.vmem [shape: f32[2,4,8,32], index: 8, kind: input, shape index: {}]   ;;  %s10597_s9 = inlined_call_operand.vmem [shape: f32[2,1,32], index: 9, kind: input, shape index: {}]   ;;  %s10598_s10 = inlined_call_operand.vmem [shape: f32[2,32,128], index: 10, kind: input, shape index: {}]   ;;  %s10599_s11 = inlined_call_operand.vmem [shape: f32[2,1,128], index: 11, kind: input, shape index: {}]   ;;  %s10600_s12 = inlined_call_operand.vmem [shape: f32[2,128,32], index: 12, kind: input, shape index: {}]   ;;  %s10601_s13 = inlined_call_operand.vmem [shape: f32[2,1,32], index: 13, kind: input, shape index: {}]   ;;  %s10602_s14 = inlined_call_operand.vmem [shape: f32[1,32], index: 14, kind: input, shape index: {}]   ;;  %s10603_s15 = inlined_call_operand.vmem [shape: f32[1,32], index: 15, kind: input, shape index: {}]   ;;  %s10604_s16 = inlined_call_operand.vmem [shape: f32[32,48], index: 16, kind: input, shape index: {}]   ;;  %s10605_s17 = inlined_call_operand.vmem [shape: f32[1,48], index: 17, kind: input, shape index: {}]   ;;  %s10606_s18 = inlined_call_operand.hbm [shape: f32[2,16,48], index: 18, kind: output, shape index: {0}]   ;;  %s10607_s19 = inlined_call_operand.vmem [shape: f32[2,16,1], index: 19, kind: output, shape index: {1}]  }
   0x1   :  { %10614 = sst [smem:[#allocation10_spill]] %s10588_s0 }
   0x2   :  { %10615 = sst [smem:[#allocation11_spill]] %s10589_s1 }
   0x3   :  { %10616 = sst [smem:[#allocation12_spill]] %s10590_s2 }
   0x4   :  { %10617 = sst [smem:[#allocation13_spill]] %s10591_s3 }
   0x5   :  { %25 = vsyncpa [#allocation3], 0 }
   0x6   :  { %27 = vsyncpa [#allocation3 + $0x1], 0  ;;  %s8941_s0 = smov 0   ;;  %s8943_s30 = smov 0  }
   0x7   :  { %s8945_s20 = smov 0   ;;  %s8947_s21 = smov 0  }
   0x8 LB: > { %10618 = sst [smem:[#allocation5_spill]] %s8820_s0  ;;  %s8962_s1 = sadd.s32 4294967295, %s8832_s21   ;;  %s8832_s21 = sphi %s8947_s21, %s10634_s21   ;;  %s8828_s20 = sphi %s8945_s20, %s10639_s20   ;;  %s8824_s30 = sphi %s8943_s30, %s10638_s30   ;;  %s8820_s0 = sphi %s8941_s0, %s10637_s0  }
   0x9   : > { %10619 = sst [smem:[#allocation6_spill]] %s8828_s20  ;;  %s6673_s22 = sadd.s32 4294967294, %s8832_s21  }
   0xa   : > { %s8966_s2 = sadd.s32 1, %s8832_s21   ;;  %s433_s23 = sadd.s32 1, %s8828_s20 }
   0xb   : > { %10620 = sst [smem:[#allocation7_spill]] %s8966_s2  ;;  %s430_s24 = ssub.s32 %s8832_s21, %s8966_s2 }
   0xc   : > { %p443_p0 = scmp.ne.s32.totalorder %s8828_s20, %s8824_s30  ;;  %p431_p1 = scmp.eq.s32.totalorder %s430_s24, 0 }
   0xd   : > { %p444_p2 = scmp.eq.s32.totalorder %s8962_s1, 1  ;;  %p449_p3 = scmp.ne.s32.totalorder %s8824_s30, %s8820_s0 }
   0xe   : > { %p450_p4 = scmp.eq.s32.totalorder %s6673_s22, 1  ;;  %p6676_p7 = scmp.ge.s32.totalorder %s8832_s21, 1 }
   0xf   : > { %s8977_s25 = scalar_select %p431_p1, %s8828_s20, %s433_s23  }
  0x10   : > { %p8979_p5 = por %p444_p2, %p443_p0  ;;  %p8983_p6 = por %p450_p4, %p449_p3 }
  0x11   : > { %10621 = sst [smem:[#allocation8_spill]] %s8977_s25  ;;  %p562_p8 = scmp.lt.s32.totalorder %s8832_s21, 3 }
  0x12   : > { %s10623_s26 = scalar_select %p8983_p6, 1, 0 }
  0x13   : > { %p563_p9 = pnand %p6676_p7, %p562_p8 }
  0x14   : > { %10624 = sst [smem:[#allocation9_spill]] %s10623_s26  ;;  %p632_p10 = scmp.lt.s32.totalorder (!%p563_p9), %s8962_s1, 1  ;;  %v8834_v0 = vmov (!%p563_p9), 0   ;;  %v8835_v1 = vmov (!%p563_p9), 0.0   ;;  %vm719_vm1 = vcmask (!%p563_p9), 1044480   ;;  %vm8836_vm4 = vmmov (!%p563_p9), 0  }
  0x15   : > { %566 = sbr.rel (%p563_p9) target bundleno = 11063 (0x2b37), region = 92  ;;  %8630 = vset.pattern.permute.xlu0 (!%p563_p9), %v8834_v0  ;;  %8631 = vset.pattern.permute.xlu1 (!%p563_p9), %v8834_v0  ;;  %s10625_s23 = sld [smem:[#allocation11_spill]] (!%p563_p9)  ;;  %v655_v9 = vlaneseq (!%p563_p9)  ;;  %vm709_vm5 = vcmask (!%p563_p9), 39936   ;;  %v803_v22 = vld [vmem:[%s10592_s4] sm:$0xff] (!%p563_p9)  ;;  %vm812_vm9 = vcmask (!%p563_p9), 261120   ;;  %v804_v29 = vld [vmem:[%s10592_s4 + $0x8] sm:$0xff] (!%p563_p9) }
  0x16   : > { %7438 = vmatprep.subr.mxu0 (!%p563_p9), %v8835_v1  ;;  %s10626_s26 = sld [smem:[#allocation10_spill]] (!%p563_p9)  ;;  %7440 = vmatprep.mubr.msk.f32.mxu0 (!%p563_p9), %vm8836_vm4, %v8835_v1  ;;  %s10627_s2 = sld [smem:[#allocation13_spill]] (!%p563_p9)  ;;  %v805_v36 = vld [vmem:[%s10592_s4 + $0x10] sm:$0x1] (!%p563_p9)  ;;  %vm819_vm10 = vcmask (!%p563_p9), 253952   ;;  %v6702_v57 = vld [vmem:[%s10594_s6 + $0x80] sm:$0xff] (!%p563_p9) }
  0x17   : > { %7457 = vmatprep.mubr.msk.f32.mxu1 (!%p563_p9), %vm8836_vm4, %v8835_v1  ;;  %v656_v10 = vand.u32 (!%p563_p9), 127, %v655_v9  ;;  %v6703_v58 = vld [vmem:[%s10594_s6 + $0x88] sm:$0xff] (!%p563_p9)  ;;  %v872_v59 = vld [vmem:[%s10594_s6] sm:$0xff] (!%p563_p9)  ;;  %v8837_v62 = vmov (!%p563_p9), 0.0|0.0   ;;  %v874_v0 = vld [vmem:[%s10594_s6 + $0x10] sm:$0xff] (!%p563_p9)  ;;  %vm1158_vm11 = vcmask (!%p563_p9), 64512  }
  0x18   : > { %v8319_v60 = vpack.c.bf16 (!%p563_p9), %v6703_v58, %v6702_v57  ;;  %v873_v61 = vld [vmem:[%s10594_s6 + $0x8] sm:$0xff] (!%p563_p9)  ;;  %8312 = vmatprep.subr.bf16.mxu1 (!%p563_p9), %v8837_v62  ;;  %vm9154_vm12 = vmpackc.low (!%p563_p9), %vm1158_vm11, %vm1158_vm11  ;;  %vm1304_vm13 = vcmask (!%p563_p9), 1040384   ;;  %vm1260_vm14 = vcmask (!%p563_p9), 138240   ;;  %vm1267_vm15 = vcmask (!%p563_p9), 131072   ;;  %s622_s29 = sand.u32 (!%p563_p9), 1, %s8824_s30   ;;  %s7079_s22 = sshll.u32 (!%p563_p9), %s8962_s1, 8 }
  0x19   : > { %v8313_v63 = vpack.c.bf16 (!%p563_p9), %v873_v61, %v872_v59  ;;  %v6716_v61 = vld [vmem:[%s10595_s7 + $0x8] ss:$0 sm:$0xff] (!%p563_p9)  ;;  %s6677_s20 = sshll.u32 (!%p563_p9), %s622_s29, 4 }
  0x1b   : > { %8314 = vmatpush3.bf16.msra.mxu1 (!%p563_p9), %v8313_v63  ;;  %v6698_v63 = vld [vmem:[%s10595_s7] ss:$0 sm:$0xff] (!%p563_p9) }
  0x1c   : > { %s8991_s27 = scalar_select %p632_p10, %s8962_s1, 1  ;;  %v6690_v17 = vld [vmem:[%s10627_s2] ss:$0 sm:$0xff]  ;;  %8315 = vmatprep.subr.bf16.mxu1 %v8837_v62 }
  0x1d   : > { %s10541_s2 = scalar_lea.sflag [#allocation3], %s622_s29 }
  0x1e   : > { %s8584_s28 = smul.u32 24, %s8991_s27  ;;  %s6678_s25 = sshll.u32 %s8991_s27, 3 }
  0x1f   : > { %s635_s0 = scalar_lea.vmem %s10626_s26, %s6678_s25  ;;  %s624_s26 = scalar_lea.vmem [#allocation2], %s6677_s20 }
  0x20   : > { %s640_s24 = scalar_lea.vmem %s10625_s23, %s8584_s28  ;;  %v651_v4 = vld [vmem:[%s635_s0] sm:$0x1f]  ;;  %s10613_s28 = sshll.u32 %s8991_s27, 4 }
  0x21   : > { %v652_v2 = vld [vmem:[%s640_s24] sm:$0xff]  ;;  %v654_v3 = vld [vmem:[%s640_s24 + $0x10] sm:$0x1]  ;;  %v653_v5 = vld [vmem:[%s640_s24 + $0x8] sm:$0xff]  ;;  %7439 = vmatpush3.msk.msra.mxu0 %vm719_vm1, %v651_v4  ;;  %vm6425_vm1 = vcmask 1046528   ;;  %s10630_s24 = sld [smem:[#allocation12_spill]]  ;;  %s10537_s20 = scalar_lea.hbm %s10606_s18, %s7079_s22 }
  0x22   : > { %658 = vperm.xlu0 %8630, %v652_v2   ;;  %vm675_vm0 = vcmp.ge.s32.totalorder %v652_v2, 5  ;;  %664 = vperm.xlu1 %8631, %v654_v3   ;;  %vm677_vm2 = vcmp.ge.s32.totalorder %v654_v3, 5  ;;  %vm676_vm3 = vcmp.ge.s32.totalorder %v653_v5, 5  ;;  %v875_v2 = vld [vmem:[%s10594_s6 + $0x18] sm:$0xff]  ;;  %v6704_v3 = vld [vmem:[%s10594_s6 + $0x90] sm:$0xff]  ;;  %s6559_s23 = sshll.u32 %s624_s26, 4  ;;  %s10539_s23 = int_to_ptr.vmem [resolvable:$true] %s6559_s23 }
  0x23   : > { %v9003_v6 = vsel %vm675_vm0, 1.0, %v8835_v1  ;;  %v9011_v7 = vsel %vm676_vm3, 1.0, %v8835_v1  ;;  %v9014_v8 = vsel %vm677_vm2, 1.0, %v8835_v1  ;;  %8318 = vmatprep.subr.bf16.mxu0 %v8837_v62  ;;  %v8316_v4 = vpack.c.bf16 %v875_v2, %v874_v0  ;;  %v6730_v2 = vld [vmem:[%s10594_s6 + $0x20] sm:$0xff]  ;;  %s8770_s25 = scalar_lea.vmem %s10539_s23, 256 }
  0x24   : > { %vm6353_vm0 = vcmask 261121   ;;  %vm6510_vm2 = vcmask 392192   ;;  %p8771_p11 = scmp.ne.s32.totalorder %s10539_s23, %s8770_s25 }
  0x25   : > { %8317 = vmatpush3.bf16.msra.mxu1 %v8316_v4 }
  0x26   : > { %661 = vperm.xlu0 %8630, %v653_v5   ;;  %687 = vperm.xlu1 %8631, %v9003_v6   ;;  %v6705_v5 = vld [vmem:[%s10594_s6 + $0x98] sm:$0xff]  ;;  %p8772_p12 = pnand %p8771_p11, %p8979_p5 }
  0x27   : > { %v8322_v9 = vpack.c.bf16 %v6705_v5, %v6704_v3  ;;  %8324 = vmatprep.subr.bf16.mxu1 %v8837_v62  ;;  %v6731_v3 = vld [vmem:[%s10594_s6 + $0x28] sm:$0xff]  ;;  %s645_s0 = scalar_lea.vmem %s10630_s24, %s10613_s28  ;;  %s8838_s28 = smov [#allocation2]  }
  0x28   : > { %p8773_p13 = pneg %p8772_p12  ;;  %s8774_s1 = sshll.u32 %s8838_s28, 4  ;;  %s8775_s1 = int_to_ptr.vmem [resolvable:$false] %s8774_s1 }
  0x29   : > { %p8777_p0 = scmp.lt.s32.totalorder %s10539_s23, %s8775_s1 }
  0x2a   : > { %692 = vperm.xlu0 %8630, %v9011_v7   ;;  %697 = vperm.xlu1 %8631, %v9014_v8  }
  0xa1   : > { %v659_v11 = vpop.permute.xlu0 %658  ;;  %v665_v14 = vpop.permute.xlu1 %664 }
  0xa2   : > { %vm666_vm6 = vcmp.eq.s32.totalorder %v659_v11, %v656_v10  ;;  %vm668_vm8 = vcmp.eq.s32.totalorder %v665_v14, %v656_v10 }
  0xa3   : > { %v6684_v12 = vsel %vm666_vm6, 1.0, %v8835_v1  ;;  %v6686_v16 = vsel %vm668_vm8, 1.0, %v8835_v1 }
  0xa4   : > { %7441 = vmatmul.mubr.msk.f32.vlgmr.msra.gmra.mrb[0].mxu0 %vm709_vm5, %v6684_v12 }
  0xa5   : > { %v662_v13 = vpop.permute.xlu0 %661  ;;  %7443 = vmatprep.mubr.msk.f32.mxu0 %vm8836_vm4, %v8835_v1  ;;  %v688_v18 = vpop.permute.xlu1 %687  ;;  %8320 = vmatpush3.bf16.msra.mxu0 %v8319_v60 }
  0xa6   : > { %vm667_vm7 = vcmp.eq.s32.totalorder %v662_v13, %v656_v10  ;;  %v706_v19 = vmul.f32 %v6690_v17, %v688_v18  ;;  %8321 = vmatprep.subr.bf16.mxu0 %v8837_v62 }
  0xa7   : > { %v6685_v15 = vsel %vm667_vm7, 1.0, %v8835_v1 }
  0xa8   : > { %7444 = vmatmul.mubr.msk.f32.gmra.mrb[2].mxu0 %vm709_vm5, %v6685_v15 }
  0xa9   : > { %7446 = vmatprep.mubr.msk.f32.mxu0 %vm8836_vm4, %v8835_v1  ;;  %v693_v20 = vpop.permute.xlu0 %692  ;;  %v698_v27 = vpop.permute.xlu1 %697  ;;  %8323 = vmatpush3.bf16.msra.mxu0 %v8322_v9 }
  0xaa   : > { %v707_v25 = vmul.f32 %v6690_v17, %v693_v20  ;;  %v708_v33 = vmul.f32 %v6690_v17, %v698_v27  ;;  %8330 = vmatprep.subr.bf16.mxu0 %v8837_v62  ;;  %v6696_v20 = vld [vmem:[%s10593_s5] ss:$0 sm:$0xff] }
  0xac   : > { %7447 = vmatmul.mubr.msk.f32.gmra.mrb[4].mxu0 %vm709_vm5, %v6686_v16 }
  0xad   : > { %7474 = vmatprep.mubr.msk.f32.mxu0 %vm8836_vm4, %v8835_v1 }
 0x177   : > { %v789_v21 = vpop.f32.mrb[0].mxu0 }
 0x178   : > { %v790_v23 = vadd.f32 %v789_v21, %v706_v19  ;;  %v7442_v24 = vpop.f32.mrb[1].mxu0 }
 0x179   : > { %v6712_v24 = vld [vmem:[%s10594_s6 + $0x108] sm:$0xff] }
 0x17a   : > { %v9033_v26 = vadd.f32 %v803_v22, %v790_v23  ;;  %v6697_v22 = vld [vmem:[%s10593_s5 + $0x1] ss:$0 sm:$0xff] }
 0x17b   : > { %v794_v28 = vpop.f32.mrb[2].mxu0  ;;  %v6711_v23 = vld [vmem:[%s10594_s6 + $0x100] sm:$0xff] }
 0x17c   : > { %v795_v30 = vadd.f32 %v794_v28, %v707_v25  ;;  %v7445_v31 = vpop.f32.mrb[3].mxu0  ;;  %v813_v32 = vsel %vm812_vm9, %v9033_v26, 0.0 }
 0x17d   : > { %814 = vadd.xlane.f32.xlu0 %v813_v32  ;;  %v6713_v31 = vld [vmem:[%s10594_s6 + $0x110] sm:$0xff]  ;;  %v6714_v32 = vld [vmem:[%s10594_s6 + $0x118] sm:$0xff] }
 0x17e   : > { %v9040_v34 = vadd.f32 %v804_v29, %v795_v30  ;;  %v8325_v30 = vpack.c.bf16 %v6712_v24, %v6711_v23  ;;  %v6749_v23 = vld [vmem:[%s10594_s6 + $0x128] sm:$0xff] }
 0x17f   : > { %v799_v35 = vpop.f32.mrb[4].mxu0 }
 0x180   : > { %v800_v37 = vadd.f32 %v799_v35, %v708_v33  ;;  %v816_v38 = vsel %vm812_vm9, %v9040_v34, 0.0  ;;  %v7448_v39 = vpop.f32.mrb[5].mxu0 }
 0x181   : > { %817 = vadd.xlane.f32.xlu1 %v816_v38  ;;  %v8328_v38 = vpack.c.bf16 %v6714_v32, %v6713_v31 }
 0x182   : > { %v9047_v40 = vadd.f32 %v805_v36, %v800_v37 }
 0x184   : > { %v820_v41 = vsel %vm819_vm10, %v9047_v40, 0.0 }
 0x185   : > { %821 = vadd.xlane.f32.xlu0 %v820_v41 }
 0x20a   : > { %v815_v42 = vpop.xlane.xlu0 %814 }
 0x20b   : > { %v824_v43 = vmul.f32 0.03125, %v815_v42 }
 0x20d   : > { %v827_v44 = vsub.f32 %v9033_v26, %v824_v43 }
 0x20e   : > { %v818_v45 = vpop.xlane.xlu1 %817 }
 0x20f   : > { %v825_v46 = vmul.f32 0.03125, %v818_v45  ;;  %v830_v47 = vmul.f32 %v827_v44, %v827_v44 }
 0x211   : > { %v828_v48 = vsub.f32 %v9040_v34, %v825_v46  ;;  %v833_v49 = vsel %vm812_vm9, %v830_v47, 0.0  ;;  %v6707_v46 = vld [vmem:[%s10595_s7 + $0x4] ss:$0 sm:$0xff] }
 0x212   : > { %834 = vadd.xlane.f32.xlu0 %v833_v49  ;;  %v822_v50 = vpop.xlane.xlu0 %821 }
 0x213   : > { %v826_v51 = vmul.f32 0.03125, %v822_v50  ;;  %v831_v52 = vmul.f32 %v828_v48, %v828_v48 }
 0x215   : > { %v829_v53 = vsub.f32 %v9047_v40, %v826_v51  ;;  %v836_v54 = vsel %vm812_vm9, %v831_v52, 0.0 }
 0x216   : > { %837 = vadd.xlane.f32.xlu1 %v836_v54 }
 0x217   : > { %v832_v55 = vmul.f32 %v829_v53, %v829_v53 }
 0x219   : > { %v839_v56 = vsel %vm819_vm10, %v832_v55, 0.0 }
 0x21a   : > { %840 = vadd.xlane.f32.xlu0 %v839_v56 }
 0x29f   : > { %v835_v10 = vpop.xlane.xlu0 %834 }
 0x2a0   : > { %v842_v11 = vmul.f32 0.03125, %v835_v10 }
 0x2a2   : > { %v845_v12 = vadd.f32 1e-05, %v842_v11 }
 0x2a3   : > { %v838_v13 = vpop.xlane.xlu1 %837 }
 0x2a4   : > { %8632 = vrsqrt.f32 %v845_v12  ;;  %v843_v14 = vmul.f32 0.03125, %v838_v13  ;;  %v8338_v12 = vpack.c.bf16 %v6731_v3, %v6730_v2 }
 0x2a6   : > { %v846_v15 = vadd.f32 1e-05, %v843_v14  ;;  %v6732_v14 = vld [vmem:[%s10594_s6 + $0x30] sm:$0xff] }
 0x2a7   : > { %v841_v16 = vpop.xlane.xlu0 %840 }
 0x2a8   : > { %8634 = vrsqrt.f32 %v846_v15  ;;  %v844_v17 = vmul.f32 0.03125, %v841_v16  ;;  %v6733_v15 = vld [vmem:[%s10594_s6 + $0x38] sm:$0xff] }
 0x2aa   : > { %v847_v18 = vadd.f32 1e-05, %v844_v17 }
 0x2ac   : > { %8636 = vrsqrt.f32 %v847_v18 }
 0x2ae   : > { %v8633_v19 = vpop.eup %8632 }
 0x2af   : > { %v851_v21 = vmul.f32 %v8633_v19, %v827_v44  ;;  %v8341_v19 = vpack.c.bf16 %v6733_v15, %v6732_v14 }
 0x2b1   : > { %v860_v25 = vmul.f32 %v6696_v20, %v851_v21 }
 0x2b2   : > { %v8635_v27 = vpop.eup %8634 }
 0x2b3   : > { %v9099_v28 = vadd.f32 %v6697_v22, %v860_v25  ;;  %v852_v29 = vmul.f32 %v8635_v27, %v828_v48  ;;  %v6750_v25 = vld [vmem:[%s10594_s6 + $0x130] sm:$0xff]  ;;  %v6751_v27 = vld [vmem:[%s10594_s6 + $0x138] sm:$0xff] }
 0x2b5   : > { %v861_v33 = vmul.f32 %v6696_v20, %v852_v29  ;;  %7458 = vmatmul.mubr.msk.f32.vlgmr.msra.gmra.mrb[0].mxu1 %vm812_vm9, %v9099_v28  ;;  %7475 = vmatmul.mubr.msk.f32.vlgmr.msra.gmra.mrb[6].mxu0 %vm812_vm9, %v9099_v28  ;;  %v8353_v29 = vpack.c.bf16 %v6751_v27, %v6750_v25 }
 0x2b6   : > { %v8637_v35 = vpop.eup %8636  ;;  %7460 = vmatprep.mubr.msk.f32.mxu1 %vm8836_vm4, %v8835_v1  ;;  %7477 = vmatprep.mubr.msk.f32.mxu0 %vm8836_vm4, %v8835_v1 }
 0x2b7   : > { %v9115_v36 = vadd.f32 %v6697_v22, %v861_v33  ;;  %v853_v37 = vmul.f32 %v8637_v35, %v829_v53  ;;  %8326 = vmatpush3.bf16.msra.mxu1 %v8325_v30 }
 0x2b8   : > { %8327 = vmatprep.subr.bf16.mxu1 %v8837_v62 }
 0x2b9   : > { %v862_v39 = vmul.f32 %v6696_v20, %v853_v37  ;;  %7461 = vmatmul.mubr.msk.f32.gmra.mrb[2].mxu1 %vm812_vm9, %v9115_v36  ;;  %7478 = vmatmul.mubr.msk.f32.gmra.mrb[8].mxu0 %vm812_vm9, %v9115_v36 }
 0x2ba   : > { %7463 = vmatprep.mubr.msk.f32.mxu1 %vm8836_vm4, %v8835_v1  ;;  %7480 = vmatprep.mubr.msk.f32.mxu0 %vm8836_vm4, %v8835_v1 }
 0x2bb   : > { %v9126_v41 = vadd.f32 %v6697_v22, %v862_v39  ;;  %8329 = vmatpush3.bf16.msra.mxu1 %v8328_v38  ;;  %v6748_v22 = vld [vmem:[%s10594_s6 + $0x120] sm:$0xff] }
 0x2bc   : > { %8334 = vmatprep.subr.bf16.mxu1 %v8837_v62  ;;  %v8350_v24 = vpack.c.bf16 %v6749_v23, %v6748_v22  ;;  %v6739_v23 = vld [vmem:[%s10594_s6 + $0xa0] sm:$0xff] }
 0x2bd   : > { %7464 = vmatmul.mubr.msk.f32.gmra.mrb[4].mxu1 %vm812_vm9, %v9126_v41  ;;  %7481 = vmatmul.mubr.msk.f32.gmra.mrb[10].mxu0 %vm812_vm9, %v9126_v41 }
 0x2be   : > { %7491 = vmatprep.mubr.msk.f32.mxu1 %vm8836_vm4, %v8835_v1  ;;  %7506 = vmatprep.mubr.msk.f32.mxu0 %vm8836_vm4, %v8835_v1 }
 0x2c1   : > { %7492 = vmatmul.mubr.msk.f32.vlgmr.msra.gmra.mrb[6].mxu1 %vm812_vm9, %v9099_v28 }
 0x2c2   : > { %7494 = vmatprep.mubr.msk.f32.mxu1 %vm8836_vm4, %v8835_v1 }
 0x2c5   : > { %7495 = vmatmul.mubr.msk.f32.gmra.mrb[8].mxu1 %vm812_vm9, %v9115_v36 }
 0x2c6   : > { %7497 = vmatprep.mubr.msk.f32.mxu1 %vm8836_vm4, %v8835_v1 }
 0x2c9   : > { %7498 = vmatmul.mubr.msk.f32.gmra.mrb[10].mxu1 %vm812_vm9, %v9126_v41 }
 0x2ca   : > { %7521 = vmatprep.mubr.msk.f32.mxu1 %vm8836_vm4, %v8835_v1 }
 0x388   : > { %v958_v42 = vpop.f32.mrb[0].mxu1  ;;  %v1051_v43 = vpop.f32.mrb[6].mxu0 }
 0x389   : > { %v7459_v44 = vpop.f32.mrb[1].mxu1  ;;  %v7476_v45 = vpop.f32.mrb[7].mxu0  ;;  %v1052_v49 = vadd.f32 %v6707_v46, %v1051_v43  ;;  %v959_v11 = vadd.f32 %v6698_v63, %v958_v42 }
 0x38c   : > { %v963_v47 = vpop.f32.mrb[2].mxu1  ;;  %v1056_v48 = vpop.f32.mrb[8].mxu0 }
 0x38d   : > { %v1057_v50 = vadd.f32 %v6707_v46, %v1056_v48  ;;  %v7462_v51 = vpop.f32.mrb[3].mxu1  ;;  %v7479_v52 = vpop.f32.mrb[9].mxu0  ;;  %v964_v18 = vadd.f32 %v6698_v63, %v963_v47 }
 0x38f   : > { %v8331_v54 = vpack.c.bf16 %v1057_v50, %v1052_v49 }
 0x390   : > { %v968_v55 = vpop.f32.mrb[4].mxu1  ;;  %v1061_v56 = vpop.f32.mrb[10].mxu0 }
 0x391   : > { %v7465_v57 = vpop.f32.mrb[5].mxu1  ;;  %v7482_v58 = vpop.f32.mrb[11].mxu0  ;;  %8333 = vmatpush3.bf16.xpose.msk.msra.mxu0 %vm9154_vm12, %v8331_v54  ;;  %v1062_v0 = vadd.f32 %v6707_v46, %v1061_v56  ;;  %v969_v21 = vadd.f32 %v6698_v63, %v968_v55  ;;  %v6753_v55 = vld [vmem:[%s10595_s7 + $0x9] ss:$0 sm:$0xff] }
 0x392   : > { %7504 = vmatprep.subr.mxu0 %v8835_v1 }
 0x394   : > { %v1144_v59 = vpop.f32.mrb[6].mxu1 }
 0x395   : > { %v7493_v60 = vpop.f32.mrb[7].mxu1  ;;  %v1145_v5 = vadd.f32 %v6716_v61, %v1144_v59 }
 0x398   : > { %v1149_v4 = vpop.f32.mrb[8].mxu1 }
 0x399   : > { %v1150_v9 = vadd.f32 %v6716_v61, %v1149_v4  ;;  %v7496_v10 = vpop.f32.mrb[9].mxu1  ;;  %7505 = vmatpush3.xpose.msk.msra.mxu0 %vm1158_vm11, %v1062_v0 }
 0x39a   : > { %8337 = vmatprep.subr.bf16.mxu0 %v8837_v62 }
 0x39b   : > { %v8335_v13 = vpack.c.bf16 %v1150_v9, %v1145_v5 }
 0x39c   : > { %v1154_v16 = vpop.f32.mrb[10].mxu1  ;;  %7507 = vmatmul.mubr.msk.f32.vlgmr.msra.gmra.mrb[12].mxu0 %vm1158_vm11, %v959_v11 }
 0x39d   : > { %v7499_v17 = vpop.f32.mrb[11].mxu1  ;;  %8336 = vmatpush3.bf16.msra.mxu1 %v8335_v13  ;;  %7509 = vmatprep.mubr.msk.f32.mxu0 %vm8836_vm4, %v8835_v1  ;;  %v1155_v20 = vadd.f32 %v6716_v61, %v1154_v16 }
 0x39e   : > { %7519 = vmatprep.subr.mxu1 %v8835_v1  ;;  %8339 = vmatpush3.bf16.msra.mxu0 %v8338_v12 }
 0x39f   : > { %8340 = vmatprep.subr.bf16.mxu0 %v8837_v62 }
 0x3a0   : > { %7510 = vmatmul.mubr.msk.f32.gmra.mrb[14].mxu0 %vm1158_vm11, %v964_v18 }
 0x3a1   : > { %7520 = vmatpush3.msk.msra.mxu1 %vm1304_vm13, %v1155_v20  ;;  %7512 = vmatprep.mubr.msk.f32.mxu0 %vm8836_vm4, %v8835_v1 }
 0x3a2   : > { %8342 = vmatpush3.bf16.msra.mxu0 %v8341_v19  ;;  %8343 = vmatprep.subr.bf16.mxu1 %v8837_v62 }
 0x3a3   : > { %8349 = vmatprep.subr.bf16.mxu0 %v8837_v62 }
 0x3a4   : > { %7513 = vmatmul.mubr.msk.f32.gmra.mrb[16].mxu0 %vm1158_vm11, %v969_v21 }
 0x3a5   : > { %7538 = vmatprep.mubr.msk.f32.mxu0 %vm8836_vm4, %v8835_v1 }
 0x3a8   : > { %7539 = vmatmul.mubr.msk.f32.vlgmr.msra.gmra.mrb[18].mxu0 %vm812_vm9, %v9099_v28 }
 0x3a9   : > { %7541 = vmatprep.mubr.msk.f32.mxu0 %vm8836_vm4, %v8835_v1  ;;  %8351 = vmatpush3.bf16.msra.mxu0 %v8350_v24  ;;  %v6740_v24 = vld [vmem:[%s10594_s6 + $0xa8] sm:$0xff] }
 0x3aa   : > { %8352 = vmatprep.subr.bf16.mxu0 %v8837_v62  ;;  %v8344_v27 = vpack.c.bf16 %v6740_v24, %v6739_v23 }
 0x3ac   : > { %7542 = vmatmul.mubr.msk.f32.gmra.mrb[20].mxu0 %vm812_vm9, %v9115_v36 }
 0x3ad   : > { %7544 = vmatprep.mubr.msk.f32.mxu0 %vm8836_vm4, %v8835_v1  ;;  %8354 = vmatpush3.bf16.msra.mxu0 %v8353_v29 }
 0x3ae   : > { %8359 = vmatprep.subr.bf16.mxu0 %v8837_v62 }
 0x3b0   : > { %7545 = vmatmul.mubr.msk.f32.gmra.mrb[22].mxu0 %vm812_vm9, %v9126_v41 }
 0x3b1   : > { %7572 = vmatprep.mubr.msk.f32.mxu0 %vm8836_vm4, %v8835_v1 }
 0x3b4   : > { %7573 = vmatmul.mubr.msk.f32.vlgmr.msra.gmra.mrb[24].mxu0 %vm812_vm9, %v9099_v28 }
 0x3b5   : > { %7575 = vmatprep.mubr.msk.f32.mxu0 %vm8836_vm4, %v8835_v1 }
 0x3b8   : > { %7576 = vmatmul.mubr.msk.f32.gmra.mrb[26].mxu0 %vm812_vm9, %v9115_v36 }
 0x3b9   : > { %7578 = vmatprep.mubr.msk.f32.mxu0 %vm8836_vm4, %v8835_v1 }
 0x3bc   : > { %7579 = vmatmul.mubr.msk.f32.gmra.mrb[28].mxu0 %vm812_vm9, %v9126_v41 }
 0x3bd   : > { %7602 = vmatprep.mubr.msk.f32.mxu0 %vm8836_vm4, %v8835_v1 }
 0x46f   : > { %v1243_v30 = vpop.f32.mrb[12].mxu0 }
 0x470   : > { %v1257_v31 = vmul.f32 0.35355338, %v1243_v30  ;;  %v7508_v32 = vpop.f32.mrb[13].mxu0  ;;  %v6741_v30 = vld [vmem:[%s10594_s6 + $0xb0] sm:$0xff] }
 0x472   : > { %v1261_v33 = vsel %vm1260_vm14, %v1257_v31, -inf }
 0x473   : > { %1262 = vmax.xlane.f32.xlu1 %v1261_v33  ;;  %v1248_v35 = vpop.f32.mrb[14].mxu0 }
 0x474   : > { %v1258_v37 = vmul.f32 0.35355338, %v1248_v35  ;;  %v7511_v38 = vpop.f32.mrb[15].mxu0 }
 0x476   : > { %v1264_v39 = vsel %vm1260_vm14, %v1258_v37, -inf }
 0x477   : > { %1265 = vmax.xlane.f32.xlu0 %v1264_v39  ;;  %v1253_v42 = vpop.f32.mrb[16].mxu0 }
 0x478   : > { %v1259_v43 = vmul.f32 0.35355338, %v1253_v42  ;;  %v7514_v44 = vpop.f32.mrb[17].mxu0 }
 0x47a   : > { %v1268_v45 = vsel %vm1267_vm15, %v1259_v43, -inf }
 0x47b   : > { %1269 = vmax.xlane.f32.xlu1 %v1268_v45  ;;  %v9236_v46 = vpop.f32.mrb[18].mxu0 }
 0x47c   : > { %v7540_v47 = vpop.f32.mrb[19].mxu0 }
 0x47f   : > { %v9238_v48 = vpop.f32.mrb[20].mxu0 }
 0x480   : > { %v7543_v49 = vpop.f32.mrb[21].mxu0 }
 0x483   : > { %v9240_v50 = vpop.f32.mrb[22].mxu0 }
 0x484   : > { %v7546_v51 = vpop.f32.mrb[23].mxu0 }
 0x487   : > { %v1654_v52 = vpop.f32.mrb[24].mxu0 }
 0x488   : > { %v7574_v54 = vpop.f32.mrb[25].mxu0  ;;  %v1655_v57 = vadd.f32 %v6753_v55, %v1654_v52  ;;  %v6744_v52 = vld [vmem:[%s10595_s7 + $0x5] ss:$0 sm:$0xff] }
 0x48b   : > { %v1659_v56 = vpop.f32.mrb[26].mxu0 }
 0x48c   : > { %v1660_v58 = vadd.f32 %v6753_v55, %v1659_v56  ;;  %v7577_v59 = vpop.f32.mrb[27].mxu0 }
 0x48e   : > { %v9245_v60 = vpack.c.bf16 %v1660_v58, %v1655_v57 }
 0x48f   : > { %v1664_v61 = vpop.f32.mrb[28].mxu0 }
 0x490   : > { %v7580_v63 = vpop.f32.mrb[29].mxu0  ;;  %8361 = vmatpush3.bf16.msra.mxu0 %v9245_v60  ;;  %v9249_v0 = vadd.f32 %v6753_v55, %v1664_v61 }
 0x491   : > { %7600 = vmatprep.subr.mxu0 %v8835_v1  ;;  %v6735_v63 = vld [vmem:[%s10595_s7 + $0x1] ss:$0 sm:$0xff] }
 0x494   : > { %7601 = vmatpush3.msk.msra.mxu0 %vm1304_vm13, %v9249_v0 }
 0x495   : > { %7622 = vmatprep.subr.mxu0 %v8835_v1 }
 0x500   : > { %v1263_v2 = vpop.xlane.xlu1 %1262 }
 0x501   : > { %v1271_v3 = vsub.f32 %v1257_v31, %v1263_v2  ;;  %v6742_v31 = vld [vmem:[%s10594_s6 + $0xb8] sm:$0xff] }
 0x502   : > { %v8347_v33 = vpack.c.bf16 %v6742_v31, %v6741_v30 }
 0x503   : > { %v1274_v4 = vmul.f32 1.442695, %v1271_v3  ;;  %v1469_v3 = vadd.f32 %v6735_v63, %v9236_v46  ;;  %v1479_v46 = vadd.f32 %v6735_v63, %v9240_v50 }
 0x504   : > { %v1266_v5 = vpop.xlane.xlu0 %1265 }
 0x505   : > { %8638 = vpow2.f32 %v1274_v4  ;;  %v1272_v9 = vsub.f32 %v1258_v37, %v1266_v5  ;;  %v1474_v4 = vadd.f32 %v6735_v63, %v9238_v48  ;;  %v6776_v63 = vld [vmem:[%s10594_s6 + $0x50] sm:$0xff] }
 0x507   : > { %v1276_v10 = vmul.f32 1.442695, %v1272_v9 }
 0x508   : > { %v1270_v11 = vpop.xlane.xlu1 %1269 }
 0x509   : > { %8640 = vpow2.f32 %v1276_v10  ;;  %v1273_v12 = vsub.f32 %v1259_v43, %v1270_v11 }
 0x50b   : > { %v1278_v13 = vmul.f32 1.442695, %v1273_v12 }
 0x50d   : > { %8642 = vpow2.f32 %v1278_v13 }
 0x50f   : > { %v8639_v14 = vpop.eup %8638 }
 0x510   : > { %v1280_v15 = vsel %vm1260_vm14, %v8639_v14, 0.0 }
 0x511   : > { %1281 = vadd.xlane.f32.xlu0 %v1280_v15 }
 0x513   : > { %v8641_v16 = vpop.eup %8640 }
 0x514   : > { %v1283_v17 = vsel %vm1260_vm14, %v8641_v16, 0.0 }
 0x515   : > { %1284 = vadd.xlane.f32.xlu1 %v1283_v17 }
 0x517   : > { %v8643_v18 = vpop.eup %8642 }
 0x518   : > { %v1286_v19 = vsel %vm1267_vm15, %v8643_v18, 0.0 }
 0x519   : > { %1287 = vadd.xlane.f32.xlu0 %v1286_v19 }
 0x59e   : > { %v1282_v20 = vpop.xlane.xlu0 %1281 }
 0x59f   : > { %8644 = vrcp.f32 %v1282_v20 }
 0x5a2   : > { %v1285_v21 = vpop.xlane.xlu1 %1284 }
 0x5a3   : > { %8646 = vrcp.f32 %v1285_v21 }
 0x5a6   : > { %v1288_v22 = vpop.xlane.xlu0 %1287 }
 0x5a7   : > { %8648 = vrcp.f32 %v1288_v22 }
 0x5a9   : > { %v8645_v25 = vpop.eup %8644 }
 0x5aa   : > { %v1290_v29 = vmul.f32 %v8645_v25, %v8639_v14 }
 0x5ac   : > { %7522 = vmatmul.mubr.msk.f32.vlgmr.msra.gmra.mrb[12].mxu1 %vm1260_vm14, %v1290_v29 }
 0x5ad   : > { %v8647_v32 = vpop.eup %8646  ;;  %7524 = vmatprep.mubr.msk.f32.mxu1 %vm8836_vm4, %v8835_v1  ;;  %8345 = vmatpush3.bf16.msra.mxu1 %v8344_v27 }
 0x5ae   : > { %v1292_v35 = vmul.f32 %v8647_v32, %v8641_v16  ;;  %8346 = vmatprep.subr.bf16.mxu1 %v8837_v62 }
 0x5b0   : > { %7525 = vmatmul.mubr.msk.f32.gmra.mrb[14].mxu1 %vm1260_vm14, %v1292_v35 }
 0x5b1   : > { %v8649_v37 = vpop.eup %8648  ;;  %7527 = vmatprep.mubr.msk.f32.mxu1 %vm8836_vm4, %v8835_v1  ;;  %8348 = vmatpush3.bf16.msra.mxu1 %v8347_v33 }
 0x5b2   : > { %v1294_v38 = vmul.f32 %v8649_v37, %v8643_v18  ;;  %8355 = vmatprep.subr.bf16.mxu1 %v8837_v62 }
 0x5b4   : > { %7528 = vmatmul.mubr.msk.f32.gmra.mrb[16].mxu1 %vm1260_vm14, %v1294_v38 }
 0x5b5   : > { %7555 = vmatprep.mubr.msk.f32.mxu1 %vm8836_vm4, %v8835_v1 }
 0x5b8   : > { %7556 = vmatmul.mubr.msk.f32.vlgmr.msra.gmra.mrb[18].mxu1 %vm812_vm9, %v9099_v28 }
 0x5b9   : > { %7558 = vmatprep.mubr.msk.f32.mxu1 %vm8836_vm4, %v8835_v1 }
 0x5bc   : > { %7559 = vmatmul.mubr.msk.f32.gmra.mrb[20].mxu1 %vm812_vm9, %v9115_v36 }
 0x5bd   : > { %7561 = vmatprep.mubr.msk.f32.mxu1 %vm8836_vm4, %v8835_v1 }
 0x5c0   : > { %7562 = vmatmul.mubr.msk.f32.gmra.mrb[22].mxu1 %vm812_vm9, %v9126_v41 }
 0x5c1   : > { %7587 = vmatprep.mubr.msk.f32.mxu1 %vm8836_vm4, %v8835_v1 }
 0x67f   : > { %v9292_v39 = vpop.f32.mrb[12].mxu1 }
 0x680   : > { %v7523_v42 = vpop.f32.mrb[13].mxu1 }
 0x683   : > { %v9294_v43 = vpop.f32.mrb[14].mxu1 }
 0x684   : > { %v7526_v44 = vpop.f32.mrb[15].mxu1 }
 0x685   : > { %v1388_v44 = vld [vmem:[%s10596_s8] sm:$0xff] }
 0x687   : > { %v9296_v45 = vpop.f32.mrb[16].mxu1 }
 0x688   : > { %v7529_v47 = vpop.f32.mrb[17].mxu1 }
 0x689   : > { %v6783_v47 = vld [vmem:[%s10594_s6 + $0xc0] sm:$0xff] }
 0x68b   : > { %v1561_v49 = vpop.f32.mrb[18].mxu1 }
 0x68c   : > { %v7557_v51 = vpop.f32.mrb[19].mxu1  ;;  %v1562_v55 = vadd.f32 %v6744_v52, %v1561_v49  ;;  %v6784_v49 = vld [vmem:[%s10594_s6 + $0xc8] sm:$0xff] }
 0x68f   : > { %v1566_v54 = vpop.f32.mrb[20].mxu1 }
 0x690   : > { %v1567_v56 = vadd.f32 %v6744_v52, %v1566_v54  ;;  %v7560_v57 = vpop.f32.mrb[21].mxu1  ;;  %v8369_v54 = vpack.c.bf16 %v6784_v49, %v6783_v47 }
 0x691   : > { %v6767_v57 = vld [vmem:[%s10596_s8 + $0x8] sm:$0xff] }
 0x692   : > { %v8356_v58 = vpack.c.bf16 %v1567_v56, %v1562_v55  ;;  %v6785_v55 = vld [vmem:[%s10594_s6 + $0xd0] sm:$0xff]  ;;  %v6786_v56 = vld [vmem:[%s10594_s6 + $0xd8] sm:$0xff] }
 0x693   : > { %v1571_v59 = vpop.f32.mrb[22].mxu1 }
 0x694   : > { %v7563_v61 = vpop.f32.mrb[23].mxu1  ;;  %8358 = vmatpush3.bf16.xpose.msk.msra.mxu1 %vm9154_vm12, %v8356_v58  ;;  %v1572_v2 = vadd.f32 %v6744_v52, %v1571_v59 }
 0x695   : > { %7585 = vmatprep.subr.mxu1 %v8835_v1  ;;  %v8372_v61 = vpack.c.bf16 %v6786_v56, %v6785_v55 }
 0x69c   : > { %7586 = vmatpush3.xpose.msk.msra.mxu1 %vm1158_vm11, %v1572_v2  ;;  %v6777_v2 = vld [vmem:[%s10594_s6 + $0x58] sm:$0xff] }
 0x69d   : > { %8580 = vmatprep.subr.bf16.mxu1 %v8837_v62 }
 0x69f   : > { %7588 = vmatmul.mubr.msk.f32.vlgmr.msra.gmra.mrb[24].mxu1 %vm1158_vm11, %v1469_v3 }
 0x6a0   : > { %8582 = vmatpush3.bf16.msra.mxu1 %v9245_v60  ;;  %7590 = vmatprep.mubr.msk.f32.mxu1 %vm8836_vm4, %v8835_v1 }
 0x6a1   : > { %8581 = vmatprep.subr.mxu1 %v8835_v1 }
 0x6a3   : > { %7591 = vmatmul.mubr.msk.f32.gmra.mrb[26].mxu1 %vm1158_vm11, %v1474_v4 }
 0x6a4   : > { %8583 = vmatpush3.msk.msra.mxu1 %vm1304_vm13, %v9249_v0  ;;  %7593 = vmatprep.mubr.msk.f32.mxu1 %vm8836_vm4, %v8835_v1 }
 0x6a5   : > { %7611 = vmatprep.subr.mxu1 %v8835_v1 }
 0x6a7   : > { %7594 = vmatmul.mubr.msk.f32.gmra.mrb[28].mxu1 %vm1158_vm11, %v1479_v46  ;;  %v8366_v46 = vpack.c.bf16 %v6777_v2, %v6776_v63  ;;  %v6797_v2 = vld [vmem:[%s10595_s7 + $0xa] ss:$0 sm:$0xff] }
 0x6a8   : > { %7605 = vmatprep.mubr.msk.f32.mxu1 %vm8836_vm4, %v8835_v1 }
 0x772   : > { %v1752_v48 = vpop.f32.mrb[24].mxu1 }
 0x773   : > { %v1766_v60 = vmul.f32 0.35355338, %v1752_v48  ;;  %v7589_v5 = vpop.f32.mrb[25].mxu1 }
 0x775   : > { %v1769_v9 = vsel %vm1260_vm14, %v1766_v60, -inf }
 0x776   : > { %1770 = vmax.xlane.f32.xlu1 %v1769_v9  ;;  %v1757_v10 = vpop.f32.mrb[26].mxu1 }
 0x777   : > { %v1767_v0 = vmul.f32 0.35355338, %v1757_v10  ;;  %v7592_v11 = vpop.f32.mrb[27].mxu1  ;;  %v6792_v10 = vld [vmem:[%s10594_s6 + $0x140] sm:$0xff] }
 0x779   : > { %v1772_v12 = vsel %vm1260_vm14, %v1767_v0, -inf }
 0x77a   : > { %1773 = vmax.xlane.f32.xlu0 %v1772_v12  ;;  %v1762_v50 = vpop.f32.mrb[28].mxu1 }
 0x77b   : > { %v1768_v13 = vmul.f32 0.35355338, %v1762_v50  ;;  %v7595_v14 = vpop.f32.mrb[29].mxu1 }
 0x77d   : > { %v1775_v15 = vsel %vm1267_vm15, %v1768_v13, -inf }
 0x77e   : > { %1776 = vmax.xlane.f32.xlu1 %v1775_v15  ;;  %v6794_v15 = vld [vmem:[%s10594_s6 + $0x150] sm:$0xff] }
 0x803   : > { %v1771_v16 = vpop.xlane.xlu1 %1770 }
 0x804   : > { %v1778_v17 = vsub.f32 %v1766_v60, %v1771_v16  ;;  %v6795_v16 = vld [vmem:[%s10594_s6 + $0x158] sm:$0xff] }
 0x806   : > { %v1781_v18 = vmul.f32 1.442695, %v1778_v17 }
 0x807   : > { %v1774_v19 = vpop.xlane.xlu0 %1773 }
 0x808   : > { %8650 = vpow2.f32 %v1781_v18  ;;  %v1779_v20 = vsub.f32 %v1767_v0, %v1774_v19  ;;  %v6793_v0 = vld [vmem:[%s10594_s6 + $0x148] sm:$0xff]  ;;  %v8378_v19 = vpack.c.bf16 %v6795_v16, %v6794_v15 }
 0x809   : > { %v8375_v14 = vpack.c.bf16 %v6793_v0, %v6792_v10 }
 0x80a   : > { %v1783_v21 = vmul.f32 1.442695, %v1779_v20 }
 0x80b   : > { %v1777_v22 = vpop.xlane.xlu1 %1776 }
 0x80c   : > { %8652 = vpow2.f32 %v1783_v21  ;;  %v1780_v23 = vsub.f32 %v1768_v13, %v1777_v22  ;;  %v6788_v22 = vld [vmem:[%s10595_s7 + $0x6] ss:$0 sm:$0xff] }
 0x80e   : > { %v1785_v24 = vmul.f32 1.442695, %v1780_v23 }
 0x810   : > { %8654 = vpow2.f32 %v1785_v24 }
 0x812   : > { %v8651_v25 = vpop.eup %8650 }
 0x813   : > { %v1787_v27 = vsel %vm1260_vm14, %v8651_v25, 0.0 }
 0x814   : > { %1788 = vadd.xlane.f32.xlu0 %v1787_v27 }
 0x816   : > { %v8653_v29 = vpop.eup %8652 }
 0x817   : > { %v1790_v30 = vsel %vm1260_vm14, %v8653_v29, 0.0 }
 0x818   : > { %1791 = vadd.xlane.f32.xlu1 %v1790_v30 }
 0x81a   : > { %v8655_v31 = vpop.eup %8654 }
 0x81b   : > { %v1793_v32 = vsel %vm1267_vm15, %v8655_v31, 0.0 }
 0x81c   : > { %1794 = vadd.xlane.f32.xlu0 %v1793_v32 }
 0x8a1   : > { %v1789_v33 = vpop.xlane.xlu0 %1788 }
 0x8a2   : > { %8656 = vrcp.f32 %v1789_v33 }
 0x8a5   : > { %v1792_v35 = vpop.xlane.xlu1 %1791 }
 0x8a6   : > { %8658 = vrcp.f32 %v1792_v35 }
 0x8a9   : > { %v1795_v37 = vpop.xlane.xlu0 %1794 }
 0x8aa   : > { %8660 = vrcp.f32 %v1795_v37 }
 0x8ac   : > { %v8657_v38 = vpop.eup %8656 }
 0x8ad   : > { %v1797_v42 = vmul.f32 %v8657_v38, %v8651_v25 }
 0x8af   : > { %7603 = vmatmul.mubr.msk.f32.vlgmr.msra.gmra.mrb[30].mxu0 %vm1260_vm14, %v1797_v42 }
 0x8b0   : > { %v8659_v51 = vpop.eup %8658  ;;  %7623 = vmatpush3.msra.mxu0 %v1388_v44  ;;  %7624 = vmatprep.mubr.msk.f32.mxu0 %vm8836_vm4, %v8835_v1 }
 0x8b1   : > { %v1799_v52 = vmul.f32 %v8659_v51, %v8653_v29  ;;  %8368 = vmatprep.subr.bf16.mxu0 %v8837_v62 }
 0x8b3   : > { %7606 = vmatmul.mubr.msk.f32.vlgmr.msra.gmra.mrb[30].mxu1 %vm1260_vm14, %v1799_v52  ;;  %7625 = vmatmul.mubr.msk.f32.vlgmr.msra.gmra.mrb[32].mxu0 %vm1158_vm11, %v9292_v39  ;;  %v6774_v39 = vld [vmem:[%s10594_s6 + $0x40] sm:$0xff] }
 0x8b4   : > { %v8661_v58 = vpop.eup %8660  ;;  %7608 = vmatprep.mubr.msk.f32.mxu1 %vm8836_vm4, %v8835_v1  ;;  %7627 = vmatprep.mubr.msk.f32.mxu0 %vm8836_vm4, %v8835_v1  ;;  %v6779_v52 = vld [vmem:[%s10595_s7 + $0x2] ss:$0 sm:$0xff] }
 0x8b5   : > { %v1801_v59 = vmul.f32 %v8661_v58, %v8655_v31  ;;  %8370 = vmatpush3.bf16.msra.mxu0 %v8369_v54  ;;  %7612 = vmatpush3.msra.mxu1 %v6767_v57 }
 0x8b6   : > { %8371 = vmatprep.subr.bf16.mxu0 %v8837_v62  ;;  %8362 = vmatprep.subr.bf16.mxu1 %v8837_v62 }
 0x8b7   : > { %7609 = vmatmul.mubr.msk.f32.gmra.mrb[32].mxu1 %vm1260_vm14, %v1801_v59  ;;  %7628 = vmatmul.mubr.msk.f32.gmra.mrb[34].mxu0 %vm1158_vm11, %v9294_v43  ;;  %v6775_v43 = vld [vmem:[%s10594_s6 + $0x48] sm:$0xff] }
 0x8b8   : > { %7630 = vmatprep.mubr.msk.f32.mxu0 %vm8836_vm4, %v8835_v1  ;;  %7613 = vmatprep.mubr.msk.f32.mxu1 %vm8836_vm4, %v8835_v1 }
 0x8b9   : > { %8373 = vmatpush3.bf16.msra.mxu0 %v8372_v61 }
 0x8ba   : > { %8380 = vmatprep.subr.bf16.mxu0 %v8837_v62 }
 0x8bb   : > { %7631 = vmatmul.mubr.msk.f32.gmra.mrb[36].mxu0 %vm1158_vm11, %v9296_v45  ;;  %v8363_v45 = vpack.c.bf16 %v6775_v43, %v6774_v39 }
 0x8bc   : > { %7658 = vmatprep.mubr.msk.f32.mxu0 %vm8836_vm4, %v8835_v1 }
 0x8bf   : > { %7659 = vmatmul.mubr.msk.f32.vlgmr.msra.gmra.mrb[38].mxu0 %vm812_vm9, %v9099_v28 }
 0x8c0   : > { %7661 = vmatprep.mubr.msk.f32.mxu0 %vm8836_vm4, %v8835_v1 }
 0x8c3   : > { %7662 = vmatmul.mubr.msk.f32.gmra.mrb[40].mxu0 %vm812_vm9, %v9115_v36 }
 0x8c4   : > { %7664 = vmatprep.mubr.msk.f32.mxu0 %vm8836_vm4, %v8835_v1 }
 0x8c7   : > { %7665 = vmatmul.mubr.msk.f32.gmra.mrb[42].mxu0 %vm812_vm9, %v9126_v41 }
 0x8c8   : > { %7690 = vmatprep.mubr.msk.f32.mxu0 %vm8836_vm4, %v8835_v1 }
 0x982   : > { %v1880_v3 = vpop.f32.mrb[30].mxu0 }
 0x983   : > { %v7604_v4 = vpop.f32.mrb[31].mxu0  ;;  %7614 = vmatmul.mubr.msk.f32.vlgmr.msra.gmra.mrb[34].mxu1 %vm1158_vm11, %v1880_v3 }
 0x984   : > { %7616 = vmatprep.mubr.msk.f32.mxu1 %vm8836_vm4, %v8835_v1  ;;  %8364 = vmatpush3.bf16.msra.mxu1 %v8363_v45 }
 0x985   : > { %8365 = vmatprep.subr.bf16.mxu1 %v8837_v62 }
 0x986   : > { %v1885_v48 = vpop.f32.mrb[30].mxu1  ;;  %v2060_v60 = vpop.f32.mrb[32].mxu0 }
 0x987   : > { %v7607_v5 = vpop.f32.mrb[31].mxu1  ;;  %7617 = vmatmul.mubr.msk.f32.gmra.mrb[36].mxu1 %vm1158_vm11, %v1885_v48  ;;  %v7626_v9 = vpop.f32.mrb[33].mxu0 }
 0x988   : > { %7619 = vmatprep.mubr.msk.f32.mxu1 %vm8836_vm4, %v8835_v1  ;;  %8367 = vmatpush3.bf16.msra.mxu1 %v8366_v46 }
 0x989   : > { %8374 = vmatprep.subr.bf16.mxu1 %v8837_v62 }
 0x98a   : > { %v1890_v11 = vpop.f32.mrb[32].mxu1  ;;  %v2065_v12 = vpop.f32.mrb[34].mxu0 }
 0x98b   : > { %v7610_v50 = vpop.f32.mrb[33].mxu1  ;;  %7620 = vmatmul.mubr.msk.f32.gmra.mrb[38].mxu1 %vm1158_vm11, %v1890_v11  ;;  %v7629_v13 = vpop.f32.mrb[35].mxu0 }
 0x98c   : > { %7641 = vmatprep.mubr.msk.f32.mxu1 %vm8836_vm4, %v8835_v1 }
 0x98e   : > { %v2070_v17 = vpop.f32.mrb[36].mxu0 }
 0x98f   : > { %v7632_v18 = vpop.f32.mrb[37].mxu0  ;;  %7642 = vmatmul.mubr.msk.f32.vlgmr.msra.gmra.mrb[40].mxu1 %vm812_vm9, %v9099_v28 }
 0x990   : > { %7644 = vmatprep.mubr.msk.f32.mxu1 %vm8836_vm4, %v8835_v1  ;;  %8376 = vmatpush3.bf16.msra.mxu1 %v8375_v14 }
 0x991   : > { %8377 = vmatprep.subr.bf16.mxu1 %v8837_v62 }
 0x992   : > { %v2246_v20 = vpop.f32.mrb[38].mxu0 }
 0x993   : > { %7645 = vmatmul.mubr.msk.f32.gmra.mrb[42].mxu1 %vm812_vm9, %v9115_v36  ;;  %v7660_v21 = vpop.f32.mrb[39].mxu0  ;;  %v2247_v24 = vadd.f32 %v6788_v22, %v2246_v20 }
 0x994   : > { %7647 = vmatprep.mubr.msk.f32.mxu1 %vm8836_vm4, %v8835_v1  ;;  %8379 = vmatpush3.bf16.msra.mxu1 %v8378_v19 }
 0x995   : > { %8384 = vmatprep.subr.bf16.mxu1 %v8837_v62 }
 0x996   : > { %v2251_v23 = vpop.f32.mrb[40].mxu0 }
 0x997   : > { %v2252_v25 = vadd.f32 %v6788_v22, %v2251_v23  ;;  %7648 = vmatmul.mubr.msk.f32.gmra.mrb[44].mxu1 %vm812_vm9, %v9126_v41  ;;  %v7663_v27 = vpop.f32.mrb[41].mxu0 }
 0x998   : > { %7675 = vmatprep.mubr.msk.f32.mxu1 %vm8836_vm4, %v8835_v1 }
 0x999   : > { %v8381_v29 = vpack.c.bf16 %v2252_v25, %v2247_v24 }
 0x99a   : > { %v2256_v30 = vpop.f32.mrb[42].mxu0 }
 0x99b   : > { %v7666_v31 = vpop.f32.mrb[43].mxu0  ;;  %7676 = vmatmul.mubr.msk.f32.vlgmr.msra.gmra.mrb[46].mxu1 %vm812_vm9, %v9099_v28  ;;  %8383 = vmatpush3.bf16.xpose.msk.msra.mxu0 %vm9154_vm12, %v8381_v29  ;;  %v2257_v32 = vadd.f32 %v6788_v22, %v2256_v30 }
 0x99c   : > { %7678 = vmatprep.mubr.msk.f32.mxu1 %vm8836_vm4, %v8835_v1  ;;  %7688 = vmatprep.subr.mxu0 %v8835_v1 }
 0x99f   : > { %7679 = vmatmul.mubr.msk.f32.gmra.mrb[48].mxu1 %vm812_vm9, %v9115_v36 }
 0x9a0   : > { %7681 = vmatprep.mubr.msk.f32.mxu1 %vm8836_vm4, %v8835_v1 }
 0x9a3   : > { %7682 = vmatmul.mubr.msk.f32.gmra.mrb[50].mxu1 %vm812_vm9, %v9126_v41  ;;  %7689 = vmatpush3.xpose.msk.msra.mxu0 %vm1158_vm11, %v2257_v32 }
 0x9a4   : > { %7705 = vmatprep.mubr.msk.f32.mxu1 %vm8836_vm4, %v8835_v1  ;;  %7714 = vmatprep.subr.mxu0 %v8835_v1 }
 0xa56   : > { %v1971_v33 = vpop.f32.mrb[34].mxu1 }
 0xa57   : > { %v9456_v35 = vadd.f32 %v2060_v60, %v1971_v33  ;;  %v7615_v37 = vpop.f32.mrb[35].mxu1 }
 0xa5a   : > { %v1976_v38 = vpop.f32.mrb[36].mxu1 }
 0xa5b   : > { %v9458_v42 = vadd.f32 %v2065_v12, %v1976_v38  ;;  %v7618_v44 = vpop.f32.mrb[37].mxu1 }
 0xa5e   : > { %v1981_v47 = vpop.f32.mrb[38].mxu1 }
 0xa5f   : > { %v9460_v49 = vadd.f32 %v2070_v17, %v1981_v47  ;;  %v7621_v51 = vpop.f32.mrb[39].mxu1 }
 0xa60   : > { %v6811_v51 = vld [vmem:[%s10596_s8 + $0x10] sm:$0xff] }
 0xa62   : > { %v2153_v54 = vpop.f32.mrb[40].mxu1 }
 0xa63   : > { %v2154_v55 = vadd.f32 %v6779_v52, %v2153_v54  ;;  %v7643_v56 = vpop.f32.mrb[41].mxu1 }
 0xa64   : > { %v6815_v56 = vld [vmem:[%s10594_s6 + $0x60] sm:$0xff] }
 0xa65   : > { %7691 = vmatmul.mubr.msk.f32.vlgmr.msra.gmra.mrb[44].mxu0 %vm1158_vm11, %v2154_v55 }
 0xa66   : > { %v2158_v57 = vpop.f32.mrb[42].mxu1  ;;  %7693 = vmatprep.mubr.msk.f32.mxu0 %vm8836_vm4, %v8835_v1  ;;  %7715 = vmatpush3.msra.mxu0 %v6811_v51 }
 0xa67   : > { %v2159_v58 = vadd.f32 %v6779_v52, %v2158_v57  ;;  %v7646_v59 = vpop.f32.mrb[43].mxu1  ;;  %8393 = vmatprep.subr.bf16.mxu0 %v8837_v62  ;;  %v6816_v57 = vld [vmem:[%s10594_s6 + $0x68] sm:$0xff] }
 0xa68   : > { %v8388_v59 = vpack.c.bf16 %v6816_v57, %v6815_v56 }
 0xa69   : > { %7694 = vmatmul.mubr.msk.f32.gmra.mrb[46].mxu0 %vm1158_vm11, %v2159_v58 }
 0xa6a   : > { %v2163_v61 = vpop.f32.mrb[44].mxu1  ;;  %7696 = vmatprep.mubr.msk.f32.mxu0 %vm8836_vm4, %v8835_v1 }
 0xa6b   : > { %v2164_v39 = vadd.f32 %v6779_v52, %v2163_v61  ;;  %v7649_v43 = vpop.f32.mrb[45].mxu1 }
 0xa6c   : > { %v6818_v43 = vld [vmem:[%s10594_s6 + $0x78] sm:$0xff] }
 0xa6d   : > { %7697 = vmatmul.mubr.msk.f32.gmra.mrb[48].mxu0 %vm1158_vm11, %v2164_v39  ;;  %v6817_v39 = vld [vmem:[%s10594_s6 + $0x70] sm:$0xff] }
 0xa6e   : > { %v2339_v45 = vpop.f32.mrb[46].mxu1  ;;  %7716 = vmatprep.mubr.msk.f32.mxu0 %vm8836_vm4, %v8835_v1 }
 0xa6f   : > { %v7677_v63 = vpop.f32.mrb[47].mxu1  ;;  %v2340_v4 = vadd.f32 %v6797_v2, %v2339_v45 }
 0xa70   : > { %v8391_v63 = vpack.c.bf16 %v6818_v43, %v6817_v39  ;;  %v6829_v43 = vld [vmem:[%s10595_s7 + $0x7] ss:$0 sm:$0xff] }
 0xa72   : > { %v2344_v3 = vpop.f32.mrb[48].mxu1 }
 0xa73   : > { %v2345_v46 = vadd.f32 %v6797_v2, %v2344_v3  ;;  %v7680_v48 = vpop.f32.mrb[49].mxu1 }
 0xa74   : > { %v6834_v48 = vld [vmem:[%s10594_s6 + $0x168] sm:$0xff] }
 0xa75   : > { %v8385_v60 = vpack.c.bf16 %v2345_v46, %v2340_v4  ;;  %v6833_v46 = vld [vmem:[%s10594_s6 + $0x160] sm:$0xff] }
 0xa76   : > { %v2349_v5 = vpop.f32.mrb[50].mxu1 }
 0xa77   : > { %v7683_v9 = vpop.f32.mrb[51].mxu1  ;;  %8386 = vmatpush3.bf16.msra.mxu1 %v8385_v60  ;;  %v2350_v10 = vadd.f32 %v6797_v2, %v2349_v5  ;;  %v8400_v60 = vpack.c.bf16 %v6834_v48, %v6833_v46  ;;  %v6835_v5 = vld [vmem:[%s10594_s6 + $0x170] sm:$0xff] }
 0xa78   : > { %7703 = vmatprep.subr.mxu1 %v8835_v1  ;;  %v6836_v9 = vld [vmem:[%s10594_s6 + $0x178] sm:$0xff] }
 0xa7b   : > { %7704 = vmatpush3.msk.msra.mxu1 %vm1304_vm13, %v2350_v10  ;;  %v8403_v10 = vpack.c.bf16 %v6836_v9, %v6835_v5 }
 0xa7c   : > { %8387 = vmatprep.subr.bf16.mxu1 %v8837_v62 }
 0xb38   : > { %v2437_v0 = vpop.f32.mrb[44].mxu0 }
 0xb39   : > { %v2451_v11 = vmul.f32 0.35355338, %v2437_v0  ;;  %v7692_v12 = vpop.f32.mrb[45].mxu0  ;;  %v6824_v0 = vld [vmem:[%s10594_s6 + $0xe0] sm:$0xff] }
 0xb3b   : > { %v2454_v50 = vsel %vm1260_vm14, %v2451_v11, -inf }
 0xb3c   : > { %2455 = vmax.xlane.f32.xlu1 %v2454_v50  ;;  %v2442_v13 = vpop.f32.mrb[46].mxu0  ;;  %v6826_v50 = vld [vmem:[%s10594_s6 + $0xf0] sm:$0xff] }
 0xb3d   : > { %v2452_v14 = vmul.f32 0.35355338, %v2442_v13  ;;  %v7695_v15 = vpop.f32.mrb[47].mxu0  ;;  %v6827_v13 = vld [vmem:[%s10594_s6 + $0xf8] sm:$0xff] }
 0xb3f   : > { %v2457_v16 = vsel %vm1260_vm14, %v2452_v14, -inf }
 0xb40   : > { %2458 = vmax.xlane.f32.xlu0 %v2457_v16  ;;  %v2447_v17 = vpop.f32.mrb[48].mxu0  ;;  %v8397_v16 = vpack.c.bf16 %v6827_v13, %v6826_v50 }
 0xb41   : > { %v2453_v18 = vmul.f32 0.35355338, %v2447_v17  ;;  %v7698_v19 = vpop.f32.mrb[49].mxu0 }
 0xb43   : > { %v2460_v20 = vsel %vm1267_vm15, %v2453_v18, -inf }
 0xb44   : > { %2461 = vmax.xlane.f32.xlu1 %v2460_v20 }
 0xbc9   : > { %v2456_v21 = vpop.xlane.xlu1 %2455 }
 0xbca   : > { %v2463_v22 = vsub.f32 %v2451_v11, %v2456_v21  ;;  %v6825_v11 = vld [vmem:[%s10594_s6 + $0xe8] sm:$0xff] }
 0xbcb   : > { %v8394_v12 = vpack.c.bf16 %v6825_v11, %v6824_v0 }
 0xbcc   : > { %v2466_v23 = vmul.f32 1.442695, %v2463_v22 }
 0xbcd   : > { %v2459_v24 = vpop.xlane.xlu0 %2458 }
 0xbce   : > { %8662 = vpow2.f32 %v2466_v23  ;;  %v2464_v25 = vsub.f32 %v2452_v14, %v2459_v24 }
 0xbd0   : > { %v2468_v27 = vmul.f32 1.442695, %v2464_v25 }
 0xbd1   : > { %v2462_v29 = vpop.xlane.xlu1 %2461 }
 0xbd2   : > { %8664 = vpow2.f32 %v2468_v27  ;;  %v2465_v30 = vsub.f32 %v2453_v18, %v2462_v29 }
 0xbd4   : > { %v2470_v31 = vmul.f32 1.442695, %v2465_v30  ;;  %v6838_v30 = vld [vmem:[%s10595_s7 + $0xb] ss:$0 sm:$0xff] }
 0xbd6   : > { %8666 = vpow2.f32 %v2470_v31 }
 0xbd8   : > { %v8663_v32 = vpop.eup %8662 }
 0xbd9   : > { %v2472_v33 = vsel %vm1260_vm14, %v8663_v32, 0.0 }
 0xbda   : > { %2473 = vadd.xlane.f32.xlu0 %v2472_v33 }
 0xbdc   : > { %v8665_v37 = vpop.eup %8664 }
 0xbdd   : > { %v2475_v38 = vsel %vm1260_vm14, %v8665_v37, 0.0 }
 0xbde   : > { %2476 = vadd.xlane.f32.xlu1 %v2475_v38 }
 0xbe0   : > { %v8667_v44 = vpop.eup %8666 }
 0xbe1   : > { %v2478_v47 = vsel %vm1267_vm15, %v8667_v44, 0.0 }
 0xbe2   : > { %2479 = vadd.xlane.f32.xlu0 %v2478_v47 }
 0xc67   : > { %v2474_v52 = vpop.xlane.xlu0 %2473 }
 0xc68   : > { %8668 = vrcp.f32 %v2474_v52 }
 0xc6b   : > { %v2477_v54 = vpop.xlane.xlu1 %2476 }
 0xc6c   : > { %8670 = vrcp.f32 %v2477_v54 }
 0xc6f   : > { %v2480_v55 = vpop.xlane.xlu0 %2479 }
 0xc70   : > { %8672 = vrcp.f32 %v2480_v55 }
 0xc72   : > { %v8669_v58 = vpop.eup %8668 }
 0xc73   : > { %v2482_v61 = vmul.f32 %v8669_v58, %v8663_v32 }
 0xc75   : > { %7706 = vmatmul.mubr.msk.f32.vlgmr.msra.gmra.mrb[52].mxu1 %vm1260_vm14, %v2482_v61 }
 0xc76   : > { %v8671_v45 = vpop.eup %8670  ;;  %7708 = vmatprep.mubr.msk.f32.mxu1 %vm8836_vm4, %v8835_v1  ;;  %8389 = vmatpush3.bf16.msra.mxu1 %v8388_v59 }
 0xc77   : > { %v2484_v2 = vmul.f32 %v8671_v45, %v8665_v37  ;;  %8390 = vmatprep.subr.bf16.mxu1 %v8837_v62 }
 0xc79   : > { %7709 = vmatmul.mubr.msk.f32.gmra.mrb[54].mxu1 %vm1260_vm14, %v2484_v2 }
 0xc7a   : > { %v8673_v3 = vpop.eup %8672  ;;  %7711 = vmatprep.mubr.msk.f32.mxu1 %vm8836_vm4, %v8835_v1  ;;  %8392 = vmatpush3.bf16.msra.mxu1 %v8391_v63 }
 0xc7b   : > { %v2486_v4 = vmul.f32 %v8673_v3, %v8667_v44  ;;  %8399 = vmatprep.subr.bf16.mxu1 %v8837_v62 }
 0xc7d   : > { %7712 = vmatmul.mubr.msk.f32.gmra.mrb[56].mxu1 %vm1260_vm14, %v2486_v4 }
 0xc7e   : > { %7733 = vmatprep.mubr.msk.f32.mxu1 %vm8836_vm4, %v8835_v1 }
 0xc81   : > { %7734 = vmatmul.mubr.msk.f32.vlgmr.msra.gmra.mrb[58].mxu1 %vm812_vm9, %v9099_v28 }
 0xc82   : > { %7736 = vmatprep.mubr.msk.f32.mxu1 %vm8836_vm4, %v8835_v1  ;;  %8401 = vmatpush3.bf16.msra.mxu1 %v8400_v60 }
 0xc83   : > { %8402 = vmatprep.subr.bf16.mxu1 %v8837_v62 }
 0xc85   : > { %7737 = vmatmul.mubr.msk.f32.gmra.mrb[60].mxu1 %vm812_vm9, %v9115_v36 }
 0xc86   : > { %7739 = vmatprep.mubr.msk.f32.mxu1 %vm8836_vm4, %v8835_v1  ;;  %8404 = vmatpush3.bf16.msra.mxu1 %v8403_v10 }
 0xc87   : > { %8409 = vmatprep.subr.bf16.mxu1 %v8837_v62 }
 0xc89   : > { %7740 = vmatmul.mubr.msk.f32.gmra.mrb[62].mxu1 %vm812_vm9, %v9126_v41 }
 0xc8a   : > { %7767 = vmatprep.mubr.msk.f32.mxu1 %vm8836_vm4, %v8835_v1 }
 0xc8d   : > { %7768 = vmatmul.mubr.msk.f32.vlgmr.msra.gmra.mrb[64].mxu1 %vm812_vm9, %v9099_v28 }
 0xc8e   : > { %7770 = vmatprep.mubr.msk.f32.mxu1 %vm8836_vm4, %v8835_v1 }
 0xc91   : > { %7771 = vmatmul.mubr.msk.f32.gmra.mrb[66].mxu1 %vm812_vm9, %v9115_v36 }
 0xc92   : > { %7773 = vmatprep.mubr.msk.f32.mxu1 %vm8836_vm4, %v8835_v1 }
 0xc95   : > { %7774 = vmatmul.mubr.msk.f32.gmra.mrb[68].mxu1 %vm812_vm9, %v9126_v41 }
 0xc96   : > { %7797 = vmatprep.mubr.msk.f32.mxu1 %vm8836_vm4, %v8835_v1 }
 0xd48   : > { %v2565_v14 = vpop.f32.mrb[52].mxu1 }
 0xd49   : > { %v7707_v15 = vpop.f32.mrb[53].mxu1  ;;  %7717 = vmatmul.mubr.msk.f32.vlgmr.msra.gmra.mrb[50].mxu0 %vm1158_vm11, %v2565_v14 }
 0xd4a   : > { %7719 = vmatprep.mubr.msk.f32.mxu0 %vm8836_vm4, %v8835_v1  ;;  %8395 = vmatpush3.bf16.msra.mxu0 %v8394_v12 }
 0xd4b   : > { %8396 = vmatprep.subr.bf16.mxu0 %v8837_v62 }
 0xd4c   : > { %v2570_v17 = vpop.f32.mrb[54].mxu1 }
 0xd4d   : > { %v7710_v18 = vpop.f32.mrb[55].mxu1  ;;  %7720 = vmatmul.mubr.msk.f32.gmra.mrb[52].mxu0 %vm1158_vm11, %v2570_v17 }
 0xd4e   : > { %7722 = vmatprep.mubr.msk.f32.mxu0 %vm8836_vm4, %v8835_v1  ;;  %8398 = vmatpush3.bf16.msra.mxu0 %v8397_v16 }
 0xd4f   : > { %8405 = vmatprep.subr.bf16.mxu0 %v8837_v62 }
 0xd50   : > { %v2575_v19 = vpop.f32.mrb[56].mxu1 }
 0xd51   : > { %v7713_v20 = vpop.f32.mrb[57].mxu1  ;;  %7723 = vmatmul.mubr.msk.f32.gmra.mrb[54].mxu0 %vm1158_vm11, %v2575_v19 }
 0xd52   : > { %7750 = vmatprep.mubr.msk.f32.mxu0 %vm8836_vm4, %v8835_v1 }
 0xd54   : > { %v2752_v21 = vpop.f32.mrb[58].mxu1 }
 0xd55   : > { %v7735_v22 = vpop.f32.mrb[59].mxu1  ;;  %7751 = vmatmul.mubr.msk.f32.vlgmr.msra.gmra.mrb[56].mxu0 %vm812_vm9, %v9099_v28 }
 0xd56   : > { %7753 = vmatprep.mubr.msk.f32.mxu0 %vm8836_vm4, %v8835_v1 }
 0xd58   : > { %v2757_v23 = vpop.f32.mrb[60].mxu1 }
 0xd59   : > { %v7738_v24 = vpop.f32.mrb[61].mxu1  ;;  %7754 = vmatmul.mubr.msk.f32.gmra.mrb[58].mxu0 %vm812_vm9, %v9115_v36 }
 0xd5a   : > { %7756 = vmatprep.mubr.msk.f32.mxu0 %vm8836_vm4, %v8835_v1 }
 0xd5c   : > { %v2762_v25 = vpop.f32.mrb[62].mxu1 }
 0xd5d   : > { %v7741_v27 = vpop.f32.mrb[63].mxu1  ;;  %7757 = vmatmul.mubr.msk.f32.gmra.mrb[60].mxu0 %vm812_vm9, %v9126_v41 }
 0xd5e   : > { %7782 = vmatprep.mubr.msk.f32.mxu0 %vm8836_vm4, %v8835_v1 }
 0xd60   : > { %v2938_v28 = vpop.f32.mrb[64].mxu1 }
 0xd61   : > { %v7769_v29 = vpop.f32.mrb[65].mxu1  ;;  %v2939_v32 = vadd.f32 %v6838_v30, %v2938_v28 }
 0xd64   : > { %v2943_v31 = vpop.f32.mrb[66].mxu1 }
 0xd65   : > { %v2944_v36 = vadd.f32 %v6838_v30, %v2943_v31  ;;  %v7772_v33 = vpop.f32.mrb[67].mxu1 }
 0xd67   : > { %v8410_v37 = vpack.c.bf16 %v2944_v36, %v2939_v32 }
 0xd68   : > { %v2948_v38 = vpop.f32.mrb[68].mxu1 }
 0xd69   : > { %v7775_v44 = vpop.f32.mrb[69].mxu1  ;;  %8411 = vmatpush3.bf16.msra.mxu1 %v8410_v37  ;;  %v2949_v41 = vadd.f32 %v6838_v30, %v2948_v38  ;;  %v6852_v37 = vld [vmem:[%s10596_s8 + $0x18] sm:$0xff] }
 0xd6a   : > { %7795 = vmatprep.subr.mxu1 %v8835_v1 }
 0xd6d   : > { %7796 = vmatpush3.msk.msra.mxu1 %vm1304_vm13, %v2949_v41 }
 0xd6e   : > { %8412 = vmatprep.subr.bf16.mxu1 %v8837_v62 }
 0xe1c   : > { %v2656_v47 = vpop.f32.mrb[50].mxu0 }
 0xe1d   : > { %v9593_v51 = vadd.f32 %v2656_v47, %v9456_v35  ;;  %v7718_v52 = vpop.f32.mrb[51].mxu0 }
 0xe20   : > { %v2661_v54 = vpop.f32.mrb[52].mxu0 }
 0xe21   : > { %v9596_v55 = vadd.f32 %v2661_v54, %v9458_v42  ;;  %v7721_v56 = vpop.f32.mrb[53].mxu0 }
 0xe24   : > { %v2666_v57 = vpop.f32.mrb[54].mxu0 }
 0xe25   : > { %v9599_v58 = vadd.f32 %v2666_v57, %v9460_v49  ;;  %v7724_v59 = vpop.f32.mrb[55].mxu0  ;;  %v6820_v49 = vld [vmem:[%s10595_s7 + $0x3] ss:$0 sm:$0xff] }
 0xe26   : > { %v2753_v48 = vadd.f32 %v6820_v49, %v2752_v21  ;;  %v2758_v60 = vadd.f32 %v6820_v49, %v2757_v23  ;;  %v2763_v5 = vadd.f32 %v6820_v49, %v2762_v25 }
 0xe28   : > { %v2845_v61 = vpop.f32.mrb[56].mxu0 }
 0xe29   : > { %v7752_v39 = vpop.f32.mrb[57].mxu0  ;;  %v2846_v35 = vadd.f32 %v6829_v43, %v2845_v61 }
 0xe2c   : > { %v2850_v45 = vpop.f32.mrb[58].mxu0 }
 0xe2d   : > { %v2851_v63 = vadd.f32 %v6829_v43, %v2850_v45  ;;  %v7755_v2 = vpop.f32.mrb[59].mxu0 }
 0xe2f   : > { %v8406_v3 = vpack.c.bf16 %v2851_v63, %v2846_v35 }
 0xe30   : > { %v2855_v4 = vpop.f32.mrb[60].mxu0 }
 0xe31   : > { %v7758_v42 = vpop.f32.mrb[61].mxu0  ;;  %8408 = vmatpush3.bf16.xpose.msk.msra.mxu0 %vm9154_vm12, %v8406_v3  ;;  %v2856_v46 = vadd.f32 %v6829_v43, %v2855_v4 }
 0xe32   : > { %7780 = vmatprep.subr.mxu0 %v8835_v1  ;;  %v6856_v42 = vld [vmem:[%s10597_s9] ss:$0 sm:$0xff] }
 0xe39   : > { %7781 = vmatpush3.xpose.msk.msra.mxu0 %vm1158_vm11, %v2856_v46 }
 0xe3a   : > { %7806 = vmatprep.subr.mxu0 %v8835_v1 }
 0xe3c   : > { %7783 = vmatmul.mubr.msk.f32.vlgmr.msra.gmra.mrb[62].mxu0 %vm1158_vm11, %v2753_v48 }
 0xe3d   : > { %7785 = vmatprep.mubr.msk.f32.mxu0 %vm8836_vm4, %v8835_v1  ;;  %7807 = vmatpush3.msra.mxu0 %v6852_v37 }
 0xe3e   : > { %8418 = vmatprep.subr.bf16.mxu0 %v8837_v62 }
 0xe40   : > { %7786 = vmatmul.mubr.msk.f32.gmra.mrb[64].mxu0 %vm1158_vm11, %v2758_v60 }
 0xe41   : > { %7788 = vmatprep.mubr.msk.f32.mxu0 %vm8836_vm4, %v8835_v1 }
 0xe44   : > { %7789 = vmatmul.mubr.msk.f32.gmra.mrb[66].mxu0 %vm1158_vm11, %v2763_v5 }
 0xe45   : > { %7808 = vmatprep.mubr.msk.f32.mxu0 %vm8836_vm4, %v8835_v1 }
 0xf0f   : > { %v3036_v9 = vpop.f32.mrb[62].mxu0 }
 0xf10   : > { %v3050_v10 = vmul.f32 0.35355338, %v3036_v9  ;;  %v7784_v0 = vpop.f32.mrb[63].mxu0 }
 0xf12   : > { %v3053_v11 = vsel %vm1260_vm14, %v3050_v10, -inf }
 0xf13   : > { %3054 = vmax.xlane.f32.xlu1 %v3053_v11  ;;  %v3041_v12 = vpop.f32.mrb[64].mxu0 }
 0xf14   : > { %v3051_v50 = vmul.f32 0.35355338, %v3041_v12  ;;  %v7787_v13 = vpop.f32.mrb[65].mxu0 }
 0xf16   : > { %v3056_v14 = vsel %vm1260_vm14, %v3051_v50, -inf }
 0xf17   : > { %3057 = vmax.xlane.f32.xlu0 %v3056_v14  ;;  %v3046_v15 = vpop.f32.mrb[66].mxu0 }
 0xf18   : > { %v3052_v16 = vmul.f32 0.35355338, %v3046_v15  ;;  %v7790_v17 = vpop.f32.mrb[67].mxu0 }
 0xf1a   : > { %v3059_v18 = vsel %vm1267_vm15, %v3052_v16, -inf }
 0xf1b   : > { %3060 = vmax.xlane.f32.xlu1 %v3059_v18 }
 0xfa0   : > { %v3055_v19 = vpop.xlane.xlu1 %3054 }
 0xfa1   : > { %v3062_v20 = vsub.f32 %v3050_v10, %v3055_v19 }
 0xfa3   : > { %v3065_v21 = vmul.f32 1.442695, %v3062_v20 }
 0xfa4   : > { %v3058_v22 = vpop.xlane.xlu0 %3057 }
 0xfa5   : > { %8674 = vpow2.f32 %v3065_v21  ;;  %v3063_v23 = vsub.f32 %v3051_v50, %v3058_v22 }
 0xfa7   : > { %v3067_v24 = vmul.f32 1.442695, %v3063_v23 }
 0xfa8   : > { %v3061_v25 = vpop.xlane.xlu1 %3060 }
 0xfa9   : > { %8676 = vpow2.f32 %v3067_v24  ;;  %v3064_v27 = vsub.f32 %v3052_v16, %v3061_v25 }
 0xfab   : > { %v3069_v28 = vmul.f32 1.442695, %v3064_v27  ;;  %v3346_v27 = vld [vmem:[%s10598_s10] sm:$0xff] }
 0xfad   : > { %8678 = vpow2.f32 %v3069_v28  ;;  %v3347_v28 = vld [vmem:[%s10598_s10 + $0x8] sm:$0xff] }
 0xfaf   : > { %v8675_v29 = vpop.eup %8674 }
 0xfb0   : > { %v3071_v30 = vsel %vm1260_vm14, %v8675_v29, 0.0 }
 0xfb1   : > { %3072 = vadd.xlane.f32.xlu0 %v3071_v30  ;;  %v3348_v30 = vld [vmem:[%s10598_s10 + $0x10] sm:$0xff] }
 0xfb3   : > { %v8677_v31 = vpop.eup %8676 }
 0xfb4   : > { %v3074_v32 = vsel %vm1260_vm14, %v8677_v31, 0.0 }
 0xfb5   : > { %3075 = vadd.xlane.f32.xlu1 %v3074_v32 }
 0xfb7   : > { %v8679_v36 = vpop.eup %8678 }
 0xfb8   : > { %v3077_v33 = vsel %vm1267_vm15, %v8679_v36, 0.0 }
 0xfb9   : > { %3078 = vadd.xlane.f32.xlu0 %v3077_v33  ;;  %v3474_v33 = vld [vmem:[%s10600_s12 + $0x8] sm:$0xff] }
0x103e   : > { %v3073_v38 = vpop.xlane.xlu0 %3072 }
0x103f   : > { %8680 = vrcp.f32 %v3073_v38 }
0x1042   : > { %v3076_v44 = vpop.xlane.xlu1 %3075 }
0x1043   : > { %8682 = vrcp.f32 %v3076_v44 }
0x1046   : > { %v3079_v41 = vpop.xlane.xlu0 %3078 }
0x1047   : > { %8684 = vrcp.f32 %v3079_v41 }
0x1049   : > { %v8681_v47 = vpop.eup %8680 }
0x104a   : > { %v3081_v52 = vmul.f32 %v8681_v47, %v8675_v29  ;;  %v8413_v29 = vpack.c.bf16 %v3347_v28, %v3346_v27 }
0x104c   : > { %7798 = vmatmul.mubr.msk.f32.vlgmr.msra.gmra.mrb[70].mxu1 %vm1260_vm14, %v3081_v52 }
0x104d   : > { %v8683_v54 = vpop.eup %8682  ;;  %7800 = vmatprep.mubr.msk.f32.mxu1 %vm8836_vm4, %v8835_v1  ;;  %8414 = vmatpush3.bf16.msra.mxu1 %v8413_v29 }
0x104e   : > { %v3083_v56 = vmul.f32 %v8683_v54, %v8677_v31  ;;  %8415 = vmatprep.subr.bf16.mxu1 %v8837_v62  ;;  %v3349_v31 = vld [vmem:[%s10598_s10 + $0x18] sm:$0xff] }
0x104f   : > { %v8416_v32 = vpack.c.bf16 %v3349_v31, %v3348_v30 }
0x1050   : > { %7801 = vmatmul.mubr.msk.f32.gmra.mrb[72].mxu1 %vm1260_vm14, %v3083_v56 }
0x1051   : > { %v8685_v57 = vpop.eup %8684  ;;  %7803 = vmatprep.mubr.msk.f32.mxu1 %vm8836_vm4, %v8835_v1  ;;  %8417 = vmatpush3.bf16.msra.mxu1 %v8416_v32 }
0x1052   : > { %v3085_v59 = vmul.f32 %v8685_v57, %v8679_v36  ;;  %8442 = vmatprep.subr.bf16.mxu1 %v8837_v62  ;;  %v3473_v36 = vld [vmem:[%s10600_s12] sm:$0xff] }
0x1053   : > { %v8419_v37 = vpack.c.bf16 %v3474_v33, %v3473_v36 }
0x1054   : > { %7804 = vmatmul.mubr.msk.f32.gmra.mrb[74].mxu1 %vm1260_vm14, %v3085_v59 }
0x1055   : > { %7825 = vmatprep.mubr.msk.f32.mxu1 %vm8836_vm4, %v8835_v1 }
0x111f   : > { %v3164_v61 = vpop.f32.mrb[70].mxu1 }
0x1120   : > { %v7799_v39 = vpop.f32.mrb[71].mxu1  ;;  %7809 = vmatmul.mubr.msk.f32.vlgmr.msra.gmra.mrb[68].mxu0 %vm1158_vm11, %v3164_v61 }
0x1121   : > { %7811 = vmatprep.mubr.msk.f32.mxu0 %vm8836_vm4, %v8835_v1  ;;  %8420 = vmatpush3.bf16.msra.mxu0 %v8419_v37  ;;  %v6859_v39 = vld [vmem:[%s10593_s5 + $0x2] ss:$0 sm:$0xff] }
0x1122   : > { %8421 = vmatprep.subr.bf16.mxu0 %v8837_v62 }
0x1123   : > { %v3169_v43 = vpop.f32.mrb[72].mxu1 }
0x1124   : > { %v7802_v45 = vpop.f32.mrb[73].mxu1  ;;  %7812 = vmatmul.mubr.msk.f32.gmra.mrb[70].mxu0 %vm1158_vm11, %v3169_v43 }
0x1125   : > { %7814 = vmatprep.mubr.msk.f32.mxu0 %vm8836_vm4, %v8835_v1  ;;  %v6860_v45 = vld [vmem:[%s10593_s5 + $0x3] ss:$0 sm:$0xff] }
0x1127   : > { %v3174_v35 = vpop.f32.mrb[74].mxu1 }
0x1128   : > { %v7805_v63 = vpop.f32.mrb[75].mxu1  ;;  %7815 = vmatmul.mubr.msk.f32.gmra.mrb[72].mxu0 %vm1158_vm11, %v3174_v35 }
0x1129   : > { %7866 = vmatprep.mubr.msk.f32.mxu0 %vm8836_vm4, %v8835_v1 }
0x11f3   : > { %v3255_v2 = vpop.f32.mrb[68].mxu0 }
0x11f4   : > { %v3269_v3 = vadd.f32 %v3255_v2, %v9593_v51  ;;  %v7810_v4 = vpop.f32.mrb[69].mxu0 }
0x11f6   : > { %v3272_v49 = vadd.f32 %v3269_v3, %v9033_v26 }
0x11f7   : > { %v3260_v46 = vpop.f32.mrb[70].mxu0 }
0x11f8   : > { %v9654_v48 = vadd.f32 %v6856_v42, %v3272_v49  ;;  %v3270_v60 = vadd.f32 %v3260_v46, %v9596_v55  ;;  %v7813_v5 = vpop.f32.mrb[71].mxu0 }
0x11fa   : > { %v3273_v9 = vadd.f32 %v3270_v60, %v9040_v34  ;;  %v3289_v10 = vsel %vm812_vm9, %v9654_v48, 0.0 }
0x11fb   : > { %3290 = vadd.xlane.f32.xlu1 %v3289_v10  ;;  %v3265_v51 = vpop.f32.mrb[72].mxu0  ;;  %v3476_v10 = vld [vmem:[%s10600_s12 + $0x18] sm:$0xff] }
0x11fc   : > { %v9660_v0 = vadd.f32 %v6856_v42, %v3273_v9  ;;  %v3271_v11 = vadd.f32 %v3265_v51, %v9599_v58  ;;  %v7816_v12 = vpop.f32.mrb[73].mxu0  ;;  %v3475_v9 = vld [vmem:[%s10600_s12 + $0x10] sm:$0xff] }
0x11fd   : > { %v8422_v51 = vpack.c.bf16 %v3476_v10, %v3475_v9  ;;  %v3478_v12 = vld [vmem:[%s10600_s12 + $0x28] sm:$0xff] }
0x11fe   : > { %v3274_v26 = vadd.f32 %v3271_v11, %v9047_v40  ;;  %v3292_v50 = vsel %vm812_vm9, %v9660_v0, 0.0  ;;  %v3477_v11 = vld [vmem:[%s10600_s12 + $0x20] sm:$0xff] }
0x11ff   : > { %3293 = vadd.xlane.f32.xlu0 %v3292_v50  ;;  %8423 = vmatpush3.bf16.msra.mxu0 %v8422_v51  ;;  %v3479_v50 = vld [vmem:[%s10600_s12 + $0x30] sm:$0xff] }
0x1200   : > { %v9666_v55 = vadd.f32 %v6856_v42, %v3274_v26  ;;  %8424 = vmatprep.subr.bf16.mxu0 %v8837_v62  ;;  %v8425_v26 = vpack.c.bf16 %v3478_v12, %v3477_v11  ;;  %v6865_v11 = vld [vmem:[%s10601_s13] ss:$0 sm:$0xff] }
0x1202   : > { %v3295_v34 = vsel %vm819_vm10, %v9666_v55, 0.0 }
0x1203   : > { %3296 = vadd.xlane.f32.xlu1 %v3295_v34  ;;  %8426 = vmatpush3.bf16.msra.mxu0 %v8425_v26  ;;  %v3480_v34 = vld [vmem:[%s10600_s12 + $0x38] sm:$0xff] }
0x1204   : > { %8427 = vmatprep.subr.bf16.mxu0 %v8837_v62 }
0x1288   : > { %v3291_v13 = vpop.xlane.xlu1 %3290 }
0x1289   : > { %v3298_v14 = vmul.f32 0.03125, %v3291_v13  ;;  %v8428_v13 = vpack.c.bf16 %v3480_v34, %v3479_v50 }
0x128b   : > { %v3301_v15 = vsub.f32 %v9654_v48, %v3298_v14  ;;  %8429 = vmatpush3.bf16.msra.mxu0 %v8428_v13  ;;  %v3481_v14 = vld [vmem:[%s10600_s12 + $0x40] sm:$0xff] }
0x128c   : > { %v3294_v16 = vpop.xlane.xlu0 %3293  ;;  %8430 = vmatprep.subr.bf16.mxu0 %v8837_v62 }
0x128d   : > { %v3299_v17 = vmul.f32 0.03125, %v3294_v16  ;;  %v3304_v58 = vmul.f32 %v3301_v15, %v3301_v15 }
0x128f   : > { %v3302_v18 = vsub.f32 %v9660_v0, %v3299_v17  ;;  %v3307_v40 = vsel %vm812_vm9, %v3304_v58, 0.0  ;;  %v3483_v17 = vld [vmem:[%s10600_s12 + $0x50] sm:$0xff]  ;;  %v3484_v58 = vld [vmem:[%s10600_s12 + $0x58] sm:$0xff] }
0x1290   : > { %3308 = vadd.xlane.f32.xlu0 %v3307_v40  ;;  %v3297_v19 = vpop.xlane.xlu1 %3296  ;;  %v3485_v40 = vld [vmem:[%s10600_s12 + $0x60] sm:$0xff] }
0x1291   : > { %v3300_v20 = vmul.f32 0.03125, %v3297_v19  ;;  %v3305_v21 = vmul.f32 %v3302_v18, %v3302_v18  ;;  %v3486_v19 = vld [vmem:[%s10600_s12 + $0x68] sm:$0xff] }
0x1293   : > { %v3303_v22 = vsub.f32 %v9666_v55, %v3300_v20  ;;  %v3310_v23 = vsel %vm812_vm9, %v3305_v21, 0.0  ;;  %v8437_v20 = vpack.c.bf16 %v3486_v19, %v3485_v40  ;;  %v3487_v21 = vld [vmem:[%s10600_s12 + $0x70] sm:$0xff] }
0x1294   : > { %3311 = vadd.xlane.f32.xlu1 %v3310_v23 }
0x1295   : > { %v3306_v24 = vmul.f32 %v3303_v22, %v3303_v22 }
0x1297   : > { %v3313_v25 = vsel %vm819_vm10, %v3306_v24, 0.0  ;;  %v6861_v24 = vld [vmem:[%s10599_s11] ss:$0 sm:$0xff] }
0x1298   : > { %3314 = vadd.xlane.f32.xlu0 %v3313_v25 }
0x131d   : > { %v3309_v38 = vpop.xlane.xlu0 %3308 }
0x131e   : > { %v3316_v44 = vmul.f32 0.03125, %v3309_v38 }
0x1320   : > { %v3319_v41 = vadd.f32 1e-05, %v3316_v44 }
0x1321   : > { %v3312_v47 = vpop.xlane.xlu1 %3311 }
0x1322   : > { %8686 = vrsqrt.f32 %v3319_v41  ;;  %v3317_v52 = vmul.f32 0.03125, %v3312_v47 }
0x1324   : > { %v3320_v54 = vadd.f32 1e-05, %v3317_v52 }
0x1325   : > { %v3315_v56 = vpop.xlane.xlu0 %3314 }
0x1326   : > { %8688 = vrsqrt.f32 %v3320_v54  ;;  %v3318_v57 = vmul.f32 0.03125, %v3315_v56 }
0x1328   : > { %v3321_v59 = vadd.f32 1e-05, %v3318_v57 }
0x132a   : > { %8690 = vrsqrt.f32 %v3321_v59 }
0x132c   : > { %v8687_v61 = vpop.eup %8686 }
0x132d   : > { %v3325_v43 = vmul.f32 %v8687_v61, %v3301_v15  ;;  %v3482_v15 = vld [vmem:[%s10600_s12 + $0x48] sm:$0xff] }
0x132e   : > { %v8431_v16 = vpack.c.bf16 %v3482_v15, %v3481_v14 }
0x132f   : > { %v3334_v35 = vmul.f32 %v6859_v39, %v3325_v43 }
0x1330   : > { %v8689_v63 = vpop.eup %8688  ;;  %8432 = vmatpush3.bf16.msra.mxu0 %v8431_v16 }
0x1331   : > { %v3343_v2 = vadd.f32 %v6860_v45, %v3334_v35  ;;  %v3326_v3 = vmul.f32 %v8689_v63, %v3302_v18  ;;  %8433 = vmatprep.subr.bf16.mxu0 %v8837_v62  ;;  %v8434_v18 = vpack.c.bf16 %v3484_v58, %v3483_v17 }
0x1333   : > { %7826 = vmatmul.mubr.msk.f32.vlgmr.msra.gmra.mrb[76].mxu1 %vm812_vm9, %v3343_v2  ;;  %v3335_v4 = vmul.f32 %v6859_v39, %v3326_v3 }
0x1334   : > { %v8691_v42 = vpop.eup %8690  ;;  %7828 = vmatprep.mubr.msk.f32.mxu1 %vm8836_vm4, %v8835_v1  ;;  %8435 = vmatpush3.bf16.msra.mxu0 %v8434_v18 }
0x1335   : > { %v3344_v49 = vadd.f32 %v6860_v45, %v3335_v4  ;;  %v3327_v46 = vmul.f32 %v8691_v42, %v3303_v22  ;;  %8436 = vmatprep.subr.bf16.mxu0 %v8837_v62  ;;  %v3488_v22 = vld [vmem:[%s10600_s12 + $0x78] sm:$0xff] }
0x1336   : > { %v8440_v23 = vpack.c.bf16 %v3488_v22, %v3487_v21 }
0x1337   : > { %7829 = vmatmul.mubr.msk.f32.gmra.mrb[78].mxu1 %vm812_vm9, %v3344_v49  ;;  %v3336_v60 = vmul.f32 %v6859_v39, %v3327_v46 }
0x1338   : > { %7831 = vmatprep.mubr.msk.f32.mxu1 %vm8836_vm4, %v8835_v1  ;;  %8438 = vmatpush3.bf16.msra.mxu0 %v8437_v20 }
0x1339   : > { %v3345_v5 = vadd.f32 %v6860_v45, %v3336_v60  ;;  %8439 = vmatprep.subr.bf16.mxu0 %v8837_v62 }
0x133b   : > { %7832 = vmatmul.mubr.msk.f32.gmra.mrb[80].mxu1 %vm812_vm9, %v3345_v5 }
0x133c   : > { %7883 = vmatprep.mubr.msk.f32.mxu1 %vm8836_vm4, %v8835_v1  ;;  %8441 = vmatpush3.bf16.msra.mxu0 %v8440_v23 }
0x133d   : > { %8460 = vmatprep.subr.bf16.mxu0 %v8837_v62 }
0x1406   : > { %v3432_v25 = vpop.f32.mrb[76].mxu1 }
0x1407   : > { %v3433_v27 = vadd.f32 %v6861_v24, %v3432_v25  ;;  %v7827_v28 = vpop.f32.mrb[77].mxu1 }
0x1409   : > { %v3449_v29 = vmul.f32 0.044715, %v3433_v27  ;;  %v3446_v2 = vmul.f32 0.5, %v3433_v27 }
0x140a   : > { %v3437_v30 = vpop.f32.mrb[78].mxu1 }
0x140b   : > { %v3452_v31 = vmul.f32 %v3449_v29, %v3433_v27  ;;  %v3438_v32 = vadd.f32 %v6861_v24, %v3437_v30  ;;  %v7830_v36 = vpop.f32.mrb[79].mxu1 }
0x140d   : > { %v3455_v33 = vmul.f32 %v3452_v31, %v3433_v27  ;;  %v3450_v37 = vmul.f32 0.044715, %v3438_v32  ;;  %v3447_v49 = vmul.f32 0.5, %v3438_v32 }
0x140e   : > { %v3442_v38 = vpop.f32.mrb[80].mxu1 }
0x140f   : > { %v3458_v44 = vadd.f32 %v3455_v33, %v3433_v27  ;;  %v3453_v41 = vmul.f32 %v3450_v37, %v3438_v32  ;;  %v3443_v47 = vadd.f32 %v6861_v24, %v3442_v38  ;;  %v7833_v52 = vpop.f32.mrb[81].mxu1  ;;  %v6870_v37 = vld [vmem:[%s10594_s6 + $0x180] sm:$0xff]  ;;  %v6871_v38 = vld [vmem:[%s10594_s6 + $0x188] sm:$0xff] }
0x1411   : > { %v3461_v54 = vmul.f32 0.7978846, %v3458_v44  ;;  %v3451_v56 = vmul.f32 0.044715, %v3443_v47  ;;  %v3456_v57 = vmul.f32 %v3453_v41, %v3438_v32  ;;  %v3448_v9 = vmul.f32 0.5, %v3443_v47  ;;  %v6872_v41 = vld [vmem:[%s10594_s6 + $0x190] sm:$0xff] }
0x1412   : > { %v8443_v44 = vpack.c.bf16 %v6871_v38, %v6870_v37 }
0x1413   : > { %8692 = vtanh.f32 %v3461_v54  ;;  %v3454_v59 = vmul.f32 %v3451_v56, %v3443_v47  ;;  %v3459_v61 = vadd.f32 %v3456_v57, %v3438_v32 }
0x1414   : > { %8444 = vmatpush3.bf16.msra.mxu1 %v8443_v44 }
0x1415   : > { %v3462_v39 = vmul.f32 0.7978846, %v3459_v61  ;;  %v3457_v43 = vmul.f32 %v3454_v59, %v3443_v47  ;;  %8445 = vmatprep.subr.bf16.mxu1 %v8837_v62 }
0x1417   : > { %8694 = vtanh.f32 %v3462_v39  ;;  %v3460_v45 = vadd.f32 %v3457_v43, %v3443_v47  ;;  %v6873_v47 = vld [vmem:[%s10594_s6 + $0x198] sm:$0xff] }
0x1418   : > { %v8446_v52 = vpack.c.bf16 %v6873_v47, %v6872_v41  ;;  %v6893_v47 = vld [vmem:[%s10595_s7 + $0x14] ss:$0 sm:$0xff] }
0x1419   : > { %v3463_v35 = vmul.f32 0.7978846, %v3460_v45 }
0x141a   : > { %8447 = vmatpush3.bf16.msra.mxu1 %v8446_v52  ;;  %v6875_v52 = vld [vmem:[%s10595_s7 + $0xc] ss:$0 sm:$0xff] }
0x141b   : > { %8696 = vtanh.f32 %v3463_v35  ;;  %8448 = vmatprep.subr.bf16.mxu1 %v8837_v62 }
0x141d   : > { %v8693_v63 = vpop.eup %8692 }
0x141e   : > { %v3467_v3 = vadd.f32 1.0, %v8693_v63 }
0x1420   : > { %v3470_v4 = vmul.f32 %v3467_v3, %v3446_v2  ;;  %v6868_v2 = vld [vmem:[%s10593_s5 + $0x4] ss:$0 sm:$0xff] }
0x1421   : > { %v8695_v42 = vpop.eup %8694 }
0x1422   : > { %7867 = vmatmul.mubr.f32.vlgmr.msra.gmra.mrb[74].mxu0 %v3470_v4  ;;  %v3468_v46 = vadd.f32 1.0, %v8695_v42  ;;  %v6879_v4 = vld [vmem:[%s10594_s6 + $0x200] sm:$0xff]  ;;  %v6880_v42 = vld [vmem:[%s10594_s6 + $0x208] sm:$0xff] }
0x1423   : > { %7869 = vmatprep.mubr.msk.f32.mxu0 %vm8836_vm4, %v8835_v1 }
0x1424   : > { %v3471_v60 = vmul.f32 %v3468_v46, %v3447_v49  ;;  %v6869_v49 = vld [vmem:[%s10593_s5 + $0x5] ss:$0 sm:$0xff] }
0x1425   : > { %v8697_v5 = vpop.eup %8696 }
0x1426   : > { %7870 = vmatmul.mubr.f32.gmra.mrb[76].mxu0 %v3471_v60  ;;  %v3469_v10 = vadd.f32 1.0, %v8697_v5  ;;  %v8449_v5 = vpack.c.bf16 %v6880_v42, %v6879_v4 }
0x1427   : > { %7872 = vmatprep.mubr.msk.f32.mxu0 %vm8836_vm4, %v8835_v1 }
0x1428   : > { %v3472_v51 = vmul.f32 %v3469_v10, %v3448_v9 }
0x142a   : > { %7873 = vmatmul.mubr.f32.gmra.mrb[78].mxu0 %v3472_v51  ;;  %v6881_v51 = vld [vmem:[%s10594_s6 + $0x210] sm:$0xff] }
0x142b   : > { %7932 = vmatprep.mubr.msk.f32.mxu0 %vm8836_vm4, %v8835_v1 }
0x14f5   : > { %v3562_v12 = vpop.f32.mrb[74].mxu0 }
0x14f6   : > { %v3563_v26 = vadd.f32 %v6865_v11, %v3562_v12  ;;  %v7868_v50 = vpop.f32.mrb[75].mxu0 }
0x14f8   : > { %v9774_v34 = vadd.f32 %v3563_v26, %v9654_v48 }
0x14f9   : > { %v3567_v13 = vpop.f32.mrb[76].mxu0 }
0x14fa   : > { %v3568_v14 = vadd.f32 %v6865_v11, %v3567_v13  ;;  %v7871_v15 = vpop.f32.mrb[77].mxu0  ;;  %v3583_v16 = vsel %vm812_vm9, %v9774_v34, 0.0 }
0x14fb   : > { %3584 = vadd.xlane.f32.xlu1 %v3583_v16 }
0x14fc   : > { %v9779_v17 = vadd.f32 %v3568_v14, %v9660_v0 }
0x14fd   : > { %v3572_v58 = vpop.f32.mrb[78].mxu0 }
0x14fe   : > { %v3573_v18 = vadd.f32 %v6865_v11, %v3572_v58  ;;  %v7874_v40 = vpop.f32.mrb[79].mxu0  ;;  %v3586_v19 = vsel %vm812_vm9, %v9779_v17, 0.0  ;;  %v6882_v11 = vld [vmem:[%s10594_s6 + $0x218] sm:$0xff]  ;;  %v6888_v58 = vld [vmem:[%s10594_s6 + $0x280] sm:$0xff] }
0x14ff   : > { %3587 = vadd.xlane.f32.xlu0 %v3586_v19  ;;  %v8452_v50 = vpack.c.bf16 %v6882_v11, %v6881_v51  ;;  %v6890_v19 = vld [vmem:[%s10594_s6 + $0x290] sm:$0xff]  ;;  %v6927_v51 = vld [vmem:[%s10594_s6 + $0x2a8] sm:$0xff] }
0x1500   : > { %v9784_v48 = vadd.f32 %v3573_v18, %v9666_v55  ;;  %v6889_v18 = vld [vmem:[%s10594_s6 + $0x288] sm:$0xff] }
0x1501   : > { %v8455_v40 = vpack.c.bf16 %v6889_v18, %v6888_v58 }
0x1502   : > { %v3589_v20 = vsel %vm819_vm10, %v9784_v48, 0.0 }
0x1503   : > { %3590 = vadd.xlane.f32.xlu1 %v3589_v20  ;;  %v6891_v20 = vld [vmem:[%s10594_s6 + $0x298] sm:$0xff] }
0x1588   : > { %v3585_v21 = vpop.xlane.xlu1 %3584 }
0x1589   : > { %v3592_v22 = vmul.f32 0.03125, %v3585_v21  ;;  %v8458_v21 = vpack.c.bf16 %v6891_v20, %v6890_v19 }
0x158b   : > { %v3595_v23 = vsub.f32 %v9774_v34, %v3592_v22 }
0x158c   : > { %v3588_v0 = vpop.xlane.xlu0 %3587 }
0x158d   : > { %v3593_v24 = vmul.f32 0.03125, %v3588_v0  ;;  %v3598_v25 = vmul.f32 %v3595_v23, %v3595_v23 }
0x158f   : > { %v3596_v27 = vsub.f32 %v9779_v17, %v3593_v24  ;;  %v3601_v28 = vsel %vm812_vm9, %v3598_v25, 0.0 }
0x1590   : > { %3602 = vadd.xlane.f32.xlu0 %v3601_v28  ;;  %v3591_v29 = vpop.xlane.xlu1 %3590 }
0x1591   : > { %v3594_v30 = vmul.f32 0.03125, %v3591_v29  ;;  %v3599_v55 = vmul.f32 %v3596_v27, %v3596_v27 }
0x1593   : > { %v3597_v31 = vsub.f32 %v9784_v48, %v3594_v30  ;;  %v3604_v32 = vsel %vm812_vm9, %v3599_v55, 0.0  ;;  %v6884_v30 = vld [vmem:[%s10595_s7 + $0x10] ss:$0 sm:$0xff] }
0x1594   : > { %3605 = vadd.xlane.f32.xlu1 %v3604_v32 }
0x1595   : > { %v3600_v36 = vmul.f32 %v3597_v31, %v3597_v31 }
0x1597   : > { %v3607_v33 = vsel %vm819_vm10, %v3600_v36, 0.0 }
0x1598   : > { %3608 = vadd.xlane.f32.xlu0 %v3607_v33 }
0x161d   : > { %v3603_v54 = vpop.xlane.xlu0 %3602 }
0x161e   : > { %v3610_v56 = vmul.f32 0.03125, %v3603_v54 }
0x1620   : > { %v3613_v57 = vadd.f32 1e-05, %v3610_v56  ;;  %v6908_v56 = vld [vmem:[%s10594_s6 + $0x1a0] sm:$0xff] }
0x1621   : > { %v3606_v59 = vpop.xlane.xlu1 %3605 }
0x1622   : > { %8698 = vrsqrt.f32 %v3613_v57  ;;  %v3611_v61 = vmul.f32 0.03125, %v3606_v59  ;;  %v6909_v57 = vld [vmem:[%s10594_s6 + $0x1a8] sm:$0xff] }
0x1624   : > { %v3614_v39 = vadd.f32 1e-05, %v3611_v61 }
0x1625   : > { %v3609_v43 = vpop.xlane.xlu0 %3608 }
0x1626   : > { %8700 = vrsqrt.f32 %v3614_v39  ;;  %v3612_v45 = vmul.f32 0.03125, %v3609_v43 }
0x1628   : > { %v3615_v35 = vadd.f32 1e-05, %v3612_v45 }
0x162a   : > { %8702 = vrsqrt.f32 %v3615_v35  ;;  %v8468_v35 = vpack.c.bf16 %v6909_v57, %v6908_v56 }
0x162c   : > { %v8699_v63 = vpop.eup %8698 }
0x162d   : > { %v3619_v3 = vmul.f32 %v8699_v63, %v3595_v23 }
0x162f   : > { %v3628_v46 = vmul.f32 %v6868_v2, %v3619_v3  ;;  %v6911_v3 = vld [vmem:[%s10594_s6 + $0x1b8] sm:$0xff] }
0x1630   : > { %v8701_v60 = vpop.eup %8700 }
0x1631   : > { %v9820_v9 = vadd.f32 %v6869_v49, %v3628_v46  ;;  %v3620_v10 = vmul.f32 %v8701_v60, %v3596_v27 }
0x1633   : > { %v3629_v12 = vmul.f32 %v6868_v2, %v3620_v10  ;;  %7884 = vmatmul.mubr.msk.f32.vlgmr.msra.gmra.mrb[82].mxu1 %vm812_vm9, %v9820_v9  ;;  %v6926_v10 = vld [vmem:[%s10594_s6 + $0x2a0] sm:$0xff] }
0x1634   : > { %v8703_v26 = vpop.eup %8702  ;;  %7886 = vmatprep.mubr.msk.f32.mxu1 %vm8836_vm4, %v8835_v1  ;;  %8450 = vmatpush3.bf16.msra.mxu1 %v8449_v5  ;;  %v8480_v11 = vpack.c.bf16 %v6927_v51, %v6926_v10  ;;  %v6917_v51 = vld [vmem:[%s10594_s6 + $0x220] sm:$0xff] }
0x1635   : > { %v9832_v13 = vadd.f32 %v6869_v49, %v3629_v12  ;;  %v3621_v14 = vmul.f32 %v8703_v26, %v3597_v31  ;;  %8451 = vmatprep.subr.bf16.mxu1 %v8837_v62  ;;  %v6928_v12 = vld [vmem:[%s10594_s6 + $0x2b0] sm:$0xff]  ;;  %v6929_v26 = vld [vmem:[%s10594_s6 + $0x2b8] sm:$0xff] }
0x1637   : > { %v3630_v15 = vmul.f32 %v6868_v2, %v3621_v14  ;;  %7887 = vmatmul.mubr.msk.f32.gmra.mrb[84].mxu1 %vm812_vm9, %v9832_v13  ;;  %v6910_v2 = vld [vmem:[%s10594_s6 + $0x1b0] sm:$0xff] }
0x1638   : > { %7889 = vmatprep.mubr.msk.f32.mxu1 %vm8836_vm4, %v8835_v1  ;;  %8453 = vmatpush3.bf16.msra.mxu1 %v8452_v50  ;;  %v8471_v46 = vpack.c.bf16 %v6911_v3, %v6910_v2  ;;  %v8483_v50 = vpack.c.bf16 %v6929_v26, %v6928_v12 }
0x1639   : > { %v9839_v16 = vadd.f32 %v6869_v49, %v3630_v15  ;;  %8454 = vmatprep.subr.bf16.mxu1 %v8837_v62 }
0x163b   : > { %7890 = vmatmul.mubr.msk.f32.gmra.mrb[86].mxu1 %vm812_vm9, %v9839_v16 }
0x163c   : > { %7900 = vmatprep.mubr.msk.f32.mxu1 %vm8836_vm4, %v8835_v1 }
0x163f   : > { %7901 = vmatmul.mubr.msk.f32.vlgmr.msra.gmra.mrb[88].mxu1 %vm812_vm9, %v9820_v9 }
0x1640   : > { %7903 = vmatprep.mubr.msk.f32.mxu1 %vm8836_vm4, %v8835_v1  ;;  %8456 = vmatpush3.bf16.msra.mxu1 %v8455_v40 }
0x1641   : > { %8457 = vmatprep.subr.bf16.mxu1 %v8837_v62 }
0x1643   : > { %7904 = vmatmul.mubr.msk.f32.gmra.mrb[90].mxu1 %vm812_vm9, %v9832_v13 }
0x1644   : > { %7906 = vmatprep.mubr.msk.f32.mxu1 %vm8836_vm4, %v8835_v1  ;;  %8459 = vmatpush3.bf16.msra.mxu1 %v8458_v21 }
0x1645   : > { %8464 = vmatprep.subr.bf16.mxu1 %v8837_v62 }
0x1647   : > { %7907 = vmatmul.mubr.msk.f32.gmra.mrb[92].mxu1 %vm812_vm9, %v9839_v16 }
0x1648   : > { %7917 = vmatprep.mubr.msk.f32.mxu1 %vm8836_vm4, %v8835_v1 }
0x164b   : > { %7918 = vmatmul.mubr.msk.f32.vlgmr.msra.gmra.mrb[94].mxu1 %vm812_vm9, %v9820_v9 }
0x164c   : > { %7920 = vmatprep.mubr.msk.f32.mxu1 %vm8836_vm4, %v8835_v1 }
0x164f   : > { %7921 = vmatmul.mubr.msk.f32.gmra.mrb[96].mxu1 %vm812_vm9, %v9832_v13 }
0x1650   : > { %7923 = vmatprep.mubr.msk.f32.mxu1 %vm8836_vm4, %v8835_v1 }
0x1653   : > { %7924 = vmatmul.mubr.msk.f32.gmra.mrb[98].mxu1 %vm812_vm9, %v9839_v16 }
0x1654   : > { %7947 = vmatprep.mubr.msk.f32.mxu1 %vm8836_vm4, %v8835_v1 }
0x1706   : > { %v3728_v22 = vpop.f32.mrb[82].mxu1 }
0x1707   : > { %v7885_v23 = vpop.f32.mrb[83].mxu1  ;;  %v3729_v45 = vadd.f32 %v6875_v52, %v3728_v22 }
0x170a   : > { %v3733_v0 = vpop.f32.mrb[84].mxu1 }
0x170b   : > { %v7888_v24 = vpop.f32.mrb[85].mxu1  ;;  %v3734_v49 = vadd.f32 %v6875_v52, %v3733_v0 }
0x170e   : > { %v3738_v25 = vpop.f32.mrb[86].mxu1 }
0x170f   : > { %v7891_v27 = vpop.f32.mrb[87].mxu1  ;;  %v3739_v5 = vadd.f32 %v6875_v52, %v3738_v25 }
0x1712   : > { %v3821_v28 = vpop.f32.mrb[88].mxu1 }
0x1713   : > { %v7902_v29 = vpop.f32.mrb[89].mxu1  ;;  %v3822_v31 = vadd.f32 %v6884_v30, %v3821_v28 }
0x1716   : > { %v3826_v55 = vpop.f32.mrb[90].mxu1 }
0x1717   : > { %v3827_v32 = vadd.f32 %v6884_v30, %v3826_v55  ;;  %v7905_v36 = vpop.f32.mrb[91].mxu1 }
0x1718   : > { %v6931_v36 = vld [vmem:[%s10595_s7 + $0x15] ss:$0 sm:$0xff] }
0x1719   : > { %v8461_v33 = vpack.c.bf16 %v3827_v32, %v3822_v31 }
0x171a   : > { %v3831_v37 = vpop.f32.mrb[92].mxu1 }
0x171b   : > { %v7908_v38 = vpop.f32.mrb[93].mxu1  ;;  %8463 = vmatpush3.bf16.xpose.msk.msra.mxu0 %vm9154_vm12, %v8461_v33  ;;  %v3832_v54 = vadd.f32 %v6884_v30, %v3831_v37 }
0x171c   : > { %7930 = vmatprep.subr.mxu0 %v8835_v1 }
0x171e   : > { %v3914_v44 = vpop.f32.mrb[94].mxu1 }
0x171f   : > { %v7919_v41 = vpop.f32.mrb[95].mxu1  ;;  %v3915_v61 = vadd.f32 %v6893_v47, %v3914_v44 }
0x1722   : > { %v3919_v59 = vpop.f32.mrb[96].mxu1 }
0x1723   : > { %v3920_v39 = vadd.f32 %v6893_v47, %v3919_v59  ;;  %v7922_v43 = vpop.f32.mrb[97].mxu1  ;;  %7931 = vmatpush3.xpose.msk.msra.mxu0 %vm1158_vm11, %v3832_v54 }
0x1724   : > { %8467 = vmatprep.subr.bf16.mxu0 %v8837_v62 }
0x1725   : > { %v8465_v63 = vpack.c.bf16 %v3920_v39, %v3915_v61 }
0x1726   : > { %v3924_v4 = vpop.f32.mrb[98].mxu1  ;;  %7933 = vmatmul.mubr.msk.f32.vlgmr.msra.gmra.mrb[80].mxu0 %vm1158_vm11, %v3729_v45 }
0x1727   : > { %v7925_v42 = vpop.f32.mrb[99].mxu1  ;;  %8466 = vmatpush3.bf16.msra.mxu1 %v8465_v63  ;;  %7935 = vmatprep.mubr.msk.f32.mxu0 %vm8836_vm4, %v8835_v1  ;;  %v3925_v60 = vadd.f32 %v6893_v47, %v3924_v4 }
0x1728   : > { %7945 = vmatprep.subr.mxu1 %v8835_v1  ;;  %8469 = vmatpush3.bf16.msra.mxu0 %v8468_v35 }
0x1729   : > { %8470 = vmatprep.subr.bf16.mxu0 %v8837_v62 }
0x172a   : > { %7936 = vmatmul.mubr.msk.f32.gmra.mrb[82].mxu0 %vm1158_vm11, %v3734_v49 }
0x172b   : > { %7946 = vmatpush3.msk.msra.mxu1 %vm1304_vm13, %v3925_v60  ;;  %7938 = vmatprep.mubr.msk.f32.mxu0 %vm8836_vm4, %v8835_v1 }
0x172c   : > { %8472 = vmatpush3.bf16.msra.mxu0 %v8471_v46  ;;  %8473 = vmatprep.subr.bf16.mxu1 %v8837_v62 }
0x172d   : > { %8479 = vmatprep.subr.bf16.mxu0 %v8837_v62 }
0x172e   : > { %7939 = vmatmul.mubr.msk.f32.gmra.mrb[84].mxu0 %vm1158_vm11, %v3739_v5 }
0x172f   : > { %7964 = vmatprep.mubr.msk.f32.mxu0 %vm8836_vm4, %v8835_v1 }
0x1732   : > { %7965 = vmatmul.mubr.msk.f32.vlgmr.msra.gmra.mrb[86].mxu0 %vm812_vm9, %v9820_v9 }
0x1733   : > { %7967 = vmatprep.mubr.msk.f32.mxu0 %vm8836_vm4, %v8835_v1  ;;  %8481 = vmatpush3.bf16.msra.mxu0 %v8480_v11  ;;  %v6918_v11 = vld [vmem:[%s10594_s6 + $0x228] sm:$0xff] }
0x1734   : > { %8482 = vmatprep.subr.bf16.mxu0 %v8837_v62  ;;  %v8474_v26 = vpack.c.bf16 %v6918_v11, %v6917_v51 }
0x1736   : > { %7968 = vmatmul.mubr.msk.f32.gmra.mrb[88].mxu0 %vm812_vm9, %v9832_v13 }
0x1737   : > { %7970 = vmatprep.mubr.msk.f32.mxu0 %vm8836_vm4, %v8835_v1  ;;  %8484 = vmatpush3.bf16.msra.mxu0 %v8483_v50 }
0x1738   : > { %8489 = vmatprep.subr.bf16.mxu0 %v8837_v62 }
0x173a   : > { %7971 = vmatmul.mubr.msk.f32.gmra.mrb[90].mxu0 %vm812_vm9, %v9839_v16 }
0x173b   : > { %7998 = vmatprep.mubr.msk.f32.mxu0 %vm8836_vm4, %v8835_v1 }
0x173e   : > { %7999 = vmatmul.mubr.msk.f32.vlgmr.msra.gmra.mrb[92].mxu0 %vm812_vm9, %v9820_v9 }
0x173f   : > { %8001 = vmatprep.mubr.msk.f32.mxu0 %vm8836_vm4, %v8835_v1 }
0x1742   : > { %8002 = vmatmul.mubr.msk.f32.gmra.mrb[94].mxu0 %vm812_vm9, %v9832_v13 }
0x1743   : > { %8004 = vmatprep.mubr.msk.f32.mxu0 %vm8836_vm4, %v8835_v1 }
0x1746   : > { %8005 = vmatmul.mubr.msk.f32.gmra.mrb[96].mxu0 %vm812_vm9, %v9839_v16 }
0x1747   : > { %8028 = vmatprep.mubr.msk.f32.mxu0 %vm8836_vm4, %v8835_v1 }
0x17f9   : > { %v4012_v14 = vpop.f32.mrb[80].mxu0 }
0x17fa   : > { %v4026_v15 = vmul.f32 0.35355338, %v4012_v14  ;;  %v7934_v58 = vpop.f32.mrb[81].mxu0  ;;  %v6919_v14 = vld [vmem:[%s10594_s6 + $0x230] sm:$0xff] }
0x17fc   : > { %v4029_v18 = vsel %vm1260_vm14, %v4026_v15, -inf }
0x17fd   : > { %4030 = vmax.xlane.f32.xlu1 %v4029_v18  ;;  %v4017_v40 = vpop.f32.mrb[82].mxu0 }
0x17fe   : > { %v4027_v19 = vmul.f32 0.35355338, %v4017_v40  ;;  %v7937_v20 = vpop.f32.mrb[83].mxu0 }
0x1800   : > { %v4032_v21 = vsel %vm1260_vm14, %v4027_v19, -inf }
0x1801   : > { %4033 = vmax.xlane.f32.xlu0 %v4032_v21  ;;  %v4022_v22 = vpop.f32.mrb[84].mxu0 }
0x1802   : > { %v4028_v23 = vmul.f32 0.35355338, %v4022_v22  ;;  %v7940_v0 = vpop.f32.mrb[85].mxu0 }
0x1804   : > { %v4035_v24 = vsel %vm1267_vm15, %v4028_v23, -inf }
0x1805   : > { %4036 = vmax.xlane.f32.xlu1 %v4035_v24  ;;  %v9965_v25 = vpop.f32.mrb[86].mxu0 }
0x1806   : > { %v7966_v27 = vpop.f32.mrb[87].mxu0 }
0x1809   : > { %v9967_v28 = vpop.f32.mrb[88].mxu0 }
0x180a   : > { %v7969_v29 = vpop.f32.mrb[89].mxu0 }
0x180d   : > { %v9969_v30 = vpop.f32.mrb[90].mxu0 }
0x180e   : > { %v7972_v55 = vpop.f32.mrb[91].mxu0 }
0x1811   : > { %v4421_v31 = vpop.f32.mrb[92].mxu0 }
0x1812   : > { %v8000_v32 = vpop.f32.mrb[93].mxu0  ;;  %v4422_v37 = vadd.f32 %v6931_v36, %v4421_v31  ;;  %v6922_v31 = vld [vmem:[%s10595_s7 + $0x11] ss:$0 sm:$0xff] }
0x1815   : > { %v4426_v33 = vpop.f32.mrb[94].mxu0 }
0x1816   : > { %v4427_v38 = vadd.f32 %v6931_v36, %v4426_v33  ;;  %v8003_v44 = vpop.f32.mrb[95].mxu0 }
0x1818   : > { %v8490_v41 = vpack.c.bf16 %v4427_v38, %v4422_v37 }
0x1819   : > { %v4431_v47 = vpop.f32.mrb[96].mxu0 }
0x181a   : > { %v8006_v52 = vpop.f32.mrb[97].mxu0  ;;  %8491 = vmatpush3.bf16.msra.mxu0 %v8490_v41  ;;  %v4432_v54 = vadd.f32 %v6931_v36, %v4431_v47  ;;  %v6913_v47 = vld [vmem:[%s10595_s7 + $0xd] ss:$0 sm:$0xff] }
0x181b   : > { %8026 = vmatprep.subr.mxu0 %v8835_v1 }
0x181e   : > { %8027 = vmatpush3.msk.msra.mxu0 %vm1304_vm13, %v4432_v54  ;;  %v4236_v54 = vadd.f32 %v6913_v47, %v9965_v25 }
0x181f   : > { %8048 = vmatprep.subr.mxu0 %v8835_v1 }
0x188a   : > { %v4031_v56 = vpop.xlane.xlu1 %4030 }
0x188b   : > { %v4038_v57 = vsub.f32 %v4026_v15, %v4031_v56  ;;  %v6920_v15 = vld [vmem:[%s10594_s6 + $0x238] sm:$0xff]  ;;  %v4241_v56 = vadd.f32 %v6913_v47, %v9967_v28 }
0x188c   : > { %v8477_v18 = vpack.c.bf16 %v6920_v15, %v6919_v14 }
0x188d   : > { %v4041_v59 = vmul.f32 1.442695, %v4038_v57  ;;  %v4246_v57 = vadd.f32 %v6913_v47, %v9969_v30  ;;  %v6954_v47 = vld [vmem:[%s10594_s6 + $0x1d0] sm:$0xff] }
0x188e   : > { %v4034_v61 = vpop.xlane.xlu0 %4033 }
0x188f   : > { %8704 = vpow2.f32 %v4041_v59  ;;  %v4039_v39 = vsub.f32 %v4027_v19, %v4034_v61 }
0x1891   : > { %v4043_v43 = vmul.f32 1.442695, %v4039_v39 }
0x1892   : > { %v4037_v45 = vpop.xlane.xlu1 %4036 }
0x1893   : > { %8706 = vpow2.f32 %v4043_v43  ;;  %v4040_v35 = vsub.f32 %v4028_v23, %v4037_v45 }
0x1895   : > { %v4045_v63 = vmul.f32 1.442695, %v4040_v35 }
0x1897   : > { %8708 = vpow2.f32 %v4045_v63 }
0x1899   : > { %v8705_v2 = vpop.eup %8704 }
0x189a   : > { %v4047_v3 = vsel %vm1260_vm14, %v8705_v2, 0.0 }
0x189b   : > { %4048 = vadd.xlane.f32.xlu0 %v4047_v3 }
0x189d   : > { %v8707_v4 = vpop.eup %8706 }
0x189e   : > { %v4050_v42 = vsel %vm1260_vm14, %v8707_v4, 0.0 }
0x189f   : > { %4051 = vadd.xlane.f32.xlu1 %v4050_v42 }
0x18a1   : > { %v8709_v49 = vpop.eup %8708 }
0x18a2   : > { %v4053_v46 = vsel %vm1267_vm15, %v8709_v49, 0.0 }
0x18a3   : > { %4054 = vadd.xlane.f32.xlu0 %v4053_v46 }
0x1928   : > { %v4049_v60 = vpop.xlane.xlu0 %4048 }
0x1929   : > { %8710 = vrcp.f32 %v4049_v60 }
0x192c   : > { %v4052_v5 = vpop.xlane.xlu1 %4051 }
0x192d   : > { %8712 = vrcp.f32 %v4052_v5 }
0x1930   : > { %v4055_v10 = vpop.xlane.xlu0 %4054 }
0x1931   : > { %8714 = vrcp.f32 %v4055_v10 }
0x1933   : > { %v8711_v12 = vpop.eup %8710 }
0x1934   : > { %v4057_v50 = vmul.f32 %v8711_v12, %v8705_v2 }
0x1936   : > { %7948 = vmatmul.mubr.msk.f32.vlgmr.msra.gmra.mrb[100].mxu1 %vm1260_vm14, %v4057_v50 }
0x1937   : > { %v8713_v58 = vpop.eup %8712  ;;  %7950 = vmatprep.mubr.msk.f32.mxu1 %vm8836_vm4, %v8835_v1  ;;  %8475 = vmatpush3.bf16.msra.mxu1 %v8474_v26 }
0x1938   : > { %v4059_v40 = vmul.f32 %v8713_v58, %v8707_v4  ;;  %8476 = vmatprep.subr.bf16.mxu1 %v8837_v62 }
0x193a   : > { %7951 = vmatmul.mubr.msk.f32.gmra.mrb[102].mxu1 %vm1260_vm14, %v4059_v40 }
0x193b   : > { %v8715_v19 = vpop.eup %8714  ;;  %7953 = vmatprep.mubr.msk.f32.mxu1 %vm8836_vm4, %v8835_v1  ;;  %8478 = vmatpush3.bf16.msra.mxu1 %v8477_v18  ;;  %v6945_v18 = vld [vmem:[%s10596_s8 + $0x28] sm:$0xff] }
0x193c   : > { %v4061_v20 = vmul.f32 %v8715_v19, %v8709_v49  ;;  %8485 = vmatprep.subr.bf16.mxu1 %v8837_v62 }
0x193e   : > { %7954 = vmatmul.mubr.msk.f32.gmra.mrb[104].mxu1 %vm1260_vm14, %v4061_v20 }
0x193f   : > { %7981 = vmatprep.mubr.msk.f32.mxu1 %vm8836_vm4, %v8835_v1 }
0x1942   : > { %7982 = vmatmul.mubr.msk.f32.vlgmr.msra.gmra.mrb[106].mxu1 %vm812_vm9, %v9820_v9 }
0x1943   : > { %7984 = vmatprep.mubr.msk.f32.mxu1 %vm8836_vm4, %v8835_v1 }
0x1946   : > { %7985 = vmatmul.mubr.msk.f32.gmra.mrb[108].mxu1 %vm812_vm9, %v9832_v13 }
0x1947   : > { %7987 = vmatprep.mubr.msk.f32.mxu1 %vm8836_vm4, %v8835_v1 }
0x194a   : > { %7988 = vmatmul.mubr.msk.f32.gmra.mrb[110].mxu1 %vm812_vm9, %v9839_v16 }
0x194b   : > { %8013 = vmatprep.mubr.msk.f32.mxu1 %vm8836_vm4, %v8835_v1 }
0x1a09   : > { %v10015_v21 = vpop.f32.mrb[100].mxu1 }
0x1a0a   : > { %v7949_v22 = vpop.f32.mrb[101].mxu1 }
0x1a0d   : > { %v10017_v23 = vpop.f32.mrb[102].mxu1 }
0x1a0e   : > { %v7952_v0 = vpop.f32.mrb[103].mxu1 }
0x1a11   : > { %v10019_v24 = vpop.f32.mrb[104].mxu1 }
0x1a12   : > { %v7955_v27 = vpop.f32.mrb[105].mxu1 }
0x1a13   : > { %v6907_v27 = vld [vmem:[%s10596_s8 + $0x20] sm:$0xff] }
0x1a15   : > { %v4328_v29 = vpop.f32.mrb[106].mxu1 }
0x1a16   : > { %v7983_v55 = vpop.f32.mrb[107].mxu1  ;;  %v4329_v36 = vadd.f32 %v6922_v31, %v4328_v29 }
0x1a19   : > { %v4333_v32 = vpop.f32.mrb[108].mxu1 }
0x1a1a   : > { %v4334_v33 = vadd.f32 %v6922_v31, %v4333_v32  ;;  %v7986_v37 = vpop.f32.mrb[109].mxu1 }
0x1a1c   : > { %v8486_v38 = vpack.c.bf16 %v4334_v33, %v4329_v36  ;;  %v6961_v36 = vld [vmem:[%s10594_s6 + $0x240] sm:$0xff]  ;;  %v6962_v33 = vld [vmem:[%s10594_s6 + $0x248] sm:$0xff] }
0x1a1d   : > { %v4338_v44 = vpop.f32.mrb[110].mxu1  ;;  %v8499_v37 = vpack.c.bf16 %v6962_v33, %v6961_v36 }
0x1a1e   : > { %v7989_v41 = vpop.f32.mrb[111].mxu1  ;;  %8488 = vmatpush3.bf16.xpose.msk.msra.mxu1 %vm9154_vm12, %v8486_v38  ;;  %v4339_v52 = vadd.f32 %v6922_v31, %v4338_v44  ;;  %v6963_v38 = vld [vmem:[%s10594_s6 + $0x250] sm:$0xff]  ;;  %v6964_v44 = vld [vmem:[%s10594_s6 + $0x258] sm:$0xff] }
0x1a1f   : > { %8011 = vmatprep.subr.mxu1 %v8835_v1  ;;  %v8502_v41 = vpack.c.bf16 %v6964_v44, %v6963_v38 }
0x1a26   : > { %8012 = vmatpush3.xpose.msk.msra.mxu1 %vm1158_vm11, %v4339_v52  ;;  %v6955_v52 = vld [vmem:[%s10594_s6 + $0x1d8] sm:$0xff] }
0x1a27   : > { %8037 = vmatprep.subr.mxu1 %v8835_v1 }
0x1a29   : > { %8014 = vmatmul.mubr.msk.f32.vlgmr.msra.gmra.mrb[112].mxu1 %vm1158_vm11, %v4236_v54 }
0x1a2a   : > { %8016 = vmatprep.mubr.msk.f32.mxu1 %vm8836_vm4, %v8835_v1  ;;  %8038 = vmatpush3.msra.mxu1 %v6945_v18 }
0x1a2b   : > { %8492 = vmatprep.subr.bf16.mxu1 %v8837_v62 }
0x1a2d   : > { %8017 = vmatmul.mubr.msk.f32.gmra.mrb[114].mxu1 %vm1158_vm11, %v4241_v56 }
0x1a2e   : > { %8019 = vmatprep.mubr.msk.f32.mxu1 %vm8836_vm4, %v8835_v1 }
0x1a31   : > { %8020 = vmatmul.mubr.msk.f32.gmra.mrb[116].mxu1 %vm1158_vm11, %v4246_v57  ;;  %v8496_v57 = vpack.c.bf16 %v6955_v52, %v6954_v47  ;;  %v6975_v52 = vld [vmem:[%s10595_s7 + $0x16] ss:$0 sm:$0xff] }
0x1a32   : > { %8039 = vmatprep.mubr.msk.f32.mxu1 %vm8836_vm4, %v8835_v1 }
0x1afc   : > { %v4519_v25 = vpop.f32.mrb[112].mxu1 }
0x1afd   : > { %v4533_v59 = vmul.f32 0.35355338, %v4519_v25  ;;  %v8015_v61 = vpop.f32.mrb[113].mxu1 }
0x1afe   : > { %v6970_v61 = vld [vmem:[%s10594_s6 + $0x2c0] sm:$0xff] }
0x1aff   : > { %v4536_v39 = vsel %vm1260_vm14, %v4533_v59, -inf }
0x1b00   : > { %4537 = vmax.xlane.f32.xlu1 %v4536_v39  ;;  %v4524_v43 = vpop.f32.mrb[114].mxu1  ;;  %v6971_v39 = vld [vmem:[%s10594_s6 + $0x2c8] sm:$0xff] }
0x1b01   : > { %v4534_v28 = vmul.f32 0.35355338, %v4524_v43  ;;  %v8018_v45 = vpop.f32.mrb[115].mxu1 }
0x1b02   : > { %v8505_v45 = vpack.c.bf16 %v6971_v39, %v6970_v61 }
0x1b03   : > { %v4539_v35 = vsel %vm1260_vm14, %v4534_v28, -inf }
0x1b04   : > { %4540 = vmax.xlane.f32.xlu0 %v4539_v35  ;;  %v4529_v63 = vpop.f32.mrb[116].mxu1  ;;  %v6972_v35 = vld [vmem:[%s10594_s6 + $0x2d0] sm:$0xff] }
0x1b05   : > { %v4535_v2 = vmul.f32 0.35355338, %v4529_v63  ;;  %v8021_v30 = vpop.f32.mrb[117].mxu1  ;;  %v6973_v63 = vld [vmem:[%s10594_s6 + $0x2d8] sm:$0xff] }
0x1b07   : > { %v4542_v3 = vsel %vm1267_vm15, %v4535_v2, -inf }
0x1b08   : > { %4543 = vmax.xlane.f32.xlu1 %v4542_v3  ;;  %v8508_v3 = vpack.c.bf16 %v6973_v63, %v6972_v35 }
0x1b8d   : > { %v4538_v4 = vpop.xlane.xlu1 %4537 }
0x1b8e   : > { %v4545_v42 = vsub.f32 %v4533_v59, %v4538_v4 }
0x1b90   : > { %v4548_v49 = vmul.f32 1.442695, %v4545_v42 }
0x1b91   : > { %v4541_v46 = vpop.xlane.xlu0 %4540 }
0x1b92   : > { %8716 = vpow2.f32 %v4548_v49  ;;  %v4546_v60 = vsub.f32 %v4534_v28, %v4541_v46 }
0x1b94   : > { %v4550_v5 = vmul.f32 1.442695, %v4546_v60 }
0x1b95   : > { %v4544_v10 = vpop.xlane.xlu1 %4543 }
0x1b96   : > { %8718 = vpow2.f32 %v4550_v5  ;;  %v4547_v51 = vsub.f32 %v4535_v2, %v4544_v10  ;;  %v6966_v10 = vld [vmem:[%s10595_s7 + $0x12] ss:$0 sm:$0xff] }
0x1b98   : > { %v4552_v11 = vmul.f32 1.442695, %v4547_v51 }
0x1b9a   : > { %8720 = vpow2.f32 %v4552_v11 }
0x1b9c   : > { %v8717_v12 = vpop.eup %8716 }
0x1b9d   : > { %v4554_v26 = vsel %vm1260_vm14, %v8717_v12, 0.0 }
0x1b9e   : > { %4555 = vadd.xlane.f32.xlu0 %v4554_v26 }
0x1ba0   : > { %v8719_v50 = vpop.eup %8718 }
0x1ba1   : > { %v4557_v14 = vsel %vm1260_vm14, %v8719_v50, 0.0 }
0x1ba2   : > { %4558 = vadd.xlane.f32.xlu1 %v4557_v14 }
0x1ba4   : > { %v8721_v15 = vpop.eup %8720 }
0x1ba5   : > { %v4560_v58 = vsel %vm1267_vm15, %v8721_v15, 0.0 }
0x1ba6   : > { %4561 = vadd.xlane.f32.xlu0 %v4560_v58 }
0x1c2b   : > { %v4556_v40 = vpop.xlane.xlu0 %4555 }
0x1c2c   : > { %8722 = vrcp.f32 %v4556_v40 }
0x1c2f   : > { %v4559_v19 = vpop.xlane.xlu1 %4558 }
0x1c30   : > { %8724 = vrcp.f32 %v4559_v19 }
0x1c33   : > { %v4562_v20 = vpop.xlane.xlu0 %4561 }
0x1c34   : > { %8726 = vrcp.f32 %v4562_v20 }
0x1c36   : > { %v8723_v22 = vpop.eup %8722 }
0x1c37   : > { %v4564_v0 = vmul.f32 %v8723_v22, %v8717_v12 }
0x1c39   : > { %8029 = vmatmul.mubr.msk.f32.vlgmr.msra.gmra.mrb[98].mxu0 %vm1260_vm14, %v4564_v0 }
0x1c3a   : > { %v8725_v29 = vpop.eup %8724  ;;  %8031 = vmatprep.mubr.msk.f32.mxu0 %vm8836_vm4, %v8835_v1  ;;  %8049 = vmatpush3.msra.mxu0 %v6907_v27 }
0x1c3b   : > { %v4566_v55 = vmul.f32 %v8725_v29, %v8719_v50  ;;  %8498 = vmatprep.subr.bf16.mxu0 %v8837_v62 }
0x1c3d   : > { %8032 = vmatmul.mubr.msk.f32.gmra.mrb[100].mxu0 %vm1260_vm14, %v4566_v55 }
0x1c3e   : > { %v8727_v31 = vpop.eup %8726  ;;  %8034 = vmatprep.mubr.msk.f32.mxu0 %vm8836_vm4, %v8835_v1 }
0x1c3f   : > { %v4568_v32 = vmul.f32 %v8727_v31, %v8721_v15  ;;  %v6957_v31 = vld [vmem:[%s10595_s7 + $0xe] ss:$0 sm:$0xff] }
0x1c41   : > { %8035 = vmatmul.mubr.msk.f32.gmra.mrb[102].mxu0 %vm1260_vm14, %v4568_v32 }
0x1c42   : > { %8050 = vmatprep.mubr.msk.f32.mxu0 %vm8836_vm4, %v8835_v1 }
0x1c45   : > { %8051 = vmatmul.mubr.msk.f32.vlgmr.msra.gmra.mrb[104].mxu0 %vm1158_vm11, %v10015_v21  ;;  %v6952_v21 = vld [vmem:[%s10594_s6 + $0x1c0] sm:$0xff] }
0x1c46   : > { %8053 = vmatprep.mubr.msk.f32.mxu0 %vm8836_vm4, %v8835_v1  ;;  %8500 = vmatpush3.bf16.msra.mxu0 %v8499_v37 }
0x1c47   : > { %8501 = vmatprep.subr.bf16.mxu0 %v8837_v62 }
0x1c49   : > { %8054 = vmatmul.mubr.msk.f32.gmra.mrb[106].mxu0 %vm1158_vm11, %v10017_v23  ;;  %v6953_v23 = vld [vmem:[%s10594_s6 + $0x1c8] sm:$0xff] }
0x1c4a   : > { %8056 = vmatprep.mubr.msk.f32.mxu0 %vm8836_vm4, %v8835_v1  ;;  %8503 = vmatpush3.bf16.msra.mxu0 %v8502_v41 }
0x1c4b   : > { %8510 = vmatprep.subr.bf16.mxu0 %v8837_v62 }
0x1c4d   : > { %8057 = vmatmul.mubr.msk.f32.gmra.mrb[108].mxu0 %vm1158_vm11, %v10019_v24  ;;  %v8493_v24 = vpack.c.bf16 %v6953_v23, %v6952_v21 }
0x1c4e   : > { %8084 = vmatprep.mubr.msk.f32.mxu0 %vm8836_vm4, %v8835_v1 }
0x1c51   : > { %8085 = vmatmul.mubr.msk.f32.vlgmr.msra.gmra.mrb[110].mxu0 %vm812_vm9, %v9820_v9 }
0x1c52   : > { %8087 = vmatprep.mubr.msk.f32.mxu0 %vm8836_vm4, %v8835_v1 }
0x1c55   : > { %8088 = vmatmul.mubr.msk.f32.gmra.mrb[112].mxu0 %vm812_vm9, %v9832_v13 }
0x1c56   : > { %8090 = vmatprep.mubr.msk.f32.mxu0 %vm8836_vm4, %v8835_v1 }
0x1c59   : > { %8091 = vmatmul.mubr.msk.f32.gmra.mrb[114].mxu0 %vm812_vm9, %v9839_v16 }
0x1c5a   : > { %8116 = vmatprep.mubr.msk.f32.mxu0 %vm8836_vm4, %v8835_v1 }
0x1d0c   : > { %v4647_v54 = vpop.f32.mrb[98].mxu0 }
0x1d0d   : > { %v8030_v56 = vpop.f32.mrb[99].mxu0  ;;  %8040 = vmatmul.mubr.msk.f32.vlgmr.msra.gmra.mrb[118].mxu1 %vm1158_vm11, %v4647_v54 }
0x1d0e   : > { %8042 = vmatprep.mubr.msk.f32.mxu1 %vm8836_vm4, %v8835_v1  ;;  %8494 = vmatpush3.bf16.msra.mxu1 %v8493_v24 }
0x1d0f   : > { %8495 = vmatprep.subr.bf16.mxu1 %v8837_v62 }
0x1d10   : > { %v4652_v25 = vpop.f32.mrb[100].mxu0 }
0x1d11   : > { %v8033_v59 = vpop.f32.mrb[101].mxu0  ;;  %8043 = vmatmul.mubr.msk.f32.gmra.mrb[120].mxu1 %vm1158_vm11, %v4652_v25 }
0x1d12   : > { %8045 = vmatprep.mubr.msk.f32.mxu1 %vm8836_vm4, %v8835_v1  ;;  %8497 = vmatpush3.bf16.msra.mxu1 %v8496_v57 }
0x1d13   : > { %8504 = vmatprep.subr.bf16.mxu1 %v8837_v62 }
0x1d14   : > { %v4657_v43 = vpop.f32.mrb[102].mxu0 }
0x1d15   : > { %v8036_v28 = vpop.f32.mrb[103].mxu0  ;;  %8046 = vmatmul.mubr.msk.f32.gmra.mrb[122].mxu1 %vm1158_vm11, %v4657_v43 }
0x1d16   : > { %8067 = vmatprep.mubr.msk.f32.mxu1 %vm8836_vm4, %v8835_v1 }
0x1d18   : > { %v4827_v2 = vpop.f32.mrb[104].mxu0 }
0x1d19   : > { %v8052_v30 = vpop.f32.mrb[105].mxu0  ;;  %8068 = vmatmul.mubr.msk.f32.vlgmr.msra.gmra.mrb[124].mxu1 %vm812_vm9, %v9820_v9 }
0x1d1a   : > { %8070 = vmatprep.mubr.msk.f32.mxu1 %vm8836_vm4, %v8835_v1  ;;  %8506 = vmatpush3.bf16.msra.mxu1 %v8505_v45 }
0x1d1b   : > { %8507 = vmatprep.subr.bf16.mxu1 %v8837_v62 }
0x1d1c   : > { %v4832_v4 = vpop.f32.mrb[106].mxu0 }
0x1d1d   : > { %v8055_v42 = vpop.f32.mrb[107].mxu0  ;;  %8071 = vmatmul.mubr.msk.f32.gmra.mrb[126].mxu1 %vm812_vm9, %v9832_v13 }
0x1d1e   : > { %8073 = vmatprep.mubr.msk.f32.mxu1 %vm8836_vm4, %v8835_v1  ;;  %8509 = vmatpush3.bf16.msra.mxu1 %v8508_v3 }
0x1d1f   : > { %8514 = vmatprep.subr.bf16.mxu1 %v8837_v62 }
0x1d20   : > { %v4837_v49 = vpop.f32.mrb[108].mxu0 }
0x1d21   : > { %v8058_v46 = vpop.f32.mrb[109].mxu0  ;;  %8074 = vmatmul.mubr.msk.f32.gmra.mrb[128].mxu1 %vm812_vm9, %v9839_v16 }
0x1d22   : > { %8101 = vmatprep.mubr.msk.f32.mxu1 %vm8836_vm4, %v8835_v1 }
0x1d24   : > { %v5013_v60 = vpop.f32.mrb[110].mxu0 }
0x1d25   : > { %v8086_v5 = vpop.f32.mrb[111].mxu0  ;;  %8102 = vmatmul.mubr.msk.f32.vlgmr.msra.gmra.mrb[130].mxu1 %vm812_vm9, %v9820_v9  ;;  %v5014_v11 = vadd.f32 %v6966_v10, %v5013_v60 }
0x1d26   : > { %8104 = vmatprep.mubr.msk.f32.mxu1 %vm8836_vm4, %v8835_v1 }
0x1d28   : > { %v5018_v51 = vpop.f32.mrb[112].mxu0 }
0x1d29   : > { %v5019_v12 = vadd.f32 %v6966_v10, %v5018_v51  ;;  %v8089_v26 = vpop.f32.mrb[113].mxu0  ;;  %8105 = vmatmul.mubr.msk.f32.gmra.mrb[132].mxu1 %vm812_vm9, %v9832_v13 }
0x1d2a   : > { %8107 = vmatprep.mubr.msk.f32.mxu1 %vm8836_vm4, %v8835_v1 }
0x1d2b   : > { %v8511_v50 = vpack.c.bf16 %v5019_v12, %v5014_v11 }
0x1d2c   : > { %v5023_v14 = vpop.f32.mrb[114].mxu0 }
0x1d2d   : > { %v8092_v15 = vpop.f32.mrb[115].mxu0  ;;  %8108 = vmatmul.mubr.msk.f32.gmra.mrb[134].mxu1 %vm812_vm9, %v9839_v16  ;;  %8513 = vmatpush3.bf16.xpose.msk.msra.mxu0 %vm9154_vm12, %v8511_v50  ;;  %v5024_v58 = vadd.f32 %v6966_v10, %v5023_v14 }
0x1d2e   : > { %8114 = vmatprep.subr.mxu0 %v8835_v1  ;;  %8131 = vmatprep.mubr.msk.f32.mxu1 %vm8836_vm4, %v8835_v1 }
0x1d35   : > { %8115 = vmatpush3.xpose.msk.msra.mxu0 %vm1158_vm11, %v5024_v58 }
0x1d36   : > { %8140 = vmatprep.subr.mxu0 %v8835_v1 }
0x1de0   : > { %v4738_v18 = vpop.f32.mrb[118].mxu1 }
0x1de1   : > { %v10174_v40 = vadd.f32 %v4827_v2, %v4738_v18  ;;  %v8041_v19 = vpop.f32.mrb[119].mxu1 }
0x1de4   : > { %v4743_v20 = vpop.f32.mrb[120].mxu1 }
0x1de5   : > { %v10176_v22 = vadd.f32 %v4832_v4, %v4743_v20  ;;  %v8044_v0 = vpop.f32.mrb[121].mxu1 }
0x1de8   : > { %v4748_v27 = vpop.f32.mrb[122].mxu1 }
0x1de9   : > { %v10178_v29 = vadd.f32 %v4837_v49, %v4748_v27  ;;  %v8047_v55 = vpop.f32.mrb[123].mxu1 }
0x1dea   : > { %v6989_v55 = vld [vmem:[%s10596_s8 + $0x30] sm:$0xff] }
0x1dec   : > { %v4920_v32 = vpop.f32.mrb[124].mxu1 }
0x1ded   : > { %v4921_v36 = vadd.f32 %v6957_v31, %v4920_v32  ;;  %v8069_v33 = vpop.f32.mrb[125].mxu1 }
0x1dee   : > { %v6993_v33 = vld [vmem:[%s10594_s6 + $0x1e0] sm:$0xff] }
0x1def   : > { %8117 = vmatmul.mubr.msk.f32.vlgmr.msra.gmra.mrb[116].mxu0 %vm1158_vm11, %v4921_v36 }
0x1df0   : > { %v4925_v37 = vpop.f32.mrb[126].mxu1  ;;  %8119 = vmatprep.mubr.msk.f32.mxu0 %vm8836_vm4, %v8835_v1  ;;  %8141 = vmatpush3.msra.mxu0 %v6989_v55 }
0x1df1   : > { %v4926_v38 = vadd.f32 %v6957_v31, %v4925_v37  ;;  %v8072_v44 = vpop.f32.mrb[127].mxu1  ;;  %8523 = vmatprep.subr.bf16.mxu0 %v8837_v62  ;;  %v6994_v37 = vld [vmem:[%s10594_s6 + $0x1e8] sm:$0xff] }
0x1df2   : > { %v8518_v44 = vpack.c.bf16 %v6994_v37, %v6993_v33 }
0x1df3   : > { %8120 = vmatmul.mubr.msk.f32.gmra.mrb[118].mxu0 %vm1158_vm11, %v4926_v38 }
0x1df4   : > { %v4930_v41 = vpop.f32.mrb[128].mxu1  ;;  %8122 = vmatprep.mubr.msk.f32.mxu0 %vm8836_vm4, %v8835_v1 }
0x1df5   : > { %v4931_v21 = vadd.f32 %v6957_v31, %v4930_v41  ;;  %v8075_v23 = vpop.f32.mrb[129].mxu1 }
0x1df6   : > { %v6996_v23 = vld [vmem:[%s10594_s6 + $0x1f8] sm:$0xff] }
0x1df7   : > { %8123 = vmatmul.mubr.msk.f32.gmra.mrb[120].mxu0 %vm1158_vm11, %v4931_v21  ;;  %v6995_v21 = vld [vmem:[%s10594_s6 + $0x1f0] sm:$0xff] }
0x1df8   : > { %v5106_v24 = vpop.f32.mrb[130].mxu1  ;;  %8142 = vmatprep.mubr.msk.f32.mxu0 %vm8836_vm4, %v8835_v1 }
0x1df9   : > { %v8103_v47 = vpop.f32.mrb[131].mxu1  ;;  %v5107_v56 = vadd.f32 %v6975_v52, %v5106_v24 }
0x1dfa   : > { %v8521_v47 = vpack.c.bf16 %v6996_v23, %v6995_v21  ;;  %v7007_v23 = vld [vmem:[%s10595_s7 + $0x13] ss:$0 sm:$0xff] }
0x1dfc   : > { %v5111_v54 = vpop.f32.mrb[132].mxu1 }
0x1dfd   : > { %v5112_v57 = vadd.f32 %v6975_v52, %v5111_v54  ;;  %v8106_v25 = vpop.f32.mrb[133].mxu1 }
0x1dfe   : > { %v7012_v25 = vld [vmem:[%s10594_s6 + $0x2e8] sm:$0xff] }
0x1dff   : > { %v8515_v59 = vpack.c.bf16 %v5112_v57, %v5107_v56  ;;  %v7011_v57 = vld [vmem:[%s10594_s6 + $0x2e0] sm:$0xff] }
0x1e00   : > { %v5116_v61 = vpop.f32.mrb[134].mxu1 }
0x1e01   : > { %v8109_v39 = vpop.f32.mrb[135].mxu1  ;;  %8516 = vmatpush3.bf16.msra.mxu1 %v8515_v59  ;;  %v5117_v43 = vadd.f32 %v6975_v52, %v5116_v61  ;;  %v8530_v59 = vpack.c.bf16 %v7012_v25, %v7011_v57  ;;  %v7013_v61 = vld [vmem:[%s10594_s6 + $0x2f0] sm:$0xff] }
0x1e02   : > { %8129 = vmatprep.subr.mxu1 %v8835_v1  ;;  %v7014_v39 = vld [vmem:[%s10594_s6 + $0x2f8] sm:$0xff] }
0x1e05   : > { %8130 = vmatpush3.msk.msra.mxu1 %vm1304_vm13, %v5117_v43  ;;  %v8533_v43 = vpack.c.bf16 %v7014_v39, %v7013_v61 }
0x1e06   : > { %8517 = vmatprep.subr.bf16.mxu1 %v8837_v62 }
0x1ec2   : > { %v5204_v28 = vpop.f32.mrb[116].mxu0 }
0x1ec3   : > { %v5218_v45 = vmul.f32 0.35355338, %v5204_v28  ;;  %v8118_v35 = vpop.f32.mrb[117].mxu0  ;;  %v7002_v28 = vld [vmem:[%s10594_s6 + $0x260] sm:$0xff] }
0x1ec5   : > { %v5221_v63 = vsel %vm1260_vm14, %v5218_v45, -inf }
0x1ec6   : > { %5222 = vmax.xlane.f32.xlu1 %v5221_v63  ;;  %v5209_v2 = vpop.f32.mrb[118].mxu0  ;;  %v7004_v63 = vld [vmem:[%s10594_s6 + $0x270] sm:$0xff] }
0x1ec7   : > { %v5219_v30 = vmul.f32 0.35355338, %v5209_v2  ;;  %v8121_v3 = vpop.f32.mrb[119].mxu0  ;;  %v7005_v2 = vld [vmem:[%s10594_s6 + $0x278] sm:$0xff] }
0x1ec9   : > { %v5224_v4 = vsel %vm1260_vm14, %v5219_v30, -inf }
0x1eca   : > { %5225 = vmax.xlane.f32.xlu0 %v5224_v4  ;;  %v5214_v42 = vpop.f32.mrb[120].mxu0  ;;  %v8527_v4 = vpack.c.bf16 %v7005_v2, %v7004_v63 }
0x1ecb   : > { %v5220_v49 = vmul.f32 0.35355338, %v5214_v42  ;;  %v8124_v46 = vpop.f32.mrb[121].mxu0 }
0x1ecd   : > { %v5227_v60 = vsel %vm1267_vm15, %v5220_v49, -inf }
0x1ece   : > { %5228 = vmax.xlane.f32.xlu1 %v5227_v60 }
0x1f53   : > { %v5223_v5 = vpop.xlane.xlu1 %5222 }
0x1f54   : > { %v5230_v10 = vsub.f32 %v5218_v45, %v5223_v5  ;;  %v7003_v45 = vld [vmem:[%s10594_s6 + $0x268] sm:$0xff] }
0x1f55   : > { %v8524_v35 = vpack.c.bf16 %v7003_v45, %v7002_v28 }
0x1f56   : > { %v5233_v51 = vmul.f32 1.442695, %v5230_v10 }
0x1f57   : > { %v5226_v11 = vpop.xlane.xlu0 %5225 }
0x1f58   : > { %8728 = vpow2.f32 %v5233_v51  ;;  %v5231_v12 = vsub.f32 %v5219_v30, %v5226_v11 }
0x1f5a   : > { %v5235_v26 = vmul.f32 1.442695, %v5231_v12 }
0x1f5b   : > { %v5229_v50 = vpop.xlane.xlu1 %5228 }
0x1f5c   : > { %8730 = vpow2.f32 %v5235_v26  ;;  %v5232_v14 = vsub.f32 %v5220_v49, %v5229_v50 }
0x1f5e   : > { %v5237_v15 = vmul.f32 1.442695, %v5232_v14  ;;  %v7016_v14 = vld [vmem:[%s10595_s7 + $0x17] ss:$0 sm:$0xff] }
0x1f60   : > { %8732 = vpow2.f32 %v5237_v15 }
0x1f62   : > { %v8729_v58 = vpop.eup %8728 }
0x1f63   : > { %v5239_v18 = vsel %vm1260_vm14, %v8729_v58, 0.0 }
0x1f64   : > { %5240 = vadd.xlane.f32.xlu0 %v5239_v18 }
0x1f66   : > { %v8731_v19 = vpop.eup %8730 }
0x1f67   : > { %v5242_v20 = vsel %vm1260_vm14, %v8731_v19, 0.0 }
0x1f68   : > { %5243 = vadd.xlane.f32.xlu1 %v5242_v20 }
0x1f6a   : > { %v8733_v0 = vpop.eup %8732 }
0x1f6b   : > { %v5245_v27 = vsel %vm1267_vm15, %v8733_v0, 0.0 }
0x1f6c   : > { %5246 = vadd.xlane.f32.xlu0 %v5245_v27 }
0x1ff1   : > { %v5241_v31 = vpop.xlane.xlu0 %5240 }
0x1ff2   : > { %8734 = vrcp.f32 %v5241_v31 }
0x1ff5   : > { %v5244_v32 = vpop.xlane.xlu1 %5243 }
0x1ff6   : > { %8736 = vrcp.f32 %v5244_v32 }
0x1ff9   : > { %v5247_v36 = vpop.xlane.xlu0 %5246 }
0x1ffa   : > { %8738 = vrcp.f32 %v5247_v36 }
0x1ffc   : > { %v8735_v38 = vpop.eup %8734 }
0x1ffd   : > { %v5249_v41 = vmul.f32 %v8735_v38, %v8729_v58 }
0x1fff   : > { %8132 = vmatmul.mubr.msk.f32.vlgmr.msra.gmra.mrb[136].mxu1 %vm1260_vm14, %v5249_v41 }
0x2000   : > { %v8737_v24 = vpop.eup %8736  ;;  %8134 = vmatprep.mubr.msk.f32.mxu1 %vm8836_vm4, %v8835_v1  ;;  %8519 = vmatpush3.bf16.msra.mxu1 %v8518_v44 }
0x2001   : > { %v5251_v52 = vmul.f32 %v8737_v24, %v8731_v19  ;;  %8520 = vmatprep.subr.bf16.mxu1 %v8837_v62 }
0x2003   : > { %8135 = vmatmul.mubr.msk.f32.gmra.mrb[138].mxu1 %vm1260_vm14, %v5251_v52 }
0x2004   : > { %v8739_v54 = vpop.eup %8738  ;;  %8137 = vmatprep.mubr.msk.f32.mxu1 %vm8836_vm4, %v8835_v1  ;;  %8522 = vmatpush3.bf16.msra.mxu1 %v8521_v47 }
0x2005   : > { %v5253_v56 = vmul.f32 %v8739_v54, %v8733_v0  ;;  %8529 = vmatprep.subr.bf16.mxu1 %v8837_v62 }
0x2007   : > { %8138 = vmatmul.mubr.msk.f32.gmra.mrb[140].mxu1 %vm1260_vm14, %v5253_v56 }
0x2008   : > { %8159 = vmatprep.mubr.msk.f32.mxu1 %vm8836_vm4, %v8835_v1 }
0x200b   : > { %8160 = vmatmul.mubr.msk.f32.vlgmr.msra.gmra.mrb[142].mxu1 %vm812_vm9, %v9820_v9 }
0x200c   : > { %8162 = vmatprep.mubr.msk.f32.mxu1 %vm8836_vm4, %v8835_v1  ;;  %8531 = vmatpush3.bf16.msra.mxu1 %v8530_v59 }
0x200d   : > { %8532 = vmatprep.subr.bf16.mxu1 %v8837_v62 }
0x200f   : > { %8163 = vmatmul.mubr.msk.f32.gmra.mrb[144].mxu1 %vm812_vm9, %v9832_v13 }
0x2010   : > { %8165 = vmatprep.mubr.msk.f32.mxu1 %vm8836_vm4, %v8835_v1  ;;  %8534 = vmatpush3.bf16.msra.mxu1 %v8533_v43 }
0x2011   : > { %8539 = vmatprep.subr.bf16.mxu1 %v8837_v62 }
0x2013   : > { %8166 = vmatmul.mubr.msk.f32.gmra.mrb[146].mxu1 %vm812_vm9, %v9839_v16 }
0x2014   : > { %8193 = vmatprep.mubr.msk.f32.mxu1 %vm8836_vm4, %v8835_v1 }
0x2017   : > { %8194 = vmatmul.mubr.msk.f32.vlgmr.msra.gmra.mrb[148].mxu1 %vm812_vm9, %v9820_v9 }
0x2018   : > { %8196 = vmatprep.mubr.msk.f32.mxu1 %vm8836_vm4, %v8835_v1 }
0x201b   : > { %8197 = vmatmul.mubr.msk.f32.gmra.mrb[150].mxu1 %vm812_vm9, %v9832_v13 }
0x201c   : > { %8199 = vmatprep.mubr.msk.f32.mxu1 %vm8836_vm4, %v8835_v1 }
0x201f   : > { %8200 = vmatmul.mubr.msk.f32.gmra.mrb[152].mxu1 %vm812_vm9, %v9839_v16 }
0x2020   : > { %8223 = vmatprep.mubr.msk.f32.mxu1 %vm8836_vm4, %v8835_v1 }
0x20d2   : > { %v5332_v30 = vpop.f32.mrb[136].mxu1 }
0x20d3   : > { %v8133_v3 = vpop.f32.mrb[137].mxu1  ;;  %8143 = vmatmul.mubr.msk.f32.vlgmr.msra.gmra.mrb[122].mxu0 %vm1158_vm11, %v5332_v30 }
0x20d4   : > { %8145 = vmatprep.mubr.msk.f32.mxu0 %vm8836_vm4, %v8835_v1  ;;  %8525 = vmatpush3.bf16.msra.mxu0 %v8524_v35 }
0x20d5   : > { %8526 = vmatprep.subr.bf16.mxu0 %v8837_v62 }
0x20d6   : > { %v5337_v42 = vpop.f32.mrb[138].mxu1 }
0x20d7   : > { %v8136_v49 = vpop.f32.mrb[139].mxu1  ;;  %8146 = vmatmul.mubr.msk.f32.gmra.mrb[124].mxu0 %vm1158_vm11, %v5337_v42 }
0x20d8   : > { %8148 = vmatprep.mubr.msk.f32.mxu0 %vm8836_vm4, %v8835_v1  ;;  %8528 = vmatpush3.bf16.msra.mxu0 %v8527_v4 }
0x20d9   : > { %8535 = vmatprep.subr.bf16.mxu0 %v8837_v62 }
0x20da   : > { %v5342_v46 = vpop.f32.mrb[140].mxu1 }
0x20db   : > { %v8139_v60 = vpop.f32.mrb[141].mxu1  ;;  %8149 = vmatmul.mubr.msk.f32.gmra.mrb[126].mxu0 %vm1158_vm11, %v5342_v46 }
0x20dc   : > { %8176 = vmatprep.mubr.msk.f32.mxu0 %vm8836_vm4, %v8835_v1 }
0x20de   : > { %v5519_v5 = vpop.f32.mrb[142].mxu1 }
0x20df   : > { %v8161_v10 = vpop.f32.mrb[143].mxu1  ;;  %8177 = vmatmul.mubr.msk.f32.vlgmr.msra.gmra.mrb[128].mxu0 %vm812_vm9, %v9820_v9 }
0x20e0   : > { %8179 = vmatprep.mubr.msk.f32.mxu0 %vm8836_vm4, %v8835_v1 }
0x20e2   : > { %v5524_v51 = vpop.f32.mrb[144].mxu1 }
0x20e3   : > { %v8164_v11 = vpop.f32.mrb[145].mxu1  ;;  %8180 = vmatmul.mubr.msk.f32.gmra.mrb[130].mxu0 %vm812_vm9, %v9832_v13 }
0x20e4   : > { %8182 = vmatprep.mubr.msk.f32.mxu0 %vm8836_vm4, %v8835_v1 }
0x20e6   : > { %v5529_v12 = vpop.f32.mrb[146].mxu1 }
0x20e7   : > { %v8167_v26 = vpop.f32.mrb[147].mxu1  ;;  %8183 = vmatmul.mubr.msk.f32.gmra.mrb[132].mxu0 %vm812_vm9, %v9839_v16 }
0x20e8   : > { %8208 = vmatprep.mubr.msk.f32.mxu0 %vm8836_vm4, %v8835_v1 }
0x20ea   : > { %v5705_v9 = vpop.f32.mrb[148].mxu1 }
0x20eb   : > { %v8195_v50 = vpop.f32.mrb[149].mxu1  ;;  %v5706_v58 = vadd.f32 %v7016_v14, %v5705_v9 }
0x20ee   : > { %v5710_v15 = vpop.f32.mrb[150].mxu1 }
0x20ef   : > { %v5711_v13 = vadd.f32 %v7016_v14, %v5710_v15  ;;  %v8198_v18 = vpop.f32.mrb[151].mxu1 }
0x20f0   : > { %v7030_v18 = vld [vmem:[%s10596_s8 + $0x38] sm:$0xff] }
0x20f1   : > { %v8540_v19 = vpack.c.bf16 %v5711_v13, %v5706_v58 }
0x20f2   : > { %v5715_v20 = vpop.f32.mrb[152].mxu1 }
0x20f3   : > { %v8201_v0 = vpop.f32.mrb[153].mxu1  ;;  %8541 = vmatpush3.bf16.msra.mxu1 %v8540_v19  ;;  %v5716_v16 = vadd.f32 %v7016_v14, %v5715_v20 }
0x20f4   : > { %8221 = vmatprep.subr.mxu1 %v8835_v1 }
0x20f7   : > { %8222 = vmatpush3.msk.msra.mxu1 %vm1304_vm13, %v5716_v16 }
0x20f8   : > { %8542 = vmatprep.subr.bf16.mxu1 %v8837_v62 }
0x21a6   : > { %v5423_v27 = vpop.f32.mrb[122].mxu0 }
0x21a7   : > { %v10311_v55 = vadd.f32 %v5423_v27, %v10174_v40  ;;  %v8144_v31 = vpop.f32.mrb[123].mxu0 }
0x21aa   : > { %v5428_v32 = vpop.f32.mrb[124].mxu0 }
0x21ab   : > { %v10314_v36 = vadd.f32 %v5428_v32, %v10176_v22  ;;  %v8147_v33 = vpop.f32.mrb[125].mxu0 }
0x21ae   : > { %v5433_v37 = vpop.f32.mrb[126].mxu0 }
0x21af   : > { %v10317_v38 = vadd.f32 %v5433_v37, %v10178_v29  ;;  %v8150_v44 = vpop.f32.mrb[127].mxu0  ;;  %v6998_v29 = vld [vmem:[%s10595_s7 + $0xf] ss:$0 sm:$0xff] }
0x21b0   : > { %v5520_v25 = vadd.f32 %v6998_v29, %v5519_v5  ;;  %v5525_v59 = vadd.f32 %v6998_v29, %v5524_v51  ;;  %v5530_v53 = vadd.f32 %v6998_v29, %v5529_v12 }
0x21b2   : > { %v5612_v41 = vpop.f32.mrb[128].mxu0 }
0x21b3   : > { %v8178_v21 = vpop.f32.mrb[129].mxu0  ;;  %v5613_v40 = vadd.f32 %v7007_v23, %v5612_v41 }
0x21b6   : > { %v5617_v24 = vpop.f32.mrb[130].mxu0 }
0x21b7   : > { %v5618_v47 = vadd.f32 %v7007_v23, %v5617_v24  ;;  %v8181_v52 = vpop.f32.mrb[131].mxu0 }
0x21b9   : > { %v8536_v54 = vpack.c.bf16 %v5618_v47, %v5613_v40 }
0x21ba   : > { %v5622_v56 = vpop.f32.mrb[132].mxu0 }
0x21bb   : > { %v8184_v22 = vpop.f32.mrb[133].mxu0  ;;  %8538 = vmatpush3.bf16.xpose.msk.msra.mxu0 %vm9154_vm12, %v8536_v54  ;;  %v5623_v57 = vadd.f32 %v7007_v23, %v5622_v56  ;;  %v7035_v56 = vld [vmem:[%s10597_s9 + $0x1] ss:$0 sm:$0xff] }
0x21bc   : > { %8206 = vmatprep.subr.mxu0 %v8835_v1 }
0x21c3   : > { %8207 = vmatpush3.xpose.msk.msra.mxu0 %vm1158_vm11, %v5623_v57 }
0x21c4   : > { %8232 = vmatprep.subr.mxu0 %v8835_v1 }
0x21c6   : > { %8209 = vmatmul.mubr.msk.f32.vlgmr.msra.gmra.mrb[134].mxu0 %vm1158_vm11, %v5520_v25 }
0x21c7   : > { %8211 = vmatprep.mubr.msk.f32.mxu0 %vm8836_vm4, %v8835_v1  ;;  %8233 = vmatpush3.msra.mxu0 %v7030_v18 }
0x21c8   : > { %8548 = vmatprep.subr.bf16.mxu0 %v8837_v62 }
0x21ca   : > { %8212 = vmatmul.mubr.msk.f32.gmra.mrb[136].mxu0 %vm1158_vm11, %v5525_v59 }
0x21cb   : > { %8214 = vmatprep.mubr.msk.f32.mxu0 %vm8836_vm4, %v8835_v1 }
0x21ce   : > { %8215 = vmatmul.mubr.msk.f32.gmra.mrb[138].mxu0 %vm1158_vm11, %v5530_v53 }
0x21cf   : > { %8234 = vmatprep.mubr.msk.f32.mxu0 %vm8836_vm4, %v8835_v1 }
0x2299   : > { %v5803_v61 = vpop.f32.mrb[134].mxu0 }
0x229a   : > { %v5817_v39 = vmul.f32 0.35355338, %v5803_v61  ;;  %v8210_v43 = vpop.f32.mrb[135].mxu0 }
0x229c   : > { %v5820_v28 = vsel %vm1260_vm14, %v5817_v39, -inf }
0x229d   : > { %5821 = vmax.xlane.f32.xlu1 %v5820_v28  ;;  %v5808_v45 = vpop.f32.mrb[136].mxu0 }
0x229e   : > { %v5818_v35 = vmul.f32 0.35355338, %v5808_v45  ;;  %v8213_v63 = vpop.f32.mrb[137].mxu0 }
0x22a0   : > { %v5823_v2 = vsel %vm1260_vm14, %v5818_v35, -inf }
0x22a1   : > { %5824 = vmax.xlane.f32.xlu0 %v5823_v2  ;;  %v5813_v30 = vpop.f32.mrb[138].mxu0 }
0x22a2   : > { %v5819_v3 = vmul.f32 0.35355338, %v5813_v30  ;;  %v8216_v4 = vpop.f32.mrb[139].mxu0 }
0x22a4   : > { %v5826_v42 = vsel %vm1267_vm15, %v5819_v3, -inf }
0x22a5   : > { %5827 = vmax.xlane.f32.xlu1 %v5826_v42 }
0x232a   : > { %v5822_v49 = vpop.xlane.xlu1 %5821 }
0x232b   : > { %v5829_v46 = vsub.f32 %v5817_v39, %v5822_v49 }
0x232d   : > { %v5832_v60 = vmul.f32 1.442695, %v5829_v46 }
0x232e   : > { %v5825_v5 = vpop.xlane.xlu0 %5824 }
0x232f   : > { %8740 = vpow2.f32 %v5832_v60  ;;  %v5830_v10 = vsub.f32 %v5818_v35, %v5825_v5 }
0x2331   : > { %v5834_v51 = vmul.f32 1.442695, %v5830_v10 }
0x2332   : > { %v5828_v11 = vpop.xlane.xlu1 %5827 }
0x2333   : > { %8742 = vpow2.f32 %v5834_v51  ;;  %v5831_v12 = vsub.f32 %v5819_v3, %v5828_v11  ;;  %v7040_v11 = vld [vmem:[%s10598_s10 + $0x20] sm:$0xff] }
0x2335   : > { %v5836_v26 = vmul.f32 1.442695, %v5831_v12  ;;  %v7041_v12 = vld [vmem:[%s10598_s10 + $0x28] sm:$0xff] }
0x2337   : > { %8744 = vpow2.f32 %v5836_v26  ;;  %v8543_v26 = vpack.c.bf16 %v7041_v12, %v7040_v11 }
0x2339   : > { %v8741_v9 = vpop.eup %8740 }
0x233a   : > { %v5838_v50 = vsel %vm1260_vm14, %v8741_v9, 0.0 }
0x233b   : > { %5839 = vadd.xlane.f32.xlu0 %v5838_v50  ;;  %v7043_v50 = vld [vmem:[%s10598_s10 + $0x38] sm:$0xff] }
0x233d   : > { %v8743_v14 = vpop.eup %8742 }
0x233e   : > { %v5841_v15 = vsel %vm1260_vm14, %v8743_v14, 0.0 }
0x233f   : > { %5842 = vadd.xlane.f32.xlu1 %v5841_v15  ;;  %v7049_v15 = vld [vmem:[%s10600_s12 + $0x80] sm:$0xff] }
0x2341   : > { %v8745_v58 = vpop.eup %8744 }
0x2342   : > { %v5844_v13 = vsel %vm1267_vm15, %v8745_v58, 0.0 }
0x2343   : > { %5845 = vadd.xlane.f32.xlu0 %v5844_v13 }
0x23c8   : > { %v5840_v19 = vpop.xlane.xlu0 %5839 }
0x23c9   : > { %8746 = vrcp.f32 %v5840_v19 }
0x23cc   : > { %v5843_v20 = vpop.xlane.xlu1 %5842 }
0x23cd   : > { %8748 = vrcp.f32 %v5843_v20 }
0x23d0   : > { %v5846_v0 = vpop.xlane.xlu0 %5845 }
0x23d1   : > { %8750 = vrcp.f32 %v5846_v0 }
0x23d3   : > { %v8747_v16 = vpop.eup %8746 }
0x23d4   : > { %v5848_v27 = vmul.f32 %v8747_v16, %v8741_v9  ;;  %v7042_v9 = vld [vmem:[%s10598_s10 + $0x30] sm:$0xff] }
0x23d6   : > { %8224 = vmatmul.mubr.msk.f32.vlgmr.msra.gmra.mrb[154].mxu1 %vm1260_vm14, %v5848_v27 }
0x23d7   : > { %v8749_v31 = vpop.eup %8748  ;;  %8226 = vmatprep.mubr.msk.f32.mxu1 %vm8836_vm4, %v8835_v1  ;;  %8544 = vmatpush3.bf16.msra.mxu1 %v8543_v26 }
0x23d8   : > { %v5850_v32 = vmul.f32 %v8749_v31, %v8743_v14  ;;  %8545 = vmatprep.subr.bf16.mxu1 %v8837_v62  ;;  %v8546_v14 = vpack.c.bf16 %v7043_v50, %v7042_v9 }
0x23da   : > { %8227 = vmatmul.mubr.msk.f32.gmra.mrb[156].mxu1 %vm1260_vm14, %v5850_v32 }
0x23db   : > { %v8751_v33 = vpop.eup %8750  ;;  %8229 = vmatprep.mubr.msk.f32.mxu1 %vm8836_vm4, %v8835_v1  ;;  %8547 = vmatpush3.bf16.msra.mxu1 %v8546_v14 }
0x23dc   : > { %v5852_v37 = vmul.f32 %v8751_v33, %v8745_v58  ;;  %v7050_v58 = vld [vmem:[%s10600_s12 + $0x88] sm:$0xff] }
0x23dd   : > { %v8549_v13 = vpack.c.bf16 %v7050_v58, %v7049_v15 }
0x23de   : > { %8230 = vmatmul.mubr.msk.f32.gmra.mrb[158].mxu1 %vm1260_vm14, %v5852_v37 }
0x23df   : > { %8251 = vmatprep.mubr.msk.f32.mxu1 %vm8836_vm4, %v8835_v1 }
0x24a9   : > { %v5931_v44 = vpop.f32.mrb[154].mxu1 }
0x24aa   : > { %v8225_v41 = vpop.f32.mrb[155].mxu1  ;;  %8235 = vmatmul.mubr.msk.f32.vlgmr.msra.gmra.mrb[140].mxu0 %vm1158_vm11, %v5931_v44  ;;  %v7038_v44 = vld [vmem:[%s10593_s5 + $0x6] ss:$0 sm:$0xff] }
0x24ab   : > { %8237 = vmatprep.mubr.msk.f32.mxu0 %vm8836_vm4, %v8835_v1  ;;  %8550 = vmatpush3.bf16.msra.mxu0 %v8549_v13 }
0x24ac   : > { %8551 = vmatprep.subr.bf16.mxu0 %v8837_v62 }
0x24ad   : > { %v5936_v21 = vpop.f32.mrb[156].mxu1 }
0x24ae   : > { %v8228_v23 = vpop.f32.mrb[157].mxu1  ;;  %8238 = vmatmul.mubr.msk.f32.gmra.mrb[142].mxu0 %vm1158_vm11, %v5936_v21  ;;  %v7039_v21 = vld [vmem:[%s10593_s5 + $0x7] ss:$0 sm:$0xff] }
0x24af   : > { %8240 = vmatprep.mubr.msk.f32.mxu0 %vm8836_vm4, %v8835_v1 }
0x24b1   : > { %v5941_v24 = vpop.f32.mrb[158].mxu1 }
0x24b2   : > { %v8231_v40 = vpop.f32.mrb[159].mxu1  ;;  %8241 = vmatmul.mubr.msk.f32.gmra.mrb[144].mxu0 %vm1158_vm11, %v5941_v24 }
0x24b3   : > { %8292 = vmatprep.mubr.msk.f32.mxu0 %vm8836_vm4, %v8835_v1 }
0x257d   : > { %v6022_v47 = vpop.f32.mrb[140].mxu0 }
0x257e   : > { %v6036_v52 = vadd.f32 %v6022_v47, %v10311_v55  ;;  %v8236_v54 = vpop.f32.mrb[141].mxu0 }
0x2580   : > { %v6039_v22 = vadd.f32 %v6036_v52, %v9774_v34 }
0x2581   : > { %v6027_v29 = vpop.f32.mrb[142].mxu0 }
0x2582   : > { %v10372_v57 = vadd.f32 %v7035_v56, %v6039_v22  ;;  %v6037_v25 = vadd.f32 %v6027_v29, %v10314_v36  ;;  %v8239_v59 = vpop.f32.mrb[143].mxu0 }
0x2583   : > { %v7051_v59 = vld [vmem:[%s10600_s12 + $0x90] sm:$0xff] }
0x2584   : > { %v6040_v53 = vadd.f32 %v6037_v25, %v9779_v17  ;;  %v6057_v61 = vsel %vm812_vm9, %v10372_v57, 0.0 }
0x2585   : > { %6058 = vadd.xlane.f32.xlu1 %v6057_v61  ;;  %v6032_v55 = vpop.f32.mrb[144].mxu0 }
0x2586   : > { %v10378_v39 = vadd.f32 %v7035_v56, %v6040_v53  ;;  %v6038_v43 = vadd.f32 %v6032_v55, %v10317_v38  ;;  %v8242_v28 = vpop.f32.mrb[145].mxu0  ;;  %v7052_v53 = vld [vmem:[%s10600_s12 + $0x98] sm:$0xff]  ;;  %v7053_v55 = vld [vmem:[%s10600_s12 + $0xa0] sm:$0xff] }
0x2587   : > { %v8552_v61 = vpack.c.bf16 %v7052_v53, %v7051_v59  ;;  %v7066_v53 = vld [vmem:[%s10601_s13 + $0x1] ss:$0 sm:$0xff] }
0x2588   : > { %v6041_v34 = vadd.f32 %v6038_v43, %v9784_v48  ;;  %v6060_v45 = vsel %vm812_vm9, %v10378_v39, 0.0  ;;  %v7054_v43 = vld [vmem:[%s10600_s12 + $0xa8] sm:$0xff] }
0x2589   : > { %6061 = vadd.xlane.f32.xlu0 %v6060_v45  ;;  %8553 = vmatpush3.bf16.msra.mxu0 %v8552_v61  ;;  %v8555_v28 = vpack.c.bf16 %v7054_v43, %v7053_v55  ;;  %v7056_v45 = vld [vmem:[%s10600_s12 + $0xb8] sm:$0xff] }
0x258a   : > { %v10384_v36 = vadd.f32 %v7035_v56, %v6041_v34  ;;  %8554 = vmatprep.subr.bf16.mxu0 %v8837_v62  ;;  %v7055_v34 = vld [vmem:[%s10600_s12 + $0xb0] sm:$0xff] }
0x258c   : > { %v6063_v17 = vsel %vm819_vm10, %v10384_v36, 0.0 }
0x258d   : > { %6064 = vadd.xlane.f32.xlu1 %v6063_v17  ;;  %8556 = vmatpush3.bf16.msra.mxu0 %v8555_v28  ;;  %v8558_v17 = vpack.c.bf16 %v7056_v45, %v7055_v34 }
0x258e   : > { %8557 = vmatprep.subr.bf16.mxu0 %v8837_v62 }
0x2591   : > { %8559 = vmatpush3.bf16.msra.mxu0 %v8558_v17 }
0x2592   : > { %8560 = vmatprep.subr.bf16.mxu0 %v8837_v62 }
0x2612   : > { %v6059_v35 = vpop.xlane.xlu1 %6058 }
0x2613   : > { %v6066_v63 = vmul.f32 0.03125, %v6059_v35  ;;  %v7057_v35 = vld [vmem:[%s10600_s12 + $0xc0] sm:$0xff] }
0x2615   : > { %v6069_v2 = vsub.f32 %v10372_v57, %v6066_v63  ;;  %v7058_v63 = vld [vmem:[%s10600_s12 + $0xc8] sm:$0xff] }
0x2616   : > { %v6062_v30 = vpop.xlane.xlu0 %6061 }
0x2617   : > { %v6067_v3 = vmul.f32 0.03125, %v6062_v30  ;;  %v6072_v38 = vmul.f32 %v6069_v2, %v6069_v2  ;;  %v7059_v30 = vld [vmem:[%s10600_s12 + $0xd0] sm:$0xff] }
0x2619   : > { %v6070_v4 = vsub.f32 %v10378_v39, %v6067_v3  ;;  %v6075_v48 = vsel %vm812_vm9, %v6072_v38, 0.0  ;;  %v7060_v3 = vld [vmem:[%s10600_s12 + $0xd8] sm:$0xff] }
0x261a   : > { %6076 = vadd.xlane.f32.xlu0 %v6075_v48  ;;  %v6065_v42 = vpop.xlane.xlu1 %6064  ;;  %v8564_v38 = vpack.c.bf16 %v7060_v3, %v7059_v30  ;;  %v7062_v48 = vld [vmem:[%s10600_s12 + $0xe8] sm:$0xff] }
0x261b   : > { %v6068_v49 = vmul.f32 0.03125, %v6065_v42  ;;  %v6073_v46 = vmul.f32 %v6070_v4, %v6070_v4 }
0x261d   : > { %v6071_v60 = vsub.f32 %v10384_v36, %v6068_v49  ;;  %v6078_v5 = vsel %vm812_vm9, %v6073_v46, 0.0  ;;  %v7063_v49 = vld [vmem:[%s10600_s12 + $0xf0] sm:$0xff]  ;;  %v7064_v46 = vld [vmem:[%s10600_s12 + $0xf8] sm:$0xff] }
0x261e   : > { %6079 = vadd.xlane.f32.xlu1 %v6078_v5  ;;  %v7045_v5 = vld [vmem:[%s10599_s11 + $0x1] ss:$0 sm:$0xff] }
0x261f   : > { %v6074_v10 = vmul.f32 %v6071_v60, %v6071_v60 }
0x2621   : > { %v6081_v51 = vsel %vm819_vm10, %v6074_v10, 0.0 }
0x2622   : > { %6082 = vadd.xlane.f32.xlu0 %v6081_v51 }
0x26a7   : > { %v6077_v18 = vpop.xlane.xlu0 %6076 }
0x26a8   : > { %v6084_v19 = vmul.f32 0.03125, %v6077_v18 }
0x26aa   : > { %v6087_v20 = vadd.f32 1e-05, %v6084_v19 }
0x26ab   : > { %v6080_v0 = vpop.xlane.xlu1 %6079 }
0x26ac   : > { %8752 = vrsqrt.f32 %v6087_v20  ;;  %v6085_v16 = vmul.f32 0.03125, %v6080_v0 }
0x26ae   : > { %v6088_v27 = vadd.f32 1e-05, %v6085_v16 }
0x26af   : > { %v6083_v31 = vpop.xlane.xlu0 %6082 }
0x26b0   : > { %8754 = vrsqrt.f32 %v6088_v27  ;;  %v6086_v32 = vmul.f32 0.03125, %v6083_v31 }
0x26b2   : > { %v6089_v33 = vadd.f32 1e-05, %v6086_v32 }
0x26b4   : > { %8756 = vrsqrt.f32 %v6089_v33 }
0x26b6   : > { %v8753_v37 = vpop.eup %8752 }
0x26b7   : > { %v6093_v41 = vmul.f32 %v8753_v37, %v6069_v2  ;;  %v8561_v2 = vpack.c.bf16 %v7058_v63, %v7057_v35 }
0x26b9   : > { %v6102_v23 = vmul.f32 %v7038_v44, %v6093_v41  ;;  %8562 = vmatpush3.bf16.msra.mxu0 %v8561_v2 }
0x26ba   : > { %v8755_v24 = vpop.eup %8754  ;;  %8563 = vmatprep.subr.bf16.mxu0 %v8837_v62 }
0x26bb   : > { %v6111_v40 = vadd.f32 %v7039_v21, %v6102_v23  ;;  %v6094_v47 = vmul.f32 %v8755_v24, %v6070_v4  ;;  %v7061_v4 = vld [vmem:[%s10600_s12 + $0xe0] sm:$0xff] }
0x26bc   : > { %v8567_v42 = vpack.c.bf16 %v7062_v48, %v7061_v4 }
0x26bd   : > { %8252 = vmatmul.mubr.msk.f32.vlgmr.msra.gmra.mrb[160].mxu1 %vm812_vm9, %v6111_v40  ;;  %v6103_v52 = vmul.f32 %v7038_v44, %v6094_v47  ;;  %8565 = vmatpush3.bf16.msra.mxu0 %v8564_v38 }
0x26be   : > { %v8757_v54 = vpop.eup %8756  ;;  %8254 = vmatprep.mubr.msk.f32.mxu1 %vm8836_vm4, %v8835_v1  ;;  %8566 = vmatprep.subr.bf16.mxu0 %v8837_v62 }
0x26bf   : > { %v6112_v56 = vadd.f32 %v7039_v21, %v6103_v52  ;;  %v6095_v22 = vmul.f32 %v8757_v54, %v6071_v60  ;;  %v8570_v60 = vpack.c.bf16 %v7064_v46, %v7063_v49 }
0x26c1   : > { %8255 = vmatmul.mubr.msk.f32.gmra.mrb[162].mxu1 %vm812_vm9, %v6112_v56  ;;  %v6104_v29 = vmul.f32 %v7038_v44, %v6095_v22  ;;  %8568 = vmatpush3.bf16.msra.mxu0 %v8567_v42 }
0x26c2   : > { %8257 = vmatprep.mubr.msk.f32.mxu1 %vm8836_vm4, %v8835_v1  ;;  %8569 = vmatprep.subr.bf16.mxu0 %v8837_v62 }
0x26c3   : > { %v6113_v25 = vadd.f32 %v7039_v21, %v6104_v29 }
0x26c5   : > { %8258 = vmatmul.mubr.msk.f32.gmra.mrb[164].mxu1 %vm812_vm9, %v6113_v25  ;;  %8571 = vmatpush3.bf16.msra.mxu0 %v8570_v60 }
0x2790   : > { %v6202_v10 = vpop.f32.mrb[160].mxu1 }
0x2791   : > { %v6203_v51 = vadd.f32 %v7045_v5, %v6202_v10  ;;  %v8253_v11 = vpop.f32.mrb[161].mxu1 }
0x2793   : > { %v6219_v12 = vmul.f32 0.044715, %v6203_v51  ;;  %v6216_v23 = vmul.f32 0.5, %v6203_v51 }
0x2794   : > { %v6207_v26 = vpop.f32.mrb[162].mxu1 }
0x2795   : > { %v6222_v9 = vmul.f32 %v6219_v12, %v6203_v51  ;;  %v6208_v50 = vadd.f32 %v7045_v5, %v6207_v26  ;;  %v8256_v14 = vpop.f32.mrb[163].mxu1 }
0x2796   : > { %v6412_v14 = vld [vmem:[%s10604_s16 + $0x8] sm:$0xff] }
0x2797   : > { %v6225_v15 = vmul.f32 %v6222_v9, %v6203_v51  ;;  %v6220_v58 = vmul.f32 0.044715, %v6208_v50  ;;  %v6217_v52 = vmul.f32 0.5, %v6208_v50 }
0x2798   : > { %v6212_v13 = vpop.f32.mrb[164].mxu1 }
0x2799   : > { %v6228_v18 = vadd.f32 %v6225_v15, %v6203_v51  ;;  %v6223_v19 = vmul.f32 %v6220_v58, %v6208_v50  ;;  %v6213_v20 = vadd.f32 %v7045_v5, %v6212_v13  ;;  %v8259_v62 = vpop.f32.mrb[165].mxu1  ;;  %v6413_v58 = vld [vmem:[%s10604_s16 + $0x10] sm:$0xff]  ;;  %v6414_v13 = vld [vmem:[%s10604_s16 + $0x18] sm:$0xff] }
0x279b   : > { %v6231_v0 = vmul.f32 0.7978846, %v6228_v18  ;;  %v6221_v16 = vmul.f32 0.044715, %v6213_v20  ;;  %v6226_v27 = vmul.f32 %v6223_v19, %v6208_v50  ;;  %v6218_v29 = vmul.f32 0.5, %v6213_v20 }
0x279c   : > { %v8576_v18 = vpack.c.bf16 %v6414_v13, %v6413_v58 }
0x279d   : > { %8758 = vtanh.f32 %v6231_v0  ;;  %v6224_v31 = vmul.f32 %v6221_v16, %v6213_v20  ;;  %v6229_v32 = vadd.f32 %v6226_v27, %v6208_v50  ;;  %v6411_v50 = vld [vmem:[%s10604_s16] sm:$0xff] }
0x279e   : > { %v8572_v15 = vpack.c.bf16 %v6412_v14, %v6411_v50 }
0x279f   : > { %v6232_v33 = vmul.f32 0.7978846, %v6229_v32  ;;  %v6227_v37 = vmul.f32 %v6224_v31, %v6213_v20 }
0x27a0   : > { %8573 = vmatprep.subr.bf16.mxu1 %v8572_v15 }
0x27a1   : > { %8760 = vtanh.f32 %v6232_v33  ;;  %v6230_v44 = vadd.f32 %v6227_v37, %v6213_v20  ;;  %8575 = vmatpush3.bf16.msra.mxu1 %v8572_v15 }
0x27a2   : > { %8577 = vmatprep.subr.bf16.mxu1 %v8576_v18 }
0x27a3   : > { %v6233_v41 = vmul.f32 0.7978846, %v6230_v44  ;;  %v7067_v44 = vld [vmem:[%s10602_s14] ss:$0 sm:$0xff] }
0x27a5   : > { %8762 = vtanh.f32 %v6233_v41  ;;  %8579 = vmatpush3.bf16.msra.mxu1 %v8576_v18 }
0x27a7   : > { %v8759_v21 = vpop.eup %8758 }
0x27a8   : > { %v6237_v24 = vadd.f32 1.0, %v8759_v21 }
0x27aa   : > { %v6240_v40 = vmul.f32 %v6237_v24, %v6216_v23  ;;  %v7068_v24 = vld [vmem:[%s10603_s15] ss:$0 sm:$0xff] }
0x27ab   : > { %v8761_v47 = vpop.eup %8760 }
0x27ac   : > { %8293 = vmatmul.mubr.f32.vlgmr.msra.gmra.mrb[146].mxu0 %v6240_v40  ;;  %v6238_v54 = vadd.f32 1.0, %v8761_v47 }
0x27ad   : > { %8295 = vmatprep.mubr.msk.f32.mxu0 %vm8836_vm4, %v8835_v1 }
0x27ae   : > { %v6241_v56 = vmul.f32 %v6238_v54, %v6217_v52 }
0x27af   : > { %v8763_v22 = vpop.eup %8762 }
0x27b0   : > { %8296 = vmatmul.mubr.f32.gmra.mrb[148].mxu0 %v6241_v56  ;;  %v6239_v25 = vadd.f32 1.0, %v8763_v22 }
0x27b1   : > { %8298 = vmatprep.mubr.msk.f32.mxu0 %vm8836_vm4, %v8835_v1 }
0x27b2   : > { %v6242_v59 = vmul.f32 %v6239_v25, %v6218_v29 }
0x27b4   : > { %8299 = vmatmul.mubr.f32.gmra.mrb[150].mxu0 %v6242_v59 }
0x287f   : > { %v6334_v61 = vpop.f32.mrb[146].mxu0 }
0x2880   : > { %v6335_v55 = vadd.f32 %v7066_v53, %v6334_v61  ;;  %v8294_v43 = vpop.f32.mrb[147].mxu0 }
0x2882   : > { %v6348_v28 = vadd.f32 %v6335_v55, %v10372_v57 }
0x2883   : > { %v6339_v34 = vpop.f32.mrb[148].mxu0 }
0x2884   : > { %v6340_v45 = vadd.f32 %v7066_v53, %v6339_v34  ;;  %v8297_v17 = vpop.f32.mrb[149].mxu0  ;;  %v6354_v35 = vsel %vm6353_vm0, %v6348_v28, 0.0  ;;  %v6531_v34 = vrot.slane %v9014_v8, 1 }
0x2885   : > { %6355 = vadd.xlane.f32.xlu1 %v6354_v35  ;;  %v7069_v17 = vld [vmem:[%s10605_s17] ss:$0 sm:$0xff] }
0x2886   : > { %v6349_v1 = vadd.f32 %v6340_v45, %v10378_v39 }
0x2887   : > { %v6344_v63 = vpop.f32.mrb[150].mxu0 }
0x2888   : > { %v6345_v2 = vadd.f32 %v7066_v53, %v6344_v63  ;;  %v8300_v30 = vpop.f32.mrb[151].mxu0  ;;  %v6357_v3 = vsel %vm812_vm9, %v6349_v1, 0.0  ;;  %v6513_v63 = vld [vmem:[%s645_s0] sm:$0xff] }
0x2889   : > { %6358 = vadd.xlane.f32.xlu0 %v6357_v3 }
0x288a   : > { %v6350_v38 = vadd.f32 %v6345_v2, %v10384_v36 }
0x288c   : > { %v6360_v4 = vsel %vm819_vm10, %v6350_v38, 0.0 }
0x288d   : > { %6361 = vadd.xlane.f32.xlu1 %v6360_v4 }
0x2912   : > { %v6356_v57 = vpop.xlane.xlu1 %6355 }
0x2913   : > { %v6363_v48 = vmul.f32 0.03125, %v6356_v57 }
0x2915   : > { %v6366_v42 = vsub.f32 %v6348_v28, %v6363_v48  ;;  %v6529_v28 = vrot.slane %v9011_v7, 1 }
0x2916   : > { %v6359_v49 = vpop.xlane.xlu0 %6358 }
0x2917   : > { %v6364_v46 = vmul.f32 0.03125, %v6359_v49  ;;  %v6369_v60 = vmul.f32 %v6366_v42, %v6366_v42  ;;  %v10519_v45 = vsel %vm6425_vm1, %v6529_v28, %v6531_v34 }
0x2919   : > { %v6367_v5 = vsub.f32 %v6349_v1, %v6364_v46  ;;  %v6372_v39 = vsel %vm6353_vm0, %v6369_v60, 0.0  ;;  %v6514_v1 = vld [vmem:[%s645_s0 + $0x8] sm:$0xff] }
0x291a   : > { %6373 = vadd.xlane.f32.xlu0 %v6372_v39  ;;  %v6362_v10 = vpop.xlane.xlu1 %6361 }
0x291b   : > { %v6365_v51 = vmul.f32 0.03125, %v6362_v10  ;;  %v6370_v11 = vmul.f32 %v6367_v5, %v6367_v5 }
0x291d   : > { %v6368_v12 = vsub.f32 %v6350_v38, %v6365_v51  ;;  %v6375_v26 = vsel %vm812_vm9, %v6370_v11, 0.0 }
0x291e   : > { %6376 = vadd.xlane.f32.xlu1 %v6375_v26 }
0x291f   : > { %v6371_v36 = vmul.f32 %v6368_v12, %v6368_v12 }
0x2921   : > { %v6378_v9 = vsel %vm819_vm10, %v6371_v36, 0.0 }
0x2922   : > { %6379 = vadd.xlane.f32.xlu0 %v6378_v9 }
0x29a7   : > { %v6374_v19 = vpop.xlane.xlu0 %6373 }
0x29a8   : > { %v6381_v20 = vmul.f32 0.03125, %v6374_v19 }
0x29aa   : > { %v6384_v62 = vadd.f32 1e-05, %v6381_v20 }
0x29ab   : > { %v6377_v0 = vpop.xlane.xlu1 %6376 }
0x29ac   : > { %8764 = vrsqrt.f32 %v6384_v62  ;;  %v6382_v16 = vmul.f32 0.03125, %v6377_v0 }
0x29ae   : > { %v6385_v27 = vadd.f32 1e-05, %v6382_v16 }
0x29af   : > { %v6380_v31 = vpop.xlane.xlu0 %6379 }
0x29b0   : > { %8766 = vrsqrt.f32 %v6385_v27  ;;  %v6383_v32 = vmul.f32 0.03125, %v6380_v31 }
0x29b2   : > { %v6386_v33 = vadd.f32 1e-05, %v6383_v32 }
0x29b4   : > { %8768 = vrsqrt.f32 %v6386_v33 }
0x29b6   : > { %v8765_v37 = vpop.eup %8764 }
0x29b7   : > { %v6390_v41 = vmul.f32 %v8765_v37, %v6366_v42  ;;  %v6528_v42 = vrot.slane %v9003_v6, 1 }
0x29b9   : > { %v6399_v21 = vmul.f32 %v7067_v44, %v6390_v41  ;;  %v6530_v49 = vsel %vm6425_vm1, %v6528_v42, %v6529_v28 }
0x29ba   : > { %v8767_v23 = vpop.eup %8766 }
0x29bb   : > { %v6391_v40 = vmul.f32 %v8767_v23, %v6367_v5  ;;  %v6408_v52 = vadd.f32 %v7068_v24, %v6399_v21 }
0x29bd   : > { %v6400_v47 = vmul.f32 %v7067_v44, %v6391_v40  ;;  %v6426_v25 = vrot.slane %v6408_v52, 1 }
0x29be   : > { %v8769_v54 = vpop.eup %8768 }
0x29bf   : > { %v6392_v56 = vmul.f32 %v8769_v54, %v6368_v12  ;;  %v6409_v22 = vadd.f32 %v7068_v24, %v6400_v47 }
0x29c1   : > { %v6401_v29 = vmul.f32 %v7067_v44, %v6392_v56  ;;  %v6427_v59 = vrot.slane %v6409_v22, 1 }
0x29c3   : > { %v6410_v53 = vadd.f32 %v7068_v24, %v6401_v29  ;;  %v6428_v61 = vsel %vm6425_vm1, %v6426_v25, %v6427_v59 }
0x29c4   : > { %8309 = vmatprep.mubr.msk.f32.mxu1 %vm812_vm9, %v6428_v61 }
0x29c5   : > { %v6429_v55 = vrot.slane %v6410_v53, 1 }
0x29c7   : > { %v6430_v43 = vsel %vm6425_vm1, %v6427_v59, %v6429_v55 }
0x29c8   : > { %8310 = vmatmul.mubr.msk.f32.vlgmr.msra.gmra.mrb[166].mxu1 %vm812_vm9, %v6430_v43 }
0x2a9b   : > { %v8311_v35 = vpop.f32.mrb[166].mxu1 }
0x2a9c   : > { %v6507_v7 = vadd.f32 %v8311_v35, %v7069_v17  ;;  %v6501_v8 = vpop.f32.mrb[167].mxu1 }
0x2a9d   : > { %v6502_v2 = vadd.f32 %v7069_v17, %v6501_v8 }
0x2a9e   : > { %v6516_v30 = vsub.f32 %v6507_v7, %v6514_v1  ;;  %6512 = vst.msk [vmem:[%s624_s26 + $0x8] sm:$0xff] %vm6510_vm2, %v6507_v7 }
0x2a9f   : > { %v6515_v3 = vsub.f32 %v6502_v2, %v6513_v63  ;;  %6511 = vst.msk [vmem:[%s624_s26] sm:$0xff] %vm6510_vm2, %v6502_v2  ;;  %s8776_s26 = scalar_lea.vmem %s8775_s1, 512 }
0x2aa0   : > { %v6518_v38 = vmul.f32 %v6516_v30, %v6516_v30  ;;  %p8778_p1 = scmp.lt.s32.totalorder %s8776_s26, %s8770_s25 }
0x2aa1   : > { %v6517_v4 = vmul.f32 %v6515_v3, %v6515_v3 }
0x2aa2   : > { %v6522_v57 = vsel %vm6510_vm2, %v6518_v38, 0.0  ;;  %p8779_p2 = por %p8778_p1, %p8777_p0 }
0x2aa3   : > { %6523 = vadd.xlane.f32.xlu0 %v6522_v57  ;;  %v6519_v48 = vsel %vm6510_vm2, %v6517_v4, 0.0 }
0x2aa4   : > { %6520 = vadd.xlane.f32.xlu1 %v6519_v48  ;;  %p8780_p3 = pnand %p8779_p2, %p8773_p13 }
0x2aa6   : > { %8783 = shalt.err (!%p8780_p3)
}
0x2aa7   : > { %s8784_s29 = scalar_lea.hbm %s10537_s20, 256  ;;  %s8788_s28 = scalar_lea.hbm %s10606_s18, 512 }
0x2aa8   : > { %p8785_p4 = scmp.ne.s32.totalorder %s10537_s20, %s8784_s29  ;;  %p8789_p9 = scmp.lt.u32.totalorder %s10537_s20, %s10606_s18 }
0x2aa9   : > { %p8790_p10 = scmp.lt.u32.totalorder %s8788_s28, %s8784_s29  ;;  %p8792_p12 = scmp.lt.u32.totalorder %s8784_s29, %s10537_s20 }
0x2aaa   : > { %p8786_p7 = pnand %p8785_p4, %p8979_p5 }
0x2aab   : > { %p8791_p11 = por %p8790_p10, %p8789_p9 }
0x2aac   : > { %p8787_p8 = pneg %p8786_p7 }
0x2aad   : > { %p8793_p13 = por %p8792_p12, %p8791_p11 }
0x2aaf   : > { %p8794_p0 = pnand %p8793_p13, %p8787_p8 }
0x2ab1   : > { %8797 = shalt.err (!%p8794_p0)
}
0x2ab2   : > { %s8839_s25 = smov 128   ;;  %s8840_s26 = smov 8   ;;  %vm6537_vm3 = vcmask 7168  }
0x2ab3   : > { %8585 = dma.vmem_to_hbm [thread:$0]  (%p8979_p5), %s10539_s23, 256, %s10537_s20, %s10541_s2, %s8839_s25, %s8839_s25, %s8840_s26  }
0x2ab4   : > { %s10631_s22 = sshll.u32 %s8991_s27, 4 }
0x2ab5   : > { %s650_s29 = scalar_lea.vmem %s10607_s19, %s10631_s22 }
0x2b30   : > { %v6524_v6 = vpop.xlane.xlu0 %6523 }
0x2b31   : > { %v6527_v46 = vmul.f32 0.020833334, %v6524_v6  ;;  %v6521_v60 = vpop.xlane.xlu1 %6520 }
0x2b32   : > { %v6526_v5 = vmul.f32 0.020833334, %v6521_v60 }
0x2b33   : > { %v6536_v39 = vmul.f32 %v10519_v45, %v6527_v46 }
0x2b34   : > { %v6535_v10 = vmul.f32 %v6530_v49, %v6526_v5 }
0x2b35   : > { %6539 = vst.msk [vmem:[%s650_s29 + $0x8] sm:$0xff] %vm6537_vm3, %v6536_v39 }
0x2b36   : > { %6538 = vst.msk [vmem:[%s650_s29] sm:$0xff] %vm6537_vm3, %v6535_v10 }
0x2b37 PF: > { %s10632_s0 = sld [smem:[#allocation5_spill]]  ;;  %p8591_p5 = scmp.ge.s32.totalorder %s8832_s21, 2 }
0x2b39   : > { %p8588_p1 = pnand %p8591_p5, %p8983_p6 }
0x2b3d   : > { %s6577_s23 = sand.u32 1, %s10632_s0  }
0x2b3e   : > { %s6578_s27 = scalar_lea.sflag [#allocation3], %s6577_s23 }
0x2b3f   : > { %8815 = dma.done.wait (!%p8588_p1), %s6578_s27, 256  }
0x2b40   : > { %8817 = vsyncadd (!%p8588_p1), %s6578_s27, 4294967040  ;;  %s10634_s21 = sld [smem:[#allocation7_spill]]  ;;  %s10635_s20 = sld [smem:[#allocation6_spill]] }
0x2b41   : > { %s10636_s2 = sld [smem:[#allocation8_spill]]  ;;  %s10637_s0 = smov %s8824_s30 }
0x2b46   : > { %p30_p2 = scmp.ge.s32.totalorder %s10634_s21, 4   ;;  %s10638_s30 = smov %s10635_s20 }
0x2b47   : > { %s10639_s20 = smov %s10636_s2 }
0x2b48   :  { %32 = sbr.rel (!%p30_p2) target bundleno = 8 (0x8), region = 210 }
0x2b4f   :  { %6591 = vsyncpa [#allocation3], 1 }
0x2b50   :  { %6593 = vsyncpa [#allocation3 + $0x1], 1 }

</bundles_post_ra>
